<compile_context>
chip_gen: v5e
topology: v5e:2x2
jax: 0.10.0
libtpu: 0.0.40
codegen_flags: <defaults>
</compile_context>

<pallas_src>
import jax
import jax.numpy as jnp
from jax import lax
from jax.experimental import pallas as pl
from jax.experimental.pallas import tpu as pltpu

_LANE = 128


def _round_up(x, m):
    return ((x + m - 1) // m) * m


def _pick_tm(H, rowp, target_rows=256):
    """Rows per M-chunk: a whole number of image rows, <= ~target_rows, dividing H*rowp."""
    kr = max(1, min(H, target_rows // rowp))
    while kr > 1 and H % kr != 0:
        kr -= 1
    return kr * rowp


def _vmem_limit_bytes():
    cap = 64 * 1024 * 1024                      # conservative default (v7x-sized)
    try:
        cap = int(pltpu.get_tpu_info().vmem_capacity_bytes)
    except Exception:
        pass
    # ~3/4 of physical VMEM: ~96 MiB on v5e/v6e (128 MiB), ~48 MiB on v7x (64 MiB).
    return min((cap * 3) // 4, 112 * 1024 * 1024)


# ----------------------------- Pallas kernel --------------------------------
def _make_fused_kernel(H, W, Cp, rowp, TM):
    M1 = H * rowp                # flat output rows per image (cols x >= W are junk)
    Lw = (H + 2) * rowp          # widened-LHS rows
    Lin = Lw + 2                 # flat padded image rows (+2 guard rows)
    n_chunks = M1 // TM
    kr = TM // rowp              # image rows per M-chunk
    WB = 512                     # row block for the widened-LHS build copies

    def build_widened(src_ref, wide_ref):
        # wide[i, dc*Cp:(dc+1)*Cp] = src[i + dc], dc in {0, 1, 2}
        for s in range(0, Lw, WB):
            n = min(WB, Lw - s)
            wide_ref[s:s + n, 0:Cp] = src_ref[s:s + n, :]
            wide_ref[s:s + n, Cp:2 * Cp] = src_ref[s + 1:s + 1 + n, :]
            wide_ref[s:s + n, 2 * Cp:3 * Cp] = src_ref[s + 2:s + 2 + n, :]

    def kernel(x_ref, w1_ref, b1_ref, w2_ref, b2_ref, o_ref, h1_ref, wide_ref):
        # x_ref   : (Lin, Cp)      flat 1-padded input image (+2 guard rows)
        # w1_ref  : (3, 3*Cp, Cp)  conv1 row-tap weights (BN1 scale folded in)
        # b1_ref  : (1, Cp)        BN1 folded bias (f32)
        # w2_ref  : (3, 3*Cp, Cp)  conv2 row-tap weights (BN2 scale folded in)
        # b2_ref  : (1, Cp)        BN2 folded bias (f32)
        # o_ref   : (M1, Cp)       output in the flat (H, rowp) layout
        # h1_ref  : (Lin, Cp)      VMEM scratch: zero-bordered conv1 output
        # wide_ref: (Lw, 3*Cp)     VMEM scratch: widened (K-collapsed) LHS

        # Zero only h1's never-rewritten border rows (top border + row-1 left
        # border, and the bottom border + guard rows).  Interior rows are fully
        # rewritten below.  Done every step -> correct under megacore sharding.
        h1_ref[0:rowp + 8, :] = jnp.zeros((rowp + 8, Cp), h1_ref.dtype)
        h1_ref[(H + 1) * rowp:Lin, :] = jnp.zeros((Lin - (H + 1) * rowp, Cp),
                                                  h1_ref.dtype)

        # Valid-column mask for one chunk (every chunk starts on an image-row
        # boundary, so the pattern repeats): 1.0 where x < W, 0.0 for junk cols.
        col = lax.broadcasted_iota(jnp.int32, (rowp, 1), 0)
        validf = jnp.tile((col < W).astype(jnp.float32), (kr, 1))   # (TM, 1)

        # ---- conv1 (+ folded BN1) -> ReLU -> masked -> h1 interior ----
        build_widened(x_ref, wide_ref)
        for c in range(n_chunks):
            m0 = c * TM
            acc = jnp.zeros((TM, Cp), jnp.float32)
            for dr in range(3):
                base = m0 + dr * rowp                       # 8-aligned static offset
                acc = acc + jnp.dot(wide_ref[base:base + TM, :], w1_ref[dr],
                                    preferred_element_type=jnp.float32)
            h1 = jnp.maximum(acc + b1_ref[...], 0.0) * validf
            h1_ref[rowp + 1 + m0:rowp + 1 + m0 + TM, :] = h1.astype(h1_ref.dtype)

        # ---- conv2 (+ folded BN2) -> + residual -> ReLU -> output ----
        build_widened(h1_ref, wide_ref)
        for c in range(n_chunks):
            m0 = c * TM
            acc = jnp.zeros((TM, Cp), jnp.float32)
            for dr in range(3):
                base = m0 + dr * rowp
                acc = acc + jnp.dot(wide_ref[base:base + TM, :], w2_ref[dr],
                                    preferred_element_type=jnp.float32)
            # residual = original x, read from the resident padded-x block
            res = x_ref[rowp + 1 + m0:rowp + 1 + m0 + TM, :].astype(jnp.float32)
            out = jnp.maximum(acc + b2_ref[...] + res, 0.0)     # f32 epilogue
            o_ref[m0:m0 + TM, :] = out.astype(o_ref.dtype)

    return kernel


# ------------------------------ wrapper --------------------------------------
def _fold_bn(gamma, beta, mean, var, eps=1e-5):
    scale = gamma / jnp.sqrt(var + eps)
    return scale, beta - mean * scale


def basic_block_forward(x_nchw, p, *, compute_dtype=jnp.bfloat16, out_dtype=None,
                        eps=1e-5):
    """BasicBlock: conv3x3 -> BN -> ReLU -> conv3x3 -> BN -> +x -> ReLU.

    stride=1, downsample=None (inplanes == planes), BatchNorm in eval mode.
    """
    out_dtype = out_dtype if out_dtype is not None else compute_dtype
    N, C, H, W = x_nchw.shape
    planes = p["w1"].shape[0]
    assert planes == C and p["w2"].shape[0] == planes, "expects inplanes == planes"

    rowp = _round_up(W + 2, 8)          # padded row width, 8-sublane aligned
    M1 = H * rowp                       # flat output rows (junk cols x >= W)
    Lw = (H + 2) * rowp                 # widened-LHS rows
    Lin = Lw + 2                        # flat padded image rows (+2 guard rows)
    Cp = _round_up(max(C, 1), _LANE)    # lane-dense channel padding
    K = 3 * Cp
    TM = _pick_tm(H, rowp)

    x_nhwc = jnp.transpose(x_nchw, (0, 2, 3, 1)).astype(jnp.float32)

    # flat 1-padded input (+ extra right columns to reach rowp, channel pad,
    # + 2 zero guard rows); activations are read from HBM exactly once.
    xp = jnp.pad(x_nhwc, ((0, 0), (1, 1), (1, rowp - W - 1), (0, Cp - C)))
    x_flat = jnp.pad(xp.reshape(N, (H + 2) * rowp, Cp),
                     ((0, 0), (0, 2), (0, 0))).astype(compute_dtype)

    # BN-scale-folded row-tap weights (3, 3*Cp, Cp) and f32 biases (1, Cp)
    def prep(w_oihw, gamma, beta, mean, var):
        scale, bias = _fold_bn(gamma, beta, mean, var, eps)
        w = jnp.transpose(w_oihw, (2, 3, 1, 0)) * scale          # (3, 3, Cin, Cout)
        w = jnp.pad(w, ((0, 0), (0, 0), (0, Cp - C), (0, Cp - planes)))
        w = w.reshape(3, K, Cp)                                  # k = dc*Cp + ci
        b = jnp.pad(bias, (0, Cp - planes)).reshape(1, Cp).astype(jnp.float32)
        return w.astype(compute_dtype), b

    w1m, b1v = prep(p["w1"], p["g1"], p["be1"], p["m1"], p["v1"])
    w2m, b2v = prep(p["w2"], p["g2"], p["be2"], p["m2"], p["v2"])

    kernel = _make_fused_kernel(H, W, Cp, rowp, TM)

    out_flat = pl.pallas_call(
        kernel,
        out_shape=jax.ShapeDtypeStruct((N, M1, Cp), out_dtype),
        grid_spec=pltpu.PrefetchScalarGridSpec(
            num_scalar_prefetch=0,
            grid=(N,),                                            # one image / step
            in_specs=[
                pl.BlockSpec((None, Lin, Cp), lambda n: (n, 0, 0)),  # padded x
                pl.BlockSpec((3, K, Cp), lambda n: (0, 0, 0)),       # w1 (folded)
                pl.BlockSpec((1, Cp), lambda n: (0, 0)),             # bn1 bias
                pl.BlockSpec((3, K, Cp), lambda n: (0, 0, 0)),       # w2 (folded)
                pl.BlockSpec((1, Cp), lambda n: (0, 0)),             # bn2 bias
            ],
            out_specs=pl.BlockSpec((None, M1, Cp), lambda n: (n, 0, 0)),
            scratch_shapes=[pltpu.VMEM((Lin, Cp), compute_dtype),     # h1 (VMEM only)
                            pltpu.VMEM((Lw, K), compute_dtype)],      # widened LHS
        ),
        compiler_params=pltpu.CompilerParams(
            dimension_semantics=("parallel",),     # images shard across TCs (v7x)
            vmem_limit_bytes=_vmem_limit_bytes(),
        ),
    )(x_flat, w1m, b1v, w2m, b2v)

    out = out_flat.reshape(N, H, rowp, Cp)[:, :, :W, :C]          # drop junk + pad
    return jnp.transpose(out, (0, 3, 1, 2)).astype(x_nchw.dtype)


# ------------------------------ reference (JAX) ------------------------------
def _reference_forward(x, p, eps=1e-5):
    def conv(x, w):
        return lax.conv_general_dilated(
            x, w, window_strides=(1, 1), padding=((1, 1), (1, 1)),
            dimension_numbers=("NCHW", "OIHW", "NCHW"))

    def bn(x, g, b, m, v):
        r = lambda a: a.reshape(1, -1, 1, 1)
        return (x - r(m)) / jnp.sqrt(r(v) + eps) * r(g) + r(b)

    out = jax.nn.relu(bn(conv(x, p["w1"]), p["g1"], p["be1"], p["m1"], p["v1"]))
    out = bn(conv(out, p["w2"]), p["g2"], p["be2"], p["m2"], p["v2"])
    return jax.nn.relu(out + x)


# ---------------------------------- main -------------------------------------
if __name__ == "__main__":
    key = jax.random.PRNGKey(0)
    (k_x, k_w1, k_w2, k_g1, k_b1, k_g2, k_b2,
     k_m1, k_v1, k_m2, k_v2) = jax.random.split(key, 11)

    N, C, H, W = 2, 4, 16, 16        # inplanes == planes == 4, stride = 1
    planes = C

    x = jax.random.normal(k_x, (N, C, H, W), jnp.float32)

    params = {
        "w1": 0.2 * jax.random.normal(k_w1, (planes, C, 3, 3), jnp.float32),
        "w2": 0.2 * jax.random.normal(k_w2, (planes, planes, 3, 3), jnp.float32),
        "g1": 1.0 + 0.1 * jax.random.normal(k_g1, (planes,), jnp.float32),
        "be1": 0.1 * jax.random.normal(k_b1, (planes,), jnp.float32),
        "g2": 1.0 + 0.1 * jax.random.normal(k_g2, (planes,), jnp.float32),
        "be2": 0.1 * jax.random.normal(k_b2, (planes,), jnp.float32),
        "m1": 0.05 * jax.random.normal(k_m1, (planes,), jnp.float32),
        "v1": 1.0 + 0.1 * jnp.abs(jax.random.normal(k_v1, (planes,), jnp.float32)),
        "m2": 0.05 * jax.random.normal(k_m2, (planes,), jnp.float32),
        "v2": 1.0 + 0.1 * jnp.abs(jax.random.normal(k_v2, (planes,), jnp.float32)),
    }

    ref = jax.block_until_ready(_reference_forward(x, params))

    # 1) f32 compute path: verifies the fused-kernel math (tight-ish tolerance).
    out_f32 = jax.block_until_ready(
        basic_block_forward(x, params, compute_dtype=jnp.float32))
    assert out_f32.shape == (N, C, H, W)
    assert jnp.allclose(out_f32, ref, atol=2e-2, rtol=2e-2), "f32 path mismatch"

    # 2) bf16 compute path (the optimized default): bf16-appropriate tolerance.
    out_bf16 = jax.block_until_ready(
        basic_block_forward(x, params, compute_dtype=jnp.bfloat16))
    assert out_bf16.shape == (N, C, H, W)
    assert jnp.allclose(out_bf16, ref, atol=1.5e-1, rtol=1e-1), "bf16 path mismatch"

    print("KERNEL_OK")
</pallas_src>

<mosaic_0001>
module attributes {stable_mosaic.version = 11 : i64} {
  func.func @kernel(%arg0: i32, %arg1: memref<1x434x128xf32, #tpu.memory_space<vmem>>, %arg2: memref<3x384x128xf32, #tpu.memory_space<vmem>>, %arg3: memref<1x128xf32, #tpu.memory_space<vmem>>, %arg4: memref<3x384x128xf32, #tpu.memory_space<vmem>>, %arg5: memref<1x128xf32, #tpu.memory_space<vmem>>, %arg6: memref<1x384x128xf32, #tpu.memory_space<vmem>>, %arg7: memref<434x128xf32, #tpu.memory_space<vmem>>, %arg8: memref<432x384xf32, #tpu.memory_space<vmem>>) attributes {dimension_semantics = [#tpu.dimension_semantics<parallel>], iteration_bounds = array<i64: 2>, scalar_prefetch = 0 : i64, scratch_operands = 2 : i64, tpu.core_type = #tpu.core_type<tc>, window_params = [{transform_indices = @transform_0, window_bounds = array<i64: 1, 434, 128>}, {pipeline_mode = #tpu.pipeline_mode<synchronous>, transform_indices = @transform_1, window_bounds = array<i64: 3, 384, 128>}, {pipeline_mode = #tpu.pipeline_mode<synchronous>, transform_indices = @transform_2, window_bounds = array<i64: 1, 128>}, {pipeline_mode = #tpu.pipeline_mode<synchronous>, transform_indices = @transform_3, window_bounds = array<i64: 3, 384, 128>}, {pipeline_mode = #tpu.pipeline_mode<synchronous>, transform_indices = @transform_4, window_bounds = array<i64: 1, 128>}, {transform_indices = @transform_5, window_bounds = array<i64: 1, 384, 128>}]} {
    %cst = arith.constant 0.000000e+00 : f32
    %0 = vector.broadcast %cst : f32 to vector<32x128xf32>
    %c0 = arith.constant 0 : index
    %c0_0 = arith.constant 0 : index
    %1 = vector.load %arg7[%c0, %c0_0] : memref<434x128xf32, #tpu.memory_space<vmem>>, vector<32x128xf32>
    tpu.vector_store %arg7[%c0, %c0_0], %0 {strides = array<i32>} : memref<434x128xf32, #tpu.memory_space<vmem>>, vector<32x128xf32>,
    %cst_1 = arith.constant 0.000000e+00 : f32
    %2 = vector.broadcast %cst_1 : f32 to vector<26x128xf32>
    %c408 = arith.constant 408 : index
    %c0_2 = arith.constant 0 : index
    %3 = vector.load %arg7[%c408, %c0_2] : memref<434x128xf32, #tpu.memory_space<vmem>>, vector<26x128xf32>
    tpu.vector_store %arg7[%c408, %c0_2], %2 {strides = array<i32>} : memref<434x128xf32, #tpu.memory_space<vmem>>, vector<26x128xf32>,
    %4 = tpu.iota {dimensions = array<i32: 0>} : vector<24x1xi32>
    %c16_i32 = arith.constant 16 : i32
    %5 = vector.broadcast %c16_i32 : i32 to vector<24x1xi32>
    %6 = arith.cmpi slt, %4, %5 : vector<24x1xi32>
    %7 = arith.extui %6 : vector<24x1xi1> to vector<24x1xi32>
    %8 = arith.sitofp %7 : vector<24x1xi32> to vector<24x1xf32>
    %9 = tpu.concatenate %8, %8, %8, %8, %8, %8, %8, %8 in 0 : vector<24x1xf32>, vector<24x1xf32>, vector<24x1xf32>, vector<24x1xf32>, vector<24x1xf32>, vector<24x1xf32>, vector<24x1xf32>, vector<24x1xf32> -> vector<192x1xf32>
    %c0_3 = arith.constant 0 : index
    %c0_4 = arith.constant 0 : index
    %c0_5 = arith.constant 0 : index
    %10 = vector.load %arg1[%c0_3, %c0_4, %c0_5] : memref<1x434x128xf32, #tpu.memory_space<vmem>>, vector<1x432x128xf32>
    %11 = vector.shape_cast %10 : vector<1x432x128xf32> to vector<432x128xf32>
    %c0_6 = arith.constant 0 : index
    %c0_7 = arith.constant 0 : index
    %12 = vector.load %arg8[%c0_6, %c0_7] : memref<432x384xf32, #tpu.memory_space<vmem>>, vector<432x128xf32>
    tpu.vector_store %arg8[%c0_6, %c0_7], %11 {strides = array<i32>} : memref<432x384xf32, #tpu.memory_space<vmem>>, vector<432x128xf32>,
    %c0_8 = arith.constant 0 : index
    %c1 = arith.constant 1 : index
    %c0_9 = arith.constant 0 : index
    %13 = vector.load %arg1[%c0_8, %c1, %c0_9] : memref<1x434x128xf32, #tpu.memory_space<vmem>>, vector<1x432x128xf32>
    %14 = vector.shape_cast %13 : vector<1x432x128xf32> to vector<432x128xf32>
    %c0_10 = arith.constant 0 : index
    %c128 = arith.constant 128 : index
    %15 = vector.load %arg8[%c0_10, %c128] : memref<432x384xf32, #tpu.memory_space<vmem>>, vector<432x128xf32>
    tpu.vector_store %arg8[%c0_10, %c128], %14 {strides = array<i32>} : memref<432x384xf32, #tpu.memory_space<vmem>>, vector<432x128xf32>,
    %c0_11 = arith.constant 0 : index
    %c2 = arith.constant 2 : index
    %c0_12 = arith.constant 0 : index
    %16 = vector.load %arg1[%c0_11, %c2, %c0_12] : memref<1x434x128xf32, #tpu.memory_space<vmem>>, vector<1x432x128xf32>
    %17 = vector.shape_cast %16 : vector<1x432x128xf32> to vector<432x128xf32>
    %c0_13 = arith.constant 0 : index
    %c256 = arith.constant 256 : index
    %18 = vector.load %arg8[%c0_13, %c256] : memref<432x384xf32, #tpu.memory_space<vmem>>, vector<432x128xf32>
    tpu.vector_store %arg8[%c0_13, %c256], %17 {strides = array<i32>} : memref<432x384xf32, #tpu.memory_space<vmem>>, vector<432x128xf32>,
    %cst_14 = arith.constant 0.000000e+00 : f32
    %19 = vector.broadcast %cst_14 : f32 to vector<192x128xf32>
    %c0_15 = arith.constant 0 : index
    %c0_16 = arith.constant 0 : index
    %20 = vector.load %arg8[%c0_15, %c0_16] : memref<432x384xf32, #tpu.memory_space<vmem>>, vector<192x384xf32>
    %c0_17 = arith.constant 0 : index
    %c0_18 = arith.constant 0 : index
    %c0_19 = arith.constant 0 : index
    %21 = vector.load %arg2[%c0_17, %c0_18, %c0_19] : memref<3x384x128xf32, #tpu.memory_space<vmem>>, vector<1x384x128xf32>
    %22 = vector.shape_cast %21 : vector<1x384x128xf32> to vector<384x128xf32>
    %cst_20 = arith.constant dense<0.000000e+00> : vector<192x128xf32>
    %23 = tpu.matmul %20, %22, %cst_20 {dimension_numbers = #tpu.dot_dimension_numbers<[1], [0], [0], [1], [0, 0, 1, 1], [], []>} : vector<192x384xf32>, vector<384x128xf32>, vector<192x128xf32> -> vector<192x128xf32>
    %24 = arith.addf %19, %23 : vector<192x128xf32>
    %c24 = arith.constant 24 : index
    %c0_21 = arith.constant 0 : index
    %25 = vector.load %arg8[%c24, %c0_21] : memref<432x384xf32, #tpu.memory_space<vmem>>, vector<192x384xf32>
    %c1_22 = arith.constant 1 : index
    %c0_23 = arith.constant 0 : index
    %c0_24 = arith.constant 0 : index
    %26 = vector.load %arg2[%c1_22, %c0_23, %c0_24] : memref<3x384x128xf32, #tpu.memory_space<vmem>>, vector<1x384x128xf32>
    %27 = vector.shape_cast %26 : vector<1x384x128xf32> to vector<384x128xf32>
    %cst_25 = arith.constant dense<0.000000e+00> : vector<192x128xf32>
    %28 = tpu.matmul %25, %27, %cst_25 {dimension_numbers = #tpu.dot_dimension_numbers<[1], [0], [0], [1], [0, 0, 1, 1], [], []>} : vector<192x384xf32>, vector<384x128xf32>, vector<192x128xf32> -> vector<192x128xf32>
    %29 = arith.addf %24, %28 : vector<192x128xf32>
    %c48 = arith.constant 48 : index
    %c0_26 = arith.constant 0 : index
    %30 = vector.load %arg8[%c48, %c0_26] : memref<432x384xf32, #tpu.memory_space<vmem>>, vector<192x384xf32>
    %c2_27 = arith.constant 2 : index
    %c0_28 = arith.constant 0 : index
    %c0_29 = arith.constant 0 : index
    %31 = vector.load %arg2[%c2_27, %c0_28, %c0_29] : memref<3x384x128xf32, #tpu.memory_space<vmem>>, vector<1x384x128xf32>
    %32 = vector.shape_cast %31 : vector<1x384x128xf32> to vector<384x128xf32>
    %cst_30 = arith.constant dense<0.000000e+00> : vector<192x128xf32>
    %33 = tpu.matmul %30, %32, %cst_30 {dimension_numbers = #tpu.dot_dimension_numbers<[1], [0], [0], [1], [0, 0, 1, 1], [], []>} : vector<192x384xf32>, vector<384x128xf32>, vector<192x128xf32> -> vector<192x128xf32>
    %34 = arith.addf %29, %33 : vector<192x128xf32>
    %c0_31 = arith.constant 0 : index
    %c0_32 = arith.constant 0 : index
    %35 = vector.load %arg3[%c0_31, %c0_32] : memref<1x128xf32, #tpu.memory_space<vmem>>, vector<1x128xf32>
    %36 = vector.broadcast %35 : vector<1x128xf32> to vector<192x128xf32>
    %37 = arith.addf %34, %36 : vector<192x128xf32>
    %cst_33 = arith.constant 0.000000e+00 : f32
    %38 = vector.broadcast %cst_33 : f32 to vector<192x128xf32>
    %39 = arith.maximumf %37, %38 : vector<192x128xf32>
    %40 = vector.broadcast %9 : vector<192x1xf32> to vector<192x128xf32>
    %41 = arith.mulf %39, %40 : vector<192x128xf32>
    %c25 = arith.constant 25 : index
    %c0_34 = arith.constant 0 : index
    %42 = vector.load %arg7[%c25, %c0_34] : memref<434x128xf32, #tpu.memory_space<vmem>>, vector<192x128xf32>
    tpu.vector_store %arg7[%c25, %c0_34], %41 {strides = array<i32>} : memref<434x128xf32, #tpu.memory_space<vmem>>, vector<192x128xf32>,
    %cst_35 = arith.constant 0.000000e+00 : f32
    %43 = vector.broadcast %cst_35 : f32 to vector<192x128xf32>
    %c192 = arith.constant 192 : index
    %c0_36 = arith.constant 0 : index
    %44 = vector.load %arg8[%c192, %c0_36] : memref<432x384xf32, #tpu.memory_space<vmem>>, vector<192x384xf32>
    %c0_37 = arith.constant 0 : index
    %c0_38 = arith.constant 0 : index
    %c0_39 = arith.constant 0 : index
    %45 = vector.load %arg2[%c0_37, %c0_38, %c0_39] : memref<3x384x128xf32, #tpu.memory_space<vmem>>, vector<1x384x128xf32>
    %46 = vector.shape_cast %45 : vector<1x384x128xf32> to vector<384x128xf32>
    %cst_40 = arith.constant dense<0.000000e+00> : vector<192x128xf32>
    %47 = tpu.matmul %44, %46, %cst_40 {dimension_numbers = #tpu.dot_dimension_numbers<[1], [0], [0], [1], [0, 0, 1, 1], [], []>} : vector<192x384xf32>, vector<384x128xf32>, vector<192x128xf32> -> vector<192x128xf32>
    %48 = arith.addf %43, %47 : vector<192x128xf32>
    %c216 = arith.constant 216 : index
    %c0_41 = arith.constant 0 : index
    %49 = vector.load %arg8[%c216, %c0_41] : memref<432x384xf32, #tpu.memory_space<vmem>>, vector<192x384xf32>
    %c1_42 = arith.constant 1 : index
    %c0_43 = arith.constant 0 : index
    %c0_44 = arith.constant 0 : index
    %50 = vector.load %arg2[%c1_42, %c0_43, %c0_44] : memref<3x384x128xf32, #tpu.memory_space<vmem>>, vector<1x384x128xf32>
    %51 = vector.shape_cast %50 : vector<1x384x128xf32> to vector<384x128xf32>
    %cst_45 = arith.constant dense<0.000000e+00> : vector<192x128xf32>
    %52 = tpu.matmul %49, %51, %cst_45 {dimension_numbers = #tpu.dot_dimension_numbers<[1], [0], [0], [1], [0, 0, 1, 1], [], []>} : vector<192x384xf32>, vector<384x128xf32>, vector<192x128xf32> -> vector<192x128xf32>
    %53 = arith.addf %48, %52 : vector<192x128xf32>
    %c240 = arith.constant 240 : index
    %c0_46 = arith.constant 0 : index
    %54 = vector.load %arg8[%c240, %c0_46] : memref<432x384xf32, #tpu.memory_space<vmem>>, vector<192x384xf32>
    %c2_47 = arith.constant 2 : index
    %c0_48 = arith.constant 0 : index
    %c0_49 = arith.constant 0 : index
    %55 = vector.load %arg2[%c2_47, %c0_48, %c0_49] : memref<3x384x128xf32, #tpu.memory_space<vmem>>, vector<1x384x128xf32>
    %56 = vector.shape_cast %55 : vector<1x384x128xf32> to vector<384x128xf32>
    %cst_50 = arith.constant dense<0.000000e+00> : vector<192x128xf32>
    %57 = tpu.matmul %54, %56, %cst_50 {dimension_numbers = #tpu.dot_dimension_numbers<[1], [0], [0], [1], [0, 0, 1, 1], [], []>} : vector<192x384xf32>, vector<384x128xf32>, vector<192x128xf32> -> vector<192x128xf32>
    %58 = arith.addf %53, %57 : vector<192x128xf32>
    %c0_51 = arith.constant 0 : index
    %c0_52 = arith.constant 0 : index
    %59 = vector.load %arg3[%c0_51, %c0_52] : memref<1x128xf32, #tpu.memory_space<vmem>>, vector<1x128xf32>
    %60 = vector.broadcast %59 : vector<1x128xf32> to vector<192x128xf32>
    %61 = arith.addf %58, %60 : vector<192x128xf32>
    %cst_53 = arith.constant 0.000000e+00 : f32
    %62 = vector.broadcast %cst_53 : f32 to vector<192x128xf32>
    %63 = arith.maximumf %61, %62 : vector<192x128xf32>
    %64 = vector.broadcast %9 : vector<192x1xf32> to vector<192x128xf32>
    %65 = arith.mulf %63, %64 : vector<192x128xf32>
    %c217 = arith.constant 217 : index
    %c0_54 = arith.constant 0 : index
    %66 = vector.load %arg7[%c217, %c0_54] : memref<434x128xf32, #tpu.memory_space<vmem>>, vector<192x128xf32>
    tpu.vector_store %arg7[%c217, %c0_54], %65 {strides = array<i32>} : memref<434x128xf32, #tpu.memory_space<vmem>>, vector<192x128xf32>,
    %c0_55 = arith.constant 0 : index
    %c0_56 = arith.constant 0 : index
    %67 = vector.load %arg7[%c0_55, %c0_56] : memref<434x128xf32, #tpu.memory_space<vmem>>, vector<432x128xf32>
    %c0_57 = arith.constant 0 : index
    %c0_58 = arith.constant 0 : index
    %68 = vector.load %arg8[%c0_57, %c0_58] : memref<432x384xf32, #tpu.memory_space<vmem>>, vector<432x128xf32>
    tpu.vector_store %arg8[%c0_57, %c0_58], %67 {strides = array<i32>} : memref<432x384xf32, #tpu.memory_space<vmem>>, vector<432x128xf32>,
    %c1_59 = arith.constant 1 : index
    %c0_60 = arith.constant 0 : index
    %69 = vector.load %arg7[%c1_59, %c0_60] : memref<434x128xf32, #tpu.memory_space<vmem>>, vector<432x128xf32>
    %c0_61 = arith.constant 0 : index
    %c128_62 = arith.constant 128 : index
    %70 = vector.load %arg8[%c0_61, %c128_62] : memref<432x384xf32, #tpu.memory_space<vmem>>, vector<432x128xf32>
    tpu.vector_store %arg8[%c0_61, %c128_62], %69 {strides = array<i32>} : memref<432x384xf32, #tpu.memory_space<vmem>>, vector<432x128xf32>,
    %c2_63 = arith.constant 2 : index
    %c0_64 = arith.constant 0 : index
    %71 = vector.load %arg7[%c2_63, %c0_64] : memref<434x128xf32, #tpu.memory_space<vmem>>, vector<432x128xf32>
    %c0_65 = arith.constant 0 : index
    %c256_66 = arith.constant 256 : index
    %72 = vector.load %arg8[%c0_65, %c256_66] : memref<432x384xf32, #tpu.memory_space<vmem>>, vector<432x128xf32>
    tpu.vector_store %arg8[%c0_65, %c256_66], %71 {strides = array<i32>} : memref<432x384xf32, #tpu.memory_space<vmem>>, vector<432x128xf32>,
    %cst_67 = arith.constant 0.000000e+00 : f32
    %73 = vector.broadcast %cst_67 : f32 to vector<192x128xf32>
    %c0_68 = arith.constant 0 : index
    %c0_69 = arith.constant 0 : index
    %74 = vector.load %arg8[%c0_68, %c0_69] : memref<432x384xf32, #tpu.memory_space<vmem>>, vector<192x384xf32>
    %c0_70 = arith.constant 0 : index
    %c0_71 = arith.constant 0 : index
    %c0_72 = arith.constant 0 : index
    %75 = vector.load %arg4[%c0_70, %c0_71, %c0_72] : memref<3x384x128xf32, #tpu.memory_space<vmem>>, vector<1x384x128xf32>
    %76 = vector.shape_cast %75 : vector<1x384x128xf32> to vector<384x128xf32>
    %cst_73 = arith.constant dense<0.000000e+00> : vector<192x128xf32>
    %77 = tpu.matmul %74, %76, %cst_73 {dimension_numbers = #tpu.dot_dimension_numbers<[1], [0], [0], [1], [0, 0, 1, 1], [], []>} : vector<192x384xf32>, vector<384x128xf32>, vector<192x128xf32> -> vector<192x128xf32>
    %78 = arith.addf %73, %77 : vector<192x128xf32>
    %c24_74 = arith.constant 24 : index
    %c0_75 = arith.constant 0 : index
    %79 = vector.load %arg8[%c24_74, %c0_75] : memref<432x384xf32, #tpu.memory_space<vmem>>, vector<192x384xf32>
    %c1_76 = arith.constant 1 : index
    %c0_77 = arith.constant 0 : index
    %c0_78 = arith.constant 0 : index
    %80 = vector.load %arg4[%c1_76, %c0_77, %c0_78] : memref<3x384x128xf32, #tpu.memory_space<vmem>>, vector<1x384x128xf32>
    %81 = vector.shape_cast %80 : vector<1x384x128xf32> to vector<384x128xf32>
    %cst_79 = arith.constant dense<0.000000e+00> : vector<192x128xf32>
    %82 = tpu.matmul %79, %81, %cst_79 {dimension_numbers = #tpu.dot_dimension_numbers<[1], [0], [0], [1], [0, 0, 1, 1], [], []>} : vector<192x384xf32>, vector<384x128xf32>, vector<192x128xf32> -> vector<192x128xf32>
    %83 = arith.addf %78, %82 : vector<192x128xf32>
    %c48_80 = arith.constant 48 : index
    %c0_81 = arith.constant 0 : index
    %84 = vector.load %arg8[%c48_80, %c0_81] : memref<432x384xf32, #tpu.memory_space<vmem>>, vector<192x384xf32>
    %c2_82 = arith.constant 2 : index
    %c0_83 = arith.constant 0 : index
    %c0_84 = arith.constant 0 : index
    %85 = vector.load %arg4[%c2_82, %c0_83, %c0_84] : memref<3x384x128xf32, #tpu.memory_space<vmem>>, vector<1x384x128xf32>
    %86 = vector.shape_cast %85 : vector<1x384x128xf32> to vector<384x128xf32>
    %cst_85 = arith.constant dense<0.000000e+00> : vector<192x128xf32>
    %87 = tpu.matmul %84, %86, %cst_85 {dimension_numbers = #tpu.dot_dimension_numbers<[1], [0], [0], [1], [0, 0, 1, 1], [], []>} : vector<192x384xf32>, vector<384x128xf32>, vector<192x128xf32> -> vector<192x128xf32>
    %88 = arith.addf %83, %87 : vector<192x128xf32>
    %c0_86 = arith.constant 0 : index
    %c25_87 = arith.constant 25 : index
    %c0_88 = arith.constant 0 : index
    %89 = vector.load %arg1[%c0_86, %c25_87, %c0_88] : memref<1x434x128xf32, #tpu.memory_space<vmem>>, vector<1x192x128xf32>
    %90 = vector.shape_cast %89 : vector<1x192x128xf32> to vector<192x128xf32>
    %c0_89 = arith.constant 0 : index
    %c0_90 = arith.constant 0 : index
    %91 = vector.load %arg5[%c0_89, %c0_90] : memref<1x128xf32, #tpu.memory_space<vmem>>, vector<1x128xf32>
    %92 = vector.broadcast %91 : vector<1x128xf32> to vector<192x128xf32>
    %93 = arith.addf %88, %92 : vector<192x128xf32>
    %94 = arith.addf %93, %90 : vector<192x128xf32>
    %cst_91 = arith.constant 0.000000e+00 : f32
    %95 = vector.broadcast %cst_91 : f32 to vector<192x128xf32>
    %96 = arith.maximumf %94, %95 : vector<192x128xf32>
    %c0_92 = arith.constant 0 : index
    %c0_93 = arith.constant 0 : index
    %c0_94 = arith.constant 0 : index
    %97 = vector.load %arg6[%c0_92, %c0_93, %c0_94] : memref<1x384x128xf32, #tpu.memory_space<vmem>>, vector<1x192x128xf32>
    %98 = vector.shape_cast %97 : vector<1x192x128xf32> to vector<192x128xf32>
    %99 = vector.shape_cast %96 : vector<192x128xf32> to vector<1x192x128xf32>
    tpu.vector_store %arg6[%c0_92, %c0_93, %c0_94], %99 {strides = array<i32>} : memref<1x384x128xf32, #tpu.memory_space<vmem>>, vector<1x192x128xf32>,
    %cst_95 = arith.constant 0.000000e+00 : f32
    %100 = vector.broadcast %cst_95 : f32 to vector<192x128xf32>
    %c192_96 = arith.constant 192 : index
    %c0_97 = arith.constant 0 : index
    %101 = vector.load %arg8[%c192_96, %c0_97] : memref<432x384xf32, #tpu.memory_space<vmem>>, vector<192x384xf32>
    %c0_98 = arith.constant 0 : index
    %c0_99 = arith.constant 0 : index
    %c0_100 = arith.constant 0 : index
    %102 = vector.load %arg4[%c0_98, %c0_99, %c0_100] : memref<3x384x128xf32, #tpu.memory_space<vmem>>, vector<1x384x128xf32>
    %103 = vector.shape_cast %102 : vector<1x384x128xf32> to vector<384x128xf32>
    %cst_101 = arith.constant dense<0.000000e+00> : vector<192x128xf32>
    %104 = tpu.matmul %101, %103, %cst_101 {dimension_numbers = #tpu.dot_dimension_numbers<[1], [0], [0], [1], [0, 0, 1, 1], [], []>} : vector<192x384xf32>, vector<384x128xf32>, vector<192x128xf32> -> vector<192x128xf32>
    %105 = arith.addf %100, %104 : vector<192x128xf32>
    %c216_102 = arith.constant 216 : index
    %c0_103 = arith.constant 0 : index
    %106 = vector.load %arg8[%c216_102, %c0_103] : memref<432x384xf32, #tpu.memory_space<vmem>>, vector<192x384xf32>
    %c1_104 = arith.constant 1 : index
    %c0_105 = arith.constant 0 : index
    %c0_106 = arith.constant 0 : index
    %107 = vector.load %arg4[%c1_104, %c0_105, %c0_106] : memref<3x384x128xf32, #tpu.memory_space<vmem>>, vector<1x384x128xf32>
    %108 = vector.shape_cast %107 : vector<1x384x128xf32> to vector<384x128xf32>
    %cst_107 = arith.constant dense<0.000000e+00> : vector<192x128xf32>
    %109 = tpu.matmul %106, %108, %cst_107 {dimension_numbers = #tpu.dot_dimension_numbers<[1], [0], [0], [1], [0, 0, 1, 1], [], []>} : vector<192x384xf32>, vector<384x128xf32>, vector<192x128xf32> -> vector<192x128xf32>
    %110 = arith.addf %105, %109 : vector<192x128xf32>
    %c240_108 = arith.constant 240 : index
    %c0_109 = arith.constant 0 : index
    %111 = vector.load %arg8[%c240_108, %c0_109] : memref<432x384xf32, #tpu.memory_space<vmem>>, vector<192x384xf32>
    %c2_110 = arith.constant 2 : index
    %c0_111 = arith.constant 0 : index
    %c0_112 = arith.constant 0 : index
    %112 = vector.load %arg4[%c2_110, %c0_111, %c0_112] : memref<3x384x128xf32, #tpu.memory_space<vmem>>, vector<1x384x128xf32>
    %113 = vector.shape_cast %112 : vector<1x384x128xf32> to vector<384x128xf32>
    %cst_113 = arith.constant dense<0.000000e+00> : vector<192x128xf32>
    %114 = tpu.matmul %111, %113, %cst_113 {dimension_numbers = #tpu.dot_dimension_numbers<[1], [0], [0], [1], [0, 0, 1, 1], [], []>} : vector<192x384xf32>, vector<384x128xf32>, vector<192x128xf32> -> vector<192x128xf32>
    %115 = arith.addf %110, %114 : vector<192x128xf32>
    %c0_114 = arith.constant 0 : index
    %c217_115 = arith.constant 217 : index
    %c0_116 = arith.constant 0 : index
    %116 = vector.load %arg1[%c0_114, %c217_115, %c0_116] : memref<1x434x128xf32, #tpu.memory_space<vmem>>, vector<1x192x128xf32>
    %117 = vector.shape_cast %116 : vector<1x192x128xf32> to vector<192x128xf32>
    %c0_117 = arith.constant 0 : index
    %c0_118 = arith.constant 0 : index
    %118 = vector.load %arg5[%c0_117, %c0_118] : memref<1x128xf32, #tpu.memory_space<vmem>>, vector<1x128xf32>
    %119 = vector.broadcast %118 : vector<1x128xf32> to vector<192x128xf32>
    %120 = arith.addf %115, %119 : vector<192x128xf32>
    %121 = arith.addf %120, %117 : vector<192x128xf32>
    %cst_119 = arith.constant 0.000000e+00 : f32
    %122 = vector.broadcast %cst_119 : f32 to vector<192x128xf32>
    %123 = arith.maximumf %121, %122 : vector<192x128xf32>
    %c0_120 = arith.constant 0 : index
    %c192_121 = arith.constant 192 : index
    %c0_122 = arith.constant 0 : index
    %124 = vector.load %arg6[%c0_120, %c192_121, %c0_122] : memref<1x384x128xf32, #tpu.memory_space<vmem>>, vector<1x192x128xf32>
    %125 = vector.shape_cast %124 : vector<1x192x128xf32> to vector<192x128xf32>
    %126 = vector.shape_cast %123 : vector<192x128xf32> to vector<1x192x128xf32>
    tpu.vector_store %arg6[%c0_120, %c192_121, %c0_122], %126 {strides = array<i32>} : memref<1x384x128xf32, #tpu.memory_space<vmem>>, vector<1x192x128xf32>,
    return
  }
  func.func @transform_0(%arg0: i32) -> (i32, i32, i32) {
    %c0_i32 = arith.constant 0 : i32
    %c0_i32_0 = arith.constant 0 : i32
    %c0_i32_1 = arith.constant 0 : i32
    return %arg0, %c0_i32, %c0_i32_0 : i32, i32, i32
  }
  func.func @transform_1(%arg0: i32) -> (i32, i32, i32) {
    %c0_i32 = arith.constant 0 : i32
    %c0_i32_0 = arith.constant 0 : i32
    %c0_i32_1 = arith.constant 0 : i32
    %c0_i32_2 = arith.constant 0 : i32
    return %c0_i32, %c0_i32_0, %c0_i32_1 : i32, i32, i32
  }
  func.func @transform_2(%arg0: i32) -> (i32, i32) {
    %c0_i32 = arith.constant 0 : i32
    %c0_i32_0 = arith.constant 0 : i32
    %c0_i32_1 = arith.constant 0 : i32
    return %c0_i32, %c0_i32_0 : i32, i32
  }
  func.func @transform_3(%arg0: i32) -> (i32, i32, i32) {
    %c0_i32 = arith.constant 0 : i32
    %c0_i32_0 = arith.constant 0 : i32
    %c0_i32_1 = arith.constant 0 : i32
    %c0_i32_2 = arith.constant 0 : i32
    return %c0_i32, %c0_i32_0, %c0_i32_1 : i32, i32, i32
  }
  func.func @transform_4(%arg0: i32) -> (i32, i32) {
    %c0_i32 = arith.constant 0 : i32
    %c0_i32_0 = arith.constant 0 : i32
    %c0_i32_1 = arith.constant 0 : i32
    return %c0_i32, %c0_i32_0 : i32, i32
  }
  func.func @transform_5(%arg0: i32) -> (i32, i32, i32) {
    %c0_i32 = arith.constant 0 : i32
    %c0_i32_0 = arith.constant 0 : i32
    %c0_i32_1 = arith.constant 0 : i32
    return %arg0, %c0_i32, %c0_i32_0 : i32, i32, i32
  }
}

</mosaic_0001>

<bundles_post_ra>
// kernel: tpu_custom_call.1
= control target key start
LH: loop header
LB: loop body
LE: loop exit
PB: predicated region body
PF: predicated region fallthrough
CT: control target
= control target key end

     0   :  { %10 = vsyncpa [#allocation5], 0  ;;  %s9942_s0 = inlined_call_operand.vmem [shape: f32[2,434,128], index: 0, kind: input, shape index: {}]   ;;  %s9943_s1 = inlined_call_operand.vmem [shape: f32[3,384,128], index: 1, kind: input, shape index: {}]   ;;  %s9944_s2 = inlined_call_operand.vmem [shape: f32[1,128], index: 2, kind: input, shape index: {}]   ;;  %s9945_s3 = inlined_call_operand.hbm [shape: f32[3,384,128], index: 3, kind: input, shape index: {}]   ;;  %s9946_s4 = inlined_call_operand.vmem [shape: f32[1,128], index: 4, kind: input, shape index: {}]   ;;  %s9947_s5 = inlined_call_operand.hbm [shape: f32[2,384,128], index: 5, kind: output, shape index: {}]  }
   0x1   :  { %11 = vsyncpa [#allocation6], 0 }
   0x2   :  { %13 = vsyncpa [#allocation6 + $0x1], 0  ;;  %s6541_s18 = smov 0   ;;  %s6543_s19 = smov 0  }
   0x3   :  { %s6545_s20 = smov 0   ;;  %s6547_s21 = smov 0  }
   0x4 LB: > { %s6562_s22 = sadd.s32 4294967295, %s6501_s21   ;;  %s5954_s23 = sadd.s32 4294967294, %s6501_s21   ;;  %s6501_s21 = sphi %s6547_s21, %s10286_s21   ;;  %s6497_s20 = sphi %s6545_s20, %s10285_s20   ;;  %s6493_s19 = sphi %s6543_s19, %s10284_s19   ;;  %s6489_s18 = sphi %s6541_s18, %s10283_s18  }
   0x5   : > { %s6566_s24 = sadd.s32 1, %s6501_s21   ;;  %s136_s25 = sadd.s32 1, %s6497_s20 }
   0x6   : > { %s133_s26 = ssub.s32 %s6501_s21, %s6566_s24  ;;  %p146_p0 = scmp.ne.s32.totalorder %s6497_s20, %s6493_s19 }
   0x7   : > { %p134_p1 = scmp.eq.s32.totalorder %s133_s26, 0  ;;  %p147_p2 = scmp.eq.s32.totalorder %s6562_s22, 1 }
   0x8   : > { %p152_p3 = scmp.ne.s32.totalorder %s6493_s19, %s6489_s18  ;;  %p153_p4 = scmp.eq.s32.totalorder %s5954_s23, 1 }
   0x9   : > { %s6577_s27 = scalar_select %p134_p1, %s6497_s20, %s136_s25  }
   0xa   : > { %p6579_p5 = por %p147_p2, %p146_p0  ;;  %p6583_p6 = por %p153_p4, %p152_p3 }
   0xb   : > { %p5955_p7 = scmp.ge.s32.totalorder %s6501_s21, 1  ;;  %p160_p8 = scmp.lt.s32.totalorder %s6501_s21, 3 }
   0xc   : > { %p6173_p9 = scmp.eq.s32.totalorder %s6562_s22, 0  ;;  %s177_s7 = sshll.u32 %s9945_s3, 4  ;;  %s178_s7 = int_to_ptr.hbm [resolvable:$true] %s177_s7 }
   0xd   : > { %p161_p10 = pnand %p5955_p7, %p160_p8  ;;  %s6503_s8 = smov [#allocation4]  }
   0xe   : > { %s179_s9 = sshll.u32 %s6503_s8, 4  ;;  %s6504_s10 = smov 128   ;;  %s180_s9 = int_to_ptr.vmem [resolvable:$true] %s179_s9 }
   0xf   : > { %p6165_p11 = pneg %p161_p10  ;;  %s6505_s11 = smov 8  }
  0x10   : > { %206 = sbr.rel (%p161_p10) target bundleno = 1925 (0x785), region = 40 }
  0x11   : > { %p6166_p12 = pnand %p6173_p9, %p6165_p11 }
  0x13   : > { %6168 = dma.hbm_to_vmem [thread:$0]  (!%p6166_p12), %s178_s7, 18432, %s180_s9, [#allocation5], %s6504_s10, %s6504_s10, %s6505_s11  }
  0x15   : > { %6480 = dma.done.wait (%p6173_p9), [#allocation5], 18432  }
  0x16   : > { %6482 = vsyncadd (%p6173_p9), [#allocation5], 4294948864  ;;  %v6602_v0 = vld [vmem:[%s9943_s1 + $0x1f8] sm:$0xff]  ;;  %v5975_v4 = vld [vmem:[%s9943_s1 + $0x1f0] sm:$0xff]  ;;  %p235_p13 = scmp.lt.s32.totalorder %s6562_s22, 1  ;;  %s232_s15 = sand.u32 1, %s6493_s19  }
  0x17   : > { %v6607_v1 = vld [vmem:[%s9943_s1 + $0x278] sm:$0xff]  ;;  %763 = vmatpush.msra.mxu0 %v6602_v0  ;;  %v6625_v5 = vld [vmem:[%s9943_s1 + $0x270] sm:$0xff]  ;;  %v5974_v8 = vld [vmem:[%s9943_s1 + $0x1e8] sm:$0xff]  ;;  %s6156_s26 = smul.u32 384, %s232_s15  ;;  %s5865_s14 = scalar_lea.sflag [#allocation6], %s232_s15 }
  0x18   : > { %v6612_v2 = vld [vmem:[%s9943_s1 + $0x2f8] sm:$0xff]  ;;  %852 = vmatpush.msra.mxu1 %v6607_v1  ;;  %v6007_v6 = vld [vmem:[%s9943_s1 + $0x2f0] sm:$0xff]  ;;  %v5990_v9 = vld [vmem:[%s9943_s1 + $0x268] sm:$0xff]  ;;  %s6741_s16 = scalar_select %p235_p13, %s6562_s22, 1 }
  0x19   : > { %v672_v3 = vld [vmem:[%s9943_s1 + $0x78] sm:$0xff]  ;;  %941 = vmatpush.msra.mxu2 %v6612_v2  ;;  %v671_v7 = vld [vmem:[%s9943_s1 + $0x70] sm:$0xff]  ;;  %764 = vmatpush.msra.mxu0 %v5975_v4  ;;  %v6006_v10 = vld [vmem:[%s9943_s1 + $0x2e8] sm:$0xff]  ;;  %s9263_s30 = scalar_lea.vmem [#allocation7], %s6156_s26  ;;  %s6455_s7 = scalar_lea.hbm %s9947_s5, 768 }
  0x1a   : > { %1030 = vmatpush.msra.mxu3 %v672_v3  ;;  %853 = vmatpush.msra.mxu1 %v6625_v5  ;;  %v670_v11 = vld [vmem:[%s9943_s1 + $0x68] sm:$0xff]  ;;  %v5973_v12 = vld [vmem:[%s9943_s1 + $0x1e0] sm:$0xff]  ;;  %v5972_v16 = vld [vmem:[%s9943_s1 + $0x1d8] sm:$0xff]  ;;  %s6157_s23 = smul.u32 440, %s6741_s16  ;;  %s5877_s13 = sshll.u32 %s9263_s30, 4  ;;  %s5878_s13 = int_to_ptr.vmem [resolvable:$true] %s5877_s13 }
  0x1b   : > { %942 = vmatpush.msra.mxu2 %v6007_v6  ;;  %v5989_v13 = vld [vmem:[%s9943_s1 + $0x260] sm:$0xff]  ;;  %765 = vmatpush.msra.mxu0 %v5974_v8  ;;  %v5988_v17 = vld [vmem:[%s9943_s1 + $0x258] sm:$0xff]  ;;  %v5971_v20 = vld [vmem:[%s9943_s1 + $0x1d0] sm:$0xff]  ;;  %s6158_s16 = smul.u32 384, %s6562_s22 }
  0x1c   : > { %1031 = vmatpush.msra.mxu3 %v671_v7  ;;  %854 = vmatpush.msra.mxu1 %v5990_v9  ;;  %v6005_v14 = vld [vmem:[%s9943_s1 + $0x2e0] sm:$0xff]  ;;  %v6004_v18 = vld [vmem:[%s9943_s1 + $0x2d8] sm:$0xff]  ;;  %v5987_v21 = vld [vmem:[%s9943_s1 + $0x250] sm:$0xff]  ;;  %s6795_s6 = scalar_lea.vmem %s9942_s0, %s6157_s23 }
  0x1d   : > { %v669_v15 = vld [vmem:[%s9943_s1 + $0x60] sm:$0xff]  ;;  %943 = vmatpush.msra.mxu2 %v6006_v10  ;;  %766 = vmatpush.msra.mxu0 %v5973_v12  ;;  %v668_v19 = vld [vmem:[%s9943_s1 + $0x58] sm:$0xff]  ;;  %v6003_v22 = vld [vmem:[%s9943_s1 + $0x2d0] sm:$0xff]  ;;  %s5876_s12 = scalar_lea.hbm %s9947_s5, %s6158_s16 }
  0x1e   : > { %1032 = vmatpush.msra.mxu3 %v670_v11  ;;  %855 = vmatpush.msra.mxu1 %v5989_v13  ;;  %v667_v23 = vld [vmem:[%s9943_s1 + $0x50] sm:$0xff]  ;;  %v5970_v24 = vld [vmem:[%s9943_s1 + $0x1c8] sm:$0xff]  ;;  %v5969_v28 = vld [vmem:[%s9943_s1 + $0x1c0] sm:$0xff]  ;;  %s5879_s22 = sshll.u32 %s5876_s12, 4  ;;  %s5880_s22 = int_to_ptr.hbm [resolvable:$true] %s5879_s22 }
  0x1f   : > { %944 = vmatpush.msra.mxu2 %v6005_v14  ;;  %767 = vmatpush.msra.mxu0 %v5972_v16  ;;  %v5986_v25 = vld [vmem:[%s9943_s1 + $0x248] sm:$0xff]  ;;  %v5985_v29 = vld [vmem:[%s9943_s1 + $0x240] sm:$0xff]  ;;  %v5968_v32 = vld [vmem:[%s9943_s1 + $0x1b8] sm:$0xff]  ;;  %s6449_s17 = sshra.s32 %s5880_s22, 4  ;;  %s6450_s17 = int_to_ptr.hbm [resolvable:$true] %s6449_s17 }
  0x20   : > { %1033 = vmatpush.msra.mxu3 %v669_v15  ;;  %856 = vmatpush.msra.mxu1 %v5988_v17  ;;  %v6002_v26 = vld [vmem:[%s9943_s1 + $0x2c8] sm:$0xff]  ;;  %v6001_v30 = vld [vmem:[%s9943_s1 + $0x2c0] sm:$0xff]  ;;  %v5984_v33 = vld [vmem:[%s9943_s1 + $0x238] sm:$0xff]  ;;  %s6451_s25 = scalar_lea.hbm %s6450_s17, 384  ;;  %p6456_p3 = scmp.lt.s32.totalorder %s6450_s17, %s9947_s5 }
  0x21   : > { %945 = vmatpush.msra.mxu2 %v6004_v18  ;;  %768 = vmatpush.msra.mxu0 %v5971_v20  ;;  %v666_v27 = vld [vmem:[%s9943_s1 + $0x48] sm:$0xff]  ;;  %v665_v31 = vld [vmem:[%s9943_s1 + $0x40] sm:$0xff]  ;;  %v6000_v34 = vld [vmem:[%s9943_s1 + $0x2b8] sm:$0xff]  ;;  %p6452_p0 = scmp.ne.s32.totalorder %s6450_s17, %s6451_s25  ;;  %p6457_p4 = scmp.lt.s32.totalorder %s6455_s7, %s6451_s25 }
  0x22   : > { %1034 = vmatpush.msra.mxu3 %v668_v19  ;;  %857 = vmatpush.msra.mxu1 %v5987_v21  ;;  %v664_v35 = vld [vmem:[%s9943_s1 + $0x38] sm:$0xff]  ;;  %v5967_v36 = vld [vmem:[%s9943_s1 + $0x1b0] sm:$0xff]  ;;  %v5966_v40 = vld [vmem:[%s9943_s1 + $0x1a8] sm:$0xff] }
  0x23   : > { %946 = vmatpush.msra.mxu2 %v6003_v22  ;;  %769 = vmatpush.msra.mxu0 %v5970_v24  ;;  %v5983_v37 = vld [vmem:[%s9943_s1 + $0x230] sm:$0xff]  ;;  %v5982_v41 = vld [vmem:[%s9943_s1 + $0x228] sm:$0xff]  ;;  %v5965_v44 = vld [vmem:[%s9943_s1 + $0x1a0] sm:$0xff]  ;;  %p6453_p1 = pnand %p6452_p0, %p6579_p5  ;;  %p6458_p7 = por %p6457_p4, %p6456_p3 }
  0x24   : > { %1035 = vmatpush.msra.mxu3 %v667_v23  ;;  %858 = vmatpush.msra.mxu1 %v5986_v25  ;;  %v5999_v38 = vld [vmem:[%s9943_s1 + $0x2b0] sm:$0xff]  ;;  %v5998_v42 = vld [vmem:[%s9943_s1 + $0x2a8] sm:$0xff]  ;;  %v5981_v45 = vld [vmem:[%s9943_s1 + $0x220] sm:$0xff] }
  0x25   : > { %947 = vmatpush.msra.mxu2 %v6002_v26  ;;  %770 = vmatpush.msra.mxu0 %v5969_v28  ;;  %v663_v39 = vld [vmem:[%s9943_s1 + $0x30] sm:$0xff]  ;;  %v662_v43 = vld [vmem:[%s9943_s1 + $0x28] sm:$0xff]  ;;  %v5997_v46 = vld [vmem:[%s9943_s1 + $0x2a0] sm:$0xff]  ;;  %p6454_p2 = pneg %p6453_p1 }
  0x26   : > { %1036 = vmatpush.msra.mxu3 %v666_v27  ;;  %859 = vmatpush.msra.mxu1 %v5985_v29  ;;  %v661_v47 = vld [vmem:[%s9943_s1 + $0x20] sm:$0xff]  ;;  %v5964_v48 = vld [vmem:[%s9943_s1 + $0x198] sm:$0xff]  ;;  %v5963_v52 = vld [vmem:[%s9943_s1 + $0x190] sm:$0xff] }
  0x27   : > { %948 = vmatpush.msra.mxu2 %v6001_v30  ;;  %771 = vmatpush.msra.mxu0 %v5968_v32  ;;  %v5980_v49 = vld [vmem:[%s9943_s1 + $0x218] sm:$0xff]  ;;  %v5979_v53 = vld [vmem:[%s9943_s1 + $0x210] sm:$0xff]  ;;  %v5962_v56 = vld [vmem:[%s9943_s1 + $0x188] sm:$0xff]  ;;  %p6459_p8 = pnand %p6458_p7, %p6454_p2 }
  0x28   : > { %1037 = vmatpush.msra.mxu3 %v665_v31  ;;  %860 = vmatpush.msra.mxu1 %v5984_v33  ;;  %v5996_v50 = vld [vmem:[%s9943_s1 + $0x298] sm:$0xff]  ;;  %v5995_v54 = vld [vmem:[%s9943_s1 + $0x290] sm:$0xff]  ;;  %v5978_v57 = vld [vmem:[%s9943_s1 + $0x208] sm:$0xff] }
  0x29   : > { %949 = vmatpush.msra.mxu2 %v6000_v34  ;;  %772 = vmatpush.msra.mxu0 %v5967_v36  ;;  %v660_v51 = vld [vmem:[%s9943_s1 + $0x18] sm:$0xff]  ;;  %v659_v55 = vld [vmem:[%s9943_s1 + $0x10] sm:$0xff]  ;;  %v5994_v58 = vld [vmem:[%s9943_s1 + $0x288] sm:$0xff] }
  0x2a   : > { %1038 = vmatpush.msra.mxu3 %v664_v35  ;;  %861 = vmatpush.msra.mxu1 %v5983_v37  ;;  %v658_v59 = vld [vmem:[%s9943_s1 + $0x8] sm:$0xff]  ;;  %v5961_v60 = vld [vmem:[%s9943_s1 + $0x180] sm:$0xff]  ;;  %v6816_v3 = vld [vmem:[%s6795_s6 + $0x18] sm:$0xff] }
  0x2b   : > { %950 = vmatpush.msra.mxu2 %v5999_v38  ;;  %773 = vmatpush.msra.mxu0 %v5966_v40  ;;  %v5977_v61 = vld [vmem:[%s9943_s1 + $0x200] sm:$0xff]  ;;  %v6024_v8 = vld [vmem:[%s9943_s1 + $0x378] sm:$0xff]  ;;  %v6023_v12 = vld [vmem:[%s9943_s1 + $0x370] sm:$0xff] }
  0x2c   : > { %1039 = vmatpush.msra.mxu3 %v663_v39  ;;  %862 = vmatpush.msra.mxu1 %v5982_v41  ;;  %v5993_v62 = vld [vmem:[%s9943_s1 + $0x280] sm:$0xff]  ;;  %v6040_v9 = vld [vmem:[%s9943_s1 + $0x3f8] sm:$0xff]  ;;  %v6039_v13 = vld [vmem:[%s9943_s1 + $0x3f0] sm:$0xff] }
  0x2d   : > { %951 = vmatpush.msra.mxu2 %v5998_v42  ;;  %774 = vmatpush.msra.mxu0 %v5965_v44  ;;  %v657_v63 = vld [vmem:[%s9943_s1] sm:$0xff]  ;;  %v704_v10 = vld [vmem:[%s9943_s1 + $0x178] sm:$0xff]  ;;  %v703_v14 = vld [vmem:[%s9943_s1 + $0x170] sm:$0xff] }
  0x2e   : > { %1040 = vmatpush.msra.mxu3 %v662_v43  ;;  %863 = vmatpush.msra.mxu1 %v5981_v45  ;;  %v6819_v4 = vld [vmem:[%s6795_s6 + $0x19] sm:$0xff]  ;;  %v687_v15 = vld [vmem:[%s9943_s1 + $0xf0] sm:$0xff]  ;;  %v6022_v16 = vld [vmem:[%s9943_s1 + $0x368] sm:$0xff] }
  0x2f   : > { %952 = vmatpush.msra.mxu2 %v5997_v46  ;;  %775 = vmatpush.msra.mxu0 %v5964_v48  ;;  %v6822_v6 = vld [vmem:[%s6795_s6 + $0x1a] sm:$0xff]  ;;  %v6038_v17 = vld [vmem:[%s9943_s1 + $0x3e8] sm:$0xff]  ;;  %v263_v31 = vld [vmem:[%s6795_s6 + $0x10] sm:$0xff] }
  0x30   : > { %1041 = vmatpush.msra.mxu3 %v661_v47  ;;  %864 = vmatpush.msra.mxu1 %v5980_v49  ;;  %v261_v7 = vld [vmem:[%s6795_s6] sm:$0xff]  ;;  %v688_v11 = vld [vmem:[%s9943_s1 + $0xf8] sm:$0xff]  ;;  %v702_v18 = vld [vmem:[%s9943_s1 + $0x168] sm:$0xff] }
  0x31   : > { %953 = vmatpush.msra.mxu2 %v5996_v50  ;;  %776 = vmatpush.msra.mxu0 %v5963_v52  ;;  %v686_v19 = vld [vmem:[%s9943_s1 + $0xe8] sm:$0xff]  ;;  %v265_v20 = vld [vmem:[%s6795_s6 + $0x20] sm:$0xff]  ;;  %v6020_v32 = vld [vmem:[%s9943_s1 + $0x358] sm:$0xff] }
  0x32   : > { %1042 = vmatpush.msra.mxu3 %v660_v51  ;;  %865 = vmatpush.msra.mxu1 %v5979_v53  ;;  %v6866_v21 = vld [vmem:[%s6795_s6 + $0x21] sm:$0xff]  ;;  %v6888_v29 = vld [vmem:[%s6795_s6 + $0x29] sm:$0xff]  ;;  %v6036_v33 = vld [vmem:[%s9943_s1 + $0x3d8] sm:$0xff] }
  0x33   : > { %954 = vmatpush.msra.mxu2 %v5995_v54  ;;  %777 = vmatpush.msra.mxu0 %v5962_v56  ;;  %v6869_v22 = vld [vmem:[%s6795_s6 + $0x22] sm:$0xff]  ;;  %v6891_v30 = vld [vmem:[%s6795_s6 + $0x2a] sm:$0xff]  ;;  %v700_v34 = vld [vmem:[%s9943_s1 + $0x158] sm:$0xff] }
  0x34   : > { %1043 = vmatpush.msra.mxu3 %v659_v55  ;;  %866 = vmatpush.msra.mxu1 %v5978_v57  ;;  %v262_v23 = vld [vmem:[%s6795_s6 + $0x8] sm:$0xff]  ;;  %v6021_v24 = vld [vmem:[%s9943_s1 + $0x360] sm:$0xff]  ;;  %v6906_v35 = vld [vmem:[%s6795_s6 + $0x30] sm:$0xff] }
  0x35   : > { %955 = vmatpush.msra.mxu2 %v5994_v58  ;;  %778 = vmatpush.msra.mxu0 %v5961_v60  ;;  %v6037_v25 = vld [vmem:[%s9943_s1 + $0x3e0] sm:$0xff]  ;;  %v266_v28 = vld [vmem:[%s6795_s6 + $0x28] sm:$0xff]  ;;  %v6909_v36 = vld [vmem:[%s6795_s6 + $0x31] sm:$0xff] }
  0x36   : > { %1044 = vmatpush.msra.mxu3 %v658_v59  ;;  %867 = vmatpush.msra.mxu1 %v5977_v61  ;;  %v701_v26 = vld [vmem:[%s9943_s1 + $0x160] sm:$0xff]  ;;  %v6912_v37 = vld [vmem:[%s6795_s6 + $0x32] sm:$0xff]  ;;  %v6018_v49 = vld [vmem:[%s9943_s1 + $0x348] sm:$0xff] }
  0x37   : > { %956 = vmatpush.msra.mxu2 %v5993_v62  ;;  %779 = vmatmul.f32.vlgmr.msra.gmra.mxu0 %v6816_v3  ;;  %v685_v27 = vld [vmem:[%s9943_s1 + $0xe0] sm:$0xff]  ;;  %v684_v38 = vld [vmem:[%s9943_s1 + $0xd8] sm:$0xff]  ;;  %v6019_v39 = vld [vmem:[%s9943_s1 + $0x350] sm:$0xff] }
  0x38   : > { %1045 = vmatpush.msra.mxu3 %v657_v63  ;;  %868 = vmatmul.f32.vlgmr.msra.gmra.mxu1 %v6819_v4  ;;  %v6035_v40 = vld [vmem:[%s9943_s1 + $0x3d0] sm:$0xff]  ;;  %v6928_v41 = vld [vmem:[%s6795_s6 + $0x38] sm:$0xff]  ;;  %v6946_v46 = vld [vmem:[%s6795_s6 + $0x40] sm:$0xff] }
  0x39   : > { %957 = vmatmul.f32.vlgmr.msra.gmra.mxu2 %v6822_v6  ;;  %1046 = vmatmul.f32.vlgmr.msra.gmra.mxu3 %v261_v7  ;;  %v6931_v42 = vld [vmem:[%s6795_s6 + $0x39] sm:$0xff]  ;;  %v699_v44 = vld [vmem:[%s9943_s1 + $0x150] sm:$0xff]  ;;  %v6949_v47 = vld [vmem:[%s6795_s6 + $0x41] sm:$0xff] }
  0x3a   : > { %1418 = vmatpush.msrb.mxu2 %v6024_v8  ;;  %1507 = vmatpush.msrb.mxu3 %v6040_v9  ;;  %v6934_v43 = vld [vmem:[%s6795_s6 + $0x3a] sm:$0xff]  ;;  %v683_v45 = vld [vmem:[%s9943_s1 + $0xd0] sm:$0xff]  ;;  %v6952_v48 = vld [vmem:[%s6795_s6 + $0x42] sm:$0xff] }
  0x3b   : > { %1208 = vmatpush.msrb.mxu1 %v704_v10  ;;  %1119 = vmatpush.msrb.mxu0 %v688_v11  ;;  %v6034_v50 = vld [vmem:[%s9943_s1 + $0x3c8] sm:$0xff]  ;;  %v6017_v56 = vld [vmem:[%s9943_s1 + $0x340] sm:$0xff]  ;;  %v6989_v58 = vld [vmem:[%s6795_s6 + $0x50] sm:$0xff] }
  0x3c   : > { %1419 = vmatpush.msrb.mxu2 %v6023_v12  ;;  %1508 = vmatpush.msrb.mxu3 %v6039_v13  ;;  %v698_v51 = vld [vmem:[%s9943_s1 + $0x148] sm:$0xff]  ;;  %v6033_v57 = vld [vmem:[%s9943_s1 + $0x3c0] sm:$0xff]  ;;  %v6992_v59 = vld [vmem:[%s6795_s6 + $0x51] sm:$0xff] }
  0x3d   : > { %1209 = vmatpush.msrb.mxu1 %v703_v14  ;;  %1120 = vmatpush.msrb.mxu0 %v687_v15  ;;  %v6967_v52 = vld [vmem:[%s6795_s6 + $0x48] sm:$0xff]  ;;  %v6995_v60 = vld [vmem:[%s6795_s6 + $0x52] sm:$0xff]  ;;  %v697_v61 = vld [vmem:[%s9943_s1 + $0x140] sm:$0xff] }
  0x3e   : > { %1420 = vmatpush.msrb.mxu2 %v6022_v16  ;;  %1509 = vmatpush.msrb.mxu3 %v6038_v17  ;;  %v6970_v53 = vld [vmem:[%s6795_s6 + $0x49] sm:$0xff]  ;;  %v681_v62 = vld [vmem:[%s9943_s1 + $0xc0] sm:$0xff]  ;;  %v7008_v63 = vld [vmem:[%s6795_s6 + $0x58] sm:$0xff] }
  0x3f   : > { %1210 = vmatpush.msrb.mxu1 %v702_v18  ;;  %1121 = vmatpush.msrb.mxu0 %v686_v19  ;;  %v6973_v54 = vld [vmem:[%s6795_s6 + $0x4a] sm:$0xff]  ;;  %v7014_v7 = vld [vmem:[%s6795_s6 + $0x5a] sm:$0xff]  ;;  %v7036_v13 = vld [vmem:[%s6795_s6 + $0x62] sm:$0xff] }
  0x40   : > { %782 = vmatmul.f32.gmra.mxu0 %v265_v20  ;;  %871 = vmatmul.f32.gmra.mxu1 %v6866_v21  ;;  %v682_v55 = vld [vmem:[%s9943_s1 + $0xc8] sm:$0xff]  ;;  %v6016_v8 = vld [vmem:[%s9943_s1 + $0x338] sm:$0xff]  ;;  %v7030_v11 = vld [vmem:[%s6795_s6 + $0x60] sm:$0xff] }
  0x41   : > { %960 = vmatmul.f32.gmra.mxu2 %v6869_v22  ;;  %1049 = vmatmul.f32.gmra.mxu3 %v262_v23  ;;  %v6032_v9 = vld [vmem:[%s9943_s1 + $0x3b8] sm:$0xff]  ;;  %v7033_v12 = vld [vmem:[%s6795_s6 + $0x61] sm:$0xff]  ;;  %v6015_v15 = vld [vmem:[%s9943_s1 + $0x330] sm:$0xff] }
  0x42   : > { %1421 = vmatpush.msrb.mxu2 %v6021_v24  ;;  %1510 = vmatpush.msrb.mxu3 %v6037_v25  ;;  %v696_v10 = vld [vmem:[%s9943_s1 + $0x138] sm:$0xff]  ;;  %v6031_v16 = vld [vmem:[%s9943_s1 + $0x3b0] sm:$0xff]  ;;  %v7052_v17 = vld [vmem:[%s6795_s6 + $0x68] sm:$0xff] }
  0x43   : > { %1211 = vmatpush.msrb.mxu1 %v701_v26  ;;  %1122 = vmatpush.msrb.mxu0 %v685_v27  ;;  %v680_v14 = vld [vmem:[%s9943_s1 + $0xb8] sm:$0xff]  ;;  %v7055_v18 = vld [vmem:[%s6795_s6 + $0x69] sm:$0xff] }
  0x44   : > { %1422 = vmatpush.msrb.mxu2 %v6020_v32  ;;  %1511 = vmatpush.msrb.mxu3 %v6036_v33  ;;  %v7058_v19 = vld [vmem:[%s6795_s6 + $0x6a] sm:$0xff]  ;;  %v7077_v26 = vld [vmem:[%s6795_s6 + $0x72] sm:$0xff]  ;;  %v7096_v33 = vld [vmem:[%s6795_s6 + $0x7a] sm:$0xff] }
  0x45   : > { %1212 = vmatpush.msrb.mxu1 %v700_v34  ;;  %1123 = vmatpush.msrb.mxu0 %v684_v38  ;;  %v679_v23 = vld [vmem:[%s9943_s1 + $0xb0] sm:$0xff]  ;;  %v6014_v27 = vld [vmem:[%s9943_s1 + $0x328] sm:$0xff]  ;;  %v7093_v32 = vld [vmem:[%s6795_s6 + $0x79] sm:$0xff]  ;;  %10023 = vst [vmem:[#allocation10_spill] sm:$0xff] %v7096_v33 }
  0x46   : > { %1423 = vmatpush.msrb.mxu2 %v6019_v39  ;;  %1512 = vmatpush.msrb.mxu3 %v6035_v40  ;;  %v7071_v24 = vld [vmem:[%s6795_s6 + $0x70] sm:$0xff]  ;;  %v694_v34 = vld [vmem:[%s9943_s1 + $0x128] sm:$0xff]  ;;  %v7109_v39 = vld [vmem:[%s6795_s6 + $0x80] sm:$0xff] }
  0x47   : > { %1213 = vmatpush.msrb.mxu1 %v699_v44  ;;  %1124 = vmatpush.msrb.mxu0 %v683_v45  ;;  %v7074_v25 = vld [vmem:[%s6795_s6 + $0x71] sm:$0xff]  ;;  %v678_v38 = vld [vmem:[%s9943_s1 + $0xa8] sm:$0xff]  ;;  %v6013_v45 = vld [vmem:[%s9943_s1 + $0x320] sm:$0xff] }
  0x48   : > { %785 = vmatmul.f32.gmra.mxu0 %v266_v28  ;;  %874 = vmatmul.f32.gmra.mxu1 %v6888_v29  ;;  %v7112_v40 = vld [vmem:[%s6795_s6 + $0x81] sm:$0xff] }
  0x49   : > { %963 = vmatmul.f32.gmra.mxu2 %v6891_v30  ;;  %1052 = vmatmul.f32.gmra.mxu3 %v263_v31  ;;  %v7090_v31 = vld [vmem:[%s6795_s6 + $0x78] sm:$0xff]  ;;  %v7115_v44 = vld [vmem:[%s6795_s6 + $0x82] sm:$0xff] }
  0x4a   : > { %1424 = vmatpush.msrb.mxu2 %v6018_v49  ;;  %1513 = vmatpush.msrb.mxu3 %v6034_v50  ;;  %10024 = vst [vmem:[#allocation11_spill] sm:$0xff] %v7115_v44  ;;  %v6029_v49 = vld [vmem:[%s9943_s1 + $0x3a0] sm:$0xff] }
  0x4b   : > { %1214 = vmatpush.msrb.mxu1 %v698_v51  ;;  %1125 = vmatpush.msrb.mxu0 %v682_v55  ;;  %v693_v50 = vld [vmem:[%s9943_s1 + $0x120] sm:$0xff]  ;;  %v7131_v51 = vld [vmem:[%s6795_s6 + $0x88] sm:$0xff] }
  0x4c   : > { %1425 = vmatpush.msrb.mxu2 %v6017_v56  ;;  %1514 = vmatpush.msrb.mxu3 %v6033_v57  ;;  %v7134_v55 = vld [vmem:[%s6795_s6 + $0x89] sm:$0xff]  ;;  %v677_v57 = vld [vmem:[%s9943_s1 + $0xa0] sm:$0xff] }
  0x4d   : > { %1215 = vmatpush.msrb.mxu1 %v697_v61  ;;  %1126 = vmatpush.msrb.mxu0 %v681_v62  ;;  %v7137_v56 = vld [vmem:[%s6795_s6 + $0x8a] sm:$0xff]  ;;  %v6012_v61 = vld [vmem:[%s9943_s1 + $0x318] sm:$0xff] }
  0x4e   : > { %1426 = vmatpush.msrb.mxu2 %v6016_v8  ;;  %1515 = vmatpush.msrb.mxu3 %v6032_v9  ;;  %10025 = vst [vmem:[#allocation12_spill] sm:$0xff] %v7137_v56  ;;  %v6028_v62 = vld [vmem:[%s9943_s1 + $0x398] sm:$0xff]  ;;  %v7153_v8 = vld [vmem:[%s6795_s6 + $0x90] sm:$0xff] }
  0x4f   : > { %1216 = vmatpush.msrb.mxu1 %v696_v10  ;;  %1127 = vmatpush.msrb.mxu0 %v680_v14  ;;  %v7156_v9 = vld [vmem:[%s6795_s6 + $0x91] sm:$0xff] }
  0x50   : > { %788 = vmatmul.f32.gmra.mxu0 %v6906_v35  ;;  %877 = vmatmul.f32.gmra.mxu1 %v6909_v36  ;;  %v7159_v10 = vld [vmem:[%s6795_s6 + $0x92] sm:$0xff] }
  0x51   : > { %966 = vmatmul.f32.gmra.mxu2 %v6912_v37  ;;  %1055 = vmatmul.f32.gmra.mxu3 %v6816_v3  ;;  %v7011_v3 = vld [vmem:[%s6795_s6 + $0x59] sm:$0xff]  ;;  %10026 = vst [vmem:[#allocation13_spill] sm:$0xff] %v7159_v10 }
  0x52   : > { %1427 = vmatpush.msrb.mxu2 %v6015_v15  ;;  %1516 = vmatpush.msrb.mxu3 %v6031_v16  ;;  %v692_v14 = vld [vmem:[%s9943_s1 + $0x118] sm:$0xff] }
  0x53   : > { %1128 = vmatpush.msrb.mxu0 %v679_v23  ;;  %v676_v15 = vld [vmem:[%s9943_s1 + $0x98] sm:$0xff] }
  0x54   : > { %1428 = vmatpush.msrb.mxu2 %v6014_v27  ;;  %v7172_v23 = vld [vmem:[%s6795_s6 + $0x98] sm:$0xff] }
  0x55   : > { %1129 = vmatpush.msrb.mxu0 %v678_v38  ;;  %v7175_v27 = vld [vmem:[%s6795_s6 + $0x99] sm:$0xff]  ;;  %v6027_v38 = vld [vmem:[%s9943_s1 + $0x390] sm:$0xff] }
  0x56   : > { %1429 = vmatpush.msrb.mxu2 %v6013_v45 }
  0x57   : > { %1130 = vmatpush.msrb.mxu0 %v677_v57 }
  0x58   : > { %791 = vmatmul.f32.gmra.mxu0 %v6928_v41  ;;  %880 = vmatmul.f32.gmra.mxu1 %v6931_v42 }
  0x59   : > { %969 = vmatmul.f32.gmra.mxu2 %v6934_v43  ;;  %1058 = vmatmul.f32.gmra.mxu3 %v265_v20  ;;  %v695_v20 = vld [vmem:[%s9943_s1 + $0x130] sm:$0xff] }
  0x5a   : > { %1217 = vmatpush.msrb.mxu1 %v695_v20  ;;  %1430 = vmatpush.msrb.mxu2 %v6012_v61 }
  0x5b   : > { %1131 = vmatpush.msrb.mxu0 %v676_v15  ;;  %v7194_v15 = vld [vmem:[%s6795_s6 + $0xa0] sm:$0xff] }
  0x5c   : > { %1218 = vmatpush.msrb.mxu1 %v694_v34  ;;  %v6011_v34 = vld [vmem:[%s9943_s1 + $0x310] sm:$0xff] }
  0x5d   : > { %1431 = vmatpush.msrb.mxu2 %v6011_v34 }
  0x5e   : > { %1219 = vmatpush.msrb.mxu1 %v693_v50 }
  0x60   : > { %794 = vmatmul.f32.gmra.mxu0 %v6946_v46  ;;  %883 = vmatmul.f32.gmra.mxu1 %v6949_v47 }
  0x61   : > { %972 = vmatmul.f32.gmra.mxu2 %v6952_v48  ;;  %1061 = vmatmul.f32.gmra.mxu3 %v266_v28  ;;  %v6030_v28 = vld [vmem:[%s9943_s1 + $0x3a8] sm:$0xff] }
  0x62   : > { %1517 = vmatpush.msrb.mxu3 %v6030_v28  ;;  %1220 = vmatpush.msrb.mxu1 %v692_v14  ;;  %v7178_v28 = vld [vmem:[%s6795_s6 + $0x9a] sm:$0xff] }
  0x63   : > { %10027 = vst [vmem:[#allocation14_spill] sm:$0xff] %v7178_v28 }
  0x64   : > { %1518 = vmatpush.msrb.mxu3 %v6029_v49  ;;  %v691_v49 = vld [vmem:[%s9943_s1 + $0x110] sm:$0xff] }
  0x65   : > { %1221 = vmatpush.msrb.mxu1 %v691_v49 }
  0x66   : > { %1519 = vmatpush.msrb.mxu3 %v6028_v62 }
  0x68   : > { %797 = vmatmul.f32.gmra.mxu0 %v6967_v52  ;;  %886 = vmatmul.f32.gmra.mxu1 %v6970_v53 }
  0x69   : > { %975 = vmatmul.f32.gmra.mxu2 %v6973_v54  ;;  %1064 = vmatmul.f32.gmra.mxu3 %v6906_v35 }
  0x6a   : > { %1520 = vmatpush.msrb.mxu3 %v6027_v38  ;;  %v6010_v38 = vld [vmem:[%s9943_s1 + $0x308] sm:$0xff] }
  0x6b   : > { %1432 = vmatpush.msrb.mxu2 %v6010_v38  ;;  %v674_v38 = vld [vmem:[%s9943_s1 + $0x88] sm:$0xff] }
  0x70   : > { %800 = vmatmul.f32.gmra.mxu0 %v6989_v58  ;;  %889 = vmatmul.f32.gmra.mxu1 %v6992_v59 }
  0x71   : > { %978 = vmatmul.f32.gmra.mxu2 %v6995_v60  ;;  %1067 = vmatmul.f32.gmra.mxu3 %v6928_v41 }
  0x78   : > { %803 = vmatmul.f32.gmra.mxu0 %v7008_v63  ;;  %892 = vmatmul.f32.gmra.mxu1 %v7011_v3 }
  0x79   : > { %981 = vmatmul.f32.gmra.mxu2 %v7014_v7  ;;  %1070 = vmatmul.f32.gmra.mxu3 %v6946_v46 }
  0x80   : > { %806 = vmatmul.f32.gmra.mxu0 %v7030_v11  ;;  %895 = vmatmul.f32.gmra.mxu1 %v7033_v12 }
  0x81   : > { %984 = vmatmul.f32.gmra.mxu2 %v7036_v13  ;;  %1073 = vmatmul.f32.gmra.mxu3 %v6967_v52 }
  0x88   : > { %809 = vmatmul.f32.gmra.mxu0 %v7052_v17  ;;  %898 = vmatmul.f32.gmra.mxu1 %v7055_v18 }
  0x89   : > { %987 = vmatmul.f32.gmra.mxu2 %v7058_v19  ;;  %1076 = vmatmul.f32.gmra.mxu3 %v6989_v58 }
  0x90   : > { %812 = vmatmul.f32.gmra.mxu0 %v7071_v24  ;;  %901 = vmatmul.f32.gmra.mxu1 %v7074_v25 }
  0x91   : > { %990 = vmatmul.f32.gmra.mxu2 %v7077_v26  ;;  %1079 = vmatmul.f32.gmra.mxu3 %v7008_v63 }
  0x98   : > { %815 = vmatmul.f32.gmra.mxu0 %v7090_v31  ;;  %904 = vmatmul.f32.gmra.mxu1 %v7093_v32 }
  0x99   : > { %993 = vmatmul.f32.gmra.mxu2 %v7096_v33  ;;  %1082 = vmatmul.f32.gmra.mxu3 %v7030_v11  ;;  %v7242_v33 = vld [vmem:[%s6795_s6 + $0xb1] sm:$0xff] }
  0x9a   : > { %10032 = vst [vmem:[#allocation19_spill] sm:$0xff] %v7242_v33 }
  0xa0   : > { %818 = vmatmul.f32.gmra.mxu0 %v7109_v39  ;;  %907 = vmatmul.f32.gmra.mxu1 %v7112_v40 }
  0xa1   : > { %996 = vmatmul.f32.gmra.mxu2 %v7115_v44  ;;  %1085 = vmatmul.f32.gmra.mxu3 %v7052_v17 }
  0xa8   : > { %821 = vmatmul.f32.gmra.mxu0 %v7131_v51  ;;  %910 = vmatmul.f32.gmra.mxu1 %v7134_v55 }
  0xa9   : > { %999 = vmatmul.f32.gmra.mxu2 %v7137_v56  ;;  %1088 = vmatmul.f32.gmra.mxu3 %v7071_v24  ;;  %v7224_v56 = vld [vmem:[%s6795_s6 + $0xaa] sm:$0xff] }
  0xaa   : > { %10030 = vst [vmem:[#allocation17_spill] sm:$0xff] %v7224_v56 }
  0xb0   : > { %824 = vmatmul.f32.gmra.mxu0 %v7153_v8  ;;  %913 = vmatmul.f32.gmra.mxu1 %v7156_v9 }
  0xb1   : > { %1002 = vmatmul.f32.gmra.mxu2 %v7159_v10  ;;  %1091 = vmatmul.f32.gmra.mxu3 %v7090_v31  ;;  %v7197_v10 = vld [vmem:[%s6795_s6 + $0xa1] sm:$0xff] }
  0xb4   : > { %v780_v16 = vpop.f32.mrf.mxu0 }
  0xb5   : > { %v869_v20 = vpop.f32.mrf.mxu1 }
  0xb6   : > { %v870_v45 = vadd.f32 %v869_v20, %v780_v16  ;;  %v7200_v16 = vld [vmem:[%s6795_s6 + $0xa2] sm:$0xff] }
  0xb7   : > { %10028 = vst [vmem:[#allocation15_spill] sm:$0xff] %v7200_v16 }
  0xb8   : > { %827 = vmatmul.f32.gmra.mxu0 %v7172_v23  ;;  %916 = vmatmul.f32.gmra.mxu1 %v7175_v27 }
  0xb9   : > { %1005 = vmatmul.f32.gmra.mxu2 %v7178_v28  ;;  %1094 = vmatmul.f32.gmra.mxu3 %v7109_v39  ;;  %v675_v28 = vld [vmem:[%s9943_s1 + $0x90] sm:$0xff] }
  0xba   : > { %1132 = vmatpush.msrb.mxu0 %v675_v28  ;;  %v690_v28 = vld [vmem:[%s9943_s1 + $0x108] sm:$0xff] }
  0xbb   : > { %1222 = vmatpush.msrb.mxu1 %v690_v28  ;;  %v6025_v28 = vld [vmem:[%s9943_s1 + $0x380] sm:$0xff] }
  0xbc   : > { %v958_v50 = vpop.f32.mrf.mxu2  ;;  %v1047_v57 = vpop.f32.mrf.mxu3  ;;  %1133 = vmatpush.msrb.mxu0 %v674_v38  ;;  %v689_v38 = vld [vmem:[%s9943_s1 + $0x100] sm:$0xff] }
  0xbd   : > { %v959_v61 = vadd.f32 %v958_v50, %v870_v45  ;;  %v783_v62 = vpop.f32.mrf.mxu0  ;;  %v872_v14 = vpop.f32.mrf.mxu1  ;;  %v6026_v45 = vld [vmem:[%s9943_s1 + $0x388] sm:$0xff]  ;;  %1223 = vmatpush.msrb.mxu1 %v689_v38 }
  0xbe   : > { %v873_v34 = vadd.f32 %v872_v14, %v783_v62  ;;  %1521 = vmatpush.msrb.mxu3 %v6026_v45  ;;  %v7218_v14 = vld [vmem:[%s6795_s6 + $0xa8] sm:$0xff] }
  0xbf   : > { %v7202_v20 = vadd.f32 %v1047_v57, %v959_v61  ;;  %2001 = vmatpush.msra.mxu1 %v6602_v0  ;;  %v673_v0 = vld [vmem:[%s9943_s1 + $0x80] sm:$0xff] }
  0xc0   : > { %830 = vmatmul.f32.gmra.mxu0 %v7194_v15  ;;  %919 = vmatmul.f32.gmra.mxu1 %v7197_v10 }
  0xc1   : > { %10029 = vst [vmem:[#allocation16_spill] sm:$0xff] %v7202_v20  ;;  %1008 = vmatmul.f32.gmra.mxu2 %v7200_v16  ;;  %1097 = vmatmul.f32.gmra.mxu3 %v7131_v51  ;;  %v7221_v16 = vld [vmem:[%s6795_s6 + $0xa9] sm:$0xff] }
  0xc2   : > { %v7239_v20 = vld [vmem:[%s6795_s6 + $0xb0] sm:$0xff]  ;;  %1522 = vmatpush.msrb.mxu3 %v6025_v28  ;;  %1134 = vmatpush.msrb.mxu0 %v673_v0 }
  0xc4   : > { %v961_v49 = vpop.f32.mrf.mxu2  ;;  %v1050_v50 = vpop.f32.mrf.mxu3  ;;  %2179 = vmatpush.msra.mxu3 %v6612_v2 }
  0xc5   : > { %v962_v57 = vadd.f32 %v961_v49, %v873_v34  ;;  %v786_v61 = vpop.f32.mrf.mxu0  ;;  %v875_v62 = vpop.f32.mrf.mxu1 }
  0xc6   : > { %v876_v34 = vadd.f32 %v875_v62, %v786_v61  ;;  %v7245_v61 = vld [vmem:[%s6795_s6 + $0xb2] sm:$0xff] }
  0xc7   : > { %v7226_v44 = vadd.f32 %v1050_v50, %v962_v57  ;;  %10033 = vst [vmem:[#allocation20_spill] sm:$0xff] %v7245_v61 }
  0xc8   : > { %833 = vmatmul.f32.gmra.mxu0 %v7218_v14  ;;  %922 = vmatmul.f32.gmra.mxu1 %v7221_v16 }
  0xc9   : > { %10031 = vst [vmem:[#allocation18_spill] sm:$0xff] %v7226_v44  ;;  %1011 = vmatmul.f32.gmra.mxu2 %v7224_v56  ;;  %1100 = vmatmul.f32.gmra.mxu3 %v7153_v8  ;;  %v6009_v56 = vld [vmem:[%s9943_s1 + $0x300] sm:$0xff] }
  0xca   : > { %1433 = vmatpush.msrb.mxu2 %v6009_v56  ;;  %v7273_v56 = vld [vmem:[%s6795_s6 + $0xba] sm:$0xff] }
  0xcb   : > { %10036 = vst [vmem:[#allocation23_spill] sm:$0xff] %v7273_v56 }
  0xcc   : > { %v964_v45 = vpop.f32.mrf.mxu2  ;;  %v1053_v49 = vpop.f32.mrf.mxu3  ;;  %2090 = vmatpush.msra.mxu2 %v6607_v1 }
  0xcd   : > { %v965_v50 = vadd.f32 %v964_v45, %v876_v34  ;;  %v789_v57 = vpop.f32.mrf.mxu0  ;;  %v878_v44 = vpop.f32.mrf.mxu1 }
  0xce   : > { %v879_v34 = vadd.f32 %v878_v44, %v789_v57  ;;  %2091 = vmatpush.msra.mxu2 %v6625_v5 }
  0xcf   : > { %v7247_v62 = vadd.f32 %v1053_v49, %v965_v50 }
  0xd0   : > { %836 = vmatmul.f32.gmra.mxu0 %v7239_v20  ;;  %925 = vmatmul.f32.gmra.mxu1 %v7242_v33 }
  0xd1   : > { %10034 = vst [vmem:[#allocation21_spill] sm:$0xff] %v7247_v62  ;;  %1014 = vmatmul.f32.gmra.mxu2 %v7245_v61  ;;  %1103 = vmatmul.f32.gmra.mxu3 %v7172_v23  ;;  %v7266_v61 = vld [vmem:[%s6795_s6 + $0xb8] sm:$0xff] }
  0xd2   : > { %v7269_v62 = vld [vmem:[%s6795_s6 + $0xb9] sm:$0xff] }
  0xd3   : > { %10035 = vst [vmem:[#allocation22_spill] sm:$0xff] %v7269_v62 }
  0xd4   : > { %v967_v45 = vpop.f32.mrf.mxu2  ;;  %v1056_v49 = vpop.f32.mrf.mxu3 }
  0xd5   : > { %v968_v44 = vadd.f32 %v967_v45, %v879_v34  ;;  %v792_v50 = vpop.f32.mrf.mxu0  ;;  %v881_v57 = vpop.f32.mrf.mxu1 }
  0xd6   : > { %v882_v2 = vadd.f32 %v881_v57, %v792_v50  ;;  %v6056_v57 = vld [vmem:[%s9943_s1 + $0x478] sm:$0xff] }
  0xd7   : > { %v7275_v1 = vadd.f32 %v1056_v49, %v968_v44  ;;  %v7285_v49 = vld [vmem:[%s6795_s6 + $0xc0] sm:$0xff]  ;;  %1596 = vmatpush.msra.mxu0 %v6056_v57 }
  0xd8   : > { %839 = vmatmul.f32.gmra.mxu0 %v7266_v61  ;;  %928 = vmatmul.f32.gmra.mxu1 %v7269_v62  ;;  %v7288_v44 = vld [vmem:[%s6795_s6 + $0xc1] sm:$0xff] }
  0xd9   : > { %10037 = vst [vmem:[#allocation24_spill] sm:$0xff] %v7275_v1  ;;  %1017 = vmatmul.f32.gmra.mxu2 %v7273_v56  ;;  %1106 = vmatmul.f32.gmra.mxu3 %v7194_v15  ;;  %v501_v1 = vld [vmem:[%s6795_s6 + $0xc2] sm:$0xff] }
  0xda   : > { %10038 = vst [vmem:[#allocation25_spill] sm:$0xff] %v7288_v44 }
  0xdc   : > { %v970_v5 = vpop.f32.mrf.mxu2  ;;  %v1059_v28 = vpop.f32.mrf.mxu3 }
  0xdd   : > { %v971_v34 = vadd.f32 %v970_v5, %v882_v2  ;;  %v795_v38 = vpop.f32.mrf.mxu0  ;;  %v884_v45 = vpop.f32.mrf.mxu1 }
  0xde   : > { %v885_v50 = vadd.f32 %v884_v45, %v795_v38 }
  0xdf   : > { %v7291_v62 = vadd.f32 %v1059_v28, %v971_v34  ;;  %v7300_v28 = vld [vmem:[%s6795_s6 + $0xc8] sm:$0xff] }
  0xe0   : > { %842 = vmatmul.f32.gmra.mxu0 %v7285_v49  ;;  %931 = vmatmul.f32.gmra.mxu1 %v7288_v44  ;;  %10040 = vst [vmem:[#allocation27_spill] sm:$0xff] %v7300_v28  ;;  %v7303_v34 = vld [vmem:[%s6795_s6 + $0xc9] sm:$0xff] }
  0xe1   : > { %10039 = vst [vmem:[#allocation26_spill] sm:$0xff] %v7291_v62  ;;  %1020 = vmatmul.f32.gmra.mxu2 %v501_v1  ;;  %1109 = vmatmul.f32.gmra.mxu3 %v7218_v14  ;;  %v502_v62 = vld [vmem:[%s6795_s6 + $0xca] sm:$0xff] }
  0xe2   : > { %10041 = vst [vmem:[#allocation28_spill] sm:$0xff] %v7303_v34  ;;  %v6103_v1 = vld [vmem:[%s9943_s1 + $0x2f0] sm:$0xff] }
  0xe3   : > { %2180 = vmatpush.msra.mxu3 %v6103_v1  ;;  %v7318_v44 = vld [vmem:[%s6795_s6 + $0xd0] sm:$0xff]  ;;  %v6086_v1 = vld [vmem:[%s9943_s1 + $0x268] sm:$0xff] }
  0xe4   : > { %v973_v0 = vpop.f32.mrf.mxu2  ;;  %v1062_v2 = vpop.f32.mrf.mxu3  ;;  %10043 = vst [vmem:[#allocation30_spill] sm:$0xff] %v7318_v44  ;;  %2092 = vmatpush.msra.mxu2 %v6086_v1 }
  0xe5   : > { %v974_v5 = vadd.f32 %v973_v0, %v885_v50  ;;  %v798_v56 = vpop.f32.mrf.mxu0  ;;  %v887_v33 = vpop.f32.mrf.mxu1  ;;  %v6071_v50 = vld [vmem:[%s9943_s1 + $0x1f0] sm:$0xff] }
  0xe6   : > { %v888_v45 = vadd.f32 %v887_v33, %v798_v56  ;;  %2002 = vmatpush.msra.mxu1 %v6071_v50 }
  0xe7   : > { %v7306_v38 = vadd.f32 %v1062_v2, %v974_v5 }
  0xe8   : > { %845 = vmatmul.f32.gmra.mxu0 %v7300_v28  ;;  %934 = vmatmul.f32.gmra.mxu1 %v7303_v34  ;;  %v7321_v28 = vld [vmem:[%s6795_s6 + $0xd1] sm:$0xff] }
  0xe9   : > { %10042 = vst [vmem:[#allocation29_spill] sm:$0xff] %v7306_v38  ;;  %1023 = vmatmul.f32.gmra.mxu2 %v502_v62  ;;  %1112 = vmatmul.f32.gmra.mxu3 %v7239_v20  ;;  %v503_v34 = vld [vmem:[%s6795_s6 + $0xd2] sm:$0xff] }
  0xea   : > { %10044 = vst [vmem:[#allocation31_spill] sm:$0xff] %v7321_v28  ;;  %v6055_v62 = vld [vmem:[%s9943_s1 + $0x470] sm:$0xff] }
  0xeb   : > { %1597 = vmatpush.msra.mxu0 %v6055_v62 }
  0xec   : > { %v976_v57 = vpop.f32.mrf.mxu2  ;;  %v1065_v0 = vpop.f32.mrf.mxu3 }
  0xed   : > { %v977_v2 = vadd.f32 %v976_v57, %v888_v45  ;;  %v801_v5 = vpop.f32.mrf.mxu0  ;;  %v890_v38 = vpop.f32.mrf.mxu1  ;;  %v6102_v45 = vld [vmem:[%s9943_s1 + $0x2e8] sm:$0xff] }
  0xee   : > { %v891_v56 = vadd.f32 %v890_v38, %v801_v5  ;;  %2181 = vmatpush.msra.mxu3 %v6102_v45  ;;  %v369_v38 = vld [vmem:[%s6795_s6 + $0x1] sm:$0xff] }
  0xef   : > { %v7324_v33 = vadd.f32 %v1065_v0, %v977_v2 }
  0xf0   : > { %848 = vmatmul.f32.gmra.mxu0 %v7318_v44  ;;  %937 = vmatmul.f32.gmra.mxu1 %v7321_v28  ;;  %v6070_v28 = vld [vmem:[%s9943_s1 + $0x1e8] sm:$0xff] }
  0xf1   : > { %10045 = vst [vmem:[#allocation32_spill] sm:$0xff] %v7324_v33  ;;  %1026 = vmatmul.f32.gmra.mxu2 %v503_v34  ;;  %1115 = vmatmul.f32.gmra.mxu3 %v7266_v61  ;;  %v477_v34 = vld [vmem:[%s6795_s6 + $0x2] sm:$0xff]  ;;  %v478_v44 = vld [vmem:[%s6795_s6 + $0xa] sm:$0xff] }
  0xf2   : > { %2003 = vmatpush.msra.mxu1 %v6070_v28 }
  0xf4   : > { %v979_v50 = vpop.f32.mrf.mxu2  ;;  %v1068_v57 = vpop.f32.mrf.mxu3 }
  0xf5   : > { %v980_v0 = vadd.f32 %v979_v50, %v891_v56  ;;  %v804_v2 = vpop.f32.mrf.mxu0  ;;  %v893_v33 = vpop.f32.mrf.mxu1  ;;  %v6054_v56 = vld [vmem:[%s9943_s1 + $0x468] sm:$0xff] }
  0xf6   : > { %v894_v62 = vadd.f32 %v893_v33, %v804_v2  ;;  %1598 = vmatpush.msra.mxu0 %v6054_v56  ;;  %v6101_v33 = vld [vmem:[%s9943_s1 + $0x2e0] sm:$0xff] }
  0xf7   : > { %v7340_v5 = vadd.f32 %v1068_v57, %v980_v0  ;;  %v6069_v2 = vld [vmem:[%s9943_s1 + $0x1e0] sm:$0xff]  ;;  %2182 = vmatpush.msra.mxu3 %v6101_v33 }
  0xf8   : > { %1135 = vmatmul.f32.vlgmr.msrb.gmra.mxu0 %v369_v38  ;;  %1224 = vmatmul.f32.vlgmr.msrb.gmra.mxu1 %v477_v34 }
  0xf9   : > { %10046 = vst [vmem:[#allocation33_spill] sm:$0xff] %v7340_v5  ;;  %1434 = vmatmul.f32.vlgmr.msrb.gmra.mxu2 %v6906_v35  ;;  %1523 = vmatmul.f32.vlgmr.msrb.gmra.mxu3 %v6909_v36  ;;  %v370_v5 = vld [vmem:[%s6795_s6 + $0x9] sm:$0xff]  ;;  %v6085_v35 = vld [vmem:[%s9943_s1 + $0x260] sm:$0xff] }
  0xfa   : > { %2093 = vmatpush.msra.mxu2 %v6085_v35  ;;  %2004 = vmatpush.msra.mxu1 %v6069_v2  ;;  %v6100_v35 = vld [vmem:[%s9943_s1 + $0x2d8] sm:$0xff] }
  0xfb   : > { %2183 = vmatpush.msra.mxu3 %v6100_v35 }
  0xfc   : > { %v982_v1 = vpop.f32.mrf.mxu2  ;;  %v1071_v45 = vpop.f32.mrf.mxu3 }
  0xfd   : > { %v983_v50 = vadd.f32 %v982_v1, %v894_v62  ;;  %v807_v57 = vpop.f32.mrf.mxu0  ;;  %v896_v0 = vpop.f32.mrf.mxu1 }
  0xfe   : > { %v897_v28 = vadd.f32 %v896_v0, %v807_v57  ;;  %v6084_v0 = vld [vmem:[%s9943_s1 + $0x258] sm:$0xff] }
  0xff   : > { %v7352_v38 = vadd.f32 %v1071_v45, %v983_v50  ;;  %v371_v50 = vld [vmem:[%s6795_s6 + $0x11] sm:$0xff]  ;;  %2094 = vmatpush.msra.mxu2 %v6084_v0 }
 0x100   : > { %1138 = vmatmul.f32.gmra.mxu0 %v370_v5  ;;  %1227 = vmatmul.f32.gmra.mxu1 %v478_v44  ;;  %v479_v5 = vld [vmem:[%s6795_s6 + $0x12] sm:$0xff] }
 0x101   : > { %1437 = vmatmul.f32.gmra.mxu2 %v6928_v41  ;;  %1526 = vmatmul.f32.gmra.mxu3 %v6931_v42  ;;  %v6053_v41 = vld [vmem:[%s9943_s1 + $0x460] sm:$0xff] }
 0x102   : > { %1599 = vmatpush.msra.mxu0 %v6053_v41 }
 0x104   : > { %v985_v34 = vpop.f32.mrf.mxu2  ;;  %v1074_v62 = vpop.f32.mrf.mxu3 }
 0x105   : > { %v986_v56 = vadd.f32 %v985_v34, %v897_v28  ;;  %v810_v1 = vpop.f32.mrf.mxu0  ;;  %v899_v45 = vpop.f32.mrf.mxu1 }
 0x106   : > { %v900_v57 = vadd.f32 %v899_v45, %v810_v1  ;;  %v6052_v45 = vld [vmem:[%s9943_s1 + $0x458] sm:$0xff] }
 0x107   : > { %v7367_v44 = vadd.f32 %v1074_v62, %v986_v56  ;;  %1600 = vmatpush.msra.mxu0 %v6052_v45  ;;  %v6098_v45 = vld [vmem:[%s9943_s1 + $0x2c8] sm:$0xff] }
 0x108   : > { %1141 = vmatmul.f32.gmra.mxu0 %v371_v50  ;;  %1230 = vmatmul.f32.gmra.mxu1 %v479_v5 }
 0x109   : > { %1440 = vmatmul.f32.gmra.mxu2 %v6946_v46  ;;  %1529 = vmatmul.f32.gmra.mxu3 %v6949_v47  ;;  %v6068_v46 = vld [vmem:[%s9943_s1 + $0x1d8] sm:$0xff] }
 0x10a   : > { %2005 = vmatpush.msra.mxu1 %v6068_v46 }
 0x10c   : > { %v988_v33 = vpop.f32.mrf.mxu2  ;;  %v1077_v28 = vpop.f32.mrf.mxu3 }
 0x10d   : > { %v989_v2 = vadd.f32 %v988_v33, %v900_v57  ;;  %v813_v34 = vpop.f32.mrf.mxu0  ;;  %v902_v62 = vpop.f32.mrf.mxu1  ;;  %v6067_v33 = vld [vmem:[%s9943_s1 + $0x1d0] sm:$0xff] }
 0x10e   : > { %v903_v1 = vadd.f32 %v902_v62, %v813_v34  ;;  %2006 = vmatpush.msra.mxu1 %v6067_v33 }
 0x10f   : > { %v7380_v56 = vadd.f32 %v1077_v28, %v989_v2 }
 0x110   : > { %1144 = vmatmul.f32.gmra.mxu0 %v6819_v4  ;;  %1233 = vmatmul.f32.gmra.mxu1 %v6822_v6  ;;  %v6083_v4 = vld [vmem:[%s9943_s1 + $0x250] sm:$0xff] }
 0x111   : > { %1443 = vmatmul.f32.gmra.mxu2 %v6967_v52  ;;  %1532 = vmatmul.f32.gmra.mxu3 %v6970_v53  ;;  %v6099_v6 = vld [vmem:[%s9943_s1 + $0x2d0] sm:$0xff] }
 0x112   : > { %2095 = vmatpush.msra.mxu2 %v6083_v4  ;;  %2184 = vmatpush.msra.mxu3 %v6099_v6  ;;  %v6050_v4 = vld [vmem:[%s9943_s1 + $0x448] sm:$0xff] }
 0x114   : > { %v991_v50 = vpop.f32.mrf.mxu2  ;;  %v1080_v5 = vpop.f32.mrf.mxu3  ;;  %2185 = vmatpush.msra.mxu3 %v6098_v45 }
 0x115   : > { %v992_v41 = vadd.f32 %v991_v50, %v903_v1  ;;  %v816_v57 = vpop.f32.mrf.mxu0  ;;  %v905_v0 = vpop.f32.mrf.mxu1  ;;  %v6082_v1 = vld [vmem:[%s9943_s1 + $0x248] sm:$0xff] }
 0x116   : > { %v906_v52 = vadd.f32 %v905_v0, %v816_v57  ;;  %2096 = vmatpush.msra.mxu2 %v6082_v1 }
 0x117   : > { %v7392_v35 = vadd.f32 %v1080_v5, %v992_v41 }
 0x118   : > { %1147 = vmatmul.f32.gmra.mxu0 %v6866_v21  ;;  %1236 = vmatmul.f32.gmra.mxu1 %v6869_v22  ;;  %v6051_v22 = vld [vmem:[%s9943_s1 + $0x450] sm:$0xff] }
 0x119   : > { %1446 = vmatmul.f32.gmra.mxu2 %v6989_v58  ;;  %1535 = vmatmul.f32.gmra.mxu3 %v6992_v59 }
 0x11a   : > { %1601 = vmatpush.msra.mxu0 %v6051_v22 }
 0x11c   : > { %v994_v28 = vpop.f32.mrf.mxu2  ;;  %v1083_v2 = vpop.f32.mrf.mxu3  ;;  %1602 = vmatpush.msra.mxu0 %v6050_v4  ;;  %v6048_v4 = vld [vmem:[%s9943_s1 + $0x438] sm:$0xff] }
 0x11d   : > { %v995_v34 = vadd.f32 %v994_v28, %v906_v52  ;;  %v819_v62 = vpop.f32.mrf.mxu0  ;;  %v908_v46 = vpop.f32.mrf.mxu1 }
 0x11e   : > { %v909_v58 = vadd.f32 %v908_v46, %v819_v62  ;;  %v6065_v62 = vld [vmem:[%s9943_s1 + $0x1c0] sm:$0xff] }
 0x11f   : > { %v7407_v21 = vadd.f32 %v1083_v2, %v995_v34 }
 0x120   : > { %1150 = vmatmul.f32.gmra.mxu0 %v6888_v29  ;;  %1239 = vmatmul.f32.gmra.mxu1 %v6891_v30 }
 0x121   : > { %1449 = vmatmul.f32.gmra.mxu2 %v7008_v63  ;;  %1538 = vmatmul.f32.gmra.mxu3 %v7011_v3  ;;  %v6066_v63 = vld [vmem:[%s9943_s1 + $0x1c8] sm:$0xff] }
 0x122   : > { %2007 = vmatpush.msra.mxu1 %v6066_v63 }
 0x124   : > { %v997_v50 = vpop.f32.mrf.mxu2  ;;  %v1086_v29 = vpop.f32.mrf.mxu3  ;;  %2008 = vmatpush.msra.mxu1 %v6065_v62 }
 0x125   : > { %v998_v5 = vadd.f32 %v997_v50, %v909_v58  ;;  %v822_v30 = vpop.f32.mrf.mxu0  ;;  %v911_v41 = vpop.f32.mrf.mxu1  ;;  %v6080_v50 = vld [vmem:[%s9943_s1 + $0x238] sm:$0xff] }
 0x126   : > { %v912_v0 = vadd.f32 %v911_v41, %v822_v30 }
 0x127   : > { %v7422_v57 = vadd.f32 %v1086_v29, %v998_v5  ;;  %v6096_v29 = vld [vmem:[%s9943_s1 + $0x2b8] sm:$0xff] }
 0x128   : > { %1153 = vmatmul.f32.gmra.mxu0 %v6909_v36  ;;  %1242 = vmatmul.f32.gmra.mxu1 %v6912_v37  ;;  %v6081_v36 = vld [vmem:[%s9943_s1 + $0x240] sm:$0xff] }
 0x129   : > { %1452 = vmatmul.f32.gmra.mxu2 %v7030_v11  ;;  %1541 = vmatmul.f32.gmra.mxu3 %v7033_v12  ;;  %v6097_v37 = vld [vmem:[%s9943_s1 + $0x2c0] sm:$0xff] }
 0x12a   : > { %2097 = vmatpush.msra.mxu2 %v6081_v36  ;;  %2186 = vmatpush.msra.mxu3 %v6097_v37  ;;  %v6063_v37 = vld [vmem:[%s9943_s1 + $0x1b0] sm:$0xff] }
 0x12c   : > { %v1000_v6 = vpop.f32.mrf.mxu2  ;;  %v1089_v52 = vpop.f32.mrf.mxu3  ;;  %2098 = vmatpush.msra.mxu2 %v6080_v50  ;;  %2187 = vmatpush.msra.mxu3 %v6096_v29 }
 0x12d   : > { %v1001_v33 = vadd.f32 %v1000_v6, %v912_v0  ;;  %v825_v28 = vpop.f32.mrf.mxu0  ;;  %v914_v2 = vpop.f32.mrf.mxu1 }
 0x12e   : > { %v915_v11 = vadd.f32 %v914_v2, %v825_v28 }
 0x12f   : > { %v7434_v34 = vadd.f32 %v1089_v52, %v1001_v33 }
 0x130   : > { %1156 = vmatmul.f32.gmra.mxu0 %v6931_v42  ;;  %1245 = vmatmul.f32.gmra.mxu1 %v6934_v43  ;;  %v6049_v43 = vld [vmem:[%s9943_s1 + $0x440] sm:$0xff] }
 0x131   : > { %1455 = vmatmul.f32.gmra.mxu2 %v7052_v17  ;;  %1544 = vmatmul.f32.gmra.mxu3 %v7055_v18 }
 0x132   : > { %1603 = vmatpush.msra.mxu0 %v6049_v43 }
 0x134   : > { %v1003_v46 = vpop.f32.mrf.mxu2  ;;  %v1092_v22 = vpop.f32.mrf.mxu3  ;;  %1604 = vmatpush.msra.mxu0 %v6048_v4 }
 0x135   : > { %v1004_v58 = vadd.f32 %v1003_v46, %v915_v11  ;;  %v828_v1 = vpop.f32.mrf.mxu0  ;;  %v917_v45 = vpop.f32.mrf.mxu1 }
 0x136   : > { %v918_v17 = vadd.f32 %v917_v45, %v828_v1  ;;  %v6078_v1 = vld [vmem:[%s9943_s1 + $0x228] sm:$0xff] }
 0x137   : > { %v7449_v42 = vadd.f32 %v1092_v22, %v1004_v58  ;;  %v6094_v45 = vld [vmem:[%s9943_s1 + $0x2a8] sm:$0xff] }
 0x138   : > { %1159 = vmatmul.f32.gmra.mxu0 %v6949_v47  ;;  %1248 = vmatmul.f32.gmra.mxu1 %v6952_v48 }
 0x139   : > { %1458 = vmatmul.f32.gmra.mxu2 %v7071_v24  ;;  %1547 = vmatmul.f32.gmra.mxu3 %v7074_v25  ;;  %v6064_v24 = vld [vmem:[%s9943_s1 + $0x1b8] sm:$0xff] }
 0x13a   : > { %2009 = vmatpush.msra.mxu1 %v6064_v24  ;;  %v6077_v24 = vld [vmem:[%s9943_s1 + $0x220] sm:$0xff] }
 0x13c   : > { %v1006_v5 = vpop.f32.mrf.mxu2  ;;  %v1095_v47 = vpop.f32.mrf.mxu3  ;;  %2010 = vmatpush.msra.mxu1 %v6063_v37 }
 0x13d   : > { %v1007_v30 = vadd.f32 %v1006_v5, %v918_v17  ;;  %v831_v48 = vpop.f32.mrf.mxu0  ;;  %v920_v41 = vpop.f32.mrf.mxu1 }
 0x13e   : > { %v921_v0 = vadd.f32 %v920_v41, %v831_v48 }
 0x13f   : > { %v7464_v63 = vadd.f32 %v1095_v47, %v1007_v30  ;;  %v6046_v47 = vld [vmem:[%s9943_s1 + $0x428] sm:$0xff] }
 0x140   : > { %1162 = vmatmul.f32.gmra.mxu0 %v6970_v53  ;;  %1251 = vmatmul.f32.gmra.mxu1 %v6973_v54  ;;  %v6079_v53 = vld [vmem:[%s9943_s1 + $0x230] sm:$0xff] }
 0x141   : > { %1461 = vmatmul.f32.gmra.mxu2 %v7090_v31  ;;  %1550 = vmatmul.f32.gmra.mxu3 %v7093_v32  ;;  %v6095_v54 = vld [vmem:[%s9943_s1 + $0x2b0] sm:$0xff] }
 0x142   : > { %2099 = vmatpush.msra.mxu2 %v6079_v53  ;;  %2188 = vmatpush.msra.mxu3 %v6095_v54  ;;  %v6076_v54 = vld [vmem:[%s9943_s1 + $0x218] sm:$0xff] }
 0x144   : > { %v1009_v6 = vpop.f32.mrf.mxu2  ;;  %v1098_v52 = vpop.f32.mrf.mxu3  ;;  %2100 = vmatpush.msra.mxu2 %v6078_v1  ;;  %2189 = vmatpush.msra.mxu3 %v6094_v45 }
 0x145   : > { %v1010_v33 = vadd.f32 %v1009_v6, %v921_v0  ;;  %v834_v28 = vpop.f32.mrf.mxu0  ;;  %v923_v2 = vpop.f32.mrf.mxu1  ;;  %v6061_v6 = vld [vmem:[%s9943_s1 + $0x1a0] sm:$0xff] }
 0x146   : > { %v924_v31 = vadd.f32 %v923_v2, %v834_v28  ;;  %2101 = vmatpush.msra.mxu2 %v6077_v24  ;;  %v6045_v2 = vld [vmem:[%s9943_s1 + $0x420] sm:$0xff]  ;;  %v6043_v24 = vld [vmem:[%s9943_s1 + $0x410] sm:$0xff] }
 0x147   : > { %v7476_v36 = vadd.f32 %v1098_v52, %v1010_v33 }
 0x148   : > { %1165 = vmatmul.f32.gmra.mxu0 %v6992_v59  ;;  %1254 = vmatmul.f32.gmra.mxu1 %v6995_v60  ;;  %v6047_v60 = vld [vmem:[%s9943_s1 + $0x430] sm:$0xff] }
 0x149   : > { %1464 = vmatmul.f32.gmra.mxu2 %v7109_v39  ;;  %1553 = vmatmul.f32.gmra.mxu3 %v7112_v40 }
 0x14a   : > { %1605 = vmatpush.msra.mxu0 %v6047_v60  ;;  %2102 = vmatpush.msra.mxu2 %v6076_v54  ;;  %v6044_v60 = vld [vmem:[%s9943_s1 + $0x418] sm:$0xff]  ;;  %v10054_v54 = vld [vmem:[#allocation21_spill] sm:$0xff] }
 0x14c   : > { %v1012_v11 = vpop.f32.mrf.mxu2  ;;  %v1101_v62 = vpop.f32.mrf.mxu3  ;;  %1606 = vmatpush.msra.mxu0 %v6046_v47  ;;  %v10050_v47 = vld [vmem:[#allocation19_spill] sm:$0xff] }
 0x14d   : > { %v1013_v46 = vadd.f32 %v1012_v11, %v924_v31  ;;  %v837_v22 = vpop.f32.mrf.mxu0  ;;  %v926_v58 = vpop.f32.mrf.mxu1  ;;  %v6092_v31 = vld [vmem:[%s9943_s1 + $0x298] sm:$0xff] }
 0x14e   : > { %v927_v39 = vadd.f32 %v926_v58, %v837_v22  ;;  %1607 = vmatpush.msra.mxu0 %v6045_v2  ;;  %v6060_v22 = vld [vmem:[%s9943_s1 + $0x198] sm:$0xff] }
 0x14f   : > { %v7491_v59 = vadd.f32 %v1101_v62, %v1013_v46 }
 0x150   : > { %1168 = vmatmul.f32.gmra.mxu0 %v7011_v3  ;;  %1257 = vmatmul.f32.gmra.mxu1 %v7014_v7 }
 0x151   : > { %1467 = vmatmul.f32.gmra.mxu2 %v7131_v51  ;;  %1556 = vmatmul.f32.gmra.mxu3 %v7134_v55  ;;  %v6062_v51 = vld [vmem:[%s9943_s1 + $0x1a8] sm:$0xff] }
 0x152   : > { %2011 = vmatpush.msra.mxu1 %v6062_v51  ;;  %1608 = vmatpush.msra.mxu0 %v6044_v60  ;;  %v10049_v51 = vld [vmem:[#allocation11_spill] sm:$0xff] }
 0x153   : > { %v6073_v60 = vld [vmem:[%s9943_s1 + $0x200] sm:$0xff] }
 0x154   : > { %v1015_v43 = vpop.f32.mrf.mxu2  ;;  %v1104_v3 = vpop.f32.mrf.mxu3  ;;  %2012 = vmatpush.msra.mxu1 %v6061_v6  ;;  %1609 = vmatpush.msra.mxu0 %v6043_v24  ;;  %v10052_v6 = vld [vmem:[#allocation12_spill] sm:$0xff]  ;;  %v10062_v24 = vld [vmem:[#allocation15_spill] sm:$0xff] }
 0x155   : > { %v1016_v17 = vadd.f32 %v1015_v43, %v927_v39  ;;  %v840_v7 = vpop.f32.mrf.mxu0  ;;  %v929_v50 = vpop.f32.mrf.mxu1 }
 0x156   : > { %v930_v5 = vadd.f32 %v929_v50, %v840_v7  ;;  %2013 = vmatpush.msra.mxu1 %v6060_v22 }
 0x157   : > { %v7506_v29 = vadd.f32 %v1104_v3, %v1016_v17  ;;  %v6075_v3 = vld [vmem:[%s9943_s1 + $0x210] sm:$0xff]  ;;  %v10048_v17 = vld [vmem:[#allocation16_spill] sm:$0xff] }
 0x158   : > { %1171 = vmatmul.f32.gmra.mxu0 %v7033_v12  ;;  %1260 = vmatmul.f32.gmra.mxu1 %v7036_v13 }
 0x159   : > { %1470 = vmatmul.f32.gmra.mxu2 %v7153_v8  ;;  %1559 = vmatmul.f32.gmra.mxu3 %v7156_v9  ;;  %v6093_v8 = vld [vmem:[%s9943_s1 + $0x2a0] sm:$0xff] }
 0x15a   : > { %2190 = vmatpush.msra.mxu3 %v6093_v8  ;;  %2103 = vmatpush.msra.mxu2 %v6075_v3  ;;  %v10051_v8 = vld [vmem:[#allocation18_spill] sm:$0xff]  ;;  %v10060_v3 = vld [vmem:[#allocation28_spill] sm:$0xff] }
 0x15c   : > { %v1018_v30 = vpop.f32.mrf.mxu2  ;;  %v1107_v48 = vpop.f32.mrf.mxu3  ;;  %2191 = vmatpush.msra.mxu3 %v6092_v31 }
 0x15d   : > { %v1019_v12 = vadd.f32 %v1018_v30, %v930_v5  ;;  %v843_v41 = vpop.f32.mrf.mxu0  ;;  %v932_v13 = vpop.f32.mrf.mxu1  ;;  %v6091_v5 = vld [vmem:[%s9943_s1 + $0x290] sm:$0xff] }
 0x15e   : > { %v933_v4 = vadd.f32 %v932_v13, %v843_v41  ;;  %v6059_v30 = vld [vmem:[%s9943_s1 + $0x190] sm:$0xff]  ;;  %2192 = vmatpush.msra.mxu3 %v6091_v5 }
 0x15f   : > { %v7521_v0 = vadd.f32 %v1107_v48, %v1019_v12  ;;  %2014 = vmatpush.msra.mxu1 %v6059_v30 }
 0x160   : > { %1174 = vmatmul.f32.gmra.mxu0 %v7055_v18  ;;  %1263 = vmatmul.f32.gmra.mxu1 %v7058_v19 }
 0x161   : > { %1473 = vmatmul.f32.gmra.mxu2 %v7172_v23  ;;  %1562 = vmatmul.f32.gmra.mxu3 %v7175_v27 }
 0x164   : > { %v1021_v52 = vpop.f32.mrf.mxu2  ;;  %v1110_v33 = vpop.f32.mrf.mxu3 }
 0x165   : > { %v1022_v18 = vadd.f32 %v1021_v52, %v933_v4  ;;  %v846_v28 = vpop.f32.mrf.mxu0  ;;  %v935_v19 = vpop.f32.mrf.mxu1  ;;  %v10053_v52 = vld [vmem:[#allocation22_spill] sm:$0xff] }
 0x166   : > { %v936_v23 = vadd.f32 %v935_v19, %v846_v28 }
 0x167   : > { %v7536_v53 = vadd.f32 %v1110_v33, %v1022_v18  ;;  %v6074_v33 = vld [vmem:[%s9943_s1 + $0x208] sm:$0xff] }
 0x168   : > { %1177 = vmatmul.f32.gmra.mxu0 %v7074_v25  ;;  %1266 = vmatmul.f32.gmra.mxu1 %v7077_v26  ;;  %v6090_v18 = vld [vmem:[%s9943_s1 + $0x288] sm:$0xff] }
 0x169   : > { %1476 = vmatmul.f32.gmra.mxu2 %v7194_v15  ;;  %1565 = vmatmul.f32.gmra.mxu3 %v7197_v10  ;;  %v10047_v15 = vld [vmem:[#allocation10_spill] sm:$0xff] }
 0x16a   : > { %2104 = vmatpush.msra.mxu2 %v6074_v33  ;;  %2193 = vmatpush.msra.mxu3 %v6090_v18  ;;  %v6120_v33 = vld [vmem:[%s9943_s1 + $0x378] sm:$0xff] }
 0x16c   : > { %v1024_v37 = vpop.f32.mrf.mxu2  ;;  %v1113_v11 = vpop.f32.mrf.mxu3  ;;  %2105 = vmatpush.msra.mxu2 %v6073_v60 }
 0x16d   : > { %v1025_v25 = vadd.f32 %v1024_v37, %v936_v23  ;;  %v849_v62 = vpop.f32.mrf.mxu0  ;;  %v938_v26 = vpop.f32.mrf.mxu1  ;;  %v10055_v37 = vld [vmem:[#allocation13_spill] sm:$0xff] }
 0x16e   : > { %v939_v58 = vadd.f32 %v938_v26, %v849_v62  ;;  %v6042_v62 = vld [vmem:[%s9943_s1 + $0x408] sm:$0xff] }
 0x16f   : > { %v7548_v46 = vadd.f32 %v1113_v11, %v1025_v25  ;;  %v6058_v11 = vld [vmem:[%s9943_s1 + $0x188] sm:$0xff]  ;;  %v10056_v25 = vld [vmem:[#allocation25_spill] sm:$0xff]  ;;  %1610 = vmatpush.msra.mxu0 %v6042_v62  ;;  %v1927_v62 = vld [vmem:[%s9943_s1 + $0xf8] sm:$0xff] }
 0x170   : > { %1180 = vmatmul.f32.gmra.mxu0 %v7093_v32  ;;  %1269 = vmatmul.f32.gmra.mxu1 %v10047_v15 }
 0x171   : > { %1479 = vmatmul.f32.gmra.mxu2 %v7218_v14  ;;  %1568 = vmatmul.f32.gmra.mxu3 %v7221_v16 }
 0x172   : > { %2015 = vmatpush.msra.mxu1 %v6058_v11 }
 0x174   : > { %v1027_v39 = vpop.f32.mrf.mxu2  ;;  %v1116_v1 = vpop.f32.mrf.mxu3 }
 0x175   : > { %v1028_v32 = vadd.f32 %v1027_v39, %v939_v58  ;;  %v1136_v45 = vpop.f32.mrf.mxu0  ;;  %v1225_v43 = vpop.f32.mrf.mxu1  ;;  %v10057_v39 = vld [vmem:[#allocation24_spill] sm:$0xff] }
 0x176   : > { %v1137_v7 = vadd.f32 %v1136_v45, %v10048_v17  ;;  %v6089_v45 = vld [vmem:[%s9943_s1 + $0x280] sm:$0xff] }
 0x177   : > { %v7564_v14 = vadd.f32 %v1116_v1, %v1028_v32  ;;  %v10058_v32 = vld [vmem:[#allocation14_spill] sm:$0xff]  ;;  %v6057_v17 = vld [vmem:[%s9943_s1 + $0x180] sm:$0xff]  ;;  %2194 = vmatpush.msra.mxu3 %v6089_v45 }
 0x178   : > { %v7566_v50 = vadd.f32 %v1225_v43, %v1137_v7  ;;  %1183 = vmatmul.f32.gmra.mxu0 %v7112_v40  ;;  %1272 = vmatmul.f32.gmra.mxu1 %v10049_v51  ;;  %v10059_v43 = vld [vmem:[#allocation27_spill] sm:$0xff] }
 0x179   : > { %1482 = vmatmul.f32.gmra.mxu2 %v7239_v20  ;;  %1571 = vmatmul.f32.gmra.mxu3 %v10050_v47  ;;  %v7675_v45 = vld [vmem:[%s6795_s6 + $0xe0] sm:$0xff] }
 0x17a   : > { %2016 = vmatpush.msra.mxu1 %v6057_v17  ;;  %2655 = vmatpush.msrb.mxu3 %v6120_v33  ;;  %v10068_v17 = vld [vmem:[#allocation20_spill] sm:$0xff] }
 0x17b   : > { %v7699_v33 = vld [vmem:[%s6795_s6 + $0xe8] sm:$0xff] }
 0x17c   : > { %v1435_v48 = vpop.f32.mrf.mxu2  ;;  %v1524_v12 = vpop.f32.mrf.mxu3  ;;  %2357 = vmatpush.msrb.mxu1 %v1927_v62 }
 0x17d   : > { %v7578_v41 = vadd.f32 %v1524_v12, %v1435_v48  ;;  %v1139_v40 = vpop.f32.mrf.mxu0  ;;  %v1228_v13 = vpop.f32.mrf.mxu1  ;;  %v6041_v48 = vld [vmem:[%s9943_s1 + $0x400] sm:$0xff]  ;;  %v10061_v12 = vld [vmem:[#allocation26_spill] sm:$0xff] }
 0x17e   : > { %v1140_v20 = vadd.f32 %v1139_v40, %v10051_v8  ;;  %1611 = vmatpush.msra.mxu0 %v6041_v48  ;;  %v10063_v8 = vld [vmem:[#allocation30_spill] sm:$0xff] }
 0x180   : > { %v7584_v4 = vadd.f32 %v1228_v13, %v1140_v20  ;;  %1186 = vmatmul.f32.gmra.mxu0 %v7134_v55  ;;  %1275 = vmatmul.f32.gmra.mxu1 %v10052_v6  ;;  %v10064_v20 = vld [vmem:[#allocation31_spill] sm:$0xff]  ;;  %v1943_v6 = vld [vmem:[%s9943_s1 + $0x178] sm:$0xff] }
 0x181   : > { %1485 = vmatmul.f32.gmra.mxu2 %v7266_v61  ;;  %1574 = vmatmul.f32.gmra.mxu3 %v10053_v52 }
 0x182   : > { %2446 = vmatpush.msrb.mxu2 %v1943_v6 }
 0x184   : > { %v1438_v28 = vpop.f32.mrf.mxu2  ;;  %v1527_v19 = vpop.f32.mrf.mxu3 }
 0x185   : > { %v7596_v2 = vadd.f32 %v1527_v19, %v1438_v28  ;;  %v1142_v55 = vpop.f32.mrf.mxu0  ;;  %v1231_v23 = vpop.f32.mrf.mxu1 }
 0x186   : > { %v1143_v61 = vadd.f32 %v1142_v55, %v10054_v54 }
 0x188   : > { %v7599_v31 = vadd.f32 %v1231_v23, %v1143_v61  ;;  %1189 = vmatmul.f32.gmra.mxu0 %v7156_v9  ;;  %1278 = vmatmul.f32.gmra.mxu1 %v10055_v37  ;;  %v10065_v23 = vld [vmem:[#allocation29_spill] sm:$0xff]  ;;  %v7651_v61 = vld [vmem:[%s6795_s6 + $0xd8] sm:$0xff] }
 0x189   : > { %1488 = vmatmul.f32.gmra.mxu2 %v7285_v49  ;;  %1577 = vmatmul.f32.gmra.mxu3 %v10056_v25  ;;  %v7654_v37 = vld [vmem:[%s6795_s6 + $0xd9] sm:$0xff]  ;;  %v10066_v25 = vld [vmem:[#allocation17_spill] sm:$0xff] }
 0x18c   : > { %v1441_v26 = vpop.f32.mrf.mxu2  ;;  %v1530_v15 = vpop.f32.mrf.mxu3 }
 0x18d   : > { %v7611_v22 = vadd.f32 %v1530_v15, %v1441_v26  ;;  %v1145_v9 = vpop.f32.mrf.mxu0  ;;  %v1234_v58 = vpop.f32.mrf.mxu1  ;;  %v1911_v26 = vld [vmem:[%s9943_s1 + $0x78] sm:$0xff] }
 0x18e   : > { %v1146_v49 = vadd.f32 %v1145_v9, %v10057_v39  ;;  %2268 = vmatpush.msrb.mxu0 %v1911_v26  ;;  %v1942_v39 = vld [vmem:[%s9943_s1 + $0x170] sm:$0xff] }
 0x18f   : > { %2447 = vmatpush.msrb.mxu2 %v1942_v39  ;;  %v1925_v39 = vld [vmem:[%s9943_s1 + $0xe8] sm:$0xff] }
 0x190   : > { %v7617_v1 = vadd.f32 %v1234_v58, %v1146_v49  ;;  %1192 = vmatmul.f32.gmra.mxu0 %v7175_v27  ;;  %1281 = vmatmul.f32.gmra.mxu1 %v10058_v32  ;;  %v10067_v49 = vld [vmem:[#allocation32_spill] sm:$0xff] }
 0x191   : > { %1491 = vmatmul.f32.gmra.mxu2 %v10059_v43  ;;  %1580 = vmatmul.f32.gmra.mxu3 %v10060_v3  ;;  %v7678_v43 = vld [vmem:[%s6795_s6 + $0xe1] sm:$0xff] }
 0x194   : > { %v1444_v7 = vpop.f32.mrf.mxu2  ;;  %v1533_v51 = vpop.f32.mrf.mxu3 }
 0x195   : > { %v7629_v5 = vadd.f32 %v1533_v51, %v1444_v7  ;;  %v1148_v27 = vpop.f32.mrf.mxu0  ;;  %v1237_v30 = vpop.f32.mrf.mxu1  ;;  %v6119_v7 = vld [vmem:[%s9943_s1 + $0x370] sm:$0xff] }
 0x196   : > { %v1149_v40 = vadd.f32 %v1148_v27, %v10061_v12  ;;  %v1926_v51 = vld [vmem:[%s9943_s1 + $0xf0] sm:$0xff]  ;;  %2656 = vmatpush.msrb.mxu3 %v6119_v7  ;;  %v6506_v27 = vmov 0  }
 0x197   : > { %6216 = vset.pattern.permute.xlu0 %v6506_v27  ;;  %2358 = vmatpush.msrb.mxu1 %v1926_v51  ;;  %v1940_v51 = vld [vmem:[%s9943_s1 + $0x160] sm:$0xff] }
 0x198   : > { %v7635_v13 = vadd.f32 %v1237_v30, %v1149_v40  ;;  %1195 = vmatmul.f32.gmra.mxu0 %v7197_v10  ;;  %1284 = vmatmul.f32.gmra.mxu1 %v10062_v24 }
 0x199   : > { %1494 = vmatmul.f32.gmra.mxu2 %v10063_v8  ;;  %1583 = vmatmul.f32.gmra.mxu3 %v10064_v20  ;;  %v1910_v8 = vld [vmem:[%s9943_s1 + $0x70] sm:$0xff] }
 0x19a   : > { %6217 = vset.pattern.permute.xlu1 %v6506_v27  ;;  %v10069_v20 = vld [vmem:[#allocation33_spill] sm:$0xff]  ;;  %2269 = vmatpush.msrb.mxu0 %v1910_v8 }
 0x19b   : > { %2359 = vmatpush.msrb.mxu1 %v1925_v39 }
 0x19c   : > { %v1447_v18 = vpop.f32.mrf.mxu2  ;;  %v1536_v28 = vpop.f32.mrf.mxu3 }
 0x19d   : > { %v7647_v19 = vadd.f32 %v1536_v28, %v1447_v18  ;;  %v1151_v10 = vpop.f32.mrf.mxu0  ;;  %v1240_v55 = vpop.f32.mrf.mxu1  ;;  %v7702_v18 = vld [vmem:[%s6795_s6 + $0xe9] sm:$0xff] }
 0x19e   : > { %v1152_v54 = vadd.f32 %v1151_v10, %v10065_v23  ;;  %v10070_v10 = vld [vmem:[#allocation23_spill] sm:$0xff]  ;;  %v6118_v23 = vld [vmem:[%s9943_s1 + $0x368] sm:$0xff] }
 0x19f   : > { %2657 = vmatpush.msrb.mxu3 %v6118_v23 }
 0x1a0   : > { %v7656_v11 = vadd.f32 %v1240_v55, %v1152_v54  ;;  %1198 = vmatmul.f32.gmra.mxu0 %v7221_v16  ;;  %1287 = vmatmul.f32.gmra.mxu1 %v10066_v25  ;;  %v1941_v55 = vld [vmem:[%s9943_s1 + $0x168] sm:$0xff] }
 0x1a1   : > { %1497 = vmatmul.f32.gmra.mxu2 %v7651_v61  ;;  %1586 = vmatmul.f32.gmra.mxu3 %v7654_v37 }
 0x1a2   : > { %2448 = vmatpush.msrb.mxu2 %v1941_v55  ;;  %v7762_v55 = vld [vmem:[%s6795_s6 + $0xea] sm:$0xff] }
 0x1a4   : > { %v1450_v15 = vpop.f32.mrf.mxu2  ;;  %v1539_v9 = vpop.f32.mrf.mxu3  ;;  %2449 = vmatpush.msrb.mxu2 %v1940_v51 }
 0x1a5   : > { %v7668_v16 = vadd.f32 %v1539_v9, %v1450_v15  ;;  %v1154_v58 = vpop.f32.mrf.mxu0  ;;  %v1243_v60 = vpop.f32.mrf.mxu1  ;;  %v7720_v9 = vld [vmem:[%s6795_s6 + $0xda] sm:$0xff] }
 0x1a6   : > { %v1155_v32 = vadd.f32 %v1154_v58, %v10067_v49  ;;  %v6508_v49 = vmov 0.0  }
 0x1a7   : > { %240 = vst [vmem:[#allocation2] sm:$0xff] %v6508_v49  ;;  %1773 = vperm.xlu1 %6217, %v6508_v49  }
 0x1a8   : > { %v7680_v3 = vadd.f32 %v1243_v60, %v1155_v32  ;;  %1201 = vmatmul.f32.gmra.mxu0 %v10050_v47  ;;  %1290 = vmatmul.f32.gmra.mxu1 %v10068_v17  ;;  %v6507_v47 = vmov 1.0   ;;  %v6222_v60 = vld [vmem:[%s6795_s6 + $0x32] sm:$0xff]  ;;  %241 = vst [vmem:[#allocation2 + $0x8] sm:$0xff] %v6508_v49 }
 0x1a9   : > { %1500 = vmatmul.f32.gmra.mxu2 %v7675_v45  ;;  %1589 = vmatmul.f32.gmra.mxu3 %v7678_v43  ;;  %242 = vst [vmem:[#allocation2 + $0x10] sm:$0xff] %v6508_v49 }
 0x1aa   : > { %1763 = vperm.xlu0 %6216, %v6507_v47   ;;  %243 = vst [vmem:[#allocation2 + $0x18] sm:$0xff] %v6508_v49 }
 0x1ab   : > { %244 = vst [vmem:[#allocation2 + $0x198] sm:$0xff] %v6508_v49 }
 0x1ac   : > { %v1453_v30 = vpop.f32.mrf.mxu2  ;;  %v1542_v48 = vpop.f32.mrf.mxu3  ;;  %245 = vst [vmem:[#allocation2 + $0x1a0] sm:$0xff] %v6508_v49 }
 0x1ad   : > { %v7692_v12 = vadd.f32 %v1542_v48, %v1453_v30  ;;  %v1157_v40 = vpop.f32.mrf.mxu0  ;;  %v1246_v24 = vpop.f32.mrf.mxu1  ;;  %v6223_v48 = vld [vmem:[%s6795_s6 + $0x3a] sm:$0xff]  ;;  %246 = vst [vmem:[#allocation2 + $0x1a8] sm:$0xff] %v6508_v49 }
 0x1ae   : > { %v1158_v6 = vadd.f32 %v1157_v40, %v10069_v20  ;;  %v6117_v40 = vld [vmem:[%s9943_s1 + $0x360] sm:$0xff]  ;;  %247 = vst [vmem:[#allocation2 + $0x1b0] sm:$0x3] %v6508_v49  ;;  %v507_v49 = vld [vmem:[%s6795_s6 + $0xf2] sm:$0xff] }
 0x1af   : > { %2658 = vmatpush.msrb.mxu3 %v6117_v40 }
 0x1b0   : > { %v7704_v28 = vadd.f32 %v1246_v24, %v1158_v6  ;;  %1204 = vmatmul.f32.gmra.mxu0 %v10053_v52  ;;  %1293 = vmatmul.f32.gmra.mxu1 %v10070_v10 }
 0x1b1   : > { %1503 = vmatmul.f32.gmra.mxu2 %v7699_v33  ;;  %1592 = vmatmul.f32.gmra.mxu3 %v7702_v18 }
 0x1b2   : > { %1768 = vperm.xlu0 %6216, %v6507_v47   ;;  %v7741_v47 = vld [vmem:[%s6795_s6 + $0xe2] sm:$0xff] }
 0x1b4   : > { %v1456_v54 = vpop.f32.mrf.mxu2  ;;  %v1545_v52 = vpop.f32.mrf.mxu3 }
 0x1b5   : > { %v7716_v25 = vadd.f32 %v1545_v52, %v1456_v54  ;;  %v1160_v62 = vpop.f32.mrf.mxu0  ;;  %v1249_v26 = vpop.f32.mrf.mxu1  ;;  %v6224_v54 = vld [vmem:[%s6795_s6 + $0x42] sm:$0xff]  ;;  %v6116_v52 = vld [vmem:[%s9943_s1 + $0x358] sm:$0xff] }
 0x1b6   : > { %v1161_v15 = vadd.f32 %v1160_v62, %v7352_v38  ;;  %v1909_v38 = vld [vmem:[%s9943_s1 + $0x68] sm:$0xff]  ;;  %2659 = vmatpush.msrb.mxu3 %v6116_v52 }
 0x1b7   : > { %2270 = vmatpush.msrb.mxu0 %v1909_v38  ;;  %v399_v38 = vld [vmem:[%s6795_s6 + $0xf1] sm:$0xff] }
 0x1b8   : > { %v7722_v58 = vadd.f32 %v1249_v26, %v1161_v15  ;;  %1612 = vmatmul.f32.vlgmr.msra.gmra.mxu0 %v6222_v60  ;;  %2017 = vmatmul.f32.vlgmr.msra.gmra.mxu1 %v7651_v61 }
 0x1b9   : > { %2106 = vmatmul.f32.vlgmr.msra.gmra.mxu2 %v7654_v37  ;;  %2195 = vmatmul.f32.vlgmr.msra.gmra.mxu3 %v7720_v9 }
 0x1bc   : > { %v1459_v61 = vpop.f32.mrf.mxu2  ;;  %v1548_v32 = vpop.f32.mrf.mxu3 }
 0x1bd   : > { %v7734_v17 = vadd.f32 %v1548_v32, %v1459_v61  ;;  %v1163_v37 = vpop.f32.mrf.mxu0  ;;  %v1252_v7 = vpop.f32.mrf.mxu1  ;;  %v6225_v32 = vld [vmem:[%s6795_s6 + $0x4a] sm:$0xff] }
 0x1be   : > { %v1164_v27 = vadd.f32 %v1163_v37, %v7367_v44  ;;  %v1924_v44 = vld [vmem:[%s9943_s1 + $0xe0] sm:$0xff]  ;;  %v1923_v37 = vld [vmem:[%s9943_s1 + $0xd8] sm:$0xff] }
 0x1bf   : > { %2360 = vmatpush.msrb.mxu1 %v1924_v44  ;;  %v7797_v44 = vld [vmem:[%s6795_s6 + $0xf8] sm:$0xff] }
 0x1c0   : > { %v7743_v30 = vadd.f32 %v1252_v7, %v1164_v27  ;;  %1615 = vmatmul.f32.gmra.mxu0 %v6223_v48  ;;  %2020 = vmatmul.f32.gmra.mxu1 %v7675_v45 }
 0x1c1   : > { %2109 = vmatmul.f32.gmra.mxu2 %v7678_v43  ;;  %2198 = vmatmul.f32.gmra.mxu3 %v7741_v47  ;;  %v1908_v43 = vld [vmem:[%s9943_s1 + $0x60] sm:$0xff] }
 0x1c2   : > { %2271 = vmatpush.msrb.mxu0 %v1908_v43  ;;  %2361 = vmatpush.msrb.mxu1 %v1923_v37 }
 0x1c4   : > { %v1462_v24 = vpop.f32.mrf.mxu2  ;;  %v1551_v45 = vpop.f32.mrf.mxu3 }
 0x1c5   : > { %v7755_v8 = vadd.f32 %v1551_v45, %v1462_v24  ;;  %v1166_v20 = vpop.f32.mrf.mxu0  ;;  %v1255_v6 = vpop.f32.mrf.mxu1  ;;  %v1938_v24 = vld [vmem:[%s9943_s1 + $0x150] sm:$0xff] }
 0x1c6   : > { %v1167_v10 = vadd.f32 %v1166_v20, %v7380_v56  ;;  %v1939_v56 = vld [vmem:[%s9943_s1 + $0x158] sm:$0xff] }
 0x1c7   : > { %2450 = vmatpush.msrb.mxu2 %v1939_v56  ;;  %v400_v20 = vld [vmem:[%s6795_s6 + $0xf9] sm:$0xff] }
 0x1c8   : > { %v7764_v23 = vadd.f32 %v1255_v6, %v1167_v10  ;;  %1618 = vmatmul.f32.gmra.mxu0 %v6224_v54  ;;  %2023 = vmatmul.f32.gmra.mxu1 %v7699_v33  ;;  %v508_v6 = vld [vmem:[%s6795_s6 + $0xfa] sm:$0xff]  ;;  %v6226_v10 = vld [vmem:[%s6795_s6 + $0x52] sm:$0xff] }
 0x1c9   : > { %2112 = vmatmul.f32.gmra.mxu2 %v7702_v18  ;;  %2201 = vmatmul.f32.gmra.mxu3 %v7762_v55  ;;  %v7779_v18 = vld [vmem:[%s6795_s6 + $0xf0] sm:$0xff] }
 0x1ca   : > { %2451 = vmatpush.msrb.mxu2 %v1938_v24  ;;  %v6115_v54 = vld [vmem:[%s9943_s1 + $0x350] sm:$0xff] }
 0x1cb   : > { %2660 = vmatpush.msrb.mxu3 %v6115_v54  ;;  %v510_v54 = vld [vmem:[%s6795_s6 + $0x10a] sm:$0xff] }
 0x1cc   : > { %v1465_v62 = vpop.f32.mrf.mxu2  ;;  %v1554_v26 = vpop.f32.mrf.mxu3 }
 0x1cd   : > { %v7776_v15 = vadd.f32 %v1554_v26, %v1465_v62  ;;  %v1169_v33 = vpop.f32.mrf.mxu0  ;;  %v1258_v60 = vpop.f32.mrf.mxu1 }
 0x1ce   : > { %v1170_v39 = vadd.f32 %v1169_v33, %v7392_v35  ;;  %v1907_v35 = vld [vmem:[%s9943_s1 + $0x58] sm:$0xff] }
 0x1cf   : > { %2272 = vmatpush.msrb.mxu0 %v1907_v35  ;;  %v6227_v35 = vld [vmem:[%s6795_s6 + $0x5a] sm:$0xff] }
 0x1d0   : > { %v7784_v61 = vadd.f32 %v1258_v60, %v1170_v39  ;;  %1621 = vmatmul.f32.gmra.mxu0 %v6225_v32  ;;  %2026 = vmatmul.f32.gmra.mxu1 %v7779_v18  ;;  %v7818_v60 = vld [vmem:[%s6795_s6 + $0x100] sm:$0xff]  ;;  %v1906_v39 = vld [vmem:[%s9943_s1 + $0x50] sm:$0xff] }
 0x1d1   : > { %2115 = vmatmul.f32.gmra.mxu2 %v399_v38  ;;  %2204 = vmatmul.f32.gmra.mxu3 %v507_v49  ;;  %v401_v49 = vld [vmem:[%s6795_s6 + $0x101] sm:$0xff] }
 0x1d2   : > { %v509_v32 = vld [vmem:[%s6795_s6 + $0x102] sm:$0xff]  ;;  %2273 = vmatpush.msrb.mxu0 %v1906_v39 }
 0x1d4   : > { %v1468_v7 = vpop.f32.mrf.mxu2  ;;  %v1557_v51 = vpop.f32.mrf.mxu3 }
 0x1d5   : > { %v7794_v27 = vadd.f32 %v1557_v51, %v1468_v7  ;;  %v1172_v48 = vpop.f32.mrf.mxu0  ;;  %v1261_v40 = vpop.f32.mrf.mxu1  ;;  %v1937_v7 = vld [vmem:[%s9943_s1 + $0x148] sm:$0xff] }
 0x1d6   : > { %v1173_v45 = vadd.f32 %v1172_v48, %v7407_v21  ;;  %v1922_v21 = vld [vmem:[%s9943_s1 + $0xd0] sm:$0xff]  ;;  %2452 = vmatpush.msrb.mxu2 %v1937_v7 }
 0x1d7   : > { %2362 = vmatpush.msrb.mxu1 %v1922_v21 }
 0x1d8   : > { %v7805_v43 = vadd.f32 %v1261_v40, %v1173_v45  ;;  %1624 = vmatmul.f32.gmra.mxu0 %v6226_v10  ;;  %2029 = vmatmul.f32.gmra.mxu1 %v7797_v44  ;;  %v402_v10 = vld [vmem:[%s6795_s6 + $0x109] sm:$0xff] }
 0x1d9   : > { %2118 = vmatmul.f32.gmra.mxu2 %v400_v20  ;;  %2207 = vmatmul.f32.gmra.mxu3 %v508_v6  ;;  %v7839_v20 = vld [vmem:[%s6795_s6 + $0x108] sm:$0xff] }
 0x1dc   : > { %v1471_v56 = vpop.f32.mrf.mxu2  ;;  %v1560_v52 = vpop.f32.mrf.mxu3 }
 0x1dd   : > { %v7815_v62 = vadd.f32 %v1560_v52, %v1471_v56  ;;  %v1175_v26 = vpop.f32.mrf.mxu0  ;;  %v1264_v33 = vpop.f32.mrf.mxu1  ;;  %v6228_v56 = vld [vmem:[%s6795_s6 + $0x62] sm:$0xff] }
 0x1de   : > { %v1176_v38 = vadd.f32 %v1175_v26, %v7422_v57  ;;  %v6114_v57 = vld [vmem:[%s9943_s1 + $0x348] sm:$0xff] }
 0x1df   : > { %2661 = vmatpush.msrb.mxu3 %v6114_v57  ;;  %v1921_v52 = vld [vmem:[%s9943_s1 + $0xc8] sm:$0xff]  ;;  %v403_v57 = vld [vmem:[%s6795_s6 + $0x111] sm:$0xff] }
 0x1e0   : > { %v7826_v37 = vadd.f32 %v1264_v33, %v1176_v38  ;;  %1627 = vmatmul.f32.gmra.mxu0 %v6227_v35  ;;  %2032 = vmatmul.f32.gmra.mxu1 %v7818_v60  ;;  %v1936_v35 = vld [vmem:[%s9943_s1 + $0x140] sm:$0xff] }
 0x1e1   : > { %2121 = vmatmul.f32.gmra.mxu2 %v401_v49  ;;  %2210 = vmatmul.f32.gmra.mxu3 %v509_v32  ;;  %v7857_v32 = vld [vmem:[%s6795_s6 + $0x110] sm:$0xff] }
 0x1e2   : > { %2363 = vmatpush.msrb.mxu1 %v1921_v52  ;;  %2453 = vmatpush.msrb.mxu2 %v1936_v35 }
 0x1e4   : > { %v1474_v51 = vpop.f32.mrf.mxu2  ;;  %v1563_v48 = vpop.f32.mrf.mxu3 }
 0x1e5   : > { %v7836_v40 = vadd.f32 %v1563_v48, %v1474_v51  ;;  %v1178_v24 = vpop.f32.mrf.mxu0  ;;  %v1267_v45 = vpop.f32.mrf.mxu1  ;;  %v511_v51 = vld [vmem:[%s6795_s6 + $0x112] sm:$0xff] }
 0x1e6   : > { %v1179_v6 = vadd.f32 %v1178_v24, %v7434_v34  ;;  %v1905_v34 = vld [vmem:[%s9943_s1 + $0x48] sm:$0xff] }
 0x1e7   : > { %2274 = vmatpush.msrb.mxu0 %v1905_v34  ;;  %v6229_v24 = vld [vmem:[%s6795_s6 + $0x6a] sm:$0xff]  ;;  %v7878_v34 = vld [vmem:[%s6795_s6 + $0x118] sm:$0xff] }
 0x1e8   : > { %v7844_v21 = vadd.f32 %v1267_v45, %v1179_v6  ;;  %1630 = vmatmul.f32.gmra.mxu0 %v6228_v56  ;;  %2035 = vmatmul.f32.gmra.mxu1 %v7839_v20  ;;  %v6113_v45 = vld [vmem:[%s9943_s1 + $0x340] sm:$0xff] }
 0x1e9   : > { %2124 = vmatmul.f32.gmra.mxu2 %v402_v10  ;;  %2213 = vmatmul.f32.gmra.mxu3 %v510_v54 }
 0x1ea   : > { %2662 = vmatpush.msrb.mxu3 %v6113_v45 }
 0x1ec   : > { %v1477_v26 = vpop.f32.mrf.mxu2  ;;  %v1566_v33 = vpop.f32.mrf.mxu3 }
 0x1ed   : > { %v7854_v39 = vadd.f32 %v1566_v33, %v1477_v26  ;;  %v1181_v38 = vpop.f32.mrf.mxu0  ;;  %v1270_v49 = vpop.f32.mrf.mxu1  ;;  %v1904_v26 = vld [vmem:[%s9943_s1 + $0x40] sm:$0xff] }
 0x1ee   : > { %v1182_v7 = vadd.f32 %v1181_v38, %v7449_v42  ;;  %v1920_v42 = vld [vmem:[%s9943_s1 + $0xc0] sm:$0xff]  ;;  %2275 = vmatpush.msrb.mxu0 %v1904_v26 }
 0x1ef   : > { %2364 = vmatpush.msrb.mxu1 %v1920_v42  ;;  %v404_v38 = vld [vmem:[%s6795_s6 + $0x119] sm:$0xff]  ;;  %v513_v26 = vld [vmem:[%s6795_s6 + $0x122] sm:$0xff] }
 0x1f0   : > { %v7865_v48 = vadd.f32 %v1270_v49, %v1182_v7  ;;  %1633 = vmatmul.f32.gmra.mxu0 %v6229_v24  ;;  %2038 = vmatmul.f32.gmra.mxu1 %v7857_v32  ;;  %v512_v49 = vld [vmem:[%s6795_s6 + $0x11a] sm:$0xff]  ;;  %v6230_v7 = vld [vmem:[%s6795_s6 + $0x72] sm:$0xff] }
 0x1f1   : > { %2127 = vmatmul.f32.gmra.mxu2 %v403_v57  ;;  %2216 = vmatmul.f32.gmra.mxu3 %v511_v51  ;;  %v1935_v57 = vld [vmem:[%s9943_s1 + $0x138] sm:$0xff] }
 0x1f2   : > { %2454 = vmatpush.msrb.mxu2 %v1935_v57 }
 0x1f4   : > { %v1480_v6 = vpop.f32.mrf.mxu2  ;;  %v1569_v10 = vpop.f32.mrf.mxu3 }
 0x1f5   : > { %v7875_v54 = vadd.f32 %v1569_v10, %v1480_v6  ;;  %v1184_v56 = vpop.f32.mrf.mxu0  ;;  %v1273_v52 = vpop.f32.mrf.mxu1  ;;  %v7899_v10 = vld [vmem:[%s6795_s6 + $0x120] sm:$0xff] }
 0x1f6   : > { %v1185_v33 = vadd.f32 %v1184_v56, %v7464_v63  ;;  %v6112_v63 = vld [vmem:[%s9943_s1 + $0x338] sm:$0xff] }
 0x1f7   : > { %2663 = vmatpush.msrb.mxu3 %v6112_v63 }
 0x1f8   : > { %v7886_v35 = vadd.f32 %v1273_v52, %v1185_v33  ;;  %1636 = vmatmul.f32.gmra.mxu0 %v6230_v7  ;;  %2041 = vmatmul.f32.gmra.mxu1 %v7878_v34  ;;  %v405_v52 = vld [vmem:[%s6795_s6 + $0x121] sm:$0xff] }
 0x1f9   : > { %2130 = vmatmul.f32.gmra.mxu2 %v404_v38  ;;  %2219 = vmatmul.f32.gmra.mxu3 %v512_v49  ;;  %v6231_v38 = vld [vmem:[%s6795_s6 + $0x7a] sm:$0xff] }
 0x1fa   : > { %v1919_v49 = vld [vmem:[%s9943_s1 + $0xb8] sm:$0xff] }
 0x1fb   : > { %2365 = vmatpush.msrb.mxu1 %v1919_v49  ;;  %v6232_v49 = vld [vmem:[%s6795_s6 + $0x82] sm:$0xff] }
 0x1fc   : > { %v1483_v51 = vpop.f32.mrf.mxu2  ;;  %v1572_v24 = vpop.f32.mrf.mxu3 }
 0x1fd   : > { %v7896_v45 = vadd.f32 %v1572_v24, %v1483_v51  ;;  %v1187_v42 = vpop.f32.mrf.mxu0  ;;  %v1276_v6 = vpop.f32.mrf.mxu1 }
 0x1fe   : > { %v1188_v56 = vadd.f32 %v1187_v42, %v7476_v36  ;;  %v1903_v36 = vld [vmem:[%s9943_s1 + $0x38] sm:$0xff]  ;;  %v7917_v42 = vld [vmem:[%s6795_s6 + $0x128] sm:$0xff] }
 0x1ff   : > { %2276 = vmatpush.msrb.mxu0 %v1903_v36  ;;  %v6111_v36 = vld [vmem:[%s9943_s1 + $0x330] sm:$0xff] }
 0x200   : > { %v7904_v33 = vadd.f32 %v1276_v6, %v1188_v56  ;;  %1639 = vmatmul.f32.gmra.mxu0 %v6231_v38  ;;  %2044 = vmatmul.f32.gmra.mxu1 %v7899_v10  ;;  %v1934_v6 = vld [vmem:[%s9943_s1 + $0x130] sm:$0xff] }
 0x201   : > { %2133 = vmatmul.f32.gmra.mxu2 %v405_v52  ;;  %2222 = vmatmul.f32.gmra.mxu3 %v513_v26  ;;  %v406_v52 = vld [vmem:[%s6795_s6 + $0x129] sm:$0xff] }
 0x202   : > { %10071 = vst [vmem:[#allocation10_spill] sm:$0xff] %v7904_v33  ;;  %v514_v26 = vld [vmem:[%s6795_s6 + $0x12a] sm:$0xff]  ;;  %2455 = vmatpush.msrb.mxu2 %v1934_v6  ;;  %2664 = vmatpush.msrb.mxu3 %v6111_v36  ;;  %v6234_v33 = vld [vmem:[%s6795_s6 + $0x92] sm:$0xff] }
 0x204   : > { %v1486_v7 = vpop.f32.mrf.mxu2  ;;  %v1575_v57 = vpop.f32.mrf.mxu3 }
 0x205   : > { %v7914_v63 = vadd.f32 %v1575_v57, %v1486_v7  ;;  %v1190_v51 = vpop.f32.mrf.mxu0  ;;  %v1279_v24 = vpop.f32.mrf.mxu1 }
 0x206   : > { %v1191_v56 = vadd.f32 %v1190_v51, %v7491_v59  ;;  %v1918_v59 = vld [vmem:[%s9943_s1 + $0xb0] sm:$0xff] }
 0x207   : > { %10072 = vst [vmem:[#allocation16_spill] sm:$0xff] %v7914_v63  ;;  %2366 = vmatpush.msrb.mxu1 %v1918_v59  ;;  %v6233_v59 = vld [vmem:[%s6795_s6 + $0x8a] sm:$0xff] }
 0x208   : > { %v7925_v38 = vadd.f32 %v1279_v24, %v1191_v56  ;;  %1642 = vmatmul.f32.gmra.mxu0 %v6232_v49  ;;  %2047 = vmatmul.f32.gmra.mxu1 %v7917_v42  ;;  %v7938_v56 = vld [vmem:[%s6795_s6 + $0x130] sm:$0xff] }
 0x209   : > { %2136 = vmatmul.f32.gmra.mxu2 %v406_v52  ;;  %2225 = vmatmul.f32.gmra.mxu3 %v514_v26  ;;  %v1902_v52 = vld [vmem:[%s9943_s1 + $0x30] sm:$0xff] }
 0x20a   : > { %10073 = vst [vmem:[#allocation11_spill] sm:$0xff] %v7925_v38  ;;  %v407_v49 = vld [vmem:[%s6795_s6 + $0x131] sm:$0xff]  ;;  %2277 = vmatpush.msrb.mxu0 %v1902_v52 }
 0x20b   : > { %v515_v38 = vld [vmem:[%s6795_s6 + $0x132] sm:$0xff] }
 0x20c   : > { %v1489_v7 = vpop.f32.mrf.mxu2  ;;  %v1578_v57 = vpop.f32.mrf.mxu3 }
 0x20d   : > { %v7935_v51 = vadd.f32 %v1578_v57, %v1489_v7  ;;  %v1193_v24 = vpop.f32.mrf.mxu0  ;;  %v1282_v6 = vpop.f32.mrf.mxu1  ;;  %v1933_v7 = vld [vmem:[%s9943_s1 + $0x128] sm:$0xff] }
 0x20e   : > { %v1194_v26 = vadd.f32 %v1193_v24, %v7506_v29  ;;  %v6110_v29 = vld [vmem:[%s9943_s1 + $0x328] sm:$0xff]  ;;  %2456 = vmatpush.msrb.mxu2 %v1933_v7 }
 0x20f   : > { %10074 = vst [vmem:[#allocation19_spill] sm:$0xff] %v7935_v51  ;;  %2665 = vmatpush.msrb.mxu3 %v6110_v29 }
 0x210   : > { %v7946_v36 = vadd.f32 %v1282_v6, %v1194_v26  ;;  %1645 = vmatmul.f32.gmra.mxu0 %v6233_v59  ;;  %2050 = vmatmul.f32.gmra.mxu1 %v7938_v56  ;;  %v7959_v59 = vld [vmem:[%s6795_s6 + $0x138] sm:$0xff] }
 0x211   : > { %2139 = vmatmul.f32.gmra.mxu2 %v407_v49  ;;  %2228 = vmatmul.f32.gmra.mxu3 %v515_v38  ;;  %10077 = vst [vmem:[#allocation22_spill] sm:$0xff] %v7959_v59  ;;  %v408_v49 = vld [vmem:[%s6795_s6 + $0x139] sm:$0xff] }
 0x212   : > { %10075 = vst [vmem:[#allocation18_spill] sm:$0xff] %v7946_v36  ;;  %v516_v36 = vld [vmem:[%s6795_s6 + $0x13a] sm:$0xff] }
 0x214   : > { %v1492_v57 = vpop.f32.mrf.mxu2  ;;  %v1581_v24 = vpop.f32.mrf.mxu3 }
 0x215   : > { %v7956_v6 = vadd.f32 %v1581_v24, %v1492_v57  ;;  %v1196_v52 = vpop.f32.mrf.mxu0  ;;  %v1285_v26 = vpop.f32.mrf.mxu1  ;;  %v1901_v57 = vld [vmem:[%s9943_s1 + $0x28] sm:$0xff] }
 0x216   : > { %v1197_v38 = vadd.f32 %v1196_v52, %v7521_v0  ;;  %v1917_v0 = vld [vmem:[%s9943_s1 + $0xa8] sm:$0xff]  ;;  %2278 = vmatpush.msrb.mxu0 %v1901_v57 }
 0x217   : > { %10076 = vst [vmem:[#allocation12_spill] sm:$0xff] %v7956_v6  ;;  %2367 = vmatpush.msrb.mxu1 %v1917_v0  ;;  %v1916_v0 = vld [vmem:[%s9943_s1 + $0xa0] sm:$0xff] }
 0x218   : > { %v7964_v51 = vadd.f32 %v1285_v26, %v1197_v38  ;;  %1648 = vmatmul.f32.gmra.mxu0 %v6234_v33  ;;  %2053 = vmatmul.f32.gmra.mxu1 %v7959_v59  ;;  %v7977_v26 = vld [vmem:[%s6795_s6 + $0x140] sm:$0xff] }
 0x219   : > { %2142 = vmatmul.f32.gmra.mxu2 %v408_v49  ;;  %2231 = vmatmul.f32.gmra.mxu3 %v516_v36  ;;  %10080 = vst [vmem:[#allocation25_spill] sm:$0xff] %v7977_v26  ;;  %v409_v38 = vld [vmem:[%s6795_s6 + $0x141] sm:$0xff] }
 0x21a   : > { %10078 = vst [vmem:[#allocation21_spill] sm:$0xff] %v7964_v51  ;;  %v517_v49 = vld [vmem:[%s6795_s6 + $0x142] sm:$0xff]  ;;  %v6235_v59 = vld [vmem:[%s6795_s6 + $0x9a] sm:$0xff]  ;;  %2368 = vmatpush.msrb.mxu1 %v1916_v0 }
 0x21b   : > { %v1932_v51 = vld [vmem:[%s9943_s1 + $0x120] sm:$0xff] }
 0x21c   : > { %v1495_v7 = vpop.f32.mrf.mxu2  ;;  %v1584_v29 = vpop.f32.mrf.mxu3  ;;  %2457 = vmatpush.msrb.mxu2 %v1932_v51 }
 0x21d   : > { %v7974_v24 = vadd.f32 %v1584_v29, %v1495_v7  ;;  %v1199_v52 = vpop.f32.mrf.mxu0  ;;  %v1288_v33 = vpop.f32.mrf.mxu1  ;;  %v6109_v29 = vld [vmem:[%s9943_s1 + $0x320] sm:$0xff] }
 0x21e   : > { %v1200_v36 = vadd.f32 %v1199_v52, %v7536_v53  ;;  %2666 = vmatpush.msrb.mxu3 %v6109_v29  ;;  %v6108_v29 = vld [vmem:[%s9943_s1 + $0x318] sm:$0xff] }
 0x21f   : > { %10079 = vst [vmem:[#allocation13_spill] sm:$0xff] %v7974_v24  ;;  %v6236_v24 = vld [vmem:[%s6795_s6 + $0xa2] sm:$0xff] }
 0x220   : > { %v7985_v6 = vadd.f32 %v1288_v33, %v1200_v36  ;;  %1651 = vmatmul.f32.gmra.mxu0 %v6235_v59  ;;  %2056 = vmatmul.f32.gmra.mxu1 %v7977_v26  ;;  %v7998_v33 = vld [vmem:[%s6795_s6 + $0x148] sm:$0xff] }
 0x221   : > { %2145 = vmatmul.f32.gmra.mxu2 %v409_v38  ;;  %2234 = vmatmul.f32.gmra.mxu3 %v517_v49  ;;  %10083 = vst [vmem:[#allocation27_spill] sm:$0xff] %v7998_v33  ;;  %v410_v36 = vld [vmem:[%s6795_s6 + $0x149] sm:$0xff]  ;;  %v1900_v49 = vld [vmem:[%s9943_s1 + $0x20] sm:$0xff] }
 0x222   : > { %10081 = vst [vmem:[#allocation24_spill] sm:$0xff] %v7985_v6  ;;  %v518_v38 = vld [vmem:[%s6795_s6 + $0x14a] sm:$0xff]  ;;  %2279 = vmatpush.msrb.mxu0 %v1900_v49  ;;  %2667 = vmatpush.msrb.mxu3 %v6108_v29 }
 0x224   : > { %v1498_v53 = vpop.f32.mrf.mxu2  ;;  %v1587_v7 = vpop.f32.mrf.mxu3 }
 0x225   : > { %v7995_v57 = vadd.f32 %v1587_v7, %v1498_v53  ;;  %v1202_v59 = vpop.f32.mrf.mxu0  ;;  %v1291_v52 = vpop.f32.mrf.mxu1  ;;  %v1931_v7 = vld [vmem:[%s9943_s1 + $0x118] sm:$0xff] }
 0x226   : > { %v1203_v51 = vadd.f32 %v1202_v59, %v7548_v46  ;;  %2458 = vmatpush.msrb.mxu2 %v1931_v7 }
 0x227   : > { %10082 = vst [vmem:[#allocation14_spill] sm:$0xff] %v7995_v57 }
 0x228   : > { %v8006_v6 = vadd.f32 %v1291_v52, %v1203_v51  ;;  %1654 = vmatmul.f32.gmra.mxu0 %v6236_v24  ;;  %2059 = vmatmul.f32.gmra.mxu1 %v7998_v33  ;;  %v8019_v52 = vld [vmem:[%s6795_s6 + $0x150] sm:$0xff]  ;;  %v413_v33 = vld [vmem:[%s6795_s6 + $0x161] sm:$0xff] }
 0x229   : > { %2148 = vmatmul.f32.gmra.mxu2 %v410_v36  ;;  %2237 = vmatmul.f32.gmra.mxu3 %v518_v38  ;;  %10086 = vst [vmem:[#allocation15_spill] sm:$0xff] %v8019_v52  ;;  %v411_v36 = vld [vmem:[%s6795_s6 + $0x151] sm:$0xff] }
 0x22a   : > { %10084 = vst [vmem:[#allocation28_spill] sm:$0xff] %v8006_v6  ;;  %v519_v38 = vld [vmem:[%s6795_s6 + $0x152] sm:$0xff]  ;;  %v6237_v6 = vld [vmem:[%s6795_s6 + $0xaa] sm:$0xff] }
 0x22c   : > { %v1501_v46 = vpop.f32.mrf.mxu2  ;;  %v1590_v53 = vpop.f32.mrf.mxu3 }
 0x22d   : > { %v8016_v0 = vadd.f32 %v1590_v53, %v1501_v46  ;;  %v1205_v24 = vpop.f32.mrf.mxu0  ;;  %v1294_v59 = vpop.f32.mrf.mxu1 }
 0x22e   : > { %v1206_v51 = vadd.f32 %v1205_v24, %v7564_v14  ;;  %v8031_v14 = vld [vmem:[%s6795_s6 + $0x158] sm:$0xff] }
 0x22f   : > { %10085 = vst [vmem:[#allocation26_spill] sm:$0xff] %v8016_v0 }
 0x230   : > { %v8024_v49 = vadd.f32 %v1294_v59, %v1206_v51  ;;  %1657 = vmatmul.f32.gmra.mxu0 %v6237_v6  ;;  %2062 = vmatmul.f32.gmra.mxu1 %v8019_v52  ;;  %10089 = vst [vmem:[#allocation29_spill] sm:$0xff] %v8031_v14  ;;  %v8037_v59 = vld [vmem:[%s9944_s2] ss:$0 sm:$0xff] }
 0x231   : > { %2151 = vmatmul.f32.gmra.mxu2 %v411_v36  ;;  %2240 = vmatmul.f32.gmra.mxu3 %v519_v38  ;;  %v412_v6 = vld [vmem:[%s6795_s6 + $0x159] sm:$0xff] }
 0x232   : > { %10087 = vst [vmem:[#allocation30_spill] sm:$0xff] %v8024_v49  ;;  %v520_v51 = vld [vmem:[%s6795_s6 + $0x15a] sm:$0xff]  ;;  %v6238_v38 = vld [vmem:[%s6795_s6 + $0xb2] sm:$0xff] }
 0x233   : > { %v8057_v52 = vld [vmem:[%s6795_s6 + $0x160] sm:$0xff] }
 0x234   : > { %v1504_v46 = vpop.f32.mrf.mxu2  ;;  %v1593_v53 = vpop.f32.mrf.mxu3 }
 0x235   : > { %v8028_v7 = vadd.f32 %v1593_v53, %v1504_v46  ;;  %v1613_v29 = vpop.f32.mrf.mxu0  ;;  %v2018_v0 = vpop.f32.mrf.mxu1  ;;  %v1915_v46 = vld [vmem:[%s9943_s1 + $0x98] sm:$0xff]  ;;  %v1930_v53 = vld [vmem:[%s9943_s1 + $0x110] sm:$0xff] }
 0x236   : > { %v1614_v24 = vadd.f32 %v1613_v29, %v7578_v41  ;;  %v1899_v41 = vld [vmem:[%s9943_s1 + $0x18] sm:$0xff]  ;;  %2369 = vmatpush.msrb.mxu1 %v1915_v46  ;;  %2459 = vmatpush.msrb.mxu2 %v1930_v53 }
 0x237   : > { %10088 = vst [vmem:[#allocation31_spill] sm:$0xff] %v8028_v7  ;;  %2280 = vmatpush.msrb.mxu0 %v1899_v41  ;;  %v6239_v46 = vld [vmem:[%s6795_s6 + $0xba] sm:$0xff] }
 0x238   : > { %v1685_v36 = vadd.f32 %v1614_v24, %v7566_v50  ;;  %1660 = vmatmul.f32.gmra.mxu0 %v6238_v38  ;;  %2065 = vmatmul.f32.gmra.mxu1 %v8031_v14  ;;  %v8053_v50 = vpop.permute.xlu0 %1763 }
 0x239   : > { %2154 = vmatmul.f32.gmra.mxu2 %v412_v6  ;;  %2243 = vmatmul.f32.gmra.mxu3 %v520_v51  ;;  %10090 = vst [vmem:[#allocation17_spill] sm:$0xff] %v8053_v50  ;;  %v521_v51 = vld [vmem:[%s6795_s6 + $0x162] sm:$0xff] }
 0x23a   : > { %v1713_v29 = vadd.f32 %v8037_v59, %v1685_v36 }
 0x23c   : > { %v1737_v24 = vmax.f32 %v1713_v29, 0.0  ;;  %v2107_v38 = vpop.f32.mrf.mxu2  ;;  %v2196_v49 = vpop.f32.mrf.mxu3 }
 0x23d   : > { %v2108_v7 = vadd.f32 %v2107_v38, %v2018_v0  ;;  %v1616_v14 = vpop.f32.mrf.mxu0  ;;  %v2021_v57 = vpop.f32.mrf.mxu1  ;;  %v6107_v0 = vld [vmem:[%s9943_s1 + $0x310] sm:$0xff] }
 0x23e   : > { %v1617_v6 = vadd.f32 %v1616_v14, %v7596_v2  ;;  %v1776_v26 = vmul.f32 %v8053_v50, %v1737_v24  ;;  %v1914_v2 = vld [vmem:[%s9943_s1 + $0x90] sm:$0xff]  ;;  %2668 = vmatpush.msrb.mxu3 %v6107_v0 }
 0x23f   : > { %v8063_v63 = vadd.f32 %v2196_v49, %v2108_v7  ;;  %v1898_v49 = vld [vmem:[%s9943_s1 + $0x10] sm:$0xff]  ;;  %2370 = vmatpush.msrb.mxu1 %v1914_v2  ;;  %v8091_v2 = vld [vmem:[%s6795_s6 + $0xc2] sm:$0xff] }
 0x240   : > { %v1686_v36 = vadd.f32 %v1617_v6, %v7584_v4  ;;  %1663 = vmatmul.f32.gmra.mxu0 %v6239_v46  ;;  %2068 = vmatmul.f32.gmra.mxu1 %v8057_v52  ;;  %1800 = vst [vmem:[#allocation2 + $0x19] sm:$0xff] %v1776_v26  ;;  %v8078_v7 = vpop.permute.xlu0 %1768  ;;  %v8081_v6 = vld [vmem:[%s6795_s6 + $0x168] sm:$0xff] }
 0x241   : > { %10091 = vst [vmem:[#allocation32_spill] sm:$0xff] %v8063_v63  ;;  %2157 = vmatmul.f32.gmra.mxu2 %v413_v33  ;;  %2246 = vmatmul.f32.gmra.mxu3 %v521_v51  ;;  %v414_v33 = vld [vmem:[%s6795_s6 + $0x169] sm:$0xff] }
 0x242   : > { %v1714_v4 = vadd.f32 %v8037_v59, %v1686_v36  ;;  %10092 = vst [vmem:[#allocation20_spill] sm:$0xff] %v8078_v7  ;;  %2281 = vmatpush.msrb.mxu0 %v1898_v49  ;;  %v522_v51 = vld [vmem:[%s6795_s6 + $0x16a] sm:$0xff]  ;;  %v8102_v49 = vpop.permute.xlu1 %1773 }
 0x243   : > { %10094 = vst [vmem:[#allocation23_spill] sm:$0xff] %v8102_v49 }
 0x244   : > { %v1738_v14 = vmax.f32 %v1714_v4, 0.0  ;;  %v2110_v41 = vpop.f32.mrf.mxu2  ;;  %v2199_v53 = vpop.f32.mrf.mxu3 }
 0x245   : > { %v2111_v29 = vadd.f32 %v2110_v41, %v2021_v57  ;;  %v1619_v24 = vpop.f32.mrf.mxu0  ;;  %v2024_v38 = vpop.f32.mrf.mxu1  ;;  %v1929_v57 = vld [vmem:[%s9943_s1 + $0x108] sm:$0xff] }
 0x246   : > { %v1620_v26 = vadd.f32 %v1619_v24, %v7611_v22  ;;  %v1777_v36 = vmul.f32 %v8078_v7, %v1738_v14  ;;  %v6106_v22 = vld [vmem:[%s9943_s1 + $0x308] sm:$0xff]  ;;  %2460 = vmatpush.msrb.mxu2 %v1929_v57 }
 0x247   : > { %v8087_v46 = vadd.f32 %v2199_v53, %v2111_v29  ;;  %2669 = vmatpush.msrb.mxu3 %v6106_v22  ;;  %v8115_v22 = vld [vmem:[%s6795_s6 + $0xca] sm:$0xff] }
 0x248   : > { %v1687_v0 = vadd.f32 %v1620_v26, %v7599_v31  ;;  %1666 = vmatmul.f32.gmra.mxu0 %v8091_v2  ;;  %2071 = vmatmul.f32.gmra.mxu1 %v8081_v6  ;;  %1801 = vst [vmem:[#allocation2 + $0x21] sm:$0xff] %v1777_v36  ;;  %v8105_v26 = vld [vmem:[%s6795_s6 + $0x170] sm:$0xff] }
 0x249   : > { %10093 = vst [vmem:[#allocation33_spill] sm:$0xff] %v8087_v46  ;;  %2160 = vmatmul.f32.gmra.mxu2 %v414_v33  ;;  %2249 = vmatmul.f32.gmra.mxu3 %v522_v51  ;;  %v415_v46 = vld [vmem:[%s6795_s6 + $0x171] sm:$0xff] }
 0x24a   : > { %v1715_v31 = vadd.f32 %v8037_v59, %v1687_v0  ;;  %10095 = vst [vmem:[#allocation34_spill] sm:$0xff] %v8105_v26  ;;  %v523_v33 = vld [vmem:[%s6795_s6 + $0x172] sm:$0xff] }
 0x24c   : > { %v1739_v4 = vmax.f32 %v1715_v31, 0.0  ;;  %v2113_v14 = vpop.f32.mrf.mxu2  ;;  %v2202_v41 = vpop.f32.mrf.mxu3  ;;  %v1928_v31 = vld [vmem:[%s9943_s1 + $0x100] sm:$0xff] }
 0x24d   : > { %v2114_v53 = vadd.f32 %v2113_v14, %v2024_v38  ;;  %v1622_v29 = vpop.f32.mrf.mxu0  ;;  %v2027_v24 = vpop.f32.mrf.mxu1  ;;  %v1913_v38 = vld [vmem:[%s9943_s1 + $0x88] sm:$0xff]  ;;  %2461 = vmatpush.msrb.mxu2 %v1928_v31 }
 0x24e   : > { %v1623_v36 = vadd.f32 %v1622_v29, %v7629_v5  ;;  %v1778_v51 = vmul.f32 %v8102_v49, %v1739_v4  ;;  %v1897_v5 = vld [vmem:[%s9943_s1 + $0x8] sm:$0xff]  ;;  %2371 = vmatpush.msrb.mxu1 %v1913_v38 }
 0x24f   : > { %v8111_v0 = vadd.f32 %v2202_v41, %v2114_v53  ;;  %2282 = vmatpush.msrb.mxu0 %v1897_v5  ;;  %v8146_v5 = vld [vmem:[%s6795_s6 + $0xd2] sm:$0xff] }
 0x250   : > { %v1688_v57 = vadd.f32 %v1623_v36, %v7617_v1  ;;  %1669 = vmatmul.f32.gmra.mxu0 %v8115_v22  ;;  %2074 = vmatmul.f32.gmra.mxu1 %v8105_v26  ;;  %1802 = vst [vmem:[#allocation2 + $0x29] sm:$0xff] %v1778_v51  ;;  %v416_v26 = vld [vmem:[%s6795_s6 + $0x179] sm:$0xff] }
 0x251   : > { %10096 = vst [vmem:[#allocation35_spill] sm:$0xff] %v8111_v0  ;;  %2163 = vmatmul.f32.gmra.mxu2 %v415_v46  ;;  %2252 = vmatmul.f32.gmra.mxu3 %v523_v33  ;;  %v8130_v0 = vld [vmem:[%s6795_s6 + $0x178] sm:$0xff] }
 0x252   : > { %v1716_v1 = vadd.f32 %v8037_v59, %v1688_v57  ;;  %v524_v33 = vld [vmem:[%s6795_s6 + $0x17a] sm:$0xff] }
 0x253   : > { %v6105_v57 = vld [vmem:[%s9943_s1 + $0x300] sm:$0xff] }
 0x254   : > { %v1740_v4 = vmax.f32 %v1716_v1, 0.0  ;;  %v2116_v14 = vpop.f32.mrf.mxu2  ;;  %v2205_v41 = vpop.f32.mrf.mxu3  ;;  %2670 = vmatpush.msrb.mxu3 %v6105_v57 }
 0x255   : > { %v2117_v53 = vadd.f32 %v2116_v14, %v2027_v24  ;;  %v1625_v29 = vpop.f32.mrf.mxu0  ;;  %v2030_v36 = vpop.f32.mrf.mxu1  ;;  %v1912_v24 = vld [vmem:[%s9943_s1 + $0x80] sm:$0xff] }
 0x256   : > { %v1779_v51 = vmul.f32 %v8053_v50, %v1740_v4  ;;  %v1626_v46 = vadd.f32 %v1625_v29, %v7647_v19  ;;  %v1896_v19 = vld [vmem:[%s9943_s1] sm:$0xff]  ;;  %2372 = vmatpush.msrb.mxu1 %v1912_v24  ;;  %v3531_v24 = vld [vmem:[#allocation4 + $0x278] sm:$0xff] }
 0x257   : > { %v8136_v63 = vadd.f32 %v2205_v41, %v2117_v53  ;;  %2283 = vmatpush.msrb.mxu0 %v1896_v19  ;;  %v8155_v29 = vld [vmem:[%s6795_s6 + $0x180] sm:$0xff]  ;;  %3637 = vmatpush.msra.mxu3 %v3531_v24 }
 0x258   : > { %1803 = vst [vmem:[#allocation2 + $0x31] sm:$0xff] %v1779_v51  ;;  %v1689_v38 = vadd.f32 %v1626_v46, %v7635_v13  ;;  %1672 = vmatmul.f32.gmra.mxu0 %v8146_v5  ;;  %2077 = vmatmul.f32.gmra.mxu1 %v8130_v0 }
 0x259   : > { %10097 = vst [vmem:[#allocation36_spill] sm:$0xff] %v8136_v63  ;;  %2166 = vmatmul.f32.gmra.mxu2 %v416_v26  ;;  %2255 = vmatmul.f32.gmra.mxu3 %v524_v33  ;;  %v417_v26 = vld [vmem:[%s6795_s6 + $0x181] sm:$0xff] }
 0x25a   : > { %v1717_v31 = vadd.f32 %v8037_v59, %v1689_v38  ;;  %v525_v63 = vld [vmem:[%s6795_s6 + $0x182] sm:$0xff] }
 0x25c   : > { %v1741_v13 = vmax.f32 %v1717_v31, 0.0  ;;  %v2119_v1 = vpop.f32.mrf.mxu2  ;;  %v2208_v4 = vpop.f32.mrf.mxu3 }
 0x25d   : > { %v2120_v14 = vadd.f32 %v2119_v1, %v2030_v36  ;;  %v1628_v41 = vpop.f32.mrf.mxu0  ;;  %v2033_v53 = vpop.f32.mrf.mxu1  ;;  %v3515_v36 = vld [vmem:[#allocation4 + $0x1f8] sm:$0xff] }
 0x25e   : > { %v1780_v51 = vmul.f32 %v8078_v7, %v1741_v13  ;;  %v1629_v46 = vadd.f32 %v1628_v41, %v7668_v16  ;;  %3548 = vmatpush.msra.mxu2 %v3515_v36  ;;  %v418_v41 = vld [vmem:[%s6795_s6 + $0x189] sm:$0xff] }
 0x25f   : > { %v8161_v33 = vadd.f32 %v2208_v4, %v2120_v14  ;;  %v8168_v4 = vld [vmem:[%s6795_s6 + $0x188] sm:$0xff] }
 0x260   : > { %1804 = vst [vmem:[#allocation2 + $0x39] sm:$0xff] %v1780_v51  ;;  %v1690_v57 = vadd.f32 %v1629_v46, %v7656_v11  ;;  %1675 = vmatmul.f32.gmra.mxu0 %v7720_v9  ;;  %2080 = vmatmul.f32.gmra.mxu1 %v8155_v29  ;;  %v526_v51 = vld [vmem:[%s6795_s6 + $0x18a] sm:$0xff] }
 0x261   : > { %2169 = vmatmul.f32.gmra.mxu2 %v417_v26  ;;  %2258 = vmatmul.f32.gmra.mxu3 %v525_v63  ;;  %v3514_v26 = vld [vmem:[#allocation4 + $0x1f0] sm:$0xff] }
 0x262   : > { %v1718_v16 = vadd.f32 %v8037_v59, %v1690_v57  ;;  %3549 = vmatpush.msra.mxu2 %v3514_v26 }
 0x264   : > { %v1742_v38 = vmax.f32 %v1718_v16, 0.0  ;;  %v2122_v19 = vpop.f32.mrf.mxu2  ;;  %v2211_v31 = vpop.f32.mrf.mxu3 }
 0x265   : > { %v2123_v13 = vadd.f32 %v2122_v19, %v2033_v53  ;;  %v1631_v11 = vpop.f32.mrf.mxu0  ;;  %v2036_v1 = vpop.f32.mrf.mxu1  ;;  %v6152_v53 = vld [vmem:[%s9943_s1 + $0x478] sm:$0xff]  ;;  %v8187_v19 = vld [vmem:[%s6795_s6 + $0x190] sm:$0xff] }
 0x266   : > { %v1781_v9 = vmul.f32 %v8102_v49, %v1742_v38  ;;  %v1632_v14 = vadd.f32 %v1631_v11, %v7692_v12  ;;  %v6136_v12 = vld [vmem:[%s9943_s1 + $0x3f8] sm:$0xff]  ;;  %2833 = vmatpush.msra.mxu1 %v6152_v53 }
 0x267   : > { %v8174_v46 = vadd.f32 %v2211_v31, %v2123_v13  ;;  %2744 = vmatpush.msra.mxu0 %v6136_v12  ;;  %v419_v11 = vld [vmem:[%s6795_s6 + $0x191] sm:$0xff] }
 0x268   : > { %1805 = vst [vmem:[#allocation2 + $0x41] sm:$0xff] %v1781_v9  ;;  %v1691_v63 = vadd.f32 %v1632_v14, %v7680_v3  ;;  %1678 = vmatmul.f32.gmra.mxu0 %v7741_v47  ;;  %2083 = vmatmul.f32.gmra.mxu1 %v8168_v4  ;;  %v527_v9 = vld [vmem:[%s6795_s6 + $0x192] sm:$0xff] }
 0x269   : > { %2172 = vmatmul.f32.gmra.mxu2 %v418_v41  ;;  %2261 = vmatmul.f32.gmra.mxu3 %v526_v51  ;;  %v6151_v51 = vld [vmem:[%s9943_s1 + $0x470] sm:$0xff] }
 0x26a   : > { %v1719_v3 = vadd.f32 %v8037_v59, %v1691_v63  ;;  %2834 = vmatpush.msra.mxu1 %v6151_v51 }
 0x26c   : > { %v1743_v47 = vmax.f32 %v1719_v3, 0.0  ;;  %v2125_v57 = vpop.f32.mrf.mxu2  ;;  %v2214_v36 = vpop.f32.mrf.mxu3 }
 0x26d   : > { %v2126_v24 = vadd.f32 %v2125_v57, %v2036_v1  ;;  %v1634_v16 = vpop.f32.mrf.mxu0  ;;  %v2039_v38 = vpop.f32.mrf.mxu1  ;;  %v3530_v1 = vld [vmem:[#allocation4 + $0x270] sm:$0xff] }
 0x26e   : > { %v1782_v31 = vmul.f32 %v8053_v50, %v1743_v47  ;;  %v1635_v13 = vadd.f32 %v1634_v16, %v7716_v25  ;;  %v6135_v25 = vld [vmem:[%s9943_s1 + $0x3f0] sm:$0xff]  ;;  %3638 = vmatpush.msra.mxu3 %v3530_v1  ;;  %v6243_v16 = vld [vmem:[%s6795_s6 + $0xc0] sm:$0xff] }
 0x26f   : > { %v8193_v14 = vadd.f32 %v2214_v36, %v2126_v24  ;;  %2745 = vmatpush.msra.mxu0 %v6135_v25 }
 0x270   : > { %1806 = vst [vmem:[#allocation2 + $0x49] sm:$0xff] %v1782_v31  ;;  %v1692_v41 = vadd.f32 %v1635_v13, %v7704_v28  ;;  %1681 = vmatmul.f32.gmra.mxu0 %v7762_v55  ;;  %2086 = vmatmul.f32.gmra.mxu1 %v8187_v19  ;;  %v6244_v31 = vld [vmem:[%s6795_s6 + $0xc1] sm:$0xff] }
 0x271   : > { %2175 = vmatmul.f32.gmra.mxu2 %v419_v11  ;;  %2264 = vmatmul.f32.gmra.mxu3 %v527_v9  ;;  %v3513_v13 = vld [vmem:[#allocation4 + $0x1e8] sm:$0xff] }
 0x272   : > { %v1720_v63 = vadd.f32 %v8037_v59, %v1692_v41  ;;  %v3529_v11 = vld [vmem:[#allocation4 + $0x268] sm:$0xff]  ;;  %3550 = vmatpush.msra.mxu2 %v3513_v13 }
 0x273   : > { %3639 = vmatpush.msra.mxu3 %v3529_v11  ;;  %v6247_v11 = vld [vmem:[%s6795_s6 + $0xd0] sm:$0xff] }
 0x274   : > { %v1744_v28 = vmax.f32 %v1720_v63, 0.0  ;;  %v2128_v55 = vpop.f32.mrf.mxu2  ;;  %v2217_v53 = vpop.f32.mrf.mxu3 }
 0x275   : > { %v2129_v12 = vadd.f32 %v2128_v55, %v2039_v38  ;;  %v1637_v26 = vpop.f32.mrf.mxu0  ;;  %v2042_v3 = vpop.f32.mrf.mxu1  ;;  %v6246_v55 = vld [vmem:[%s6795_s6 + $0xc9] sm:$0xff] }
 0x276   : > { %v1783_v47 = vmul.f32 %v8078_v7, %v1744_v28  ;;  %v1638_v57 = vadd.f32 %v1637_v26, %v7734_v17  ;;  %v3512_v26 = vld [vmem:[#allocation4 + $0x1e0] sm:$0xff] }
 0x277   : > { %v8207_v36 = vadd.f32 %v2217_v53, %v2129_v12  ;;  %v6150_v53 = vld [vmem:[%s9943_s1 + $0x468] sm:$0xff]  ;;  %3551 = vmatpush.msra.mxu2 %v3512_v26  ;;  %v3527_v26 = vld [vmem:[#allocation4 + $0x258] sm:$0xff] }
 0x278   : > { %1807 = vst [vmem:[#allocation2 + $0x51] sm:$0xff] %v1783_v47  ;;  %v1693_v24 = vadd.f32 %v1638_v57, %v7722_v58  ;;  %2284 = vmatmul.f32.vlgmr.msrb.gmra.mxu0 %v6243_v16  ;;  %2373 = vmatmul.f32.vlgmr.msrb.gmra.mxu1 %v6244_v31  ;;  %v6134_v12 = vld [vmem:[%s9943_s1 + $0x3e8] sm:$0xff] }
 0x279   : > { %2462 = vmatmul.f32.vlgmr.msrb.gmra.mxu2 %v8091_v2  ;;  %2671 = vmatmul.f32.vlgmr.msrb.gmra.mxu3 %v7779_v18  ;;  %v6245_v2 = vld [vmem:[%s6795_s6 + $0xc8] sm:$0xff] }
 0x27a   : > { %v1721_v38 = vadd.f32 %v8037_v59, %v1693_v24  ;;  %2835 = vmatpush.msra.mxu1 %v6150_v53  ;;  %2746 = vmatpush.msra.mxu0 %v6134_v12  ;;  %v6250_v53 = vld [vmem:[%s6795_s6 + $0xd9] sm:$0xff]  ;;  %v3511_v12 = vld [vmem:[#allocation4 + $0x1d8] sm:$0xff] }
 0x27b   : > { %3552 = vmatpush.msra.mxu2 %v3511_v12  ;;  %v6131_v12 = vld [vmem:[%s9943_s1 + $0x3d0] sm:$0xff] }
 0x27c   : > { %v1745_v17 = vmax.f32 %v1721_v38, 0.0  ;;  %v2131_v9 = vpop.f32.mrf.mxu2  ;;  %v2220_v41 = vpop.f32.mrf.mxu3  ;;  %v6248_v38 = vld [vmem:[%s6795_s6 + $0xd1] sm:$0xff] }
 0x27d   : > { %v2132_v58 = vadd.f32 %v2131_v9, %v2042_v3  ;;  %v1640_v1 = vpop.f32.mrf.mxu0  ;;  %v2045_v51 = vpop.f32.mrf.mxu1  ;;  %v6149_v9 = vld [vmem:[%s9943_s1 + $0x460] sm:$0xff] }
 0x27e   : > { %v1784_v25 = vmul.f32 %v8102_v49, %v1745_v17  ;;  %v1641_v63 = vadd.f32 %v1640_v1, %v7755_v8  ;;  %v3528_v17 = vld [vmem:[#allocation4 + $0x260] sm:$0xff]  ;;  %2836 = vmatpush.msra.mxu1 %v6149_v9  ;;  %v3510_v9 = vld [vmem:[#allocation4 + $0x1d0] sm:$0xff] }
 0x27f   : > { %v8217_v28 = vadd.f32 %v2220_v41, %v2132_v58  ;;  %v6133_v41 = vld [vmem:[%s9943_s1 + $0x3e0] sm:$0xff]  ;;  %3640 = vmatpush.msra.mxu3 %v3528_v17  ;;  %v6132_v17 = vld [vmem:[%s9943_s1 + $0x3d8] sm:$0xff]  ;;  %3553 = vmatpush.msra.mxu2 %v3510_v9 }
 0x280   : > { %1808 = vst [vmem:[#allocation2 + $0x59] sm:$0xff] %v1784_v25  ;;  %v1694_v18 = vadd.f32 %v1641_v63, %v7743_v30  ;;  %2287 = vmatmul.f32.gmra.mxu0 %v6245_v2  ;;  %2376 = vmatmul.f32.gmra.mxu1 %v6246_v55  ;;  %v6249_v55 = vld [vmem:[%s6795_s6 + $0xd8] sm:$0xff] }
 0x281   : > { %2465 = vmatmul.f32.gmra.mxu2 %v8115_v22  ;;  %2674 = vmatmul.f32.gmra.mxu3 %v7797_v44 }
 0x282   : > { %v1722_v30 = vadd.f32 %v8037_v59, %v1694_v18  ;;  %2747 = vmatpush.msra.mxu0 %v6133_v41  ;;  %3641 = vmatpush.msra.mxu3 %v3527_v26  ;;  %v6254_v41 = vld [vmem:[%s6795_s6 + $0xe2] sm:$0xff]  ;;  %v6257_v26 = vld [vmem:[%s6795_s6 + $0xea] sm:$0xff] }
 0x284   : > { %v1746_v8 = vmax.f32 %v1722_v30, 0.0  ;;  %v2134_v3 = vpop.f32.mrf.mxu2  ;;  %v2223_v47 = vpop.f32.mrf.mxu3  ;;  %v6251_v30 = vld [vmem:[%s6795_s6 + $0xda] sm:$0xff]  ;;  %2748 = vmatpush.msra.mxu0 %v6132_v17 }
 0x285   : > { %v2135_v57 = vadd.f32 %v2134_v3, %v2045_v51  ;;  %v1643_v24 = vpop.f32.mrf.mxu0  ;;  %v2048_v16 = vpop.f32.mrf.mxu1 }
 0x286   : > { %v1785_v31 = vmul.f32 %v8053_v50, %v1746_v8  ;;  %v1644_v13 = vadd.f32 %v1643_v24, %v7776_v15  ;;  %2749 = vmatpush.msra.mxu0 %v6131_v12 }
 0x287   : > { %v8233_v22 = vadd.f32 %v2223_v47, %v2135_v57 }
 0x288   : > { %1809 = vst [vmem:[#allocation2 + $0x61] sm:$0xff] %v1785_v31  ;;  %v1695_v44 = vadd.f32 %v1644_v13, %v7764_v23  ;;  %2290 = vmatmul.f32.gmra.mxu0 %v6247_v11  ;;  %2379 = vmatmul.f32.gmra.mxu1 %v6248_v38  ;;  %v6253_v11 = vld [vmem:[%s6795_s6 + $0xe1] sm:$0xff]  ;;  %v6148_v38 = vld [vmem:[%s9943_s1 + $0x458] sm:$0xff] }
 0x289   : > { %2468 = vmatmul.f32.gmra.mxu2 %v8146_v5  ;;  %2677 = vmatmul.f32.gmra.mxu3 %v7818_v60 }
 0x28a   : > { %v1723_v23 = vadd.f32 %v8037_v59, %v1695_v44  ;;  %v6252_v44 = vld [vmem:[%s6795_s6 + $0xe0] sm:$0xff]  ;;  %2837 = vmatpush.msra.mxu1 %v6148_v38 }
 0x28c   : > { %v1747_v15 = vmax.f32 %v1723_v23, 0.0  ;;  %v2137_v58 = vpop.f32.mrf.mxu2  ;;  %v2226_v1 = vpop.f32.mrf.mxu3 }
 0x28d   : > { %v2138_v51 = vadd.f32 %v2137_v58, %v2048_v16  ;;  %v1646_v25 = vpop.f32.mrf.mxu0  ;;  %v2051_v63 = vpop.f32.mrf.mxu1 }
 0x28e   : > { %v1786_v18 = vmul.f32 %v8078_v7, %v1747_v15  ;;  %v1647_v5 = vadd.f32 %v1646_v25, %v7794_v27 }
 0x28f   : > { %v8249_v2 = vadd.f32 %v2226_v1, %v2138_v51 }
 0x290   : > { %1810 = vst [vmem:[#allocation2 + $0x69] sm:$0xff] %v1786_v18  ;;  %v1696_v60 = vadd.f32 %v1647_v5, %v7784_v61  ;;  %2293 = vmatmul.f32.gmra.mxu0 %v6249_v55  ;;  %2382 = vmatmul.f32.gmra.mxu1 %v6250_v53  ;;  %v6255_v5 = vld [vmem:[%s6795_s6 + $0xe8] sm:$0xff]  ;;  %v6147_v53 = vld [vmem:[%s9943_s1 + $0x450] sm:$0xff] }
 0x291   : > { %2471 = vmatmul.f32.gmra.mxu2 %v6251_v30  ;;  %2680 = vmatmul.f32.gmra.mxu3 %v7839_v20  ;;  %v3526_v55 = vld [vmem:[#allocation4 + $0x250] sm:$0xff] }
 0x292   : > { %v1724_v8 = vadd.f32 %v8037_v59, %v1696_v60  ;;  %v6256_v60 = vld [vmem:[%s6795_s6 + $0xe9] sm:$0xff]  ;;  %3642 = vmatpush.msra.mxu3 %v3526_v55  ;;  %2838 = vmatpush.msra.mxu1 %v6147_v53 }
 0x294   : > { %v1748_v27 = vmax.f32 %v1724_v8, 0.0  ;;  %v2140_v3 = vpop.f32.mrf.mxu2  ;;  %v2229_v47 = vpop.f32.mrf.mxu3 }
 0x295   : > { %v2141_v61 = vadd.f32 %v2140_v3, %v2051_v63  ;;  %v1649_v57 = vpop.f32.mrf.mxu0  ;;  %v2054_v24 = vpop.f32.mrf.mxu1 }
 0x296   : > { %v1787_v16 = vmul.f32 %v8102_v49, %v1748_v27  ;;  %v1650_v31 = vadd.f32 %v1649_v57, %v7815_v62 }
 0x297   : > { %v8259_v13 = vadd.f32 %v2229_v47, %v2141_v61 }
 0x298   : > { %1811 = vst [vmem:[#allocation2 + $0x71] sm:$0xff] %v1787_v16  ;;  %v1697_v20 = vadd.f32 %v1650_v31, %v7805_v43  ;;  %2296 = vmatmul.f32.gmra.mxu0 %v6252_v44  ;;  %2385 = vmatmul.f32.gmra.mxu1 %v6253_v11  ;;  %v6258_v16 = vld [vmem:[%s6795_s6 + $0xf0] sm:$0xff]  ;;  %v3525_v44 = vld [vmem:[#allocation4 + $0x248] sm:$0xff] }
 0x299   : > { %2474 = vmatmul.f32.gmra.mxu2 %v6254_v41  ;;  %2683 = vmatmul.f32.gmra.mxu3 %v7857_v32  ;;  %v8296_v31 = vld [vmem:[%s6795_s6 + $0xf1] sm:$0xff] }
 0x29a   : > { %v1725_v43 = vadd.f32 %v8037_v59, %v1697_v20  ;;  %v3509_v20 = vld [vmem:[#allocation4 + $0x1c8] sm:$0xff]  ;;  %v8300_v11 = vld [vmem:[%s6795_s6 + $0xf2] sm:$0xff]  ;;  %3643 = vmatpush.msra.mxu3 %v3525_v44 }
 0x29b   : > { %3554 = vmatpush.msra.mxu2 %v3509_v20 }
 0x29c   : > { %v1749_v62 = vmax.f32 %v1725_v43, 0.0  ;;  %v2143_v23 = vpop.f32.mrf.mxu2  ;;  %v2232_v15 = vpop.f32.mrf.mxu3 }
 0x29d   : > { %v2144_v58 = vadd.f32 %v2143_v23, %v2054_v24  ;;  %v1652_v1 = vpop.f32.mrf.mxu0  ;;  %v2057_v51 = vpop.f32.mrf.mxu1 }
 0x29e   : > { %v1788_v25 = vmul.f32 %v8053_v50, %v1749_v62  ;;  %v1653_v63 = vadd.f32 %v1652_v1, %v7836_v40  ;;  %v8312_v1 = vld [vmem:[%s6795_s6 + $0xf9] sm:$0xff] }
 0x29f   : > { %v8275_v18 = vadd.f32 %v2232_v15, %v2144_v58  ;;  %v6261_v58 = vld [vmem:[%s6795_s6 + $0xf8] sm:$0xff] }
 0x2a0   : > { %1812 = vst [vmem:[#allocation2 + $0x79] sm:$0xff] %v1788_v25  ;;  %v1698_v32 = vadd.f32 %v1653_v63, %v7826_v37  ;;  %2299 = vmatmul.f32.gmra.mxu0 %v6255_v5  ;;  %2388 = vmatmul.f32.gmra.mxu1 %v6256_v60  ;;  %v6130_v25 = vld [vmem:[%s9943_s1 + $0x3c8] sm:$0xff]  ;;  %v8322_v63 = vld [vmem:[%s6795_s6 + $0xfa] sm:$0xff] }
 0x2a1   : > { %2477 = vmatmul.f32.gmra.mxu2 %v6257_v26  ;;  %2686 = vmatmul.f32.gmra.mxu3 %v7878_v34 }
 0x2a2   : > { %v1726_v37 = vadd.f32 %v8037_v59, %v1698_v32  ;;  %2750 = vmatpush.msra.mxu0 %v6130_v25 }
 0x2a4   : > { %v1750_v40 = vmax.f32 %v1726_v37, 0.0  ;;  %v2146_v30 = vpop.f32.mrf.mxu2  ;;  %v2235_v8 = vpop.f32.mrf.mxu3 }
 0x2a5   : > { %v2147_v27 = vadd.f32 %v2146_v30, %v2057_v51  ;;  %v1655_v3 = vpop.f32.mrf.mxu0  ;;  %v2060_v47 = vpop.f32.mrf.mxu1  ;;  %v6146_v51 = vld [vmem:[%s9943_s1 + $0x448] sm:$0xff]  ;;  %v6264_v30 = vld [vmem:[%s6795_s6 + $0x100] sm:$0xff] }
 0x2a6   : > { %v1789_v61 = vmul.f32 %v8078_v7, %v1750_v40  ;;  %v1656_v57 = vadd.f32 %v1655_v3, %v7854_v39  ;;  %2839 = vmatpush.msra.mxu1 %v6146_v51  ;;  %v6145_v3 = vld [vmem:[%s9943_s1 + $0x440] sm:$0xff] }
 0x2a7   : > { %v8291_v24 = vadd.f32 %v2235_v8, %v2147_v27  ;;  %v8334_v8 = vld [vmem:[%s6795_s6 + $0x101] sm:$0xff]  ;;  %v3524_v27 = vld [vmem:[#allocation4 + $0x240] sm:$0xff] }
 0x2a8   : > { %1813 = vst [vmem:[#allocation2 + $0x81] sm:$0xff] %v1789_v61  ;;  %v1699_v34 = vadd.f32 %v1656_v57, %v7844_v21  ;;  %2302 = vmatmul.f32.gmra.mxu0 %v6258_v16  ;;  %2391 = vmatmul.f32.gmra.mxu1 %v8296_v31 }
 0x2a9   : > { %2480 = vmatmul.f32.gmra.mxu2 %v8300_v11  ;;  %2689 = vmatmul.f32.gmra.mxu3 %v7899_v10 }
 0x2aa   : > { %v1727_v39 = vadd.f32 %v8037_v59, %v1699_v34  ;;  %3644 = vmatpush.msra.mxu3 %v3524_v27  ;;  %2840 = vmatpush.msra.mxu1 %v6145_v3  ;;  %v8372_v27 = vld [vmem:[%s6795_s6 + $0x111] sm:$0xff] }
 0x2ab   : > { %v6144_v3 = vld [vmem:[%s9943_s1 + $0x438] sm:$0xff] }
 0x2ac   : > { %v1751_v21 = vmax.f32 %v1727_v39, 0.0  ;;  %v2149_v38 = vpop.f32.mrf.mxu2  ;;  %v2238_v17 = vpop.f32.mrf.mxu3  ;;  %2841 = vmatpush.msra.mxu1 %v6144_v3 }
 0x2ad   : > { %v2150_v9 = vadd.f32 %v2149_v38, %v2060_v47  ;;  %v1658_v41 = vpop.f32.mrf.mxu0  ;;  %v2063_v43 = vpop.f32.mrf.mxu1  ;;  %v8344_v47 = vld [vmem:[%s6795_s6 + $0x102] sm:$0xff] }
 0x2ae   : > { %v1790_v62 = vmul.f32 %v8102_v49, %v1751_v21  ;;  %v1659_v23 = vadd.f32 %v1658_v41, %v7875_v54  ;;  %v3508_v54 = vld [vmem:[#allocation4 + $0x1c0] sm:$0xff]  ;;  %v10098_v21 = vld [vmem:[#allocation16_spill] sm:$0xff] }
 0x2af   : > { %v8307_v15 = vadd.f32 %v2238_v17, %v2150_v9  ;;  %3555 = vmatpush.msra.mxu2 %v3508_v54  ;;  %v6267_v41 = vld [vmem:[%s6795_s6 + $0x108] sm:$0xff] }
 0x2b0   : > { %1814 = vst [vmem:[#allocation2 + $0x89] sm:$0xff] %v1790_v62  ;;  %v1700_v10 = vadd.f32 %v1659_v23, %v7865_v48  ;;  %2305 = vmatmul.f32.gmra.mxu0 %v6261_v58  ;;  %2394 = vmatmul.f32.gmra.mxu1 %v8312_v1  ;;  %v3507_v62 = vld [vmem:[#allocation4 + $0x1b8] sm:$0xff]  ;;  %v10100_v58 = vld [vmem:[#allocation22_spill] sm:$0xff] }
 0x2b1   : > { %2483 = vmatmul.f32.gmra.mxu2 %v8322_v63  ;;  %2692 = vmatmul.f32.gmra.mxu3 %v7917_v42  ;;  %v3523_v23 = vld [vmem:[#allocation4 + $0x238] sm:$0xff] }
 0x2b2   : > { %v1728_v48 = vadd.f32 %v8037_v59, %v1700_v10  ;;  %v8360_v10 = vld [vmem:[%s6795_s6 + $0x10a] sm:$0xff]  ;;  %3556 = vmatpush.msra.mxu2 %v3507_v62  ;;  %3645 = vmatpush.msra.mxu3 %v3523_v23  ;;  %v10105_v23 = vld [vmem:[#allocation18_spill] sm:$0xff] }
 0x2b4   : > { %v1752_v32 = vmax.f32 %v1728_v48, 0.0  ;;  %v2152_v5 = vpop.f32.mrf.mxu2  ;;  %v2241_v60 = vpop.f32.mrf.mxu3 }
 0x2b5   : > { %v2153_v55 = vadd.f32 %v2152_v5, %v2063_v43  ;;  %v1661_v53 = vpop.f32.mrf.mxu0  ;;  %v2066_v12 = vpop.f32.mrf.mxu1  ;;  %v8356_v43 = vld [vmem:[%s6795_s6 + $0x109] sm:$0xff] }
 0x2b6   : > { %v1791_v26 = vmul.f32 %v8053_v50, %v1752_v32  ;;  %v1662_v37 = vadd.f32 %v1661_v53, %v7896_v45  ;;  %v6129_v45 = vld [vmem:[%s9943_s1 + $0x3c0] sm:$0xff] }
 0x2b7   : > { %v8329_v40 = vadd.f32 %v2241_v60, %v2153_v55  ;;  %2751 = vmatpush.msra.mxu0 %v6129_v45  ;;  %v10101_v53 = vld [vmem:[#allocation19_spill] sm:$0xff]  ;;  %v6128_v45 = vld [vmem:[%s9943_s1 + $0x3b8] sm:$0xff] }
 0x2b8   : > { %1815 = vst [vmem:[#allocation2 + $0x91] sm:$0xff] %v1791_v26  ;;  %v1701_v42 = vadd.f32 %v1662_v37, %v7886_v35  ;;  %2308 = vmatmul.f32.gmra.mxu0 %v6264_v30  ;;  %2397 = vmatmul.f32.gmra.mxu1 %v8334_v8  ;;  %v10102_v37 = vld [vmem:[#allocation11_spill] sm:$0xff]  ;;  %v6270_v30 = vld [vmem:[%s6795_s6 + $0x110] sm:$0xff] }
 0x2b9   : > { %2486 = vmatmul.f32.gmra.mxu2 %v8344_v47  ;;  %2695 = vmatmul.f32.gmra.mxu3 %v7938_v56  ;;  %v10099_v56 = vld [vmem:[#allocation10_spill] sm:$0xff] }
 0x2ba   : > { %v1729_v35 = vadd.f32 %v8037_v59, %v1701_v42  ;;  %2752 = vmatpush.msra.mxu0 %v6128_v45 }
 0x2bc   : > { %v1753_v61 = vmax.f32 %v1729_v35, 0.0  ;;  %v2155_v57 = vpop.f32.mrf.mxu2  ;;  %v2244_v34 = vpop.f32.mrf.mxu3  ;;  %v3506_v35 = vld [vmem:[#allocation4 + $0x1b0] sm:$0xff] }
 0x2bd   : > { %v2156_v16 = vadd.f32 %v2155_v57, %v2066_v12  ;;  %v1664_v20 = vpop.f32.mrf.mxu0  ;;  %v2069_v44 = vpop.f32.mrf.mxu1  ;;  %v10103_v57 = vld [vmem:[#allocation25_spill] sm:$0xff]  ;;  %3557 = vmatpush.msra.mxu2 %v3506_v35 }
 0x2be   : > { %v1792_v39 = vmul.f32 %v8078_v7, %v1753_v61  ;;  %v1665_v38 = vadd.f32 %v1664_v20, %v10098_v21  ;;  %v8382_v61 = vld [vmem:[%s6795_s6 + $0x112] sm:$0xff] }
 0x2bf   : > { %v8351_v17 = vadd.f32 %v2244_v34, %v2156_v16  ;;  %v10107_v35 = vld [vmem:[#allocation13_spill] sm:$0xff] }
 0x2c0   : > { %1816 = vst [vmem:[#allocation2 + $0x99] sm:$0xff] %v1792_v39  ;;  %v1702_v9 = vadd.f32 %v1665_v38, %v10099_v56  ;;  %2311 = vmatmul.f32.gmra.mxu0 %v6267_v41  ;;  %2400 = vmatmul.f32.gmra.mxu1 %v8356_v43 }
 0x2c1   : > { %2489 = vmatmul.f32.gmra.mxu2 %v8360_v10  ;;  %2698 = vmatmul.f32.gmra.mxu3 %v10100_v58 }
 0x2c2   : > { %v1730_v51 = vadd.f32 %v8037_v59, %v1702_v9  ;;  %v10104_v9 = vld [vmem:[#allocation12_spill] sm:$0xff] }
 0x2c4   : > { %v1754_v25 = vmax.f32 %v1730_v51, 0.0  ;;  %v2158_v54 = vpop.f32.mrf.mxu2  ;;  %v2247_v48 = vpop.f32.mrf.mxu3  ;;  %v6273_v51 = vld [vmem:[%s6795_s6 + $0x118] sm:$0xff] }
 0x2c5   : > { %v2159_v32 = vadd.f32 %v2158_v54, %v2069_v44  ;;  %v1667_v5 = vpop.f32.mrf.mxu0  ;;  %v2072_v60 = vpop.f32.mrf.mxu1  ;;  %v3522_v54 = vld [vmem:[#allocation4 + $0x230] sm:$0xff] }
 0x2c6   : > { %v1793_v55 = vmul.f32 %v8102_v49, %v1754_v25  ;;  %v1668_v12 = vadd.f32 %v1667_v5, %v10101_v53  ;;  %v8394_v25 = vld [vmem:[%s6795_s6 + $0x119] sm:$0xff]  ;;  %3646 = vmatpush.msra.mxu3 %v3522_v54 }
 0x2c7   : > { %v8367_v26 = vadd.f32 %v2247_v48, %v2159_v32  ;;  %v6143_v48 = vld [vmem:[%s9943_s1 + $0x430] sm:$0xff]  ;;  %v8404_v5 = vld [vmem:[%s6795_s6 + $0x11a] sm:$0xff] }
 0x2c8   : > { %1817 = vst [vmem:[#allocation2 + $0xa1] sm:$0xff] %v1793_v55  ;;  %v1703_v42 = vadd.f32 %v1668_v12, %v10102_v37  ;;  %2314 = vmatmul.f32.gmra.mxu0 %v6270_v30  ;;  %2403 = vmatmul.f32.gmra.mxu1 %v8372_v27  ;;  %v6127_v32 = vld [vmem:[%s9943_s1 + $0x3b0] sm:$0xff] }
 0x2c9   : > { %2492 = vmatmul.f32.gmra.mxu2 %v8382_v61  ;;  %2701 = vmatmul.f32.gmra.mxu3 %v10103_v57 }
 0x2ca   : > { %v1731_v34 = vadd.f32 %v8037_v59, %v1703_v42  ;;  %2842 = vmatpush.msra.mxu1 %v6143_v48  ;;  %2753 = vmatpush.msra.mxu0 %v6127_v32 }
 0x2cc   : > { %v1755_v16 = vmax.f32 %v1731_v34, 0.0  ;;  %v2161_v20 = vpop.f32.mrf.mxu2  ;;  %v2250_v44 = vpop.f32.mrf.mxu3 }
 0x2cd   : > { %v2162_v39 = vadd.f32 %v2161_v20, %v2072_v60  ;;  %v1670_v21 = vpop.f32.mrf.mxu0  ;;  %v2075_v38 = vpop.f32.mrf.mxu1  ;;  %v10106_v60 = vld [vmem:[#allocation27_spill] sm:$0xff] }
 0x2ce   : > { %v1794_v56 = vmul.f32 %v8053_v50, %v1755_v16  ;;  %v1671_v41 = vadd.f32 %v1670_v21, %v10104_v9  ;;  %v10108_v16 = vld [vmem:[#allocation21_spill] sm:$0xff]  ;;  %v3505_v21 = vld [vmem:[#allocation4 + $0x1a8] sm:$0xff] }
 0x2cf   : > { %v8389_v62 = vadd.f32 %v2250_v44, %v2162_v39  ;;  %v6276_v44 = vld [vmem:[%s6795_s6 + $0x120] sm:$0xff]  ;;  %3558 = vmatpush.msra.mxu2 %v3505_v21 }
 0x2d0   : > { %1818 = vst [vmem:[#allocation2 + $0xa9] sm:$0xff] %v1794_v56  ;;  %v1704_v58 = vadd.f32 %v1671_v41, %v10105_v23  ;;  %2317 = vmatmul.f32.gmra.mxu0 %v6273_v51  ;;  %2406 = vmatmul.f32.gmra.mxu1 %v8394_v25  ;;  %v8416_v39 = vld [vmem:[%s6795_s6 + $0x121] sm:$0xff] }
 0x2d1   : > { %2495 = vmatmul.f32.gmra.mxu2 %v8404_v5  ;;  %2704 = vmatmul.f32.gmra.mxu3 %v10106_v60  ;;  %v3521_v56 = vld [vmem:[#allocation4 + $0x228] sm:$0xff]  ;;  %v6126_v23 = vld [vmem:[%s9943_s1 + $0x3a8] sm:$0xff] }
 0x2d2   : > { %v1732_v55 = vadd.f32 %v8037_v59, %v1704_v58  ;;  %v8423_v9 = vld [vmem:[%s6795_s6 + $0x122] sm:$0xff]  ;;  %3647 = vmatpush.msra.mxu3 %v3521_v56  ;;  %2754 = vmatpush.msra.mxu0 %v6126_v23 }
 0x2d3   : > { %v10109_v41 = vld [vmem:[#allocation15_spill] sm:$0xff] }
 0x2d4   : > { %v1756_v53 = vmax.f32 %v1732_v55, 0.0  ;;  %v2164_v12 = vpop.f32.mrf.mxu2  ;;  %v2253_v37 = vpop.f32.mrf.mxu3  ;;  %v6141_v21 = vld [vmem:[%s9943_s1 + $0x420] sm:$0xff] }
 0x2d5   : > { %v2165_v42 = vadd.f32 %v2164_v12, %v2075_v38  ;;  %v1673_v30 = vpop.f32.mrf.mxu0  ;;  %v2078_v3 = vpop.f32.mrf.mxu1  ;;  %v6142_v38 = vld [vmem:[%s9943_s1 + $0x428] sm:$0xff] }
 0x2d6   : > { %v1795_v45 = vmul.f32 %v8078_v7, %v1756_v53  ;;  %v1674_v57 = vadd.f32 %v1673_v30, %v10107_v35  ;;  %2843 = vmatpush.msra.mxu1 %v6142_v38  ;;  %v3504_v53 = vld [vmem:[#allocation4 + $0x1a0] sm:$0xff] }
 0x2d7   : > { %v8411_v34 = vadd.f32 %v2253_v37, %v2165_v42  ;;  %v10110_v37 = vld [vmem:[#allocation14_spill] sm:$0xff]  ;;  %3559 = vmatpush.msra.mxu2 %v3504_v53 }
 0x2d8   : > { %1819 = vst [vmem:[#allocation2 + $0xb1] sm:$0xff] %v1795_v45  ;;  %v1705_v20 = vadd.f32 %v1674_v57, %v10108_v16  ;;  %2320 = vmatmul.f32.gmra.mxu0 %v6276_v44  ;;  %2409 = vmatmul.f32.gmra.mxu1 %v8416_v39  ;;  %v10111_v45 = vld [vmem:[#allocation24_spill] sm:$0xff]  ;;  %v10112_v44 = vld [vmem:[#allocation29_spill] sm:$0xff] }
 0x2d9   : > { %2498 = vmatmul.f32.gmra.mxu2 %v8423_v9  ;;  %2707 = vmatmul.f32.gmra.mxu3 %v10109_v41  ;;  %v6279_v57 = vld [vmem:[%s6795_s6 + $0x128] sm:$0xff] }
 0x2da   : > { %v1733_v58 = vadd.f32 %v8037_v59, %v1705_v20  ;;  %v8438_v16 = vld [vmem:[%s6795_s6 + $0x129] sm:$0xff]  ;;  %2844 = vmatpush.msra.mxu1 %v6141_v21 }
 0x2db   : > { %v8442_v20 = vld [vmem:[%s6795_s6 + $0x12a] sm:$0xff] }
 0x2dc   : > { %v1757_v51 = vmax.f32 %v1733_v58, 0.0  ;;  %v2167_v54 = vpop.f32.mrf.mxu2  ;;  %v2256_v48 = vpop.f32.mrf.mxu3 }
 0x2dd   : > { %v2168_v32 = vadd.f32 %v2167_v54, %v2078_v3  ;;  %v1676_v60 = vpop.f32.mrf.mxu0  ;;  %v2081_v55 = vpop.f32.mrf.mxu1  ;;  %v3520_v3 = vld [vmem:[#allocation4 + $0x220] sm:$0xff] }
 0x2de   : > { %v1796_v12 = vmul.f32 %v8102_v49, %v1757_v51  ;;  %v1677_v42 = vadd.f32 %v1676_v60, %v10110_v37  ;;  %3648 = vmatpush.msra.mxu3 %v3520_v3  ;;  %v10113_v60 = vld [vmem:[#allocation26_spill] sm:$0xff]  ;;  %v10114_v37 = vld [vmem:[#allocation28_spill] sm:$0xff]  ;;  %v3519_v3 = vld [vmem:[#allocation4 + $0x218] sm:$0xff] }
 0x2df   : > { %v8433_v30 = vadd.f32 %v2256_v48, %v2168_v32  ;;  %v6125_v48 = vld [vmem:[%s9943_s1 + $0x3a0] sm:$0xff] }
 0x2e0   : > { %1820 = vst [vmem:[#allocation2 + $0xb9] sm:$0xff] %v1796_v12  ;;  %v1706_v35 = vadd.f32 %v1677_v42, %v10111_v45  ;;  %2323 = vmatmul.f32.gmra.mxu0 %v6279_v57  ;;  %2412 = vmatmul.f32.gmra.mxu1 %v8438_v16  ;;  %v6282_v45 = vld [vmem:[%s6795_s6 + $0x130] sm:$0xff] }
 0x2e1   : > { %2501 = vmatmul.f32.gmra.mxu2 %v8442_v20  ;;  %2710 = vmatmul.f32.gmra.mxu3 %v10112_v44  ;;  %v3503_v57 = vld [vmem:[#allocation4 + $0x198] sm:$0xff] }
 0x2e2   : > { %v1734_v56 = vadd.f32 %v8037_v59, %v1706_v35  ;;  %2755 = vmatpush.msra.mxu0 %v6125_v48  ;;  %v8460_v35 = vld [vmem:[%s6795_s6 + $0x131] sm:$0xff]  ;;  %3560 = vmatpush.msra.mxu2 %v3503_v57  ;;  %v10115_v48 = vld [vmem:[#allocation31_spill] sm:$0xff] }
 0x2e3   : > { %3649 = vmatpush.msra.mxu3 %v3519_v3  ;;  %v6288_v57 = vld [vmem:[%s9944_s2] ss:$0 sm:$0xff] }
 0x2e4   : > { %v1758_v38 = vmax.f32 %v1734_v56, 0.0  ;;  %v2170_v41 = vpop.f32.mrf.mxu2  ;;  %v2259_v23 = vpop.f32.mrf.mxu3 }
 0x2e5   : > { %v2171_v58 = vadd.f32 %v2170_v41, %v2081_v55  ;;  %v1679_v51 = vpop.f32.mrf.mxu0  ;;  %v2084_v54 = vpop.f32.mrf.mxu1  ;;  %v8464_v55 = vld [vmem:[%s6795_s6 + $0x132] sm:$0xff] }
 0x2e6   : > { %v1797_v32 = vmul.f32 %v8053_v50, %v1758_v38  ;;  %v1680_v53 = vadd.f32 %v1679_v51, %v10113_v60  ;;  %v10116_v60 = vld [vmem:[#allocation30_spill] sm:$0xff] }
 0x2e7   : > { %v8455_v12 = vadd.f32 %v2259_v23, %v2171_v58 }
 0x2e8   : > { %1821 = vst [vmem:[#allocation2 + $0xc1] sm:$0xff] %v1797_v32  ;;  %v1707_v42 = vadd.f32 %v1680_v53, %v10114_v37  ;;  %2326 = vmatmul.f32.gmra.mxu0 %v6282_v45  ;;  %2415 = vmatmul.f32.gmra.mxu1 %v8460_v35  ;;  %v8476_v37 = vld [vmem:[%s6795_s6 + $0x139] sm:$0xff] }
 0x2e9   : > { %2504 = vmatmul.f32.gmra.mxu2 %v8464_v55  ;;  %2713 = vmatmul.f32.gmra.mxu3 %v8057_v52  ;;  %v6124_v45 = vld [vmem:[%s9943_s1 + $0x398] sm:$0xff] }
 0x2ea   : > { %v1735_v44 = vadd.f32 %v8037_v59, %v1707_v42  ;;  %v6285_v59 = vld [vmem:[%s6795_s6 + $0x138] sm:$0xff]  ;;  %2756 = vmatpush.msra.mxu0 %v6124_v45  ;;  %v3518_v45 = vld [vmem:[#allocation4 + $0x210] sm:$0xff] }
 0x2eb   : > { %v8483_v42 = vld [vmem:[%s6795_s6 + $0x13a] sm:$0xff]  ;;  %3650 = vmatpush.msra.mxu3 %v3518_v45  ;;  %v8524_v45 = vld [vmem:[%s6795_s6 + $0x14a] sm:$0xff] }
 0x2ec   : > { %v1759_v21 = vmax.f32 %v1735_v44, 0.0  ;;  %v2173_v56 = vpop.f32.mrf.mxu2  ;;  %v2262_v38 = vpop.f32.mrf.mxu3 }
 0x2ed   : > { %v2174_v41 = vadd.f32 %v2173_v56, %v2084_v54  ;;  %v1682_v23 = vpop.f32.mrf.mxu0  ;;  %v2087_v58 = vpop.f32.mrf.mxu1  ;;  %v6140_v54 = vld [vmem:[%s9943_s1 + $0x418] sm:$0xff] }
 0x2ee   : > { %v1798_v51 = vmul.f32 %v8078_v7, %v1759_v21  ;;  %v1683_v32 = vadd.f32 %v1682_v23, %v10115_v48  ;;  %2845 = vmatpush.msra.mxu1 %v6140_v54  ;;  %v3502_v23 = vld [vmem:[#allocation4 + $0x190] sm:$0xff]  ;;  %v8535_v7 = vld [vmem:[%s6795_s6 + $0x151] sm:$0xff] }
 0x2ef   : > { %v8471_v52 = vadd.f32 %v2262_v38, %v2174_v41  ;;  %v10117_v48 = vld [vmem:[#allocation32_spill] sm:$0xff]  ;;  %3561 = vmatpush.msra.mxu2 %v3502_v23  ;;  %v10121_v23 = vld [vmem:[#allocation33_spill] sm:$0xff] }
 0x2f0   : > { %1822 = vst [vmem:[#allocation2 + $0xc9] sm:$0xff] %v1798_v51  ;;  %v1708_v53 = vadd.f32 %v1683_v32, %v10116_v60  ;;  %2329 = vmatmul.f32.gmra.mxu0 %v6285_v59  ;;  %2418 = vmatmul.f32.gmra.mxu1 %v8476_v37  ;;  %v6289_v59 = vld [vmem:[%s6795_s6 + $0x140] sm:$0xff] }
 0x2f1   : > { %2507 = vmatmul.f32.gmra.mxu2 %v8483_v42  ;;  %2716 = vmatmul.f32.gmra.mxu3 %v8081_v6  ;;  %v8499_v54 = vld [vmem:[%s6795_s6 + $0x141] sm:$0xff] }
 0x2f2   : > { %v1736_v3 = vadd.f32 %v6288_v57, %v1708_v53  ;;  %v10118_v57 = vld [vmem:[#allocation34_spill] sm:$0xff] }
 0x2f4   : > { %v1760_v44 = vmax.f32 %v1736_v3, 0.0  ;;  %v2176_v21 = vpop.f32.mrf.mxu2  ;;  %v2265_v56 = vpop.f32.mrf.mxu3  ;;  %v6139_v3 = vld [vmem:[%s9943_s1 + $0x410] sm:$0xff] }
 0x2f5   : > { %v2177_v38 = vadd.f32 %v2176_v21, %v2087_v58  ;;  %v2285_v41 = vpop.f32.mrf.mxu0  ;;  %v2374_v6 = vpop.f32.mrf.mxu1  ;;  %v8503_v58 = vld [vmem:[%s6795_s6 + $0x142] sm:$0xff]  ;;  %2846 = vmatpush.msra.mxu1 %v6139_v3 }
 0x2f6   : > { %v1799_v51 = vmul.f32 %v8102_v49, %v1760_v44  ;;  %v2286_v32 = vadd.f32 %v2285_v41, %v10117_v48  ;;  %v6295_v49 = vld [vmem:[%s6795_s6 + $0x150] sm:$0xff] }
 0x2f7   : > { %v8495_v60 = vadd.f32 %v2265_v56, %v2177_v38 }
 0x2f8   : > { %1823 = vst [vmem:[#allocation2 + $0xd1] sm:$0xff] %v1799_v51  ;;  %v2375_v53 = vadd.f32 %v2374_v6, %v2286_v32  ;;  %2332 = vmatmul.f32.gmra.mxu0 %v6289_v59  ;;  %2421 = vmatmul.f32.gmra.mxu1 %v8499_v54  ;;  %v6123_v6 = vld [vmem:[%s9943_s1 + $0x390] sm:$0xff]  ;;  %v6292_v32 = vld [vmem:[%s6795_s6 + $0x148] sm:$0xff] }
 0x2f9   : > { %2510 = vmatmul.f32.gmra.mxu2 %v8503_v58  ;;  %2719 = vmatmul.f32.gmra.mxu3 %v10118_v57  ;;  %v8520_v59 = vld [vmem:[%s6795_s6 + $0x149] sm:$0xff]  ;;  %v3517_v57 = vld [vmem:[#allocation4 + $0x208] sm:$0xff] }
 0x2fa   : > { %2757 = vmatpush.msra.mxu0 %v6123_v6  ;;  %3651 = vmatpush.msra.mxu3 %v3517_v57 }
 0x2fc   : > { %v2463_v44 = vpop.f32.mrf.mxu2  ;;  %v8510_v21 = vpop.f32.mrf.mxu3 }
 0x2fd   : > { %10119 = vst [vmem:[#allocation16_spill] sm:$0xff] %v8510_v21  ;;  %v8512_v56 = vadd.f32 %v2463_v44, %v2375_v53  ;;  %v2288_v38 = vpop.f32.mrf.mxu0  ;;  %v2377_v41 = vpop.f32.mrf.mxu1  ;;  %v3501_v53 = vld [vmem:[#allocation4 + $0x188] sm:$0xff]  ;;  %v6307_v21 = vld [vmem:[%s6795_s6 + $0x170] sm:$0xff] }
 0x2fe   : > { %v2289_v51 = vadd.f32 %v2288_v38, %v10121_v23  ;;  %3562 = vmatpush.msra.mxu2 %v3501_v53  ;;  %v10124_v23 = vld [vmem:[#allocation35_spill] sm:$0xff]  ;;  %v8542_v53 = vld [vmem:[%s6795_s6 + $0x152] sm:$0xff] }
 0x2ff   : > { %10120 = vst [vmem:[#allocation10_spill] sm:$0xff] %v8512_v56  ;;  %v8593_v56 = vld [vmem:[%s6795_s6 + $0x169] sm:$0xff] }
 0x300   : > { %v2378_v48 = vadd.f32 %v2377_v41, %v2289_v51  ;;  %2335 = vmatmul.f32.gmra.mxu0 %v6292_v32  ;;  %2424 = vmatmul.f32.gmra.mxu1 %v8520_v59 }
 0x301   : > { %2513 = vmatmul.f32.gmra.mxu2 %v8524_v45  ;;  %2722 = vmatmul.f32.gmra.mxu3 %v8130_v0  ;;  %v6138_v0 = vld [vmem:[%s9943_s1 + $0x408] sm:$0xff] }
 0x302   : > { %2847 = vmatpush.msra.mxu1 %v6138_v0  ;;  %v3516_v0 = vld [vmem:[#allocation4 + $0x200] sm:$0xff] }
 0x303   : > { %3652 = vmatpush.msra.mxu3 %v3516_v0  ;;  %v8577_v0 = vld [vmem:[%s6795_s6 + $0x161] sm:$0xff] }
 0x304   : > { %v2466_v3 = vpop.f32.mrf.mxu2  ;;  %v8528_v44 = vpop.f32.mrf.mxu3 }
 0x305   : > { %10122 = vst [vmem:[#allocation22_spill] sm:$0xff] %v8528_v44  ;;  %v8530_v38 = vadd.f32 %v2466_v3, %v2378_v48  ;;  %v2291_v41 = vpop.f32.mrf.mxu0  ;;  %v2380_v6 = vpop.f32.mrf.mxu1  ;;  %v8556_v44 = vld [vmem:[%s6795_s6 + $0x159] sm:$0xff] }
 0x306   : > { %v2292_v51 = vadd.f32 %v2291_v41, %v10124_v23  ;;  %v3500_v23 = vld [vmem:[#allocation4 + $0x180] sm:$0xff] }
 0x307   : > { %10123 = vst [vmem:[#allocation19_spill] sm:$0xff] %v8530_v38  ;;  %3563 = vmatpush.msra.mxu2 %v3500_v23 }
 0x308   : > { %v2381_v32 = vadd.f32 %v2380_v6, %v2292_v51  ;;  %2338 = vmatmul.f32.gmra.mxu0 %v6295_v49  ;;  %2427 = vmatmul.f32.gmra.mxu1 %v8535_v7  ;;  %v6122_v49 = vld [vmem:[%s9943_s1 + $0x388] sm:$0xff] }
 0x309   : > { %2516 = vmatmul.f32.gmra.mxu2 %v8542_v53  ;;  %2725 = vmatmul.f32.gmra.mxu3 %v8155_v29  ;;  %v10127_v51 = vld [vmem:[#allocation36_spill] sm:$0xff]  ;;  %v6298_v29 = vld [vmem:[%s6795_s6 + $0x158] sm:$0xff] }
 0x30a   : > { %2758 = vmatpush.msra.mxu0 %v6122_v49  ;;  %v8560_v49 = vld [vmem:[%s6795_s6 + $0x15a] sm:$0xff] }
 0x30c   : > { %v2469_v48 = vpop.f32.mrf.mxu2  ;;  %v8549_v57 = vpop.f32.mrf.mxu3 }
 0x30d   : > { %10125 = vst [vmem:[#allocation11_spill] sm:$0xff] %v8549_v57  ;;  %v8551_v3 = vadd.f32 %v2469_v48, %v2381_v32  ;;  %v2294_v41 = vpop.f32.mrf.mxu0  ;;  %v2383_v6 = vpop.f32.mrf.mxu1  ;;  %v6137_v32 = vld [vmem:[%s9943_s1 + $0x400] sm:$0xff]  ;;  %v6304_v57 = vld [vmem:[%s6795_s6 + $0x168] sm:$0xff] }
 0x30e   : > { %v2295_v38 = vadd.f32 %v2294_v41, %v10127_v51  ;;  %2848 = vmatpush.msra.mxu1 %v6137_v32  ;;  %v6121_v51 = vld [vmem:[%s9943_s1 + $0x380] sm:$0xff]  ;;  %v3473_v32 = vld [vmem:[#allocation4 + $0xf8] sm:$0xff] }
 0x30f   : > { %10126 = vst [vmem:[#allocation25_spill] sm:$0xff] %v8551_v3  ;;  %2759 = vmatpush.msra.mxu0 %v6121_v51  ;;  %v6301_v3 = vld [vmem:[%s6795_s6 + $0x160] sm:$0xff]  ;;  %3904 = vmatpush.msrb.mxu2 %v3473_v32  ;;  %v8597_v32 = vld [vmem:[%s6795_s6 + $0x16a] sm:$0xff] }
 0x310   : > { %v2384_v50 = vadd.f32 %v2383_v6, %v2295_v38  ;;  %2341 = vmatmul.f32.gmra.mxu0 %v6298_v29  ;;  %2430 = vmatmul.f32.gmra.mxu1 %v8556_v44 }
 0x311   : > { %2519 = vmatmul.f32.gmra.mxu2 %v8560_v49  ;;  %2728 = vmatmul.f32.gmra.mxu3 %v8168_v4 }
 0x314   : > { %v2472_v38 = vpop.f32.mrf.mxu2  ;;  %v8567_v48 = vpop.f32.mrf.mxu3 }
 0x315   : > { %10128 = vst [vmem:[#allocation12_spill] sm:$0xff] %v8567_v48  ;;  %v8569_v41 = vadd.f32 %v2472_v38, %v2384_v50  ;;  %v2297_v6 = vpop.f32.mrf.mxu0  ;;  %v2386_v23 = vpop.f32.mrf.mxu1  ;;  %v8581_v50 = vld [vmem:[%s6795_s6 + $0x162] sm:$0xff]  ;;  %v3489_v38 = vld [vmem:[#allocation4 + $0x178] sm:$0xff] }
 0x316   : > { %v2298_v4 = vadd.f32 %v2297_v6, %v8161_v33  ;;  %3993 = vmatpush.msrb.mxu3 %v3489_v38 }
 0x317   : > { %10129 = vst [vmem:[#allocation18_spill] sm:$0xff] %v8569_v41  ;;  %v312_v41 = vld [vmem:[%s6795_s6 + $0x198] sm:$0xff] }
 0x318   : > { %v2387_v29 = vadd.f32 %v2386_v23, %v2298_v4  ;;  %2344 = vmatmul.f32.gmra.mxu0 %v6301_v3  ;;  %2433 = vmatmul.f32.gmra.mxu1 %v8577_v0 }
 0x319   : > { %2522 = vmatmul.f32.gmra.mxu2 %v8581_v50  ;;  %2731 = vmatmul.f32.gmra.mxu3 %v8187_v19  ;;  %v3457_v19 = vld [vmem:[#allocation4 + $0x78] sm:$0xff] }
 0x31a   : > { %3815 = vmatpush.msrb.mxu1 %v3457_v19  ;;  %v3488_v19 = vld [vmem:[#allocation4 + $0x170] sm:$0xff] }
 0x31b   : > { %3994 = vmatpush.msrb.mxu3 %v3488_v19  ;;  %v8627_v19 = vld [vmem:[%s6795_s6 + $0x17a] sm:$0xff] }
 0x31c   : > { %v2475_v33 = vpop.f32.mrf.mxu2  ;;  %v8585_v3 = vpop.f32.mrf.mxu3 }
 0x31d   : > { %10130 = vst [vmem:[#allocation27_spill] sm:$0xff] %v8585_v3  ;;  %v8587_v6 = vadd.f32 %v2475_v33, %v2387_v29  ;;  %v2300_v23 = vpop.f32.mrf.mxu0  ;;  %v2389_v51 = vpop.f32.mrf.mxu1  ;;  %v3547_v29 = vld [vmem:[#allocation4 + $0x2f8] sm:$0xff] }
 0x31e   : > { %v2301_v4 = vadd.f32 %v2300_v23, %v8174_v46  ;;  %3726 = vmatpush.msrb.mxu0 %v3547_v29  ;;  %v8612_v29 = vld [vmem:[%s6795_s6 + $0x172] sm:$0xff] }
 0x31f   : > { %10131 = vst [vmem:[#allocation13_spill] sm:$0xff] %v8587_v6  ;;  %v313_v6 = vld [vmem:[%s6795_s6 + $0x1a0] sm:$0xff] }
 0x320   : > { %v2390_v48 = vadd.f32 %v2389_v51, %v2301_v4  ;;  %2347 = vmatmul.f32.gmra.mxu0 %v6304_v57  ;;  %2436 = vmatmul.f32.gmra.mxu1 %v8593_v56  ;;  %v3472_v51 = vld [vmem:[#allocation4 + $0xf0] sm:$0xff]  ;;  %10134 = vst [vmem:[#allocation14_spill] sm:$0xff] %v8612_v29 }
 0x321   : > { %2525 = vmatmul.f32.gmra.mxu2 %v8597_v32  ;;  %2734 = vmatmul.f32.gmra.mxu3 %v312_v41  ;;  %v8608_v41 = vld [vmem:[%s6795_s6 + $0x171] sm:$0xff] }
 0x322   : > { %3905 = vmatpush.msrb.mxu2 %v3472_v51  ;;  %v3546_v51 = vld [vmem:[#allocation4 + $0x2f0] sm:$0xff] }
 0x323   : > { %3727 = vmatpush.msrb.mxu0 %v3546_v51 }
 0x324   : > { %v2478_v46 = vpop.f32.mrf.mxu2  ;;  %v8600_v38 = vpop.f32.mrf.mxu3 }
 0x325   : > { %10132 = vst [vmem:[#allocation21_spill] sm:$0xff] %v8600_v38  ;;  %v8602_v57 = vadd.f32 %v2478_v46, %v2390_v48  ;;  %v2303_v33 = vpop.f32.mrf.mxu0  ;;  %v2392_v23 = vpop.f32.mrf.mxu1  ;;  %v3456_v48 = vld [vmem:[#allocation4 + $0x70] sm:$0xff] }
 0x326   : > { %v2304_v4 = vadd.f32 %v2303_v33, %v8193_v14  ;;  %3816 = vmatpush.msrb.mxu1 %v3456_v48  ;;  %v3487_v48 = vld [vmem:[#allocation4 + $0x168] sm:$0xff] }
 0x327   : > { %10133 = vst [vmem:[#allocation15_spill] sm:$0xff] %v8602_v57  ;;  %v314_v57 = vld [vmem:[%s6795_s6 + $0x1a8] sm:$0xff]  ;;  %3995 = vmatpush.msrb.mxu3 %v3487_v48 }
 0x328   : > { %v2393_v3 = vadd.f32 %v2392_v23, %v2304_v4  ;;  %2350 = vmatmul.f32.gmra.mxu0 %v6307_v21  ;;  %2439 = vmatmul.f32.gmra.mxu1 %v8608_v41 }
 0x329   : > { %2528 = vmatmul.f32.gmra.mxu2 %v8612_v29  ;;  %2737 = vmatmul.f32.gmra.mxu3 %v313_v6  ;;  %v6310_v29 = vld [vmem:[%s6795_s6 + $0x178] sm:$0xff] }
 0x32a   : > { %v8623_v6 = vld [vmem:[%s6795_s6 + $0x179] sm:$0xff] }
 0x32c   : > { %v2481_v14 = vpop.f32.mrf.mxu2  ;;  %v8615_v46 = vpop.f32.mrf.mxu3 }
 0x32d   : > { %10135 = vst [vmem:[#allocation24_spill] sm:$0xff] %v8615_v46  ;;  %v8617_v21 = vadd.f32 %v2481_v14, %v2393_v3  ;;  %v2306_v33 = vpop.f32.mrf.mxu0  ;;  %v2395_v23 = vpop.f32.mrf.mxu1  ;;  %v3471_v3 = vld [vmem:[#allocation4 + $0xe8] sm:$0xff] }
 0x32e   : > { %v2307_v4 = vadd.f32 %v2306_v33, %v8207_v36  ;;  %3906 = vmatpush.msrb.mxu2 %v3471_v3  ;;  %v6313_v46 = vld [vmem:[#allocation2 + $0x19] sm:$0xff] }
 0x32f   : > { %10136 = vst [vmem:[#allocation29_spill] sm:$0xff] %v8617_v21  ;;  %v3049_v21 = vld [vmem:[#allocation2 + $0x18] sm:$0xff]  ;;  %v3545_v3 = vld [vmem:[#allocation4 + $0x2e8] sm:$0xff] }
 0x330   : > { %v2396_v38 = vadd.f32 %v2395_v23, %v2307_v4  ;;  %2353 = vmatmul.f32.gmra.mxu0 %v6310_v29  ;;  %2442 = vmatmul.f32.gmra.mxu1 %v8623_v6 }
 0x331   : > { %2531 = vmatmul.f32.gmra.mxu2 %v8627_v19  ;;  %2740 = vmatmul.f32.gmra.mxu3 %v314_v57  ;;  %v3455_v57 = vld [vmem:[#allocation4 + $0x68] sm:$0xff] }
 0x332   : > { %3817 = vmatpush.msrb.mxu1 %v3455_v57  ;;  %3728 = vmatpush.msrb.mxu0 %v3545_v3 }
 0x334   : > { %v2484_v14 = vpop.f32.mrf.mxu2  ;;  %v8630_v36 = vpop.f32.mrf.mxu3 }
 0x335   : > { %v8632_v33 = vadd.f32 %v2484_v14, %v2396_v38  ;;  %v2309_v23 = vpop.f32.mrf.mxu0  ;;  %v2398_v29 = vpop.f32.mrf.mxu1 }
 0x336   : > { %v2310_v51 = vadd.f32 %v2309_v23, %v8217_v28  ;;  %v3470_v23 = vld [vmem:[#allocation4 + $0xe0] sm:$0xff] }
 0x337   : > { %10137 = vst [vmem:[#allocation26_spill] sm:$0xff] %v8632_v33  ;;  %3907 = vmatpush.msrb.mxu2 %v3470_v23  ;;  %v6315_v23 = vld [vmem:[#allocation2 + $0x29] sm:$0xff] }
 0x338   : > { %v2399_v4 = vadd.f32 %v2398_v29, %v2310_v51  ;;  %2760 = vmatmul.f32.vlgmr.msra.gmra.mxu0 %v8296_v31  ;;  %2849 = vmatmul.f32.vlgmr.msra.gmra.mxu1 %v8300_v11  ;;  %v6314_v29 = vld [vmem:[#allocation2 + $0x21] sm:$0xff]  ;;  %v3454_v51 = vld [vmem:[#allocation4 + $0x60] sm:$0xff] }
 0x339   : > { %3564 = vmatmul.f32.vlgmr.msra.gmra.mxu2 %v3049_v21  ;;  %3653 = vmatmul.f32.vlgmr.msra.gmra.mxu3 %v6313_v46  ;;  %v3050_v46 = vld [vmem:[#allocation2 + $0x20] sm:$0xff]  ;;  %v3486_v21 = vld [vmem:[#allocation4 + $0x160] sm:$0xff] }
 0x33a   : > { %3996 = vmatpush.msrb.mxu3 %v3486_v21  ;;  %3818 = vmatpush.msrb.mxu1 %v3454_v51 }
 0x33c   : > { %v2487_v48 = vpop.f32.mrf.mxu2  ;;  %v8637_v38 = vpop.f32.mrf.mxu3 }
 0x33d   : > { %v8639_v14 = vadd.f32 %v2487_v48, %v2399_v4  ;;  %v2312_v33 = vpop.f32.mrf.mxu0  ;;  %v2401_v28 = vpop.f32.mrf.mxu1  ;;  %v3544_v48 = vld [vmem:[#allocation4 + $0x2e0] sm:$0xff] }
 0x33e   : > { %v2313_v31 = vadd.f32 %v2312_v33, %v8233_v22  ;;  %3729 = vmatpush.msrb.mxu0 %v3544_v48  ;;  %v3543_v48 = vld [vmem:[#allocation4 + $0x2d8] sm:$0xff] }
 0x340   : > { %v2402_v11 = vadd.f32 %v2401_v28, %v2313_v31  ;;  %2763 = vmatmul.f32.gmra.mxu0 %v8312_v1  ;;  %2852 = vmatmul.f32.gmra.mxu1 %v8322_v63  ;;  %v3051_v28 = vld [vmem:[#allocation2 + $0x28] sm:$0xff]  ;;  %v3469_v31 = vld [vmem:[#allocation4 + $0xd8] sm:$0xff] }
 0x341   : > { %3567 = vmatmul.f32.gmra.mxu2 %v3050_v46  ;;  %3656 = vmatmul.f32.gmra.mxu3 %v6314_v29  ;;  %v3485_v46 = vld [vmem:[#allocation4 + $0x158] sm:$0xff] }
 0x342   : > { %3908 = vmatpush.msrb.mxu2 %v3469_v31  ;;  %3997 = vmatpush.msrb.mxu3 %v3485_v46  ;;  %v3468_v31 = vld [vmem:[#allocation4 + $0xd0] sm:$0xff]  ;;  %v3053_v46 = vld [vmem:[#allocation2 + $0x38] sm:$0xff] }
 0x343   : > { %3730 = vmatpush.msrb.mxu0 %v3543_v48  ;;  %v3054_v48 = vld [vmem:[#allocation2 + $0x40] sm:$0xff] }
 0x344   : > { %v2490_v4 = vpop.f32.mrf.mxu2  ;;  %v8644_v57 = vpop.f32.mrf.mxu3  ;;  %3909 = vmatpush.msrb.mxu2 %v3468_v31 }
 0x345   : > { %v8646_v3 = vadd.f32 %v2490_v4, %v2402_v11  ;;  %v2315_v22 = vpop.f32.mrf.mxu0  ;;  %v2404_v33 = vpop.f32.mrf.mxu1 }
 0x346   : > { %v2316_v1 = vadd.f32 %v2315_v22, %v8249_v2  ;;  %v3160_v22 = vld [vmem:[#allocation2 + $0x31] sm:$0xff] }
 0x348   : > { %v2405_v63 = vadd.f32 %v2404_v33, %v2316_v1  ;;  %2766 = vmatmul.f32.gmra.mxu0 %v8334_v8  ;;  %2855 = vmatmul.f32.gmra.mxu1 %v8344_v47  ;;  %v3052_v47 = vld [vmem:[#allocation2 + $0x30] sm:$0xff] }
 0x349   : > { %3570 = vmatmul.f32.gmra.mxu2 %v3051_v28  ;;  %3659 = vmatmul.f32.gmra.mxu3 %v6315_v23  ;;  %v3453_v33 = vld [vmem:[#allocation4 + $0x58] sm:$0xff] }
 0x34a   : > { %3819 = vmatpush.msrb.mxu1 %v3453_v33  ;;  %v3542_v33 = vld [vmem:[#allocation4 + $0x2d0] sm:$0xff] }
 0x34b   : > { %3731 = vmatpush.msrb.mxu0 %v3542_v33 }
 0x34c   : > { %v2493_v11 = vpop.f32.mrf.mxu2  ;;  %v8651_v21 = vpop.f32.mrf.mxu3 }
 0x34d   : > { %v8653_v29 = vadd.f32 %v2493_v11, %v2405_v63  ;;  %v2318_v2 = vpop.f32.mrf.mxu0  ;;  %v2407_v51 = vpop.f32.mrf.mxu1  ;;  %v3161_v11 = vld [vmem:[#allocation2 + $0x39] sm:$0xff] }
 0x34e   : > { %v2319_v4 = vadd.f32 %v2318_v2, %v8259_v13  ;;  %v3484_v2 = vld [vmem:[#allocation4 + $0x150] sm:$0xff] }
 0x34f   : > { %3998 = vmatpush.msrb.mxu3 %v3484_v2  ;;  %v3163_v2 = vld [vmem:[#allocation2 + $0x49] sm:$0xff] }
 0x350   : > { %v2408_v8 = vadd.f32 %v2407_v51, %v2319_v4  ;;  %2769 = vmatmul.f32.gmra.mxu0 %v8356_v43  ;;  %2858 = vmatmul.f32.gmra.mxu1 %v8360_v10  ;;  %v3452_v51 = vld [vmem:[#allocation4 + $0x50] sm:$0xff] }
 0x351   : > { %3573 = vmatmul.f32.gmra.mxu2 %v3052_v47  ;;  %3662 = vmatmul.f32.gmra.mxu3 %v3160_v22 }
 0x352   : > { %3820 = vmatpush.msrb.mxu1 %v3452_v51  ;;  %v3451_v51 = vld [vmem:[#allocation4 + $0x48] sm:$0xff] }
 0x354   : > { %v2496_v1 = vpop.f32.mrf.mxu2  ;;  %v8658_v63 = vpop.f32.mrf.mxu3  ;;  %3821 = vmatpush.msrb.mxu1 %v3451_v51  ;;  %v3465_v51 = vld [vmem:[#allocation4 + $0xb8] sm:$0xff] }
 0x355   : > { %v8660_v28 = vadd.f32 %v2496_v1, %v2408_v8  ;;  %v2321_v23 = vpop.f32.mrf.mxu0  ;;  %v2410_v13 = vpop.f32.mrf.mxu1  ;;  %v3162_v1 = vld [vmem:[#allocation2 + $0x41] sm:$0xff] }
 0x356   : > { %v2322_v43 = vadd.f32 %v2321_v23, %v8275_v18  ;;  %v3467_v23 = vld [vmem:[#allocation4 + $0xc8] sm:$0xff] }
 0x357   : > { %3910 = vmatpush.msrb.mxu2 %v3467_v23  ;;  %v3482_v23 = vld [vmem:[#allocation4 + $0x140] sm:$0xff] }
 0x358   : > { %v2411_v10 = vadd.f32 %v2410_v13, %v2322_v43  ;;  %2772 = vmatmul.f32.gmra.mxu0 %v8372_v27  ;;  %2861 = vmatmul.f32.gmra.mxu1 %v8382_v61  ;;  %v3483_v13 = vld [vmem:[#allocation4 + $0x148] sm:$0xff] }
 0x359   : > { %3576 = vmatmul.f32.gmra.mxu2 %v3053_v46  ;;  %3665 = vmatmul.f32.gmra.mxu3 %v3161_v11 }
 0x35a   : > { %3999 = vmatpush.msrb.mxu3 %v3483_v13  ;;  %v3450_v13 = vld [vmem:[#allocation4 + $0x40] sm:$0xff] }
 0x35b   : > { %3822 = vmatpush.msrb.mxu1 %v3450_v13 }
 0x35c   : > { %v2499_v4 = vpop.f32.mrf.mxu2  ;;  %v8665_v8 = vpop.f32.mrf.mxu3  ;;  %4000 = vmatpush.msrb.mxu3 %v3482_v23 }
 0x35d   : > { %v8667_v47 = vadd.f32 %v2499_v4, %v2411_v10  ;;  %v2324_v18 = vpop.f32.mrf.mxu0  ;;  %v2413_v22 = vpop.f32.mrf.mxu1  ;;  %v3541_v4 = vld [vmem:[#allocation4 + $0x2c8] sm:$0xff] }
 0x35e   : > { %v2325_v27 = vadd.f32 %v2324_v18, %v8291_v24  ;;  %3732 = vmatpush.msrb.mxu0 %v3541_v4  ;;  %v3481_v4 = vld [vmem:[#allocation4 + $0x138] sm:$0xff] }
 0x35f   : > { %4001 = vmatpush.msrb.mxu3 %v3481_v4 }
 0x360   : > { %v2414_v61 = vadd.f32 %v2413_v22, %v2325_v27  ;;  %2775 = vmatmul.f32.gmra.mxu0 %v8394_v25  ;;  %2864 = vmatmul.f32.gmra.mxu1 %v8404_v5  ;;  %v3055_v5 = vld [vmem:[#allocation2 + $0x48] sm:$0xff] }
 0x361   : > { %3579 = vmatmul.f32.gmra.mxu2 %v3054_v48  ;;  %3668 = vmatmul.f32.gmra.mxu3 %v3162_v1  ;;  %v3056_v48 = vld [vmem:[#allocation2 + $0x50] sm:$0xff] }
 0x362   : > { %v3164_v1 = vld [vmem:[#allocation2 + $0x51] sm:$0xff] }
 0x364   : > { %v2502_v31 = vpop.f32.mrf.mxu2  ;;  %v8672_v43 = vpop.f32.mrf.mxu3 }
 0x365   : > { %v8674_v10 = vadd.f32 %v2502_v31, %v2414_v61  ;;  %v2327_v24 = vpop.f32.mrf.mxu0  ;;  %v2416_v46 = vpop.f32.mrf.mxu1  ;;  %v3466_v61 = vld [vmem:[#allocation4 + $0xc0] sm:$0xff] }
 0x366   : > { %v2328_v11 = vadd.f32 %v2327_v24, %v8307_v15  ;;  %3911 = vmatpush.msrb.mxu2 %v3466_v61 }
 0x368   : > { %v2417_v25 = vadd.f32 %v2416_v46, %v2328_v11  ;;  %2778 = vmatmul.f32.gmra.mxu0 %v8416_v39  ;;  %2867 = vmatmul.f32.gmra.mxu1 %v8423_v9 }
 0x369   : > { %3582 = vmatmul.f32.gmra.mxu2 %v3055_v5  ;;  %3671 = vmatmul.f32.gmra.mxu3 %v3163_v2  ;;  %v3057_v5 = vld [vmem:[#allocation2 + $0x58] sm:$0xff] }
 0x36a   : > { %v3165_v2 = vld [vmem:[#allocation2 + $0x59] sm:$0xff]  ;;  %3912 = vmatpush.msrb.mxu2 %v3465_v51 }
 0x36c   : > { %v2505_v18 = vpop.f32.mrf.mxu2  ;;  %v8679_v22 = vpop.f32.mrf.mxu3 }
 0x36d   : > { %v8681_v33 = vadd.f32 %v2505_v18, %v2417_v25  ;;  %v2330_v27 = vpop.f32.mrf.mxu0  ;;  %v2419_v15 = vpop.f32.mrf.mxu1  ;;  %v3540_v25 = vld [vmem:[#allocation4 + $0x2c0] sm:$0xff] }
 0x36e   : > { %v2331_v39 = vadd.f32 %v2330_v27, %v8329_v40  ;;  %3733 = vmatpush.msrb.mxu0 %v3540_v25  ;;  %v3059_v25 = vld [vmem:[#allocation2 + $0x68] sm:$0xff] }
 0x370   : > { %v2420_v9 = vadd.f32 %v2419_v15, %v2331_v39  ;;  %2781 = vmatmul.f32.gmra.mxu0 %v8438_v16  ;;  %2870 = vmatmul.f32.gmra.mxu1 %v8442_v20 }
 0x371   : > { %3585 = vmatmul.f32.gmra.mxu2 %v3056_v48  ;;  %3674 = vmatmul.f32.gmra.mxu3 %v3164_v1  ;;  %v3449_v48 = vld [vmem:[#allocation4 + $0x38] sm:$0xff] }
 0x372   : > { %v3539_v1 = vld [vmem:[#allocation4 + $0x2b8] sm:$0xff]  ;;  %3823 = vmatpush.msrb.mxu1 %v3449_v48 }
 0x373   : > { %3734 = vmatpush.msrb.mxu0 %v3539_v1 }
 0x374   : > { %v2508_v31 = vpop.f32.mrf.mxu2  ;;  %v8686_v24 = vpop.f32.mrf.mxu3 }
 0x375   : > { %v8688_v46 = vadd.f32 %v2508_v31, %v2420_v9  ;;  %v2333_v40 = vpop.f32.mrf.mxu0  ;;  %v2422_v11 = vpop.f32.mrf.mxu1  ;;  %v3166_v9 = vld [vmem:[#allocation2 + $0x61] sm:$0xff] }
 0x376   : > { %v2334_v16 = vadd.f32 %v2333_v40, %v8351_v17 }
 0x378   : > { %v2423_v20 = vadd.f32 %v2422_v11, %v2334_v16  ;;  %2784 = vmatmul.f32.gmra.mxu0 %v8460_v35  ;;  %2873 = vmatmul.f32.gmra.mxu1 %v8464_v55  ;;  %v3058_v55 = vld [vmem:[#allocation2 + $0x60] sm:$0xff]  ;;  %v3464_v11 = vld [vmem:[#allocation4 + $0xb0] sm:$0xff] }
 0x379   : > { %3588 = vmatmul.f32.gmra.mxu2 %v3057_v5  ;;  %3677 = vmatmul.f32.gmra.mxu3 %v3165_v2  ;;  %v3167_v16 = vld [vmem:[#allocation2 + $0x69] sm:$0xff] }
 0x37a   : > { %3913 = vmatpush.msrb.mxu2 %v3464_v11  ;;  %v3448_v5 = vld [vmem:[#allocation4 + $0x30] sm:$0xff] }
 0x37b   : > { %3824 = vmatpush.msrb.mxu1 %v3448_v5 }
 0x37c   : > { %v2511_v18 = vpop.f32.mrf.mxu2  ;;  %v8693_v27 = vpop.f32.mrf.mxu3 }
 0x37d   : > { %v8695_v15 = vadd.f32 %v2511_v18, %v2423_v20  ;;  %v2336_v17 = vpop.f32.mrf.mxu0  ;;  %v2425_v61 = vpop.f32.mrf.mxu1  ;;  %v3480_v20 = vld [vmem:[#allocation4 + $0x130] sm:$0xff] }
 0x37e   : > { %v2337_v39 = vadd.f32 %v2336_v17, %v8367_v26  ;;  %4002 = vmatpush.msrb.mxu3 %v3480_v20  ;;  %v3538_v17 = vld [vmem:[#allocation4 + $0x2b0] sm:$0xff] }
 0x37f   : > { %3735 = vmatpush.msrb.mxu0 %v3538_v17 }
 0x380   : > { %v2426_v35 = vadd.f32 %v2425_v61, %v2337_v39  ;;  %2787 = vmatmul.f32.gmra.mxu0 %v8476_v37  ;;  %2876 = vmatmul.f32.gmra.mxu1 %v8483_v42  ;;  %v3060_v61 = vld [vmem:[#allocation2 + $0x70] sm:$0xff] }
 0x381   : > { %3591 = vmatmul.f32.gmra.mxu2 %v3058_v55  ;;  %3680 = vmatmul.f32.gmra.mxu3 %v3166_v9  ;;  %v3168_v39 = vld [vmem:[#allocation2 + $0x71] sm:$0xff]  ;;  %v3479_v55 = vld [vmem:[#allocation4 + $0x128] sm:$0xff] }
 0x382   : > { %4003 = vmatpush.msrb.mxu3 %v3479_v55  ;;  %v3446_v55 = vld [vmem:[#allocation4 + $0x20] sm:$0xff] }
 0x384   : > { %v2514_v23 = vpop.f32.mrf.mxu2  ;;  %v8700_v13 = vpop.f32.mrf.mxu3 }
 0x385   : > { %v8702_v31 = vadd.f32 %v2514_v23, %v2426_v35  ;;  %v2339_v40 = vpop.f32.mrf.mxu0  ;;  %v2428_v26 = vpop.f32.mrf.mxu1  ;;  %v3463_v35 = vld [vmem:[#allocation4 + $0xa8] sm:$0xff] }
 0x386   : > { %v2340_v37 = vadd.f32 %v2339_v40, %v8389_v62  ;;  %3914 = vmatpush.msrb.mxu2 %v3463_v35  ;;  %v3478_v35 = vld [vmem:[#allocation4 + $0x120] sm:$0xff] }
 0x387   : > { %4004 = vmatpush.msrb.mxu3 %v3478_v35 }
 0x388   : > { %v2429_v42 = vadd.f32 %v2428_v26, %v2340_v37  ;;  %2790 = vmatmul.f32.gmra.mxu0 %v8499_v54  ;;  %2879 = vmatmul.f32.gmra.mxu1 %v8503_v58  ;;  %v3169_v26 = vld [vmem:[#allocation2 + $0x79] sm:$0xff] }
 0x389   : > { %3594 = vmatmul.f32.gmra.mxu2 %v3059_v25  ;;  %3683 = vmatmul.f32.gmra.mxu3 %v3167_v16 }
 0x38c   : > { %v2517_v2 = vpop.f32.mrf.mxu2  ;;  %v8707_v51 = vpop.f32.mrf.mxu3 }
 0x38d   : > { %v8709_v4 = vadd.f32 %v2517_v2, %v2429_v42  ;;  %v2342_v62 = vpop.f32.mrf.mxu0  ;;  %v2431_v18 = vpop.f32.mrf.mxu1  ;;  %v3537_v2 = vld [vmem:[#allocation4 + $0x2a8] sm:$0xff] }
 0x38e   : > { %v2343_v54 = vadd.f32 %v2342_v62, %v8411_v34  ;;  %v3462_v62 = vld [vmem:[#allocation4 + $0xa0] sm:$0xff]  ;;  %3736 = vmatpush.msrb.mxu0 %v3537_v2 }
 0x38f   : > { %3915 = vmatpush.msrb.mxu2 %v3462_v62  ;;  %v10139_v2 = vld [vmem:[#allocation14_spill] sm:$0xff] }
 0x390   : > { %v2432_v58 = vadd.f32 %v2431_v18, %v2343_v54  ;;  %2793 = vmatmul.f32.gmra.mxu0 %v8520_v59  ;;  %2882 = vmatmul.f32.gmra.mxu1 %v8524_v45  ;;  %v3061_v45 = vld [vmem:[#allocation2 + $0x78] sm:$0xff] }
 0x391   : > { %3597 = vmatmul.f32.gmra.mxu2 %v3060_v61  ;;  %3686 = vmatmul.f32.gmra.mxu3 %v3168_v39  ;;  %v3063_v61 = vld [vmem:[#allocation2 + $0x88] sm:$0xff]  ;;  %v3065_v62 = vld [vmem:[#allocation2 + $0x98] sm:$0xff] }
 0x392   : > { %v3171_v39 = vld [vmem:[#allocation2 + $0x89] sm:$0xff] }
 0x394   : > { %v2520_v9 = vpop.f32.mrf.mxu2  ;;  %v8714_v48 = vpop.f32.mrf.mxu3 }
 0x395   : > { %v8716_v1 = vadd.f32 %v2520_v9, %v2432_v58  ;;  %v2345_v34 = vpop.f32.mrf.mxu0  ;;  %v2434_v23 = vpop.f32.mrf.mxu1  ;;  %v3536_v9 = vld [vmem:[#allocation4 + $0x2a0] sm:$0xff] }
 0x396   : > { %v2346_v40 = vadd.f32 %v2345_v34, %v8433_v30  ;;  %v3170_v30 = vld [vmem:[#allocation2 + $0x81] sm:$0xff]  ;;  %3737 = vmatpush.msrb.mxu0 %v3536_v9 }
 0x398   : > { %v2435_v59 = vadd.f32 %v2434_v23, %v2346_v40  ;;  %2796 = vmatmul.f32.gmra.mxu0 %v8535_v7  ;;  %2885 = vmatmul.f32.gmra.mxu1 %v8542_v53  ;;  %v3062_v7 = vld [vmem:[#allocation2 + $0x80] sm:$0xff] }
 0x399   : > { %3600 = vmatmul.f32.gmra.mxu2 %v3061_v45  ;;  %3689 = vmatmul.f32.gmra.mxu3 %v3169_v26  ;;  %v3447_v53 = vld [vmem:[#allocation4 + $0x28] sm:$0xff]  ;;  %v3064_v45 = vld [vmem:[#allocation2 + $0x90] sm:$0xff] }
 0x39a   : > { %3825 = vmatpush.msrb.mxu1 %v3447_v53  ;;  %v3172_v26 = vld [vmem:[#allocation2 + $0x91] sm:$0xff] }
 0x39c   : > { %v2523_v11 = vpop.f32.mrf.mxu2  ;;  %v8721_v37 = vpop.f32.mrf.mxu3  ;;  %3826 = vmatpush.msrb.mxu1 %v3446_v55 }
 0x39d   : > { %v8723_v42 = vadd.f32 %v2523_v11, %v2435_v59  ;;  %v2348_v25 = vpop.f32.mrf.mxu0  ;;  %v2437_v16 = vpop.f32.mrf.mxu1  ;;  %v3461_v11 = vld [vmem:[#allocation4 + $0x98] sm:$0xff] }
 0x39e   : > { %v2349_v20 = vadd.f32 %v2348_v25, %v8455_v12  ;;  %v3477_v25 = vld [vmem:[#allocation4 + $0x118] sm:$0xff]  ;;  %3916 = vmatpush.msrb.mxu2 %v3461_v11  ;;  %v3066_v11 = vld [vmem:[#allocation2 + $0xa0] sm:$0xff] }
 0x39f   : > { %4005 = vmatpush.msrb.mxu3 %v3477_v25  ;;  %v3174_v25 = vld [vmem:[#allocation2 + $0xa1] sm:$0xff] }
 0x3a0   : > { %v2438_v5 = vadd.f32 %v2437_v16, %v2349_v20  ;;  %2799 = vmatmul.f32.gmra.mxu0 %v8556_v44  ;;  %2888 = vmatmul.f32.gmra.mxu1 %v8560_v49 }
 0x3a1   : > { %3603 = vmatmul.f32.gmra.mxu2 %v3062_v7  ;;  %3692 = vmatmul.f32.gmra.mxu3 %v3170_v30  ;;  %v10138_v30 = vld [vmem:[#allocation16_spill] sm:$0xff] }
 0x3a4   : > { %v2526_v18 = vpop.f32.mrf.mxu2  ;;  %v8728_v17 = vpop.f32.mrf.mxu3 }
 0x3a5   : > { %v8730_v54 = vadd.f32 %v2526_v18, %v2438_v5  ;;  %v2351_v12 = vpop.f32.mrf.mxu0  ;;  %v2440_v58 = vpop.f32.mrf.mxu1  ;;  %v3173_v18 = vld [vmem:[#allocation2 + $0x99] sm:$0xff] }
 0x3a6   : > { %v2352_v44 = vadd.f32 %v2351_v12, %v8471_v52  ;;  %v10140_v12 = vld [vmem:[#allocation10_spill] sm:$0xff] }
 0x3a8   : > { %v2441_v49 = vadd.f32 %v2440_v58, %v2352_v44  ;;  %2802 = vmatmul.f32.gmra.mxu0 %v8577_v0  ;;  %2891 = vmatmul.f32.gmra.mxu1 %v8581_v50  ;;  %v3445_v44 = vld [vmem:[#allocation4 + $0x18] sm:$0xff] }
 0x3a9   : > { %3606 = vmatmul.f32.gmra.mxu2 %v3063_v61  ;;  %3695 = vmatmul.f32.gmra.mxu3 %v3171_v39  ;;  %v3460_v61 = vld [vmem:[#allocation4 + $0x90] sm:$0xff] }
 0x3aa   : > { %3827 = vmatpush.msrb.mxu1 %v3445_v44  ;;  %3917 = vmatpush.msrb.mxu2 %v3460_v61 }
 0x3ac   : > { %v2529_v34 = vpop.f32.mrf.mxu2  ;;  %v8735_v23 = vpop.f32.mrf.mxu3 }
 0x3ad   : > { %v8737_v40 = vadd.f32 %v2529_v34, %v2441_v49  ;;  %v2354_v52 = vpop.f32.mrf.mxu0  ;;  %v2443_v59 = vpop.f32.mrf.mxu1  ;;  %v3535_v49 = vld [vmem:[#allocation4 + $0x298] sm:$0xff] }
 0x3ae   : > { %v2355_v0 = vadd.f32 %v2354_v52, %v8495_v60  ;;  %3738 = vmatpush.msrb.mxu0 %v3535_v49  ;;  %v10145_v49 = vld [vmem:[#allocation20_spill] sm:$0xff] }
 0x3b0   : > { %v2444_v50 = vadd.f32 %v2443_v59, %v2355_v0  ;;  %2805 = vmatmul.f32.gmra.mxu0 %v8593_v56  ;;  %2894 = vmatmul.f32.gmra.mxu1 %v8597_v32  ;;  %v8750_v32 = vld [vmem:[%s9944_s2] ss:$0 sm:$0xff]  ;;  %v10141_v59 = vld [vmem:[#allocation22_spill] sm:$0xff] }
 0x3b1   : > { %3609 = vmatmul.f32.gmra.mxu2 %v3064_v45  ;;  %3698 = vmatmul.f32.gmra.mxu3 %v3172_v26 }
 0x3b4   : > { %v2532_v16 = vpop.f32.mrf.mxu2  ;;  %v8742_v20 = vpop.f32.mrf.mxu3 }
 0x3b5   : > { %v8744_v5 = vadd.f32 %v2532_v16, %v2444_v50  ;;  %v2761_v7 = vpop.f32.mrf.mxu0  ;;  %v2850_v60 = vpop.f32.mrf.mxu1  ;;  %v10142_v50 = vld [vmem:[#allocation17_spill] sm:$0xff]  ;;  %v10143_v16 = vld [vmem:[#allocation19_spill] sm:$0xff] }
 0x3b6   : > { %v2762_v53 = vadd.f32 %v2761_v7, %v10138_v30  ;;  %v3444_v30 = vld [vmem:[#allocation4 + $0x10] sm:$0xff] }
 0x3b7   : > { %3828 = vmatpush.msrb.mxu1 %v3444_v30 }
 0x3b8   : > { %v2851_v56 = vadd.f32 %v2850_v60, %v2762_v53  ;;  %2808 = vmatmul.f32.gmra.mxu0 %v8608_v41  ;;  %2897 = vmatmul.f32.gmra.mxu1 %v10139_v2  ;;  %v3476_v60 = vld [vmem:[#allocation4 + $0x110] sm:$0xff] }
 0x3b9   : > { %3612 = vmatmul.f32.gmra.mxu2 %v3065_v62  ;;  %3701 = vmatmul.f32.gmra.mxu3 %v3173_v18  ;;  %v3534_v53 = vld [vmem:[#allocation4 + $0x290] sm:$0xff] }
 0x3ba   : > { %v2922_v58 = vadd.f32 %v2851_v56, %v10140_v12  ;;  %4006 = vmatpush.msrb.mxu3 %v3476_v60  ;;  %3739 = vmatpush.msrb.mxu0 %v3534_v53  ;;  %v10147_v53 = vld [vmem:[#allocation12_spill] sm:$0xff] }
 0x3bc   : > { %v2950_v39 = vadd.f32 %v8750_v32, %v2922_v58  ;;  %v3565_v35 = vpop.f32.mrf.mxu2  ;;  %v3654_v55 = vpop.f32.mrf.mxu3  ;;  %v10144_v58 = vld [vmem:[#allocation11_spill] sm:$0xff] }
 0x3bd   : > { %v8756_v9 = vadd.f32 %v3654_v55, %v3565_v35  ;;  %v2764_v41 = vpop.f32.mrf.mxu0  ;;  %v2853_v34 = vpop.f32.mrf.mxu1  ;;  %v6316_v35 = vld [vmem:[%s6795_s6 + $0x181] sm:$0xff] }
 0x3be   : > { %v2974_v52 = vmax.f32 %v2950_v39, 0.0  ;;  %v2765_v0 = vadd.f32 %v2764_v41, %v10141_v59  ;;  %v6317_v55 = vld [vmem:[%s6795_s6 + $0x182] sm:$0xff] }
 0x3bf   : > { %v3067_v41 = vld [vmem:[#allocation2 + $0xa8] sm:$0xff] }
 0x3c0   : > { %v2998_v45 = vmul.f32 %v2974_v52, %v10142_v50  ;;  %v2854_v26 = vadd.f32 %v2853_v34, %v2765_v0  ;;  %2811 = vmatmul.f32.gmra.mxu0 %v8623_v6  ;;  %2900 = vmatmul.f32.gmra.mxu1 %v8627_v19  ;;  %v3175_v34 = vld [vmem:[#allocation2 + $0xa9] sm:$0xff]  ;;  %v3459_v0 = vld [vmem:[#allocation4 + $0x88] sm:$0xff] }
 0x3c1   : > { %3615 = vmatmul.f32.gmra.mxu2 %v3066_v11  ;;  %3704 = vmatmul.f32.gmra.mxu3 %v3174_v25  ;;  %v10146_v52 = vld [vmem:[#allocation25_spill] sm:$0xff] }
 0x3c2   : > { %3022 = vst [vmem:[#allocation2 + $0xd9] sm:$0xff] %v2998_v45  ;;  %v2923_v7 = vadd.f32 %v2854_v26, %v10143_v16  ;;  %v3475_v45 = vld [vmem:[#allocation4 + $0x108] sm:$0xff]  ;;  %3918 = vmatpush.msrb.mxu2 %v3459_v0 }
 0x3c3   : > { %4007 = vmatpush.msrb.mxu3 %v3475_v45 }
 0x3c4   : > { %v2951_v56 = vadd.f32 %v8750_v32, %v2923_v7  ;;  %v3568_v2 = vpop.f32.mrf.mxu2  ;;  %v3657_v6 = vpop.f32.mrf.mxu3 }
 0x3c5   : > { %v8764_v19 = vadd.f32 %v3657_v6, %v3568_v2  ;;  %v2767_v62 = vpop.f32.mrf.mxu0  ;;  %v2856_v18 = vpop.f32.mrf.mxu1  ;;  %v10148_v2 = vld [vmem:[#allocation23_spill] sm:$0xff] }
 0x3c6   : > { %v2975_v12 = vmax.f32 %v2951_v56, 0.0  ;;  %v2768_v44 = vadd.f32 %v2767_v62, %v10144_v58  ;;  %v3068_v58 = vld [vmem:[#allocation2 + $0xb0] sm:$0xff] }
 0x3c8   : > { %v2999_v61 = vmul.f32 %v2975_v12, %v10145_v49  ;;  %v2857_v39 = vadd.f32 %v2856_v18, %v2768_v44  ;;  %2814 = vmatmul.f32.gmra.mxu0 %v6316_v35  ;;  %2903 = vmatmul.f32.gmra.mxu1 %v6317_v55  ;;  %v6318_v18 = vld [vmem:[%s6795_s6 + $0x189] sm:$0xff]  ;;  %v3176_v44 = vld [vmem:[#allocation2 + $0xb1] sm:$0xff]  ;;  %v3443_v35 = vld [vmem:[#allocation4 + $0x8] sm:$0xff] }
 0x3c9   : > { %3618 = vmatmul.f32.gmra.mxu2 %v3067_v41  ;;  %3707 = vmatmul.f32.gmra.mxu3 %v3175_v34  ;;  %v6319_v12 = vld [vmem:[%s6795_s6 + $0x18a] sm:$0xff]  ;;  %v3533_v55 = vld [vmem:[#allocation4 + $0x288] sm:$0xff]  ;;  %v3458_v41 = vld [vmem:[#allocation4 + $0x80] sm:$0xff] }
 0x3ca   : > { %3023 = vst [vmem:[#allocation2 + $0xe1] sm:$0xff] %v2999_v61  ;;  %v2924_v59 = vadd.f32 %v2857_v39, %v10146_v52  ;;  %v10149_v61 = vld [vmem:[#allocation18_spill] sm:$0xff]  ;;  %3829 = vmatpush.msrb.mxu1 %v3443_v35  ;;  %3740 = vmatpush.msrb.mxu0 %v3533_v55 }
 0x3cb   : > { %3919 = vmatpush.msrb.mxu2 %v3458_v41 }
 0x3cc   : > { %v2952_v26 = vadd.f32 %v8750_v32, %v2924_v59  ;;  %v3571_v11 = vpop.f32.mrf.mxu2  ;;  %v3660_v25 = vpop.f32.mrf.mxu3 }
 0x3cd   : > { %v8772_v16 = vadd.f32 %v3660_v25, %v3571_v11  ;;  %v2770_v7 = vpop.f32.mrf.mxu0  ;;  %v2859_v60 = vpop.f32.mrf.mxu1  ;;  %v10150_v25 = vld [vmem:[#allocation27_spill] sm:$0xff] }
 0x3ce   : > { %v2976_v30 = vmax.f32 %v2952_v26, 0.0  ;;  %v2771_v56 = vadd.f32 %v2770_v7, %v10147_v53 }
 0x3d0   : > { %v3000_v6 = vmul.f32 %v2976_v30, %v10148_v2  ;;  %v2860_v62 = vadd.f32 %v2859_v60, %v2771_v56  ;;  %2817 = vmatmul.f32.gmra.mxu0 %v6318_v18  ;;  %2906 = vmatmul.f32.gmra.mxu1 %v6319_v12  ;;  %v3474_v60 = vld [vmem:[#allocation4 + $0x100] sm:$0xff] }
 0x3d1   : > { %3621 = vmatmul.f32.gmra.mxu2 %v3068_v58  ;;  %3710 = vmatmul.f32.gmra.mxu3 %v3176_v44  ;;  %v3442_v30 = vld [vmem:[#allocation4] sm:$0xff]  ;;  %v10151_v44 = vld [vmem:[#allocation13_spill] sm:$0xff] }
 0x3d2   : > { %3024 = vst [vmem:[#allocation2 + $0xe9] sm:$0xff] %v3000_v6  ;;  %v2925_v39 = vadd.f32 %v2860_v62, %v10149_v61  ;;  %v6320_v6 = vld [vmem:[%s6795_s6 + $0x191] sm:$0xff]  ;;  %v3177_v12 = vld [vmem:[#allocation2 + $0xb9] sm:$0xff]  ;;  %4008 = vmatpush.msrb.mxu3 %v3474_v60  ;;  %3830 = vmatpush.msrb.mxu1 %v3442_v30  ;;  %v3178_v30 = vld [vmem:[#allocation2 + $0xc1] sm:$0xff] }
 0x3d3   : > { %v6321_v62 = vld [vmem:[%s6795_s6 + $0x192] sm:$0xff]  ;;  %v3070_v60 = vld [vmem:[#allocation2 + $0xc0] sm:$0xff] }
 0x3d4   : > { %v2953_v34 = vadd.f32 %v8750_v32, %v2925_v39  ;;  %v3574_v52 = vpop.f32.mrf.mxu2  ;;  %v3663_v59 = vpop.f32.mrf.mxu3  ;;  %v3069_v18 = vld [vmem:[#allocation2 + $0xb8] sm:$0xff] }
 0x3d5   : > { %v8780_v0 = vadd.f32 %v3663_v59, %v3574_v52  ;;  %v2773_v45 = vpop.f32.mrf.mxu0  ;;  %v2862_v26 = vpop.f32.mrf.mxu1  ;;  %v3532_v58 = vld [vmem:[#allocation4 + $0x280] sm:$0xff] }
 0x3d6   : > { %v2977_v11 = vmax.f32 %v2953_v34, 0.0  ;;  %v2774_v7 = vadd.f32 %v2773_v45, %v10150_v25  ;;  %3741 = vmatpush.msrb.mxu0 %v3532_v58  ;;  %v420_v59 = vld [vmem:[%s6795_s6 + $0x199] sm:$0xff] }
 0x3d7   : > { %v528_v45 = vld [vmem:[%s6795_s6 + $0x19a] sm:$0xff] }
 0x3d8   : > { %v3001_v53 = vmul.f32 %v2977_v11, %v10142_v50  ;;  %v2863_v56 = vadd.f32 %v2862_v26, %v2774_v7  ;;  %2820 = vmatmul.f32.gmra.mxu0 %v6320_v6  ;;  %2909 = vmatmul.f32.gmra.mxu1 %v6321_v62  ;;  %v10152_v11 = vld [vmem:[#allocation21_spill] sm:$0xff] }
 0x3d9   : > { %3624 = vmatmul.f32.gmra.mxu2 %v3069_v18  ;;  %3713 = vmatmul.f32.gmra.mxu3 %v3177_v12  ;;  %v4202_v62 = vld [vmem:[#allocation4 + $0x478] sm:$0xff] }
 0x3da   : > { %3025 = vst [vmem:[#allocation2 + $0xf1] sm:$0xff] %v3001_v53  ;;  %v2926_v61 = vadd.f32 %v2863_v56, %v10151_v44  ;;  %v10153_v56 = vld [vmem:[#allocation15_spill] sm:$0xff]  ;;  %v4762_v18 = vld [vmem:[#allocation4 + $0x1f8] sm:$0xff]  ;;  %4381 = vmatpush.msra.mxu2 %v4202_v62 }
 0x3db   : > { %4795 = vmatpush.msra.mxu3 %v4762_v18 }
 0x3dc   : > { %v2954_v39 = vadd.f32 %v8750_v32, %v2926_v61  ;;  %v3577_v35 = vpop.f32.mrf.mxu2  ;;  %v3666_v55 = vpop.f32.mrf.mxu3 }
 0x3dd   : > { %v8788_v41 = vadd.f32 %v3666_v55, %v3577_v35  ;;  %v2776_v34 = vpop.f32.mrf.mxu0  ;;  %v2865_v52 = vpop.f32.mrf.mxu1  ;;  %v421_v55 = vld [vmem:[%s6795_s6 + $0x1a1] sm:$0xff] }
 0x3de   : > { %v2978_v26 = vmax.f32 %v2954_v39, 0.0  ;;  %v2777_v25 = vadd.f32 %v2776_v34, %v10152_v11  ;;  %v529_v34 = vld [vmem:[%s6795_s6 + $0x1a2] sm:$0xff] }
 0x3e0   : > { %v3002_v7 = vmul.f32 %v2978_v26, %v10145_v49  ;;  %v2866_v53 = vadd.f32 %v2865_v52, %v2777_v25  ;;  %2823 = vmatmul.f32.gmra.mxu0 %v420_v59  ;;  %2912 = vmatmul.f32.gmra.mxu1 %v528_v45  ;;  %v10154_v59 = vld [vmem:[#allocation24_spill] sm:$0xff] }
 0x3e1   : > { %3627 = vmatmul.f32.gmra.mxu2 %v3070_v60  ;;  %3716 = vmatmul.f32.gmra.mxu3 %v3178_v30  ;;  %v3071_v25 = vld [vmem:[#allocation2 + $0xc8] sm:$0xff]  ;;  %v4186_v30 = vld [vmem:[#allocation4 + $0x3f8] sm:$0xff] }
 0x3e2   : > { %3026 = vst [vmem:[#allocation2 + $0xf9] sm:$0xff] %v3002_v7  ;;  %v2927_v6 = vadd.f32 %v2866_v53, %v10153_v56  ;;  %v3179_v7 = vld [vmem:[#allocation2 + $0xc9] sm:$0xff]  ;;  %4292 = vmatpush.msra.mxu1 %v4186_v30 }
 0x3e3   : > { %v10155_v53 = vld [vmem:[#allocation29_spill] sm:$0xff]  ;;  %v4169_v30 = vld [vmem:[#allocation4 + $0x370] sm:$0xff] }
 0x3e4   : > { %v2955_v12 = vadd.f32 %v8750_v32, %v2927_v6  ;;  %v3580_v58 = vpop.f32.mrf.mxu2  ;;  %v3669_v44 = vpop.f32.mrf.mxu3  ;;  %v4170_v56 = vld [vmem:[#allocation4 + $0x378] sm:$0xff]  ;;  %v4201_v6 = vld [vmem:[#allocation4 + $0x470] sm:$0xff] }
 0x3e5   : > { %v8796_v61 = vadd.f32 %v3669_v44, %v3580_v58  ;;  %v2779_v39 = vpop.f32.mrf.mxu0  ;;  %v2868_v35 = vpop.f32.mrf.mxu1  ;;  %4203 = vmatpush.msra.mxu0 %v4170_v56  ;;  %4382 = vmatpush.msra.mxu2 %v4201_v6 }
 0x3e6   : > { %v2979_v52 = vmax.f32 %v2955_v12, 0.0  ;;  %v2780_v45 = vadd.f32 %v2779_v39, %v10154_v59 }
 0x3e7   : > { %4204 = vmatpush.msra.mxu0 %v4169_v30 }
 0x3e8   : > { %v3003_v26 = vmul.f32 %v2979_v52, %v10148_v2  ;;  %v2869_v11 = vadd.f32 %v2868_v35, %v2780_v45  ;;  %2826 = vmatmul.f32.gmra.mxu0 %v421_v55  ;;  %2915 = vmatmul.f32.gmra.mxu1 %v529_v34  ;;  %v422_v35 = vld [vmem:[%s6795_s6 + $0x1a9] sm:$0xff] }
 0x3e9   : > { %3630 = vmatmul.f32.gmra.mxu2 %v3071_v25  ;;  %3719 = vmatmul.f32.gmra.mxu3 %v3179_v7  ;;  %v530_v55 = vld [vmem:[%s6795_s6 + $0x1aa] sm:$0xff]  ;;  %v10156_v25 = vld [vmem:[#allocation26_spill] sm:$0xff] }
 0x3ea   : > { %3027 = vst [vmem:[#allocation2 + $0x101] sm:$0xff] %v3003_v26  ;;  %v2928_v60 = vadd.f32 %v2869_v11, %v10155_v53  ;;  %v3072_v26 = vld [vmem:[#allocation2 + $0xd0] sm:$0xff]  ;;  %v4761_v53 = vld [vmem:[#allocation4 + $0x1f0] sm:$0xff] }
 0x3eb   : > { %v3180_v11 = vld [vmem:[#allocation2 + $0xd1] sm:$0xff]  ;;  %4796 = vmatpush.msra.mxu3 %v4761_v53 }
 0x3ec   : > { %v2956_v62 = vadd.f32 %v8750_v32, %v2928_v60  ;;  %v3583_v18 = vpop.f32.mrf.mxu2  ;;  %v3672_v12 = vpop.f32.mrf.mxu3  ;;  %v4185_v60 = vld [vmem:[#allocation4 + $0x3f0] sm:$0xff] }
 0x3ed   : > { %v8804_v58 = vadd.f32 %v3672_v12, %v3583_v18  ;;  %v2782_v44 = vpop.f32.mrf.mxu0  ;;  %v2871_v39 = vpop.f32.mrf.mxu1  ;;  %4293 = vmatpush.msra.mxu1 %v4185_v60 }
 0x3ee   : > { %v2980_v34 = vmax.f32 %v2956_v62, 0.0  ;;  %v2783_v52 = vadd.f32 %v2782_v44, %v8630_v36 }
 0x3f0   : > { %v3004_v59 = vmul.f32 %v2980_v34, %v10142_v50  ;;  %v2872_v45 = vadd.f32 %v2871_v39, %v2783_v52  ;;  %2829 = vmatmul.f32.gmra.mxu0 %v422_v35  ;;  %2918 = vmatmul.f32.gmra.mxu1 %v530_v55  ;;  %v3154_v35 = vld [vmem:[#allocation2 + $0x1] sm:$0xff] }
 0x3f1   : > { %3633 = vmatmul.f32.gmra.mxu2 %v3072_v26  ;;  %3722 = vmatmul.f32.gmra.mxu3 %v3180_v11  ;;  %v3262_v55 = vld [vmem:[#allocation2 + $0x2] sm:$0xff]  ;;  %v8815_v34 = vld [vmem:[#allocation2 + $0x1a] sm:$0xff] }
 0x3f2   : > { %3028 = vst [vmem:[#allocation2 + $0x109] sm:$0xff] %v3004_v59  ;;  %v2929_v7 = vadd.f32 %v2872_v45, %v10156_v25  ;;  %v6322_v45 = vld [vmem:[#allocation2] sm:$0xff] }
 0x3f3   : > { %v4200_v11 = vld [vmem:[#allocation4 + $0x468] sm:$0xff] }
 0x3f4   : > { %v2957_v56 = vadd.f32 %v8750_v32, %v2929_v7  ;;  %v3586_v36 = vpop.f32.mrf.mxu2  ;;  %v3675_v6 = vpop.f32.mrf.mxu3  ;;  %v4760_v25 = vld [vmem:[#allocation4 + $0x1e8] sm:$0xff]  ;;  %4383 = vmatpush.msra.mxu2 %v4200_v11 }
 0x3f5   : > { %v8812_v62 = vadd.f32 %v3675_v6, %v3586_v36  ;;  %v2785_v18 = vpop.f32.mrf.mxu0  ;;  %v2874_v12 = vpop.f32.mrf.mxu1  ;;  %4797 = vmatpush.msra.mxu3 %v4760_v25 }
 0x3f6   : > { %v2981_v44 = vmax.f32 %v2957_v56, 0.0  ;;  %v2786_v39 = vadd.f32 %v2785_v18, %v8637_v38  ;;  %v3155_v18 = vld [vmem:[#allocation2 + $0x9] sm:$0xff] }
 0x3f8   : > { %v3005_v52 = vmul.f32 %v2981_v44, %v10145_v49  ;;  %v2875_v59 = vadd.f32 %v2874_v12, %v2786_v39  ;;  %3742 = vmatmul.f32.vlgmr.msrb.gmra.mxu0 %v8815_v34  ;;  %3831 = vmatmul.f32.vlgmr.msrb.gmra.mxu1 %v6322_v45  ;;  %v3263_v12 = vld [vmem:[#allocation2 + $0xa] sm:$0xff]  ;;  %v8824_v44 = vld [vmem:[#allocation2 + $0x22] sm:$0xff] }
 0x3f9   : > { %3920 = vmatmul.f32.vlgmr.msrb.gmra.mxu2 %v3154_v35  ;;  %4009 = vmatmul.f32.vlgmr.msrb.gmra.mxu3 %v3262_v55  ;;  %v4184_v55 = vld [vmem:[#allocation4 + $0x3e8] sm:$0xff] }
 0x3fa   : > { %3029 = vst [vmem:[#allocation2 + $0x111] sm:$0xff] %v3005_v52  ;;  %v2930_v26 = vadd.f32 %v2875_v59, %v8639_v14  ;;  %v4168_v52 = vld [vmem:[#allocation4 + $0x368] sm:$0xff]  ;;  %v4199_v59 = vld [vmem:[#allocation4 + $0x460] sm:$0xff]  ;;  %4294 = vmatpush.msra.mxu1 %v4184_v55 }
 0x3fb   : > { %4205 = vmatpush.msra.mxu0 %v4168_v52  ;;  %4384 = vmatpush.msra.mxu2 %v4199_v59 }
 0x3fc   : > { %v2958_v38 = vadd.f32 %v8750_v32, %v2930_v26  ;;  %v3589_v7 = vpop.f32.mrf.mxu2  ;;  %v3678_v53 = vpop.f32.mrf.mxu3 }
 0x3fd   : > { %v8821_v60 = vadd.f32 %v3678_v53, %v3589_v7  ;;  %v2788_v30 = vpop.f32.mrf.mxu0  ;;  %v2877_v56 = vpop.f32.mrf.mxu1 }
 0x3fe   : > { %v2982_v36 = vmax.f32 %v2958_v38, 0.0  ;;  %v2789_v6 = vadd.f32 %v2788_v30, %v8644_v57 }
 0x400   : > { %v3006_v14 = vmul.f32 %v2982_v36, %v10148_v2  ;;  %v2878_v39 = vadd.f32 %v2877_v56, %v2789_v6  ;;  %3745 = vmatmul.f32.gmra.mxu0 %v8824_v44  ;;  %3834 = vmatmul.f32.gmra.mxu1 %v6322_v45  ;;  %v3156_v56 = vld [vmem:[#allocation2 + $0x11] sm:$0xff] }
 0x401   : > { %3923 = vmatmul.f32.gmra.mxu2 %v3155_v18  ;;  %4012 = vmatmul.f32.gmra.mxu3 %v3263_v12  ;;  %v8833_v36 = vld [vmem:[#allocation2 + $0x2a] sm:$0xff]  ;;  %v3264_v18 = vld [vmem:[#allocation2 + $0x12] sm:$0xff] }
 0x402   : > { %3030 = vst [vmem:[#allocation2 + $0x119] sm:$0xff] %v3006_v14  ;;  %v2931_v35 = vadd.f32 %v2878_v39, %v8646_v3  ;;  %v4759_v14 = vld [vmem:[#allocation4 + $0x1e0] sm:$0xff] }
 0x403   : > { %v4183_v39 = vld [vmem:[#allocation4 + $0x3e0] sm:$0xff]  ;;  %4798 = vmatpush.msra.mxu3 %v4759_v14 }
 0x404   : > { %v2959_v57 = vadd.f32 %v8750_v32, %v2931_v35  ;;  %v3592_v26 = vpop.f32.mrf.mxu2  ;;  %v3681_v11 = vpop.f32.mrf.mxu3  ;;  %v4167_v35 = vld [vmem:[#allocation4 + $0x360] sm:$0xff]  ;;  %4295 = vmatpush.msra.mxu1 %v4183_v39 }
 0x405   : > { %v8830_v25 = vadd.f32 %v3681_v11, %v3592_v26  ;;  %v2791_v38 = vpop.f32.mrf.mxu0  ;;  %v2880_v7 = vpop.f32.mrf.mxu1  ;;  %4206 = vmatpush.msra.mxu0 %v4167_v35 }
 0x406   : > { %v2983_v53 = vmax.f32 %v2959_v57, 0.0  ;;  %v2792_v30 = vadd.f32 %v2791_v38, %v8651_v21  ;;  %v8842_v38 = vld [vmem:[#allocation2 + $0x32] sm:$0xff] }
 0x408   : > { %v3007_v3 = vmul.f32 %v2983_v53, %v10142_v50  ;;  %v2881_v6 = vadd.f32 %v2880_v7, %v2792_v30  ;;  %3748 = vmatmul.f32.gmra.mxu0 %v8833_v36  ;;  %3837 = vmatmul.f32.gmra.mxu1 %v6322_v45  ;;  %v6323_v53 = vld [vmem:[#allocation2 + $0x18] sm:$0xff] }
 0x409   : > { %3926 = vmatmul.f32.gmra.mxu2 %v3156_v56  ;;  %4015 = vmatmul.f32.gmra.mxu3 %v3264_v18  ;;  %v6324_v30 = vld [vmem:[#allocation2 + $0x19] sm:$0xff] }
 0x40a   : > { %3031 = vst [vmem:[#allocation2 + $0x121] sm:$0xff] %v3007_v3  ;;  %v2932_v12 = vadd.f32 %v2881_v6, %v8653_v29  ;;  %v4198_v3 = vld [vmem:[#allocation4 + $0x458] sm:$0xff] }
 0x40b   : > { %v4758_v6 = vld [vmem:[#allocation4 + $0x1d8] sm:$0xff]  ;;  %4385 = vmatpush.msra.mxu2 %v4198_v3 }
 0x40c   : > { %v2960_v21 = vadd.f32 %v8750_v32, %v2932_v12  ;;  %v3595_v55 = vpop.f32.mrf.mxu2  ;;  %v3684_v52 = vpop.f32.mrf.mxu3  ;;  %4799 = vmatpush.msra.mxu3 %v4758_v6 }
 0x40d   : > { %v8839_v59 = vadd.f32 %v3684_v52, %v3595_v55  ;;  %v2794_v57 = vpop.f32.mrf.mxu0  ;;  %v2883_v45 = vpop.f32.mrf.mxu1  ;;  %v8852_v52 = vld [vmem:[#allocation2 + $0x3a] sm:$0xff] }
 0x40e   : > { %v2984_v26 = vmax.f32 %v2960_v21, 0.0  ;;  %v2795_v11 = vadd.f32 %v2794_v57, %v8658_v63  ;;  %v6325_v57 = vld [vmem:[#allocation2 + $0x20] sm:$0xff] }
 0x410   : > { %v3008_v29 = vmul.f32 %v2984_v26, %v10145_v49  ;;  %v2884_v7 = vadd.f32 %v2883_v45, %v2795_v11  ;;  %3751 = vmatmul.f32.gmra.mxu0 %v8842_v38  ;;  %3840 = vmatmul.f32.gmra.mxu1 %v6323_v53  ;;  %v6326_v45 = vld [vmem:[#allocation2 + $0x21] sm:$0xff]  ;;  %v4182_v11 = vld [vmem:[#allocation4 + $0x3d8] sm:$0xff] }
 0x411   : > { %3929 = vmatmul.f32.gmra.mxu2 %v6324_v30  ;;  %4018 = vmatmul.f32.gmra.mxu3 %v8815_v34 }
 0x412   : > { %3032 = vst [vmem:[#allocation2 + $0x129] sm:$0xff] %v3008_v29  ;;  %v2933_v56 = vadd.f32 %v2884_v7, %v8660_v28  ;;  %v4166_v29 = vld [vmem:[#allocation4 + $0x358] sm:$0xff]  ;;  %v4197_v7 = vld [vmem:[#allocation4 + $0x450] sm:$0xff]  ;;  %4296 = vmatpush.msra.mxu1 %v4182_v11 }
 0x413   : > { %4207 = vmatpush.msra.mxu0 %v4166_v29  ;;  %4386 = vmatpush.msra.mxu2 %v4197_v7 }
 0x414   : > { %v2961_v63 = vadd.f32 %v8750_v32, %v2933_v56  ;;  %v3598_v18 = vpop.f32.mrf.mxu2  ;;  %v3687_v12 = vpop.f32.mrf.mxu3 }
 0x415   : > { %v8849_v14 = vadd.f32 %v3687_v12, %v3598_v18  ;;  %v2797_v39 = vpop.f32.mrf.mxu0  ;;  %v2886_v35 = vpop.f32.mrf.mxu1  ;;  %v8862_v18 = vld [vmem:[#allocation2 + $0x42] sm:$0xff] }
 0x416   : > { %v2985_v21 = vmax.f32 %v2961_v63, 0.0  ;;  %v2798_v55 = vadd.f32 %v2797_v39, %v8665_v8  ;;  %v6327_v39 = vld [vmem:[#allocation2 + $0x28] sm:$0xff] }
 0x418   : > { %v3009_v34 = vmul.f32 %v2985_v21, %v10148_v2  ;;  %v2887_v28 = vadd.f32 %v2886_v35, %v2798_v55  ;;  %3754 = vmatmul.f32.gmra.mxu0 %v8852_v52  ;;  %3843 = vmatmul.f32.gmra.mxu1 %v6325_v57  ;;  %v6328_v35 = vld [vmem:[#allocation2 + $0x29] sm:$0xff] }
 0x419   : > { %3932 = vmatmul.f32.gmra.mxu2 %v6326_v45  ;;  %4021 = vmatmul.f32.gmra.mxu3 %v8824_v44  ;;  %v4757_v55 = vld [vmem:[#allocation4 + $0x1d0] sm:$0xff] }
 0x41a   : > { %3033 = vst [vmem:[#allocation2 + $0x131] sm:$0xff] %v3009_v34  ;;  %v2934_v26 = vadd.f32 %v2887_v28, %v8667_v47  ;;  %v4181_v34 = vld [vmem:[#allocation4 + $0x3d0] sm:$0xff]  ;;  %4800 = vmatpush.msra.mxu3 %v4757_v55 }
 0x41b   : > { %v4165_v28 = vld [vmem:[#allocation4 + $0x350] sm:$0xff]  ;;  %4297 = vmatpush.msra.mxu1 %v4181_v34 }
 0x41c   : > { %v2962_v8 = vadd.f32 %v8750_v32, %v2934_v26  ;;  %v3601_v53 = vpop.f32.mrf.mxu2  ;;  %v3690_v30 = vpop.f32.mrf.mxu3  ;;  %4208 = vmatpush.msra.mxu0 %v4165_v28  ;;  %v8888_v28 = vld [vmem:[#allocation2 + $0x52] sm:$0xff] }
 0x41d   : > { %v8859_v56 = vadd.f32 %v3690_v30, %v3601_v53  ;;  %v2800_v3 = vpop.f32.mrf.mxu0  ;;  %v2889_v6 = vpop.f32.mrf.mxu1  ;;  %v8876_v30 = vld [vmem:[#allocation2 + $0x30] sm:$0xff] }
 0x41e   : > { %v2986_v63 = vmax.f32 %v2962_v8, 0.0  ;;  %v2801_v44 = vadd.f32 %v2800_v3, %v8672_v43  ;;  %v8872_v8 = vld [vmem:[#allocation2 + $0x4a] sm:$0xff] }
 0x41f   : > { %v8879_v3 = vld [vmem:[#allocation2 + $0x31] sm:$0xff] }
 0x420   : > { %v3010_v47 = vmul.f32 %v2986_v63, %v10142_v50  ;;  %v2890_v12 = vadd.f32 %v2889_v6, %v2801_v44  ;;  %3757 = vmatmul.f32.gmra.mxu0 %v8862_v18  ;;  %3846 = vmatmul.f32.gmra.mxu1 %v6327_v39  ;;  %v4196_v6 = vld [vmem:[#allocation4 + $0x448] sm:$0xff] }
 0x421   : > { %3935 = vmatmul.f32.gmra.mxu2 %v6328_v35  ;;  %4024 = vmatmul.f32.gmra.mxu3 %v8833_v36  ;;  %v4756_v63 = vld [vmem:[#allocation4 + $0x1c8] sm:$0xff] }
 0x422   : > { %3034 = vst [vmem:[#allocation2 + $0x139] sm:$0xff] %v3010_v47  ;;  %v2935_v21 = vadd.f32 %v2890_v12, %v8674_v10  ;;  %4387 = vmatpush.msra.mxu2 %v4196_v6  ;;  %4801 = vmatpush.msra.mxu3 %v4756_v63 }
 0x424   : > { %v2963_v43 = vadd.f32 %v8750_v32, %v2935_v21  ;;  %v3604_v57 = vpop.f32.mrf.mxu2  ;;  %v3693_v45 = vpop.f32.mrf.mxu3 }
 0x425   : > { %v8869_v26 = vadd.f32 %v3693_v45, %v3604_v57  ;;  %v2803_v11 = vpop.f32.mrf.mxu0  ;;  %v2892_v29 = vpop.f32.mrf.mxu1  ;;  %v8892_v57 = vld [vmem:[#allocation2 + $0x38] sm:$0xff] }
 0x426   : > { %v2987_v7 = vmax.f32 %v2963_v43, 0.0  ;;  %v2804_v36 = vadd.f32 %v2803_v11, %v8679_v22  ;;  %v8895_v45 = vld [vmem:[#allocation2 + $0x39] sm:$0xff] }
 0x427   : > { %v4180_v11 = vld [vmem:[#allocation4 + $0x3c8] sm:$0xff] }
 0x428   : > { %v3011_v10 = vmul.f32 %v2987_v7, %v10145_v49  ;;  %v2893_v53 = vadd.f32 %v2892_v29, %v2804_v36  ;;  %3760 = vmatmul.f32.gmra.mxu0 %v8872_v8  ;;  %3849 = vmatmul.f32.gmra.mxu1 %v8876_v30  ;;  %v4164_v29 = vld [vmem:[#allocation4 + $0x348] sm:$0xff]  ;;  %v4195_v7 = vld [vmem:[#allocation4 + $0x440] sm:$0xff] }
 0x429   : > { %3938 = vmatmul.f32.gmra.mxu2 %v8879_v3  ;;  %4027 = vmatmul.f32.gmra.mxu3 %v8842_v38 }
 0x42a   : > { %3035 = vst [vmem:[#allocation2 + $0x141] sm:$0xff] %v3011_v10  ;;  %v2936_v22 = vadd.f32 %v2893_v53, %v8681_v33  ;;  %4298 = vmatpush.msra.mxu1 %v4180_v11  ;;  %4209 = vmatpush.msra.mxu0 %v4164_v29 }
 0x42b   : > { %4388 = vmatpush.msra.mxu2 %v4195_v7 }
 0x42c   : > { %v2964_v44 = vadd.f32 %v8750_v32, %v2936_v22  ;;  %v3607_v47 = vpop.f32.mrf.mxu2  ;;  %v3696_v12 = vpop.f32.mrf.mxu3 }
 0x42d   : > { %v8885_v39 = vadd.f32 %v3696_v12, %v3607_v47  ;;  %v2806_v35 = vpop.f32.mrf.mxu0  ;;  %v2895_v21 = vpop.f32.mrf.mxu1  ;;  %v8904_v12 = vld [vmem:[#allocation2 + $0x5a] sm:$0xff] }
 0x42e   : > { %v2988_v55 = vmax.f32 %v2964_v44, 0.0  ;;  %v2807_v34 = vadd.f32 %v2806_v35, %v8686_v24 }
 0x430   : > { %v3012_v43 = vmul.f32 %v2988_v55, %v10148_v2  ;;  %v2896_v33 = vadd.f32 %v2895_v21, %v2807_v34  ;;  %3763 = vmatmul.f32.gmra.mxu0 %v8888_v28  ;;  %3852 = vmatmul.f32.gmra.mxu1 %v8892_v57  ;;  %v8908_v21 = vld [vmem:[#allocation2 + $0x40] sm:$0xff]  ;;  %v4755_v34 = vld [vmem:[#allocation4 + $0x1c0] sm:$0xff] }
 0x431   : > { %3941 = vmatmul.f32.gmra.mxu2 %v8895_v45  ;;  %4030 = vmatmul.f32.gmra.mxu3 %v8852_v52  ;;  %v8911_v55 = vld [vmem:[#allocation2 + $0x41] sm:$0xff] }
 0x432   : > { %3036 = vst [vmem:[#allocation2 + $0x149] sm:$0xff] %v3012_v43  ;;  %v2937_v24 = vadd.f32 %v2896_v33, %v8688_v46  ;;  %v4179_v43 = vld [vmem:[#allocation4 + $0x3c0] sm:$0xff]  ;;  %4802 = vmatpush.msra.mxu3 %v4755_v34 }
 0x433   : > { %v4163_v33 = vld [vmem:[#allocation4 + $0x340] sm:$0xff]  ;;  %4299 = vmatpush.msra.mxu1 %v4179_v43 }
 0x434   : > { %v2965_v36 = vadd.f32 %v8750_v32, %v2937_v24  ;;  %v3610_v10 = vpop.f32.mrf.mxu2  ;;  %v3699_v53 = vpop.f32.mrf.mxu3  ;;  %4210 = vmatpush.msra.mxu0 %v4163_v33 }
 0x435   : > { %v8901_v22 = vadd.f32 %v3699_v53, %v3610_v10  ;;  %v2809_v6 = vpop.f32.mrf.mxu0  ;;  %v2898_v63 = vpop.f32.mrf.mxu1 }
 0x436   : > { %v2989_v44 = vmax.f32 %v2965_v36, 0.0  ;;  %v2810_v47 = vadd.f32 %v2809_v6, %v8693_v27 }
 0x437   : > { %10157 = vst [vmem:[#allocation28_spill] sm:$0xff] %v8901_v22 }
 0x438   : > { %v3013_v46 = vmul.f32 %v2989_v44, %v10142_v50  ;;  %v2899_v35 = vadd.f32 %v2898_v63, %v2810_v47  ;;  %3766 = vmatmul.f32.gmra.mxu0 %v8904_v12  ;;  %3855 = vmatmul.f32.gmra.mxu1 %v8908_v21  ;;  %v8920_v63 = vld [vmem:[#allocation2 + $0x62] sm:$0xff] }
 0x439   : > { %3944 = vmatmul.f32.gmra.mxu2 %v8911_v55  ;;  %4033 = vmatmul.f32.gmra.mxu3 %v8862_v18  ;;  %v8924_v47 = vld [vmem:[#allocation2 + $0x48] sm:$0xff] }
 0x43a   : > { %3037 = vst [vmem:[#allocation2 + $0x151] sm:$0xff] %v3013_v46  ;;  %v2938_v27 = vadd.f32 %v2899_v35, %v8695_v15  ;;  %v8927_v46 = vld [vmem:[#allocation2 + $0x49] sm:$0xff] }
 0x43b   : > { %v4194_v35 = vld [vmem:[#allocation4 + $0x438] sm:$0xff] }
 0x43c   : > { %v2966_v24 = vadd.f32 %v8750_v32, %v2938_v27  ;;  %v3613_v11 = vpop.f32.mrf.mxu2  ;;  %v3702_v29 = vpop.f32.mrf.mxu3  ;;  %v4754_v27 = vld [vmem:[#allocation4 + $0x1b8] sm:$0xff]  ;;  %4389 = vmatpush.msra.mxu2 %v4194_v35 }
 0x43d   : > { %v8917_v7 = vadd.f32 %v3702_v29, %v3613_v11  ;;  %v2812_v36 = vpop.f32.mrf.mxu0  ;;  %v2901_v10 = vpop.f32.mrf.mxu1  ;;  %4803 = vmatpush.msra.mxu3 %v4754_v27  ;;  %v4162_v35 = vld [vmem:[#allocation4 + $0x338] sm:$0xff]  ;;  %v4193_v27 = vld [vmem:[#allocation4 + $0x430] sm:$0xff] }
 0x43e   : > { %v2990_v53 = vmax.f32 %v2966_v24, 0.0  ;;  %v2813_v6 = vadd.f32 %v2812_v36, %v8700_v13  ;;  %4211 = vmatpush.msra.mxu0 %v4162_v35  ;;  %4390 = vmatpush.msra.mxu2 %v4193_v27  ;;  %v4753_v35 = vld [vmem:[#allocation4 + $0x1b0] sm:$0xff] }
 0x43f   : > { %10158 = vst [vmem:[#allocation31_spill] sm:$0xff] %v8917_v7  ;;  %v4177_v27 = vld [vmem:[#allocation4 + $0x3b0] sm:$0xff]  ;;  %4804 = vmatpush.msra.mxu3 %v4753_v35  ;;  %v8972_v35 = vld [vmem:[#allocation2 + $0x60] sm:$0xff] }
 0x440   : > { %v3014_v15 = vmul.f32 %v2990_v53, %v10145_v49  ;;  %v2902_v44 = vadd.f32 %v2901_v10, %v2813_v6  ;;  %3769 = vmatmul.f32.gmra.mxu0 %v8920_v63  ;;  %3858 = vmatmul.f32.gmra.mxu1 %v8924_v47  ;;  %v8936_v53 = vld [vmem:[#allocation2 + $0x6a] sm:$0xff] }
 0x441   : > { %3947 = vmatmul.f32.gmra.mxu2 %v8927_v46  ;;  %4036 = vmatmul.f32.gmra.mxu3 %v8872_v8  ;;  %10160 = vst [vmem:[#allocation32_spill] sm:$0xff] %v8936_v53 }
 0x442   : > { %3038 = vst [vmem:[#allocation2 + $0x159] sm:$0xff] %v3014_v15  ;;  %v2939_v13 = vadd.f32 %v2902_v44, %v8702_v31  ;;  %v8940_v15 = vld [vmem:[#allocation2 + $0x50] sm:$0xff] }
 0x443   : > { %v8943_v44 = vld [vmem:[#allocation2 + $0x51] sm:$0xff] }
 0x444   : > { %v2967_v34 = vadd.f32 %v8750_v32, %v2939_v13  ;;  %v3616_v43 = vpop.f32.mrf.mxu2  ;;  %v3705_v33 = vpop.f32.mrf.mxu3  ;;  %v4178_v13 = vld [vmem:[#allocation4 + $0x3b8] sm:$0xff] }
 0x445   : > { %v8933_v24 = vadd.f32 %v3705_v33, %v3616_v43  ;;  %v2815_v11 = vpop.f32.mrf.mxu0  ;;  %v2904_v29 = vpop.f32.mrf.mxu1  ;;  %4300 = vmatpush.msra.mxu1 %v4178_v13  ;;  %v8956_v13 = vld [vmem:[#allocation2 + $0x58] sm:$0xff] }
 0x446   : > { %v2991_v36 = vmax.f32 %v2967_v34, 0.0  ;;  %v2816_v10 = vadd.f32 %v2815_v11, %v8707_v51 }
 0x447   : > { %10159 = vst [vmem:[#allocation30_spill] sm:$0xff] %v8933_v24  ;;  %4301 = vmatpush.msra.mxu1 %v4177_v27  ;;  %v4192_v27 = vld [vmem:[#allocation4 + $0x428] sm:$0xff] }
 0x448   : > { %v3015_v6 = vmul.f32 %v2991_v36, %v10148_v2  ;;  %v2905_v31 = vadd.f32 %v2904_v29, %v2816_v10  ;;  %3772 = vmatmul.f32.gmra.mxu0 %v8936_v53  ;;  %3861 = vmatmul.f32.gmra.mxu1 %v8940_v15 }
 0x449   : > { %3950 = vmatmul.f32.gmra.mxu2 %v8943_v44  ;;  %4039 = vmatmul.f32.gmra.mxu3 %v8888_v28 }
 0x44a   : > { %3039 = vst [vmem:[#allocation2 + $0x161] sm:$0xff] %v3015_v6  ;;  %v2940_v51 = vadd.f32 %v2905_v31, %v8709_v4  ;;  %v8952_v6 = vld [vmem:[#allocation2 + $0x72] sm:$0xff]  ;;  %4391 = vmatpush.msra.mxu2 %v4192_v27 }
 0x44c   : > { %v2968_v34 = vadd.f32 %v8750_v32, %v2940_v51  ;;  %v3619_v43 = vpop.f32.mrf.mxu2  ;;  %v3708_v33 = vpop.f32.mrf.mxu3  ;;  %v8959_v51 = vld [vmem:[#allocation2 + $0x59] sm:$0xff] }
 0x44d   : > { %v8949_v11 = vadd.f32 %v3708_v33, %v3619_v43  ;;  %v2818_v29 = vpop.f32.mrf.mxu0  ;;  %v2907_v36 = vpop.f32.mrf.mxu1 }
 0x44e   : > { %v2992_v10 = vmax.f32 %v2968_v34, 0.0  ;;  %v2819_v24 = vadd.f32 %v2818_v29, %v8714_v48  ;;  %v4161_v34 = vld [vmem:[#allocation4 + $0x330] sm:$0xff] }
 0x44f   : > { %10161 = vst [vmem:[#allocation34_spill] sm:$0xff] %v8949_v11  ;;  %4212 = vmatpush.msra.mxu0 %v4161_v34  ;;  %v4752_v34 = vld [vmem:[#allocation4 + $0x1a8] sm:$0xff] }
 0x450   : > { %v3016_v4 = vmul.f32 %v2992_v10, %v10142_v50  ;;  %v2908_v31 = vadd.f32 %v2907_v36, %v2819_v24  ;;  %3775 = vmatmul.f32.gmra.mxu0 %v8952_v6  ;;  %3864 = vmatmul.f32.gmra.mxu1 %v8956_v13 }
 0x451   : > { %3953 = vmatmul.f32.gmra.mxu2 %v8959_v51  ;;  %4042 = vmatmul.f32.gmra.mxu3 %v8904_v12 }
 0x452   : > { %3040 = vst [vmem:[#allocation2 + $0x169] sm:$0xff] %v3016_v4  ;;  %v2941_v48 = vadd.f32 %v2908_v31, %v8716_v1  ;;  %v8968_v4 = vld [vmem:[#allocation2 + $0x7a] sm:$0xff]  ;;  %4805 = vmatpush.msra.mxu3 %v4752_v34 }
 0x454   : > { %v2969_v24 = vadd.f32 %v8750_v32, %v2941_v48  ;;  %v3622_v43 = vpop.f32.mrf.mxu2  ;;  %v3711_v33 = vpop.f32.mrf.mxu3  ;;  %v8975_v48 = vld [vmem:[#allocation2 + $0x61] sm:$0xff] }
 0x455   : > { %v8965_v29 = vadd.f32 %v3711_v33, %v3622_v43  ;;  %v2821_v36 = vpop.f32.mrf.mxu0  ;;  %v2910_v10 = vpop.f32.mrf.mxu1 }
 0x456   : > { %v2993_v11 = vmax.f32 %v2969_v24, 0.0  ;;  %v2822_v7 = vadd.f32 %v2821_v36, %v8721_v37  ;;  %v4176_v24 = vld [vmem:[#allocation4 + $0x3a8] sm:$0xff] }
 0x457   : > { %10162 = vst [vmem:[#allocation33_spill] sm:$0xff] %v8965_v29  ;;  %4302 = vmatpush.msra.mxu1 %v4176_v24  ;;  %v4751_v24 = vld [vmem:[#allocation4 + $0x1a0] sm:$0xff] }
 0x458   : > { %v3017_v1 = vmul.f32 %v2993_v11, %v10145_v49  ;;  %v2911_v31 = vadd.f32 %v2910_v10, %v2822_v7  ;;  %3778 = vmatmul.f32.gmra.mxu0 %v8968_v4  ;;  %3867 = vmatmul.f32.gmra.mxu1 %v8972_v35  ;;  %v4160_v7 = vld [vmem:[#allocation4 + $0x328] sm:$0xff] }
 0x459   : > { %3956 = vmatmul.f32.gmra.mxu2 %v8975_v48  ;;  %4045 = vmatmul.f32.gmra.mxu3 %v8920_v63 }
 0x45a   : > { %3041 = vst [vmem:[#allocation2 + $0x171] sm:$0xff] %v3017_v1  ;;  %v2942_v37 = vadd.f32 %v2911_v31, %v8723_v42  ;;  %4213 = vmatpush.msra.mxu0 %v4160_v7  ;;  %v8984_v42 = vld [vmem:[#allocation2 + $0x82] sm:$0xff]  ;;  %v4191_v31 = vld [vmem:[#allocation4 + $0x420] sm:$0xff]  ;;  %4806 = vmatpush.msra.mxu3 %v4751_v24 }
 0x45b   : > { %v8991_v7 = vld [vmem:[#allocation2 + $0x69] sm:$0xff]  ;;  %4392 = vmatpush.msra.mxu2 %v4191_v31 }
 0x45c   : > { %v2970_v11 = vadd.f32 %v8750_v32, %v2942_v37  ;;  %v3625_v43 = vpop.f32.mrf.mxu2  ;;  %v3714_v33 = vpop.f32.mrf.mxu3  ;;  %v8988_v37 = vld [vmem:[#allocation2 + $0x68] sm:$0xff]  ;;  %10165 = vst [vmem:[#allocation16_spill] sm:$0xff] %v8991_v7  ;;  %v9004_v31 = vld [vmem:[#allocation2 + $0x70] sm:$0xff] }
 0x45d   : > { %v8981_v36 = vadd.f32 %v3714_v33, %v3625_v43  ;;  %v2824_v10 = vpop.f32.mrf.mxu0  ;;  %v2913_v29 = vpop.f32.mrf.mxu1  ;;  %10164 = vst [vmem:[#allocation36_spill] sm:$0xff] %v8988_v37 }
 0x45e   : > { %v2994_v22 = vmax.f32 %v2970_v11, 0.0  ;;  %v2825_v1 = vadd.f32 %v2824_v10, %v8728_v17  ;;  %v4175_v17 = vld [vmem:[#allocation4 + $0x3a0] sm:$0xff] }
 0x45f   : > { %10163 = vst [vmem:[#allocation35_spill] sm:$0xff] %v8981_v36  ;;  %4303 = vmatpush.msra.mxu1 %v4175_v17 }
 0x460   : > { %v3018_v27 = vmul.f32 %v2994_v22, %v10148_v2  ;;  %v2914_v34 = vadd.f32 %v2913_v29, %v2825_v1  ;;  %3781 = vmatmul.f32.gmra.mxu0 %v8984_v42  ;;  %3870 = vmatmul.f32.gmra.mxu1 %v8988_v37  ;;  %v9000_v37 = vld [vmem:[#allocation2 + $0x8a] sm:$0xff] }
 0x461   : > { %3959 = vmatmul.f32.gmra.mxu2 %v8991_v7  ;;  %4048 = vmatmul.f32.gmra.mxu3 %v8936_v53  ;;  %v4159_v53 = vld [vmem:[#allocation4 + $0x320] sm:$0xff] }
 0x462   : > { %3042 = vst [vmem:[#allocation2 + $0x179] sm:$0xff] %v3018_v27  ;;  %v2943_v11 = vadd.f32 %v2914_v34, %v8730_v54  ;;  %v4190_v34 = vld [vmem:[#allocation4 + $0x418] sm:$0xff]  ;;  %4214 = vmatpush.msra.mxu0 %v4159_v53 }
 0x463   : > { %4393 = vmatpush.msra.mxu2 %v4190_v34  ;;  %v9025_v34 = vld [vmem:[#allocation2 + $0x79] sm:$0xff] }
 0x464   : > { %v2971_v22 = vadd.f32 %v8750_v32, %v2943_v11  ;;  %v3628_v29 = vpop.f32.mrf.mxu2  ;;  %v3717_v43 = vpop.f32.mrf.mxu3  ;;  %v9007_v32 = vld [vmem:[#allocation2 + $0x71] sm:$0xff] }
 0x465   : > { %v8997_v33 = vadd.f32 %v3717_v43, %v3628_v29  ;;  %v2827_v10 = vpop.f32.mrf.mxu0  ;;  %v2916_v1 = vpop.f32.mrf.mxu1 }
 0x466   : > { %v2995_v36 = vmax.f32 %v2971_v22, 0.0  ;;  %v2828_v7 = vadd.f32 %v2827_v10, %v8735_v23  ;;  %v4750_v23 = vld [vmem:[#allocation4 + $0x198] sm:$0xff] }
 0x467   : > { %10166 = vst [vmem:[#allocation14_spill] sm:$0xff] %v8997_v33  ;;  %4807 = vmatpush.msra.mxu3 %v4750_v23  ;;  %v4158_v23 = vld [vmem:[#allocation4 + $0x318] sm:$0xff] }
 0x468   : > { %v3019_v27 = vmul.f32 %v2995_v36, %v10142_v50  ;;  %v2917_v54 = vadd.f32 %v2916_v1, %v2828_v7  ;;  %3784 = vmatmul.f32.gmra.mxu0 %v9000_v37  ;;  %3873 = vmatmul.f32.gmra.mxu1 %v9004_v31  ;;  %v6347_v50 = vld [vmem:[%s9944_s2] ss:$0 sm:$0xff]  ;;  %v9018_v1 = vld [vmem:[#allocation2 + $0x92] sm:$0xff] }
 0x469   : > { %3962 = vmatmul.f32.gmra.mxu2 %v9007_v32  ;;  %4051 = vmatmul.f32.gmra.mxu3 %v8952_v6  ;;  %10168 = vst [vmem:[#allocation22_spill] sm:$0xff] %v9018_v1 }
 0x46a   : > { %3043 = vst [vmem:[#allocation2 + $0x181] sm:$0xff] %v3019_v27  ;;  %v2944_v24 = vadd.f32 %v2917_v54, %v8737_v40  ;;  %v9022_v27 = vld [vmem:[#allocation2 + $0x78] sm:$0xff]  ;;  %v4174_v54 = vld [vmem:[#allocation4 + $0x398] sm:$0xff]  ;;  %4215 = vmatpush.msra.mxu0 %v4158_v23 }
 0x46b   : > { %4304 = vmatpush.msra.mxu1 %v4174_v54 }
 0x46c   : > { %v2972_v36 = vadd.f32 %v6347_v50, %v2944_v24  ;;  %v3631_v7 = vpop.f32.mrf.mxu2  ;;  %v3720_v17 = vpop.f32.mrf.mxu3 }
 0x46d   : > { %v9015_v11 = vadd.f32 %v3720_v17, %v3631_v7  ;;  %v2830_v22 = vpop.f32.mrf.mxu0  ;;  %v2919_v29 = vpop.f32.mrf.mxu1 }
 0x46e   : > { %v2996_v43 = vmax.f32 %v2972_v36, 0.0  ;;  %v2831_v10 = vadd.f32 %v2830_v22, %v8742_v20 }
 0x46f   : > { %10167 = vst [vmem:[#allocation10_spill] sm:$0xff] %v9015_v11  ;;  %v4189_v11 = vld [vmem:[#allocation4 + $0x410] sm:$0xff] }
 0x470   : > { %v3020_v40 = vmul.f32 %v2996_v43, %v10145_v49  ;;  %v2920_v53 = vadd.f32 %v2919_v29, %v2831_v10  ;;  %3787 = vmatmul.f32.gmra.mxu0 %v9018_v1  ;;  %3876 = vmatmul.f32.gmra.mxu1 %v9022_v27  ;;  %v9033_v10 = vld [vmem:[#allocation2 + $0x9a] sm:$0xff] }
 0x471   : > { %3965 = vmatmul.f32.gmra.mxu2 %v9025_v34  ;;  %4054 = vmatmul.f32.gmra.mxu3 %v8968_v4  ;;  %10170 = vst [vmem:[#allocation19_spill] sm:$0xff] %v9033_v10 }
 0x472   : > { %3044 = vst [vmem:[#allocation2 + $0x189] sm:$0xff] %v3020_v40  ;;  %v2945_v20 = vadd.f32 %v2920_v53, %v8744_v5  ;;  %v9037_v5 = vld [vmem:[#allocation2 + $0x80] sm:$0xff]  ;;  %4394 = vmatpush.msra.mxu2 %v4189_v11 }
 0x473   : > { %v9040_v53 = vld [vmem:[#allocation2 + $0x81] sm:$0xff] }
 0x474   : > { %v2973_v49 = vadd.f32 %v6347_v50, %v2945_v20  ;;  %v3634_v24 = vpop.f32.mrf.mxu2  ;;  %v3723_v36 = vpop.f32.mrf.mxu3  ;;  %v4749_v50 = vld [vmem:[#allocation4 + $0x190] sm:$0xff]  ;;  %v4188_v11 = vld [vmem:[#allocation4 + $0x408] sm:$0xff] }
 0x475   : > { %v9030_v7 = vadd.f32 %v3723_v36, %v3634_v24  ;;  %v3743_v17 = vpop.f32.mrf.mxu0  ;;  %v3832_v22 = vpop.f32.mrf.mxu1  ;;  %4808 = vmatpush.msra.mxu3 %v4749_v50  ;;  %4395 = vmatpush.msra.mxu2 %v4188_v11  ;;  %v9066_v11 = vld [vmem:[#allocation2 + $0x91] sm:$0xff] }
 0x476   : > { %v2997_v29 = vmax.f32 %v2973_v49, 0.0  ;;  %v3744_v43 = vadd.f32 %v3743_v17, %v8756_v9  ;;  %v4173_v9 = vld [vmem:[#allocation4 + $0x390] sm:$0xff]  ;;  %10174 = vst [vmem:[#allocation12_spill] sm:$0xff] %v9066_v11 }
 0x477   : > { %10169 = vst [vmem:[#allocation17_spill] sm:$0xff] %v9030_v7  ;;  %4305 = vmatpush.msra.mxu1 %v4173_v9  ;;  %v9047_v17 = vld [vmem:[#allocation2 + $0xa2] sm:$0xff] }
 0x478   : > { %v3021_v33 = vmul.f32 %v2997_v29, %v10148_v2  ;;  %v3833_v40 = vadd.f32 %v3832_v22, %v3744_v43  ;;  %3790 = vmatmul.f32.gmra.mxu0 %v9033_v10  ;;  %3879 = vmatmul.f32.gmra.mxu1 %v9037_v5  ;;  %10172 = vst [vmem:[#allocation20_spill] sm:$0xff] %v9047_v17  ;;  %v4157_v22 = vld [vmem:[#allocation4 + $0x310] sm:$0xff] }
 0x479   : > { %3968 = vmatmul.f32.gmra.mxu2 %v9040_v53  ;;  %4057 = vmatmul.f32.gmra.mxu3 %v8984_v42  ;;  %v9050_v43 = vld [vmem:[#allocation2 + $0x88] sm:$0xff] }
 0x47a   : > { %3045 = vst [vmem:[#allocation2 + $0x191] sm:$0xff] %v3021_v33  ;;  %v9053_v33 = vld [vmem:[#allocation2 + $0x89] sm:$0xff]  ;;  %4216 = vmatpush.msra.mxu0 %v4157_v22  ;;  %v4172_v22 = vld [vmem:[#allocation4 + $0x388] sm:$0xff] }
 0x47b   : > { %4306 = vmatpush.msra.mxu1 %v4172_v22  ;;  %v4747_v22 = vld [vmem:[#allocation4 + $0x180] sm:$0xff] }
 0x47c   : > { %v3921_v2 = vpop.f32.mrf.mxu2  ;;  %v4010_v54 = vpop.f32.mrf.mxu3 }
 0x47d   : > { %v3922_v23 = vadd.f32 %v3921_v2, %v3833_v40  ;;  %v3746_v20 = vpop.f32.mrf.mxu0  ;;  %v3835_v49 = vpop.f32.mrf.mxu1 }
 0x47e   : > { %v3747_v24 = vadd.f32 %v3746_v20, %v8764_v19  ;;  %v4748_v19 = vld [vmem:[#allocation4 + $0x188] sm:$0xff] }
 0x47f   : > { %v9045_v36 = vadd.f32 %v4010_v54, %v3922_v23  ;;  %4809 = vmatpush.msra.mxu3 %v4748_v19 }
 0x480   : > { %v3836_v29 = vadd.f32 %v3835_v49, %v3747_v24  ;;  %3793 = vmatmul.f32.gmra.mxu0 %v9047_v17  ;;  %3882 = vmatmul.f32.gmra.mxu1 %v9050_v43  ;;  %v9060_v49 = vld [vmem:[#allocation2 + $0xaa] sm:$0xff] }
 0x481   : > { %10171 = vst [vmem:[#allocation11_spill] sm:$0xff] %v9045_v36  ;;  %3971 = vmatmul.f32.gmra.mxu2 %v9053_v33  ;;  %4060 = vmatmul.f32.gmra.mxu3 %v9000_v37  ;;  %v9063_v36 = vld [vmem:[#allocation2 + $0x90] sm:$0xff] }
 0x482   : > { %4810 = vmatpush.msra.mxu3 %v4747_v22 }
 0x484   : > { %v3924_v40 = vpop.f32.mrf.mxu2  ;;  %v4013_v50 = vpop.f32.mrf.mxu3 }
 0x485   : > { %v3925_v9 = vadd.f32 %v3924_v40, %v3836_v29  ;;  %v3749_v2 = vpop.f32.mrf.mxu0  ;;  %v3838_v54 = vpop.f32.mrf.mxu1  ;;  %v4156_v29 = vld [vmem:[#allocation4 + $0x308] sm:$0xff] }
 0x486   : > { %v3750_v23 = vadd.f32 %v3749_v2, %v8772_v16  ;;  %4217 = vmatpush.msra.mxu0 %v4156_v29  ;;  %v9079_v29 = vld [vmem:[#allocation2 + $0x99] sm:$0xff] }
 0x487   : > { %v9058_v20 = vadd.f32 %v4013_v50, %v3925_v9 }
 0x488   : > { %v3839_v24 = vadd.f32 %v3838_v54, %v3750_v23  ;;  %3796 = vmatmul.f32.gmra.mxu0 %v9060_v49  ;;  %3885 = vmatmul.f32.gmra.mxu1 %v9063_v36  ;;  %v9073_v23 = vld [vmem:[#allocation2 + $0xb2] sm:$0xff] }
 0x489   : > { %10173 = vst [vmem:[#allocation25_spill] sm:$0xff] %v9058_v20  ;;  %3974 = vmatmul.f32.gmra.mxu2 %v9066_v11  ;;  %4063 = vmatmul.f32.gmra.mxu3 %v9018_v1  ;;  %v4187_v20 = vld [vmem:[#allocation4 + $0x400] sm:$0xff] }
 0x48a   : > { %10176 = vst [vmem:[#allocation18_spill] sm:$0xff] %v9073_v23  ;;  %v9076_v11 = vld [vmem:[#allocation2 + $0x98] sm:$0xff]  ;;  %4396 = vmatpush.msra.mxu2 %v4187_v20  ;;  %v9092_v20 = vld [vmem:[#allocation2 + $0xa1] sm:$0xff] }
 0x48b   : > { %10177 = vst [vmem:[#allocation27_spill] sm:$0xff] %v9076_v11 }
 0x48c   : > { %v3927_v16 = vpop.f32.mrf.mxu2  ;;  %v4016_v19 = vpop.f32.mrf.mxu3 }
 0x48d   : > { %v3928_v40 = vadd.f32 %v3927_v16, %v3839_v24  ;;  %v3752_v50 = vpop.f32.mrf.mxu0  ;;  %v3841_v9 = vpop.f32.mrf.mxu1 }
 0x48e   : > { %v3753_v2 = vadd.f32 %v3752_v50, %v8780_v0  ;;  %v4171_v0 = vld [vmem:[#allocation4 + $0x380] sm:$0xff] }
 0x48f   : > { %v9071_v54 = vadd.f32 %v4016_v19, %v3928_v40  ;;  %4307 = vmatpush.msra.mxu1 %v4171_v0 }
 0x490   : > { %v3842_v7 = vadd.f32 %v3841_v9, %v3753_v2  ;;  %3799 = vmatmul.f32.gmra.mxu0 %v9073_v23  ;;  %3888 = vmatmul.f32.gmra.mxu1 %v9076_v11  ;;  %v4155_v11 = vld [vmem:[#allocation4 + $0x300] sm:$0xff] }
 0x491   : > { %10175 = vst [vmem:[#allocation23_spill] sm:$0xff] %v9071_v54  ;;  %3977 = vmatmul.f32.gmra.mxu2 %v9079_v29  ;;  %4066 = vmatmul.f32.gmra.mxu3 %v9033_v10  ;;  %v9086_v54 = vld [vmem:[#allocation2 + $0xba] sm:$0xff] }
 0x492   : > { %v9089_v10 = vld [vmem:[#allocation2 + $0xa0] sm:$0xff]  ;;  %4218 = vmatpush.msra.mxu0 %v4155_v11  ;;  %v4794_v11 = vld [vmem:[#allocation4 + $0x2f8] sm:$0xff] }
 0x493   : > { %4973 = vmatpush.msrb.mxu1 %v4794_v11  ;;  %v4720_v11 = vld [vmem:[#allocation4 + $0xf0] sm:$0xff] }
 0x494   : > { %v3930_v24 = vpop.f32.mrf.mxu2  ;;  %v4019_v16 = vpop.f32.mrf.mxu3 }
 0x495   : > { %v3931_v19 = vadd.f32 %v3930_v24, %v3842_v7  ;;  %v3755_v40 = vpop.f32.mrf.mxu0  ;;  %v3844_v50 = vpop.f32.mrf.mxu1  ;;  %v4705_v7 = vld [vmem:[#allocation4 + $0x78] sm:$0xff] }
 0x496   : > { %v3756_v9 = vadd.f32 %v3755_v40, %v8788_v41  ;;  %v4721_v41 = vld [vmem:[#allocation4 + $0xf8] sm:$0xff]  ;;  %5062 = vmatpush.msrb.mxu2 %v4705_v7 }
 0x497   : > { %v9084_v2 = vadd.f32 %v4019_v16, %v3931_v19  ;;  %5151 = vmatpush.msrb.mxu3 %v4721_v41  ;;  %v9105_v7 = vld [vmem:[#allocation2 + $0xa9] sm:$0xff] }
 0x498   : > { %v3845_v1 = vadd.f32 %v3844_v50, %v3756_v9  ;;  %3802 = vmatmul.f32.gmra.mxu0 %v9086_v54  ;;  %3891 = vmatmul.f32.gmra.mxu1 %v9089_v10  ;;  %v9099_v9 = vld [vmem:[#allocation2 + $0xc2] sm:$0xff]  ;;  %10181 = vst [vmem:[#allocation24_spill] sm:$0xff] %v9105_v7 }
 0x499   : > { %10178 = vst [vmem:[#allocation13_spill] sm:$0xff] %v9084_v2  ;;  %3980 = vmatmul.f32.gmra.mxu2 %v9092_v20  ;;  %4069 = vmatmul.f32.gmra.mxu3 %v9047_v17  ;;  %v9102_v17 = vld [vmem:[#allocation2 + $0xa8] sm:$0xff] }
 0x49a   : > { %10180 = vst [vmem:[#allocation15_spill] sm:$0xff] %v9099_v9  ;;  %5152 = vmatpush.msrb.mxu3 %v4720_v11 }
 0x49c   : > { %v3933_v22 = vpop.f32.mrf.mxu2  ;;  %v4022_v0 = vpop.f32.mrf.mxu3 }
 0x49d   : > { %v3934_v24 = vadd.f32 %v3933_v22, %v3845_v1  ;;  %v3758_v16 = vpop.f32.mrf.mxu0  ;;  %v3847_v19 = vpop.f32.mrf.mxu1  ;;  %v4778_v1 = vld [vmem:[#allocation4 + $0x278] sm:$0xff] }
 0x49e   : > { %v3759_v40 = vadd.f32 %v3758_v16, %v8796_v61  ;;  %4884 = vmatpush.msrb.mxu0 %v4778_v1  ;;  %v9118_v1 = vld [vmem:[#allocation2 + $0xb1] sm:$0xff] }
 0x49f   : > { %v9097_v50 = vadd.f32 %v4022_v0, %v3934_v24 }
 0x4a0   : > { %v3848_v2 = vadd.f32 %v3847_v19, %v3759_v40  ;;  %3805 = vmatmul.f32.gmra.mxu0 %v9099_v9  ;;  %3894 = vmatmul.f32.gmra.mxu1 %v9102_v17  ;;  %v9112_v40 = vld [vmem:[#allocation2 + $0xca] sm:$0xff] }
 0x4a1   : > { %10179 = vst [vmem:[#allocation21_spill] sm:$0xff] %v9097_v50  ;;  %3983 = vmatmul.f32.gmra.mxu2 %v9105_v7  ;;  %4072 = vmatmul.f32.gmra.mxu3 %v9060_v49  ;;  %v4704_v50 = vld [vmem:[#allocation4 + $0x70] sm:$0xff]  ;;  %v9115_v7 = vld [vmem:[#allocation2 + $0xb0] sm:$0xff] }
 0x4a2   : > { %10183 = vst [vmem:[#allocation26_spill] sm:$0xff] %v9112_v40  ;;  %5063 = vmatpush.msrb.mxu2 %v4704_v50  ;;  %v9131_v50 = vld [vmem:[#allocation2 + $0xb9] sm:$0xff] }
 0x4a3   : > { %10184 = vst [vmem:[#allocation37_spill] sm:$0xff] %v9115_v7 }
 0x4a4   : > { %v3936_v61 = vpop.f32.mrf.mxu2  ;;  %v4025_v41 = vpop.f32.mrf.mxu3 }
 0x4a5   : > { %v3937_v22 = vadd.f32 %v3936_v61, %v3848_v2  ;;  %v3761_v0 = vpop.f32.mrf.mxu0  ;;  %v3850_v24 = vpop.f32.mrf.mxu1 }
 0x4a6   : > { %v3762_v16 = vadd.f32 %v3761_v0, %v8804_v58  ;;  %v4793_v58 = vld [vmem:[#allocation4 + $0x2f0] sm:$0xff] }
 0x4a7   : > { %v9110_v19 = vadd.f32 %v4025_v41, %v3937_v22  ;;  %4974 = vmatpush.msrb.mxu1 %v4793_v58 }
 0x4a8   : > { %v3851_v9 = vadd.f32 %v3850_v24, %v3762_v16  ;;  %3808 = vmatmul.f32.gmra.mxu0 %v9112_v40  ;;  %3897 = vmatmul.f32.gmra.mxu1 %v9115_v7  ;;  %v4777_v40 = vld [vmem:[#allocation4 + $0x270] sm:$0xff] }
 0x4a9   : > { %10182 = vst [vmem:[#allocation29_spill] sm:$0xff] %v9110_v19  ;;  %3986 = vmatmul.f32.gmra.mxu2 %v9118_v1  ;;  %4075 = vmatmul.f32.gmra.mxu3 %v9073_v23  ;;  %v9125_v19 = vld [vmem:[#allocation2 + $0xd2] sm:$0xff] }
 0x4aa   : > { %10186 = vst [vmem:[#allocation39_spill] sm:$0xff] %v9125_v19  ;;  %v9128_v23 = vld [vmem:[#allocation2 + $0xb8] sm:$0xff]  ;;  %4885 = vmatpush.msrb.mxu0 %v4777_v40  ;;  %v4776_v40 = vld [vmem:[#allocation4 + $0x268] sm:$0xff] }
 0x4ac   : > { %v3939_v2 = vpop.f32.mrf.mxu2  ;;  %v4028_v61 = vpop.f32.mrf.mxu3  ;;  %4886 = vmatpush.msrb.mxu0 %v4776_v40 }
 0x4ad   : > { %v3940_v41 = vadd.f32 %v3939_v2, %v3851_v9  ;;  %v3764_v22 = vpop.f32.mrf.mxu0  ;;  %v3853_v0 = vpop.f32.mrf.mxu1  ;;  %v4703_v9 = vld [vmem:[#allocation4 + $0x68] sm:$0xff] }
 0x4ae   : > { %v3765_v24 = vadd.f32 %v3764_v22, %v8812_v62  ;;  %v4719_v62 = vld [vmem:[#allocation4 + $0xe8] sm:$0xff]  ;;  %5064 = vmatpush.msrb.mxu2 %v4703_v9 }
 0x4af   : > { %v9123_v16 = vadd.f32 %v4028_v61, %v3940_v41  ;;  %5153 = vmatpush.msrb.mxu3 %v4719_v62 }
 0x4b0   : > { %v3854_v7 = vadd.f32 %v3853_v0, %v3765_v24  ;;  %3811 = vmatmul.f32.gmra.mxu0 %v9125_v19  ;;  %3900 = vmatmul.f32.gmra.mxu1 %v9128_v23  ;;  %v4792_v19 = vld [vmem:[#allocation4 + $0x2e8] sm:$0xff] }
 0x4b1   : > { %10185 = vst [vmem:[#allocation38_spill] sm:$0xff] %v9123_v16  ;;  %3989 = vmatmul.f32.gmra.mxu2 %v9131_v50  ;;  %4078 = vmatmul.f32.gmra.mxu3 %v9086_v54  ;;  %v9140_v16 = vld [vmem:[#allocation2 + $0xd8] sm:$0xff] }
 0x4b2   : > { %4975 = vmatpush.msrb.mxu1 %v4792_v19  ;;  %v4791_v19 = vld [vmem:[#allocation4 + $0x2e0] sm:$0xff] }
 0x4b4   : > { %v3942_v11 = vpop.f32.mrf.mxu2  ;;  %v4031_v58 = vpop.f32.mrf.mxu3  ;;  %4976 = vmatpush.msrb.mxu1 %v4791_v19  ;;  %v4790_v19 = vld [vmem:[#allocation4 + $0x2d8] sm:$0xff] }
 0x4b5   : > { %v3943_v2 = vadd.f32 %v3942_v11, %v3854_v7  ;;  %v3767_v61 = vpop.f32.mrf.mxu0  ;;  %v3856_v41 = vpop.f32.mrf.mxu1 }
 0x4b6   : > { %v3768_v22 = vadd.f32 %v3767_v61, %v8821_v60  ;;  %v4718_v61 = vld [vmem:[#allocation4 + $0xe0] sm:$0xff]  ;;  %4977 = vmatpush.msrb.mxu1 %v4790_v19 }
 0x4b7   : > { %v9136_v0 = vadd.f32 %v4031_v58, %v3943_v2  ;;  %5154 = vmatpush.msrb.mxu3 %v4718_v61 }
 0x4b8   : > { %v3857_v24 = vadd.f32 %v3856_v41, %v3768_v22  ;;  %4219 = vmatmul.f32.vlgmr.msra.gmra.mxu0 %v8876_v30  ;;  %4308 = vmatmul.f32.vlgmr.msra.gmra.mxu1 %v8879_v3  ;;  %v4702_v3 = vld [vmem:[#allocation4 + $0x60] sm:$0xff] }
 0x4b9   : > { %4397 = vmatmul.f32.vlgmr.msra.gmra.mxu2 %v8842_v38  ;;  %4811 = vmatmul.f32.vlgmr.msra.gmra.mxu3 %v9140_v16  ;;  %v9149_v38 = vld [vmem:[#allocation2 + $0xe0] sm:$0xff] }
 0x4ba   : > { %5065 = vmatpush.msrb.mxu2 %v4702_v3 }
 0x4bc   : > { %v3945_v7 = vpop.f32.mrf.mxu2  ;;  %v4034_v9 = vpop.f32.mrf.mxu3 }
 0x4bd   : > { %v3946_v60 = vadd.f32 %v3945_v7, %v3857_v24  ;;  %v3770_v62 = vpop.f32.mrf.mxu0  ;;  %v3859_v11 = vpop.f32.mrf.mxu1 }
 0x4be   : > { %v3771_v58 = vadd.f32 %v3770_v62, %v8830_v25  ;;  %v4717_v62 = vld [vmem:[#allocation4 + $0xd8] sm:$0xff] }
 0x4bf   : > { %v9145_v30 = vadd.f32 %v4034_v9, %v3946_v60  ;;  %v4701_v60 = vld [vmem:[#allocation4 + $0x58] sm:$0xff]  ;;  %5155 = vmatpush.msrb.mxu3 %v4717_v62 }
 0x4c0   : > { %v3860_v2 = vadd.f32 %v3859_v11, %v3771_v58  ;;  %4222 = vmatmul.f32.gmra.mxu0 %v8892_v57  ;;  %4311 = vmatmul.f32.gmra.mxu1 %v8895_v45  ;;  %v4775_v45 = vld [vmem:[#allocation4 + $0x260] sm:$0xff] }
 0x4c1   : > { %4400 = vmatmul.f32.gmra.mxu2 %v8852_v52  ;;  %4814 = vmatmul.f32.gmra.mxu3 %v9149_v38  ;;  %v9158_v52 = vld [vmem:[#allocation2 + $0xe8] sm:$0xff] }
 0x4c2   : > { %4887 = vmatpush.msrb.mxu0 %v4775_v45  ;;  %5066 = vmatpush.msrb.mxu2 %v4701_v60  ;;  %v4789_v60 = vld [vmem:[#allocation4 + $0x2d0] sm:$0xff] }
 0x4c3   : > { %4978 = vmatpush.msrb.mxu1 %v4789_v60 }
 0x4c4   : > { %v3948_v25 = vpop.f32.mrf.mxu2  ;;  %v4037_v41 = vpop.f32.mrf.mxu3 }
 0x4c5   : > { %v3949_v22 = vadd.f32 %v3948_v25, %v3860_v2  ;;  %v3773_v24 = vpop.f32.mrf.mxu0  ;;  %v3862_v40 = vpop.f32.mrf.mxu1  ;;  %v4774_v25 = vld [vmem:[#allocation4 + $0x258] sm:$0xff] }
 0x4c6   : > { %v3774_v57 = vadd.f32 %v3773_v24, %v8839_v59  ;;  %4888 = vmatpush.msrb.mxu0 %v4774_v25 }
 0x4c7   : > { %v9154_v7 = vadd.f32 %v4037_v41, %v3949_v22 }
 0x4c8   : > { %v3863_v9 = vadd.f32 %v3862_v40, %v3774_v57  ;;  %4225 = vmatmul.f32.gmra.mxu0 %v8908_v21  ;;  %4314 = vmatmul.f32.gmra.mxu1 %v8911_v55 }
 0x4c9   : > { %4403 = vmatmul.f32.gmra.mxu2 %v8862_v18  ;;  %4817 = vmatmul.f32.gmra.mxu3 %v9158_v52  ;;  %v3076_v18 = vld [vmem:[#allocation2 + $0xf0] sm:$0xff] }
 0x4cc   : > { %v3951_v59 = vpop.f32.mrf.mxu2  ;;  %v4040_v11 = vpop.f32.mrf.mxu3 }
 0x4cd   : > { %v3952_v58 = vadd.f32 %v3951_v59, %v3863_v9  ;;  %v3776_v3 = vpop.f32.mrf.mxu0  ;;  %v3865_v2 = vpop.f32.mrf.mxu1 }
 0x4ce   : > { %v3777_v21 = vadd.f32 %v3776_v3, %v8849_v14 }
 0x4cf   : > { %v9163_v61 = vadd.f32 %v4040_v11, %v3952_v58 }
 0x4d0   : > { %v3866_v55 = vadd.f32 %v3865_v2, %v3777_v21  ;;  %4228 = vmatmul.f32.gmra.mxu0 %v8924_v47  ;;  %4317 = vmatmul.f32.gmra.mxu1 %v8927_v46  ;;  %v4700_v47 = vld [vmem:[#allocation4 + $0x50] sm:$0xff]  ;;  %v4699_v21 = vld [vmem:[#allocation4 + $0x48] sm:$0xff] }
 0x4d1   : > { %4406 = vmatmul.f32.gmra.mxu2 %v8872_v8  ;;  %4820 = vmatmul.f32.gmra.mxu3 %v3076_v18  ;;  %v3077_v8 = vld [vmem:[#allocation2 + $0xf8] sm:$0xff]  ;;  %v4716_v46 = vld [vmem:[#allocation4 + $0xd0] sm:$0xff] }
 0x4d2   : > { %5067 = vmatpush.msrb.mxu2 %v4700_v47  ;;  %5156 = vmatpush.msrb.mxu3 %v4716_v46 }
 0x4d4   : > { %v3954_v41 = vpop.f32.mrf.mxu2  ;;  %v4043_v22 = vpop.f32.mrf.mxu3  ;;  %5068 = vmatpush.msrb.mxu2 %v4699_v21 }
 0x4d5   : > { %v3955_v24 = vadd.f32 %v3954_v41, %v3866_v55  ;;  %v3779_v40 = vpop.f32.mrf.mxu0  ;;  %v3868_v14 = vpop.f32.mrf.mxu1  ;;  %v4715_v55 = vld [vmem:[#allocation4 + $0xc8] sm:$0xff] }
 0x4d6   : > { %v3780_v57 = vadd.f32 %v3779_v40, %v8859_v56  ;;  %5157 = vmatpush.msrb.mxu3 %v4715_v55  ;;  %v4772_v40 = vld [vmem:[#allocation4 + $0x248] sm:$0xff] }
 0x4d7   : > { %v9169_v45 = vadd.f32 %v4043_v22, %v3955_v24  ;;  %v10191_v55 = vld [vmem:[#allocation31_spill] sm:$0xff] }
 0x4d8   : > { %v3869_v9 = vadd.f32 %v3868_v14, %v3780_v57  ;;  %4231 = vmatmul.f32.gmra.mxu0 %v8940_v15  ;;  %4320 = vmatmul.f32.gmra.mxu1 %v8943_v44  ;;  %v4773_v15 = vld [vmem:[#allocation4 + $0x250] sm:$0xff] }
 0x4d9   : > { %4409 = vmatmul.f32.gmra.mxu2 %v8888_v28  ;;  %4823 = vmatmul.f32.gmra.mxu3 %v3077_v8  ;;  %v3078_v28 = vld [vmem:[#allocation2 + $0x100] sm:$0xff]  ;;  %v10187_v8 = vld [vmem:[#allocation28_spill] sm:$0xff] }
 0x4da   : > { %4889 = vmatpush.msrb.mxu0 %v4773_v15 }
 0x4dc   : > { %v3957_v62 = vpop.f32.mrf.mxu2  ;;  %v4046_v59 = vpop.f32.mrf.mxu3  ;;  %4890 = vmatpush.msrb.mxu0 %v4772_v40 }
 0x4dd   : > { %v3958_v56 = vadd.f32 %v3957_v62, %v3869_v9  ;;  %v3782_v11 = vpop.f32.mrf.mxu0  ;;  %v3871_v58 = vpop.f32.mrf.mxu1 }
 0x4de   : > { %v3783_v3 = vadd.f32 %v3782_v11, %v8869_v26  ;;  %v10190_v11 = vld [vmem:[#allocation32_spill] sm:$0xff] }
 0x4df   : > { %v9175_v2 = vadd.f32 %v4046_v59, %v3958_v56  ;;  %v10189_v59 = vld [vmem:[#allocation16_spill] sm:$0xff]  ;;  %v4714_v56 = vld [vmem:[#allocation4 + $0xc0] sm:$0xff] }
 0x4e0   : > { %v3872_v44 = vadd.f32 %v3871_v58, %v3783_v3  ;;  %4234 = vmatmul.f32.gmra.mxu0 %v8956_v13  ;;  %4323 = vmatmul.f32.gmra.mxu1 %v8959_v51  ;;  %v4788_v51 = vld [vmem:[#allocation4 + $0x2c8] sm:$0xff]  ;;  %v4787_v58 = vld [vmem:[#allocation4 + $0x2c0] sm:$0xff] }
 0x4e1   : > { %4412 = vmatmul.f32.gmra.mxu2 %v8904_v12  ;;  %4826 = vmatmul.f32.gmra.mxu3 %v3078_v28  ;;  %v3079_v12 = vld [vmem:[#allocation2 + $0x108] sm:$0xff] }
 0x4e2   : > { %4979 = vmatpush.msrb.mxu1 %v4788_v51  ;;  %5158 = vmatpush.msrb.mxu3 %v4714_v56 }
 0x4e4   : > { %v3960_v18 = vpop.f32.mrf.mxu2  ;;  %v4049_v19 = vpop.f32.mrf.mxu3  ;;  %4980 = vmatpush.msrb.mxu1 %v4787_v58 }
 0x4e5   : > { %v3961_v26 = vadd.f32 %v3960_v18, %v3872_v44  ;;  %v3785_v25 = vpop.f32.mrf.mxu0  ;;  %v3874_v41 = vpop.f32.mrf.mxu1 }
 0x4e6   : > { %v3786_v22 = vadd.f32 %v3785_v25, %v8885_v39 }
 0x4e7   : > { %v9181_v24 = vadd.f32 %v4049_v19, %v3961_v26  ;;  %v4771_v26 = vld [vmem:[#allocation4 + $0x240] sm:$0xff] }
 0x4e8   : > { %v3875_v13 = vadd.f32 %v3874_v41, %v3786_v22  ;;  %4237 = vmatmul.f32.gmra.mxu0 %v8972_v35  ;;  %4326 = vmatmul.f32.gmra.mxu1 %v8975_v48  ;;  %v4698_v35 = vld [vmem:[#allocation4 + $0x40] sm:$0xff]  ;;  %v10188_v48 = vld [vmem:[#allocation36_spill] sm:$0xff]  ;;  %v4697_v22 = vld [vmem:[#allocation4 + $0x38] sm:$0xff] }
 0x4e9   : > { %4415 = vmatmul.f32.gmra.mxu2 %v8920_v63  ;;  %4829 = vmatmul.f32.gmra.mxu3 %v3079_v12  ;;  %v3080_v63 = vld [vmem:[#allocation2 + $0x110] sm:$0xff]  ;;  %v3081_v41 = vld [vmem:[#allocation2 + $0x118] sm:$0xff] }
 0x4ea   : > { %5069 = vmatpush.msrb.mxu2 %v4698_v35  ;;  %4891 = vmatpush.msrb.mxu0 %v4771_v26 }
 0x4ec   : > { %v3963_v14 = vpop.f32.mrf.mxu2  ;;  %v4052_v57 = vpop.f32.mrf.mxu3  ;;  %5070 = vmatpush.msrb.mxu2 %v4697_v22  ;;  %v4711_v22 = vld [vmem:[#allocation4 + $0xa8] sm:$0xff] }
 0x4ed   : > { %v3964_v47 = vadd.f32 %v3963_v14, %v3875_v13  ;;  %v3788_v9 = vpop.f32.mrf.mxu0  ;;  %v3877_v39 = vpop.f32.mrf.mxu1  ;;  %v4713_v13 = vld [vmem:[#allocation4 + $0xb8] sm:$0xff] }
 0x4ee   : > { %v3789_v46 = vadd.f32 %v3788_v9, %v10187_v8  ;;  %5159 = vmatpush.msrb.mxu3 %v4713_v13  ;;  %v4770_v8 = vld [vmem:[#allocation4 + $0x238] sm:$0xff] }
 0x4ef   : > { %v9187_v60 = vadd.f32 %v4052_v57, %v3964_v47  ;;  %v10192_v47 = vld [vmem:[#allocation30_spill] sm:$0xff]  ;;  %4892 = vmatpush.msrb.mxu0 %v4770_v8 }
 0x4f0   : > { %v3878_v62 = vadd.f32 %v3877_v39, %v3789_v46  ;;  %4240 = vmatmul.f32.gmra.mxu0 %v10188_v48  ;;  %4329 = vmatmul.f32.gmra.mxu1 %v10189_v59 }
 0x4f1   : > { %4418 = vmatmul.f32.gmra.mxu2 %v10190_v11  ;;  %4832 = vmatmul.f32.gmra.mxu3 %v3080_v63  ;;  %v10193_v63 = vld [vmem:[#allocation34_spill] sm:$0xff] }
 0x4f4   : > { %v3966_v3 = vpop.f32.mrf.mxu2  ;;  %v4055_v15 = vpop.f32.mrf.mxu3 }
 0x4f5   : > { %v3967_v44 = vadd.f32 %v3966_v3, %v3878_v62  ;;  %v3791_v28 = vpop.f32.mrf.mxu0  ;;  %v3880_v21 = vpop.f32.mrf.mxu1  ;;  %v4785_v3 = vld [vmem:[#allocation4 + $0x2b0] sm:$0xff] }
 0x4f6   : > { %v3792_v18 = vadd.f32 %v3791_v28, %v10191_v55 }
 0x4f7   : > { %v9193_v19 = vadd.f32 %v4055_v15, %v3967_v44 }
 0x4f8   : > { %v3881_v25 = vadd.f32 %v3880_v21, %v3792_v18  ;;  %4243 = vmatmul.f32.gmra.mxu0 %v9004_v31  ;;  %4332 = vmatmul.f32.gmra.mxu1 %v9007_v32  ;;  %v4786_v32 = vld [vmem:[#allocation4 + $0x2b8] sm:$0xff] }
 0x4f9   : > { %4421 = vmatmul.f32.gmra.mxu2 %v8952_v6  ;;  %4835 = vmatmul.f32.gmra.mxu3 %v3081_v41  ;;  %v3082_v6 = vld [vmem:[#allocation2 + $0x120] sm:$0xff]  ;;  %v10194_v18 = vld [vmem:[#allocation33_spill] sm:$0xff] }
 0x4fa   : > { %4981 = vmatpush.msrb.mxu1 %v4786_v32  ;;  %v4695_v41 = vld [vmem:[#allocation4 + $0x28] sm:$0xff] }
 0x4fb   : > { %v4768_v32 = vld [vmem:[#allocation4 + $0x228] sm:$0xff] }
 0x4fc   : > { %v3969_v12 = vpop.f32.mrf.mxu2  ;;  %v4058_v51 = vpop.f32.mrf.mxu3  ;;  %4982 = vmatpush.msrb.mxu1 %v4785_v3 }
 0x4fd   : > { %v3970_v40 = vadd.f32 %v3969_v12, %v3881_v25  ;;  %v3794_v14 = vpop.f32.mrf.mxu0  ;;  %v3883_v57 = vpop.f32.mrf.mxu1 }
 0x4fe   : > { %v3795_v9 = vadd.f32 %v3794_v14, %v10192_v47 }
 0x4ff   : > { %v9199_v39 = vadd.f32 %v4058_v51, %v3970_v40 }
 0x500   : > { %v3884_v31 = vadd.f32 %v3883_v57, %v3795_v9  ;;  %4246 = vmatmul.f32.gmra.mxu0 %v9022_v27  ;;  %4335 = vmatmul.f32.gmra.mxu1 %v9025_v34  ;;  %v4696_v27 = vld [vmem:[#allocation4 + $0x30] sm:$0xff]  ;;  %v10195_v57 = vld [vmem:[#allocation35_spill] sm:$0xff] }
 0x501   : > { %4424 = vmatmul.f32.gmra.mxu2 %v8968_v4  ;;  %4838 = vmatmul.f32.gmra.mxu3 %v3082_v6  ;;  %v3083_v4 = vld [vmem:[#allocation2 + $0x128] sm:$0xff]  ;;  %v10197_v6 = vld [vmem:[#allocation22_spill] sm:$0xff] }
 0x502   : > { %v4712_v34 = vld [vmem:[#allocation4 + $0xb0] sm:$0xff]  ;;  %5071 = vmatpush.msrb.mxu2 %v4696_v27 }
 0x503   : > { %5160 = vmatpush.msrb.mxu3 %v4712_v34 }
 0x504   : > { %v3972_v46 = vpop.f32.mrf.mxu2  ;;  %v4061_v35 = vpop.f32.mrf.mxu3  ;;  %5072 = vmatpush.msrb.mxu2 %v4695_v41  ;;  %v10202_v41 = vld [vmem:[#allocation20_spill] sm:$0xff] }
 0x505   : > { %v3973_v62 = vadd.f32 %v3972_v46, %v3884_v31  ;;  %v3797_v48 = vpop.f32.mrf.mxu0  ;;  %v3886_v59 = vpop.f32.mrf.mxu1  ;;  %5161 = vmatpush.msrb.mxu3 %v4711_v22  ;;  %v3085_v31 = vld [vmem:[#allocation2 + $0x138] sm:$0xff] }
 0x506   : > { %v3798_v56 = vadd.f32 %v3797_v48, %v10193_v63 }
 0x507   : > { %v9205_v11 = vadd.f32 %v4061_v35, %v3973_v62 }
 0x508   : > { %v3887_v58 = vadd.f32 %v3886_v59, %v3798_v56  ;;  %4249 = vmatmul.f32.gmra.mxu0 %v9037_v5  ;;  %4338 = vmatmul.f32.gmra.mxu1 %v9040_v53  ;;  %v4769_v5 = vld [vmem:[#allocation4 + $0x230] sm:$0xff]  ;;  %v10198_v59 = vld [vmem:[#allocation14_spill] sm:$0xff] }
 0x509   : > { %4427 = vmatmul.f32.gmra.mxu2 %v8984_v42  ;;  %4841 = vmatmul.f32.gmra.mxu3 %v3083_v4  ;;  %v3084_v42 = vld [vmem:[#allocation2 + $0x130] sm:$0xff]  ;;  %v10200_v4 = vld [vmem:[#allocation19_spill] sm:$0xff] }
 0x50a   : > { %4893 = vmatpush.msrb.mxu0 %v4769_v5  ;;  %v4710_v5 = vld [vmem:[#allocation4 + $0xa0] sm:$0xff] }
 0x50b   : > { %5162 = vmatpush.msrb.mxu3 %v4710_v5  ;;  %v4781_v5 = vld [vmem:[#allocation4 + $0x290] sm:$0xff] }
 0x50c   : > { %v3975_v15 = vpop.f32.mrf.mxu2  ;;  %v4064_v44 = vpop.f32.mrf.mxu3  ;;  %4894 = vmatpush.msrb.mxu0 %v4768_v32 }
 0x50d   : > { %v3976_v28 = vadd.f32 %v3975_v15, %v3887_v58  ;;  %v3800_v21 = vpop.f32.mrf.mxu0  ;;  %v3889_v55 = vpop.f32.mrf.mxu1  ;;  %v3086_v58 = vld [vmem:[#allocation2 + $0x140] sm:$0xff] }
 0x50e   : > { %v3801_v26 = vadd.f32 %v3800_v21, %v10194_v18  ;;  %v10201_v21 = vld [vmem:[#allocation10_spill] sm:$0xff] }
 0x50f   : > { %v9211_v25 = vadd.f32 %v4064_v44, %v3976_v28 }
 0x510   : > { %v3890_v53 = vadd.f32 %v3889_v55, %v3801_v26  ;;  %4252 = vmatmul.f32.gmra.mxu0 %v9050_v43  ;;  %4341 = vmatmul.f32.gmra.mxu1 %v9053_v33  ;;  %v4784_v43 = vld [vmem:[#allocation4 + $0x2a8] sm:$0xff]  ;;  %v4694_v26 = vld [vmem:[#allocation4 + $0x20] sm:$0xff] }
 0x511   : > { %4430 = vmatmul.f32.gmra.mxu2 %v9000_v37  ;;  %4844 = vmatmul.f32.gmra.mxu3 %v3084_v42  ;;  %v10196_v37 = vld [vmem:[#allocation12_spill] sm:$0xff]  ;;  %v4783_v42 = vld [vmem:[#allocation4 + $0x2a0] sm:$0xff] }
 0x512   : > { %4983 = vmatpush.msrb.mxu1 %v4784_v43  ;;  %5073 = vmatpush.msrb.mxu2 %v4694_v26  ;;  %v4693_v43 = vld [vmem:[#allocation4 + $0x18] sm:$0xff]  ;;  %v3090_v26 = vld [vmem:[#allocation2 + $0x160] sm:$0xff] }
 0x514   : > { %v3978_v13 = vpop.f32.mrf.mxu2  ;;  %v4067_v12 = vpop.f32.mrf.mxu3  ;;  %4984 = vmatpush.msrb.mxu1 %v4783_v42  ;;  %5074 = vmatpush.msrb.mxu2 %v4693_v43  ;;  %v9271_v43 = vld [vmem:[#allocation2 + $0xc1] sm:$0xff] }
 0x515   : > { %v3979_v51 = vadd.f32 %v3978_v13, %v3890_v53  ;;  %v3803_v40 = vpop.f32.mrf.mxu0  ;;  %v3892_v14 = vpop.f32.mrf.mxu1 }
 0x516   : > { %v3804_v47 = vadd.f32 %v3803_v40, %v10195_v57 }
 0x517   : > { %v9217_v9 = vadd.f32 %v4067_v12, %v3979_v51 }
 0x518   : > { %v3893_v33 = vadd.f32 %v3892_v14, %v3804_v47  ;;  %4255 = vmatmul.f32.gmra.mxu0 %v9063_v36  ;;  %4344 = vmatmul.f32.gmra.mxu1 %v10196_v37  ;;  %v10199_v36 = vld [vmem:[#allocation27_spill] sm:$0xff]  ;;  %v10203_v14 = vld [vmem:[#allocation17_spill] sm:$0xff] }
 0x519   : > { %4433 = vmatmul.f32.gmra.mxu2 %v10197_v6  ;;  %4847 = vmatmul.f32.gmra.mxu3 %v3085_v31  ;;  %v3088_v37 = vld [vmem:[#allocation2 + $0x150] sm:$0xff] }
 0x51a   : > { %v4709_v31 = vld [vmem:[#allocation4 + $0x98] sm:$0xff] }
 0x51b   : > { %5163 = vmatpush.msrb.mxu3 %v4709_v31  ;;  %v10209_v31 = vld [vmem:[#allocation15_spill] sm:$0xff] }
 0x51c   : > { %v3981_v8 = vpop.f32.mrf.mxu2  ;;  %v4070_v46 = vpop.f32.mrf.mxu3 }
 0x51d   : > { %v3982_v35 = vadd.f32 %v3981_v8, %v3893_v33  ;;  %v3806_v62 = vpop.f32.mrf.mxu0  ;;  %v3895_v48 = vpop.f32.mrf.mxu1  ;;  %v10204_v33 = vld [vmem:[#allocation24_spill] sm:$0xff] }
 0x51e   : > { %v3807_v63 = vadd.f32 %v3806_v62, %v10198_v59  ;;  %v10205_v59 = vld [vmem:[#allocation37_spill] sm:$0xff] }
 0x51f   : > { %v9223_v56 = vadd.f32 %v4070_v46, %v3982_v35 }
 0x520   : > { %v3896_v27 = vadd.f32 %v3895_v48, %v3807_v63  ;;  %4258 = vmatmul.f32.gmra.mxu0 %v10199_v36  ;;  %4347 = vmatmul.f32.gmra.mxu1 %v9079_v29  ;;  %v3087_v29 = vld [vmem:[#allocation2 + $0x148] sm:$0xff]  ;;  %v4782_v48 = vld [vmem:[#allocation4 + $0x298] sm:$0xff]  ;;  %v3089_v63 = vld [vmem:[#allocation2 + $0x158] sm:$0xff] }
 0x521   : > { %4436 = vmatmul.f32.gmra.mxu2 %v10200_v4  ;;  %4850 = vmatmul.f32.gmra.mxu3 %v3086_v58 }
 0x522   : > { %4985 = vmatpush.msrb.mxu1 %v4782_v48 }
 0x524   : > { %v3984_v34 = vpop.f32.mrf.mxu2  ;;  %v4073_v3 = vpop.f32.mrf.mxu3  ;;  %4986 = vmatpush.msrb.mxu1 %v4781_v5 }
 0x525   : > { %v3985_v15 = vadd.f32 %v3984_v34, %v3896_v27  ;;  %v3809_v44 = vpop.f32.mrf.mxu0  ;;  %v3898_v28 = vpop.f32.mrf.mxu1  ;;  %v9251_v34 = vld [vmem:[%s9946_s4] ss:$0 sm:$0xff] }
 0x526   : > { %v3810_v55 = vadd.f32 %v3809_v44, %v10201_v21  ;;  %v4708_v21 = vld [vmem:[#allocation4 + $0x90] sm:$0xff] }
 0x527   : > { %v9229_v18 = vadd.f32 %v4073_v3, %v3985_v15  ;;  %v10207_v15 = vld [vmem:[#allocation11_spill] sm:$0xff]  ;;  %5164 = vmatpush.msrb.mxu3 %v4708_v21 }
 0x528   : > { %v3899_v53 = vadd.f32 %v3898_v28, %v3810_v55  ;;  %4261 = vmatmul.f32.gmra.mxu0 %v9089_v10  ;;  %4350 = vmatmul.f32.gmra.mxu1 %v9092_v20  ;;  %v4767_v10 = vld [vmem:[#allocation4 + $0x220] sm:$0xff]  ;;  %v4692_v28 = vld [vmem:[#allocation4 + $0x10] sm:$0xff] }
 0x529   : > { %4439 = vmatmul.f32.gmra.mxu2 %v10202_v41  ;;  %4853 = vmatmul.f32.gmra.mxu3 %v3087_v29  ;;  %v4494_v55 = vld [vmem:[%s6795_s6 + $0x19] sm:$0xff] }
 0x52a   : > { %4895 = vmatpush.msrb.mxu0 %v4767_v10  ;;  %5075 = vmatpush.msrb.mxu2 %v4692_v28  ;;  %v9268_v10 = vld [vmem:[#allocation2 + $0xc0] sm:$0xff]  ;;  %v10211_v28 = vld [vmem:[#allocation26_spill] sm:$0xff] }
 0x52c   : > { %v3987_v22 = vpop.f32.mrf.mxu2  ;;  %v4076_v13 = vpop.f32.mrf.mxu3 }
 0x52d   : > { %v3988_v12 = vadd.f32 %v3987_v22, %v3899_v53  ;;  %v3812_v51 = vpop.f32.mrf.mxu0  ;;  %v3901_v40 = vpop.f32.mrf.mxu1 }
 0x52e   : > { %v3813_v57 = vadd.f32 %v3812_v51, %v10203_v14  ;;  %v10208_v51 = vld [vmem:[#allocation25_spill] sm:$0xff]  ;;  %v4691_v14 = vld [vmem:[#allocation4 + $0x8] sm:$0xff] }
 0x52f   : > { %v9235_v47 = vadd.f32 %v4076_v13, %v3988_v12  ;;  %5076 = vmatpush.msrb.mxu2 %v4691_v14  ;;  %v9297_v14 = vld [vmem:[#allocation2 + $0xd1] sm:$0xff] }
 0x530   : > { %v3902_v20 = vadd.f32 %v3901_v40, %v3813_v57  ;;  %4264 = vmatmul.f32.gmra.mxu0 %v9102_v17  ;;  %4353 = vmatmul.f32.gmra.mxu1 %v10204_v33  ;;  %v4766_v17 = vld [vmem:[#allocation4 + $0x218] sm:$0xff]  ;;  %v4765_v40 = vld [vmem:[#allocation4 + $0x210] sm:$0xff]  ;;  %v4707_v33 = vld [vmem:[#allocation4 + $0x88] sm:$0xff] }
 0x531   : > { %4442 = vmatmul.f32.gmra.mxu2 %v9060_v49  ;;  %4856 = vmatmul.f32.gmra.mxu3 %v3088_v37  ;;  %v10206_v49 = vld [vmem:[#allocation18_spill] sm:$0xff]  ;;  %v4495_v57 = vld [vmem:[%s6795_s6 + $0x21] sm:$0xff] }
 0x532   : > { %4896 = vmatpush.msrb.mxu0 %v4766_v17  ;;  %5165 = vmatpush.msrb.mxu3 %v4707_v33 }
 0x534   : > { %v3990_v6 = vpop.f32.mrf.mxu2  ;;  %v4079_v32 = vpop.f32.mrf.mxu3  ;;  %4897 = vmatpush.msrb.mxu0 %v4765_v40  ;;  %v9294_v40 = vld [vmem:[#allocation2 + $0xd0] sm:$0xff] }
 0x535   : > { %v3991_v8 = vadd.f32 %v3990_v6, %v3902_v20  ;;  %v4220_v46 = vpop.f32.mrf.mxu0  ;;  %v4309_v35 = vpop.f32.mrf.mxu1  ;;  %v3091_v20 = vld [vmem:[#allocation2 + $0x168] sm:$0xff] }
 0x536   : > { %v4310_v27 = vadd.f32 %v4309_v35, %v4220_v46 }
 0x537   : > { %v9240_v62 = vadd.f32 %v4079_v32, %v3991_v8 }
 0x538   : > { %4267 = vmatmul.f32.gmra.mxu0 %v10205_v59  ;;  %4356 = vmatmul.f32.gmra.mxu1 %v9118_v1 }
 0x539   : > { %4445 = vmatmul.f32.gmra.mxu2 %v10206_v49  ;;  %4859 = vmatmul.f32.gmra.mxu3 %v3089_v63  ;;  %v10210_v63 = vld [vmem:[#allocation23_spill] sm:$0xff] }
 0x53c   : > { %v4398_v36 = vpop.f32.mrf.mxu2  ;;  %v9245_v58 = vpop.f32.mrf.mxu3 }
 0x53d   : > { %v4399_v4 = vadd.f32 %v4398_v36, %v4310_v27  ;;  %v4223_v1 = vpop.f32.mrf.mxu0  ;;  %v4312_v3 = vpop.f32.mrf.mxu1  ;;  %v4780_v27 = vld [vmem:[#allocation4 + $0x288] sm:$0xff] }
 0x53e   : > { %v4313_v42 = vadd.f32 %v4312_v3, %v4223_v1  ;;  %v4764_v36 = vld [vmem:[#allocation4 + $0x208] sm:$0xff]  ;;  %v9281_v1 = vld [vmem:[#allocation2 + $0xc8] sm:$0xff]  ;;  %4987 = vmatpush.msrb.mxu1 %v4780_v27 }
 0x53f   : > { %v4470_v44 = vadd.f32 %v4399_v4, %v10207_v15  ;;  %v4496_v4 = vld [vmem:[%s6795_s6 + $0x29] sm:$0xff]  ;;  %4898 = vmatpush.msrb.mxu0 %v4764_v36  ;;  %v9306_v27 = vld [vmem:[#allocation2 + $0xd9] sm:$0xff] }
 0x540   : > { %4270 = vmatmul.f32.gmra.mxu0 %v9128_v23  ;;  %4359 = vmatmul.f32.gmra.mxu1 %v9131_v50  ;;  %v9284_v3 = vld [vmem:[#allocation2 + $0xc9] sm:$0xff] }
 0x541   : > { %v4522_v53 = vadd.f32 %v9251_v34, %v4470_v44  ;;  %4448 = vmatmul.f32.gmra.mxu2 %v9086_v54  ;;  %4862 = vmatmul.f32.gmra.mxu3 %v3090_v26  ;;  %v3092_v15 = vld [vmem:[#allocation2 + $0x170] sm:$0xff] }
 0x542   : > { %v5432_v36 = vld [vmem:[#allocation4 + $0x3f8] sm:$0xff] }
 0x543   : > { %v4546_v29 = vadd.f32 %v4522_v53, %v4494_v55 }
 0x544   : > { %v4401_v41 = vpop.f32.mrf.mxu2  ;;  %v9261_v22 = vpop.f32.mrf.mxu3 }
 0x545   : > { %v4570_v13 = vmax.f32 %v4546_v29, 0.0  ;;  %v4402_v23 = vadd.f32 %v4401_v41, %v4313_v42  ;;  %v4226_v12 = vpop.f32.mrf.mxu0  ;;  %v4315_v50 = vpop.f32.mrf.mxu1 }
 0x546   : > { %v4316_v32 = vadd.f32 %v4315_v50, %v4226_v12  ;;  %v3093_v12 = vld [vmem:[#allocation2 + $0x178] sm:$0xff] }
 0x547   : > { %4594 = vst [vmem:[%s9263_s30] sm:$0xff] %v4570_v13  ;;  %v4471_v54 = vadd.f32 %v4402_v23, %v10208_v51  ;;  %v10212_v13 = vld [vmem:[#allocation13_spill] sm:$0xff]  ;;  %v4690_v50 = vld [vmem:[#allocation4] sm:$0xff] }
 0x548   : > { %4273 = vmatmul.f32.gmra.mxu0 %v9268_v10  ;;  %4362 = vmatmul.f32.gmra.mxu1 %v9271_v43  ;;  %v4706_v51 = vld [vmem:[#allocation4 + $0x80] sm:$0xff] }
 0x549   : > { %v4523_v37 = vadd.f32 %v9251_v34, %v4471_v54  ;;  %4451 = vmatmul.f32.gmra.mxu2 %v10209_v31  ;;  %4865 = vmatmul.f32.gmra.mxu3 %v3091_v20  ;;  %v4497_v54 = vld [vmem:[%s6795_s6 + $0x31] sm:$0xff] }
 0x54a   : > { %v4763_v20 = vld [vmem:[#allocation4 + $0x200] sm:$0xff]  ;;  %5077 = vmatpush.msrb.mxu2 %v4690_v50  ;;  %5166 = vmatpush.msrb.mxu3 %v4706_v51  ;;  %v9319_v50 = vld [vmem:[#allocation2 + $0xe1] sm:$0xff]  ;;  %v5416_v51 = vld [vmem:[#allocation4 + $0x378] sm:$0xff] }
 0x54b   : > { %v4547_v6 = vadd.f32 %v4523_v37, %v4495_v57  ;;  %v4779_v57 = vld [vmem:[#allocation4 + $0x280] sm:$0xff]  ;;  %v10213_v37 = vld [vmem:[#allocation39_spill] sm:$0xff]  ;;  %4899 = vmatpush.msrb.mxu0 %v4763_v20 }
 0x54c   : > { %v4404_v8 = vpop.f32.mrf.mxu2  ;;  %v9276_v46 = vpop.f32.mrf.mxu3  ;;  %4988 = vmatpush.msrb.mxu1 %v4779_v57  ;;  %5538 = vmatpush.msra.mxu2 %v5432_v36  ;;  %v4499_v57 = vld [vmem:[%s6795_s6 + $0x41] sm:$0xff] }
 0x54d   : > { %v4571_v35 = vmax.f32 %v4547_v6, 0.0  ;;  %v4405_v48 = vadd.f32 %v4404_v8, %v4316_v32  ;;  %v4229_v17 = vpop.f32.mrf.mxu0  ;;  %v4318_v59 = vpop.f32.mrf.mxu1  ;;  %v9324_v20 = vld [vmem:[#allocation2 + $0xe2] sm:$0xff] }
 0x54e   : > { %v4319_v55 = vadd.f32 %v4318_v59, %v4229_v17  ;;  %5449 = vmatpush.msra.mxu1 %v5416_v51 }
 0x54f   : > { %4595 = vst [vmem:[%s9263_s30 + $0x8] sm:$0xff] %v4571_v35  ;;  %v4472_v49 = vadd.f32 %v4405_v48, %v10210_v63  ;;  %v10214_v63 = vld [vmem:[#allocation21_spill] sm:$0xff] }
 0x550   : > { %4276 = vmatmul.f32.gmra.mxu0 %v9281_v1  ;;  %4365 = vmatmul.f32.gmra.mxu1 %v9284_v3 }
 0x551   : > { %v4524_v44 = vadd.f32 %v9251_v34, %v4472_v49  ;;  %4454 = vmatmul.f32.gmra.mxu2 %v10211_v28  ;;  %4868 = vmatmul.f32.gmra.mxu3 %v3092_v15  ;;  %v4498_v15 = vld [vmem:[%s6795_s6 + $0x39] sm:$0xff] }
 0x552   : > { %v3094_v28 = vld [vmem:[#allocation2 + $0x180] sm:$0xff] }
 0x553   : > { %v4548_v21 = vadd.f32 %v4524_v44, %v4496_v4  ;;  %v5448_v4 = vld [vmem:[#allocation4 + $0x478] sm:$0xff]  ;;  %v9311_v44 = vld [vmem:[#allocation2 + $0xda] sm:$0xff] }
 0x554   : > { %v4407_v26 = vpop.f32.mrf.mxu2  ;;  %v9289_v5 = vpop.f32.mrf.mxu3  ;;  %5627 = vmatpush.msra.mxu3 %v5448_v4  ;;  %v9334_v4 = vld [vmem:[#allocation2 + $0xea] sm:$0xff] }
 0x555   : > { %v4572_v53 = vmax.f32 %v4548_v21, 0.0  ;;  %v4408_v29 = vadd.f32 %v4407_v26, %v4319_v55  ;;  %v4232_v42 = vpop.f32.mrf.mxu0  ;;  %v4321_v41 = vpop.f32.mrf.mxu1 }
 0x556   : > { %v4322_v6 = vadd.f32 %v4321_v41, %v4232_v42 }
 0x557   : > { %4596 = vst [vmem:[%s9263_s30 + $0x10] sm:$0xff] %v4572_v53  ;;  %v4473_v23 = vadd.f32 %v4408_v29, %v10212_v13 }
 0x558   : > { %4279 = vmatmul.f32.gmra.mxu0 %v9294_v40  ;;  %4368 = vmatmul.f32.gmra.mxu1 %v9297_v14 }
 0x559   : > { %v4525_v33 = vadd.f32 %v9251_v34, %v4473_v23  ;;  %4457 = vmatmul.f32.gmra.mxu2 %v10213_v37  ;;  %4871 = vmatmul.f32.gmra.mxu3 %v3093_v12  ;;  %v10215_v23 = vld [vmem:[#allocation29_spill] sm:$0xff] }
 0x55b   : > { %v4549_v31 = vadd.f32 %v4525_v33, %v4497_v54  ;;  %v4737_v54 = vld [vmem:[#allocation4 + $0x178] sm:$0xff]  ;;  %v3095_v33 = vld [vmem:[#allocation2 + $0x188] sm:$0xff] }
 0x55c   : > { %v4410_v32 = vpop.f32.mrf.mxu2  ;;  %v9302_v8 = vpop.f32.mrf.mxu3  ;;  %5240 = vmatpush.msra.mxu0 %v4737_v54 }
 0x55d   : > { %v4573_v35 = vmax.f32 %v4549_v31, 0.0  ;;  %v4411_v48 = vadd.f32 %v4410_v32, %v4322_v6  ;;  %v4235_v17 = vpop.f32.mrf.mxu0  ;;  %v4324_v59 = vpop.f32.mrf.mxu1 }
 0x55e   : > { %v4325_v26 = vadd.f32 %v4324_v59, %v4235_v17 }
 0x55f   : > { %4597 = vst [vmem:[%s9263_s30 + $0x18] sm:$0xff] %v4573_v35  ;;  %v4474_v49 = vadd.f32 %v4411_v48, %v10214_v63  ;;  %v9330_v63 = vld [vmem:[#allocation2 + $0xe9] sm:$0xff] }
 0x560   : > { %4282 = vmatmul.f32.gmra.mxu0 %v9140_v16  ;;  %4371 = vmatmul.f32.gmra.mxu1 %v9306_v27 }
 0x561   : > { %v4526_v21 = vadd.f32 %v9251_v34, %v4474_v49  ;;  %4460 = vmatmul.f32.gmra.mxu2 %v9311_v44  ;;  %4874 = vmatmul.f32.gmra.mxu3 %v3094_v28  ;;  %v10216_v49 = vld [vmem:[#allocation38_spill] sm:$0xff]  ;;  %v5447_v28 = vld [vmem:[#allocation4 + $0x470] sm:$0xff] }
 0x562   : > { %5628 = vmatpush.msra.mxu3 %v5447_v28  ;;  %v4502_v28 = vld [vmem:[%s6795_s6 + $0x59] sm:$0xff] }
 0x563   : > { %v4550_v55 = vadd.f32 %v4526_v21, %v4498_v15  ;;  %v5431_v15 = vld [vmem:[#allocation4 + $0x3f0] sm:$0xff] }
 0x564   : > { %v4413_v53 = vpop.f32.mrf.mxu2  ;;  %v9315_v29 = vpop.f32.mrf.mxu3  ;;  %v4500_v21 = vld [vmem:[%s6795_s6 + $0x49] sm:$0xff]  ;;  %5539 = vmatpush.msra.mxu2 %v5431_v15  ;;  %v5414_v15 = vld [vmem:[#allocation4 + $0x368] sm:$0xff] }
 0x565   : > { %v4574_v16 = vmax.f32 %v4550_v55, 0.0  ;;  %v4414_v42 = vadd.f32 %v4413_v53, %v4325_v26  ;;  %v4238_v41 = vpop.f32.mrf.mxu0  ;;  %v4327_v13 = vpop.f32.mrf.mxu1  ;;  %v3096_v55 = vld [vmem:[#allocation2 + $0x190] sm:$0xff]  ;;  %v5415_v26 = vld [vmem:[#allocation4 + $0x370] sm:$0xff] }
 0x566   : > { %v4328_v6 = vadd.f32 %v4327_v13, %v4238_v41  ;;  %5450 = vmatpush.msra.mxu1 %v5415_v26 }
 0x567   : > { %4598 = vst [vmem:[%s9263_s30 + $0x20] sm:$0xff] %v4574_v16  ;;  %v4475_v12 = vadd.f32 %v4414_v42, %v10215_v23 }
 0x568   : > { %4285 = vmatmul.f32.gmra.mxu0 %v9149_v38  ;;  %4374 = vmatmul.f32.gmra.mxu1 %v9319_v50 }
 0x569   : > { %v4527_v37 = vadd.f32 %v9251_v34, %v4475_v12  ;;  %4463 = vmatmul.f32.gmra.mxu2 %v9324_v20  ;;  %4877 = vmatmul.f32.gmra.mxu3 %v3095_v33  ;;  %v5430_v33 = vld [vmem:[#allocation4 + $0x3e8] sm:$0xff] }
 0x56a   : > { %5540 = vmatpush.msra.mxu2 %v5430_v33  ;;  %5451 = vmatpush.msra.mxu1 %v5414_v15 }
 0x56b   : > { %v4551_v31 = vadd.f32 %v4527_v37, %v4499_v57  ;;  %v4736_v57 = vld [vmem:[#allocation4 + $0x170] sm:$0xff]  ;;  %v4501_v37 = vld [vmem:[%s6795_s6 + $0x51] sm:$0xff] }
 0x56c   : > { %v4416_v32 = vpop.f32.mrf.mxu2  ;;  %v9328_v35 = vpop.f32.mrf.mxu3  ;;  %5241 = vmatpush.msra.mxu0 %v4736_v57 }
 0x56d   : > { %v4575_v38 = vmax.f32 %v4551_v31, 0.0  ;;  %v4417_v48 = vadd.f32 %v4416_v32, %v4328_v6  ;;  %v4241_v17 = vpop.f32.mrf.mxu0  ;;  %v4330_v59 = vpop.f32.mrf.mxu1  ;;  %v5446_v31 = vld [vmem:[#allocation4 + $0x468] sm:$0xff] }
 0x56e   : > { %v4331_v42 = vadd.f32 %v4330_v59, %v4241_v17  ;;  %5629 = vmatpush.msra.mxu3 %v5446_v31 }
 0x56f   : > { %4599 = vst [vmem:[%s9263_s30 + $0x28] sm:$0xff] %v4575_v38  ;;  %v4476_v36 = vadd.f32 %v4417_v48, %v10216_v49 }
 0x570   : > { %4288 = vmatmul.f32.gmra.mxu0 %v9158_v52  ;;  %4377 = vmatmul.f32.gmra.mxu1 %v9330_v63 }
 0x571   : > { %v4528_v53 = vadd.f32 %v9251_v34, %v4476_v36  ;;  %4466 = vmatmul.f32.gmra.mxu2 %v9334_v4  ;;  %4880 = vmatmul.f32.gmra.mxu3 %v3096_v55 }
 0x573   : > { %v4552_v16 = vadd.f32 %v4528_v53, %v4500_v21 }
 0x574   : > { %v4419_v41 = vpop.f32.mrf.mxu2  ;;  %v9341_v13 = vpop.f32.mrf.mxu3 }
 0x575   : > { %v4576_v52 = vmax.f32 %v4552_v16, 0.0  ;;  %v4420_v23 = vadd.f32 %v4419_v41, %v4331_v42  ;;  %v4244_v12 = vpop.f32.mrf.mxu0  ;;  %v4333_v51 = vpop.f32.mrf.mxu1 }
 0x577   : > { %4600 = vst [vmem:[%s9263_s30 + $0x30] sm:$0xff] %v4576_v52  ;;  %v4477_v54 = vadd.f32 %v4420_v23, %v9136_v0  ;;  %v4334_v0 = vadd.f32 %v4333_v51, %v4244_v12  ;;  %v5429_v52 = vld [vmem:[#allocation4 + $0x3e0] sm:$0xff] }
 0x578   : > { %4900 = vmatmul.f32.vlgmr.msrb.gmra.mxu0 %v9306_v27  ;;  %4989 = vmatmul.f32.vlgmr.msrb.gmra.mxu1 %v9311_v44  ;;  %v5445_v23 = vld [vmem:[#allocation4 + $0x460] sm:$0xff] }
 0x579   : > { %v4529_v6 = vadd.f32 %v9251_v34, %v4477_v54  ;;  %5078 = vmatmul.f32.vlgmr.msrb.gmra.mxu2 %v9268_v10  ;;  %5167 = vmatmul.f32.vlgmr.msrb.gmra.mxu3 %v9271_v43  ;;  %v4735_v10 = vld [vmem:[#allocation4 + $0x168] sm:$0xff] }
 0x57a   : > { %5242 = vmatpush.msra.mxu0 %v4735_v10  ;;  %5541 = vmatpush.msra.mxu2 %v5429_v52 }
 0x57b   : > { %v4553_v32 = vadd.f32 %v4529_v6, %v4501_v37  ;;  %5630 = vmatpush.msra.mxu3 %v5445_v23  ;;  %v9373_v6 = vld [vmem:[#allocation2 + $0xf1] sm:$0xff] }
 0x57c   : > { %v4422_v38 = vpop.f32.mrf.mxu2  ;;  %v9351_v48 = vpop.f32.mrf.mxu3 }
 0x57d   : > { %v4577_v17 = vmax.f32 %v4553_v32, 0.0  ;;  %v4423_v59 = vadd.f32 %v4422_v38, %v4334_v0  ;;  %v4247_v44 = vpop.f32.mrf.mxu0  ;;  %v4336_v49 = vpop.f32.mrf.mxu1  ;;  %v9377_v32 = vld [vmem:[#allocation2 + $0xf2] sm:$0xff]  ;;  %v4504_v38 = vld [vmem:[%s6795_s6 + $0x69] sm:$0xff] }
 0x57e   : > { %v4337_v55 = vadd.f32 %v4336_v49, %v4247_v44  ;;  %v5428_v0 = vld [vmem:[#allocation4 + $0x3d8] sm:$0xff]  ;;  %v6372_v44 = vld [vmem:[#allocation2 + $0xd8] sm:$0xff] }
 0x57f   : > { %4601 = vst [vmem:[%s9263_s30 + $0x38] sm:$0xff] %v4577_v17  ;;  %v4478_v36 = vadd.f32 %v4423_v59, %v9145_v30  ;;  %v5444_v17 = vld [vmem:[#allocation4 + $0x458] sm:$0xff]  ;;  %5542 = vmatpush.msra.mxu2 %v5428_v0  ;;  %v6374_v0 = vld [vmem:[#allocation2 + $0xe8] sm:$0xff] }
 0x580   : > { %4903 = vmatmul.f32.gmra.mxu0 %v9319_v50  ;;  %4992 = vmatmul.f32.gmra.mxu1 %v9324_v20 }
 0x581   : > { %v4530_v43 = vadd.f32 %v9251_v34, %v4478_v36  ;;  %5081 = vmatmul.f32.gmra.mxu2 %v9281_v1  ;;  %5170 = vmatmul.f32.gmra.mxu3 %v9284_v3  ;;  %v4503_v1 = vld [vmem:[%s6795_s6 + $0x61] sm:$0xff]  ;;  %v5413_v3 = vld [vmem:[#allocation4 + $0x360] sm:$0xff] }
 0x582   : > { %5452 = vmatpush.msra.mxu1 %v5413_v3  ;;  %5631 = vmatpush.msra.mxu3 %v5444_v17 }
 0x583   : > { %v4554_v21 = vadd.f32 %v4530_v43, %v4502_v28 }
 0x584   : > { %v4425_v30 = vpop.f32.mrf.mxu2  ;;  %v9361_v26 = vpop.f32.mrf.mxu3 }
 0x585   : > { %v4578_v53 = vmax.f32 %v4554_v21, 0.0  ;;  %v4426_v16 = vadd.f32 %v4425_v30, %v4337_v55  ;;  %v4250_v42 = vpop.f32.mrf.mxu0  ;;  %v4339_v41 = vpop.f32.mrf.mxu1  ;;  %v9386_v55 = vld [vmem:[#allocation2 + $0xf9] sm:$0xff] }
 0x587   : > { %4602 = vst [vmem:[%s9263_s30 + $0x40] sm:$0xff] %v4578_v53  ;;  %v4479_v20 = vadd.f32 %v4426_v16, %v9154_v7  ;;  %v4340_v7 = vadd.f32 %v4339_v41, %v4250_v42  ;;  %v9390_v53 = vld [vmem:[#allocation2 + $0xfa] sm:$0xff]  ;;  %v4733_v16 = vld [vmem:[#allocation4 + $0x158] sm:$0xff] }
 0x588   : > { %4906 = vmatmul.f32.gmra.mxu0 %v9330_v63  ;;  %4995 = vmatmul.f32.gmra.mxu1 %v9334_v4  ;;  %v4505_v42 = vld [vmem:[%s6795_s6 + $0x71] sm:$0xff] }
 0x589   : > { %v4531_v12 = vadd.f32 %v9251_v34, %v4479_v20  ;;  %5084 = vmatmul.f32.gmra.mxu2 %v9294_v40  ;;  %5173 = vmatmul.f32.gmra.mxu3 %v9297_v14  ;;  %v4734_v14 = vld [vmem:[#allocation4 + $0x160] sm:$0xff]  ;;  %v6373_v20 = vld [vmem:[#allocation2 + $0xe0] sm:$0xff] }
 0x58a   : > { %5243 = vmatpush.msra.mxu0 %v4734_v14 }
 0x58b   : > { %v4555_v51 = vadd.f32 %v4531_v12, %v4503_v1 }
 0x58c   : > { %v4428_v54 = vpop.f32.mrf.mxu2  ;;  %v9371_v57 = vpop.f32.mrf.mxu3  ;;  %5244 = vmatpush.msra.mxu0 %v4733_v16 }
 0x58d   : > { %v4579_v33 = vmax.f32 %v4555_v51, 0.0  ;;  %v4429_v37 = vadd.f32 %v4428_v54, %v4340_v7  ;;  %v4253_v4 = vpop.f32.mrf.mxu0  ;;  %v4342_v31 = vpop.f32.mrf.mxu1  ;;  %v9399_v54 = vld [vmem:[#allocation2 + $0x101] sm:$0xff] }
 0x58e   : > { %v4343_v49 = vadd.f32 %v4342_v31, %v4253_v4  ;;  %v5443_v4 = vld [vmem:[#allocation4 + $0x450] sm:$0xff]  ;;  %v4506_v31 = vld [vmem:[%s6795_s6 + $0x79] sm:$0xff] }
 0x58f   : > { %4603 = vst [vmem:[%s9263_s30 + $0x48] sm:$0xff] %v4579_v33  ;;  %v4480_v40 = vadd.f32 %v4429_v37, %v9163_v61  ;;  %v9403_v37 = vld [vmem:[#allocation2 + $0x102] sm:$0xff]  ;;  %5632 = vmatpush.msra.mxu3 %v5443_v4 }
 0x590   : > { %4909 = vmatmul.f32.gmra.mxu0 %v9373_v6  ;;  %4998 = vmatmul.f32.gmra.mxu1 %v9377_v32  ;;  %v4731_v4 = vld [vmem:[#allocation4 + $0x148] sm:$0xff] }
 0x591   : > { %v4532_v59 = vadd.f32 %v9251_v34, %v4480_v40  ;;  %5087 = vmatmul.f32.gmra.mxu2 %v6372_v44  ;;  %5176 = vmatmul.f32.gmra.mxu3 %v9306_v27  ;;  %v5412_v27 = vld [vmem:[#allocation4 + $0x358] sm:$0xff]  ;;  %v5411_v40 = vld [vmem:[#allocation4 + $0x350] sm:$0xff] }
 0x592   : > { %5453 = vmatpush.msra.mxu1 %v5412_v27  ;;  %v5442_v27 = vld [vmem:[#allocation4 + $0x448] sm:$0xff] }
 0x593   : > { %v4556_v61 = vadd.f32 %v4532_v59, %v4504_v38  ;;  %5633 = vmatpush.msra.mxu3 %v5442_v27  ;;  %v4509_v27 = vld [vmem:[%s6795_s6 + $0x91] sm:$0xff] }
 0x594   : > { %v4431_v36 = vpop.f32.mrf.mxu2  ;;  %v9384_v15 = vpop.f32.mrf.mxu3  ;;  %5454 = vmatpush.msra.mxu1 %v5411_v40 }
 0x595   : > { %v4580_v10 = vmax.f32 %v4556_v61, 0.0  ;;  %v4432_v28 = vadd.f32 %v4431_v36, %v4343_v49  ;;  %v4256_v43 = vpop.f32.mrf.mxu0  ;;  %v4345_v21 = vpop.f32.mrf.mxu1 }
 0x596   : > { %v4346_v52 = vadd.f32 %v4345_v21, %v4256_v43  ;;  %v9416_v43 = vld [vmem:[#allocation2 + $0x10a] sm:$0xff]  ;;  %v5426_v21 = vld [vmem:[#allocation4 + $0x3c8] sm:$0xff] }
 0x597   : > { %4604 = vst [vmem:[%s9263_s30 + $0x50] sm:$0xff] %v4580_v10  ;;  %v4481_v30 = vadd.f32 %v4432_v28, %v9169_v45  ;;  %v9412_v10 = vld [vmem:[#allocation2 + $0x109] sm:$0xff] }
 0x598   : > { %4912 = vmatmul.f32.gmra.mxu0 %v9386_v55  ;;  %5001 = vmatmul.f32.gmra.mxu1 %v9390_v53 }
 0x599   : > { %v4533_v41 = vadd.f32 %v9251_v34, %v4481_v30  ;;  %5090 = vmatmul.f32.gmra.mxu2 %v6373_v20  ;;  %5179 = vmatmul.f32.gmra.mxu3 %v9319_v50  ;;  %v5427_v50 = vld [vmem:[#allocation4 + $0x3d0] sm:$0xff] }
 0x59a   : > { %5543 = vmatpush.msra.mxu2 %v5427_v50  ;;  %v4507_v30 = vld [vmem:[%s6795_s6 + $0x81] sm:$0xff] }
 0x59b   : > { %v4557_v45 = vadd.f32 %v4533_v41, %v4505_v42  ;;  %v9422_v42 = vld [vmem:[#allocation2 + $0xf0] sm:$0xff]  ;;  %v5410_v50 = vld [vmem:[#allocation4 + $0x348] sm:$0xff] }
 0x59c   : > { %v4434_v23 = vpop.f32.mrf.mxu2  ;;  %v9397_v1 = vpop.f32.mrf.mxu3  ;;  %5544 = vmatpush.msra.mxu2 %v5426_v21  ;;  %5455 = vmatpush.msra.mxu1 %v5410_v50  ;;  %v5425_v21 = vld [vmem:[#allocation4 + $0x3c0] sm:$0xff] }
 0x59d   : > { %v4581_v3 = vmax.f32 %v4557_v45, 0.0  ;;  %v4435_v12 = vadd.f32 %v4434_v23, %v4346_v52  ;;  %v4259_v51 = vpop.f32.mrf.mxu0  ;;  %v4348_v7 = vpop.f32.mrf.mxu1 }
 0x59e   : > { %v4349_v38 = vadd.f32 %v4348_v7, %v4259_v51  ;;  %v9428_v51 = vld [vmem:[#allocation2 + $0x111] sm:$0xff]  ;;  %5545 = vmatpush.msra.mxu2 %v5425_v21 }
 0x59f   : > { %4605 = vst [vmem:[%s9263_s30 + $0x58] sm:$0xff] %v4581_v3  ;;  %v4482_v33 = vadd.f32 %v4435_v12, %v9175_v2 }
 0x5a0   : > { %4915 = vmatmul.f32.gmra.mxu0 %v9399_v54  ;;  %5004 = vmatmul.f32.gmra.mxu1 %v9403_v37 }
 0x5a1   : > { %v4534_v14 = vadd.f32 %v9251_v34, %v4482_v33  ;;  %5093 = vmatmul.f32.gmra.mxu2 %v6374_v0  ;;  %5182 = vmatmul.f32.gmra.mxu3 %v9330_v63  ;;  %v4732_v63 = vld [vmem:[#allocation4 + $0x150] sm:$0xff]  ;;  %v9432_v33 = vld [vmem:[#allocation2 + $0x112] sm:$0xff] }
 0x5a2   : > { %5245 = vmatpush.msra.mxu0 %v4732_v63  ;;  %v9448_v63 = vld [vmem:[#allocation2 + $0x11a] sm:$0xff] }
 0x5a3   : > { %v4558_v2 = vadd.f32 %v4534_v14, %v4506_v31  ;;  %v4508_v31 = vld [vmem:[%s6795_s6 + $0x89] sm:$0xff]  ;;  %v9438_v14 = vld [vmem:[#allocation2 + $0xf8] sm:$0xff] }
 0x5a4   : > { %v4437_v17 = vpop.f32.mrf.mxu2  ;;  %v9410_v59 = vpop.f32.mrf.mxu3  ;;  %5246 = vmatpush.msra.mxu0 %v4731_v4  ;;  %v9460_v4 = vld [vmem:[#allocation2 + $0x121] sm:$0xff] }
 0x5a5   : > { %v4582_v44 = vmax.f32 %v4558_v2, 0.0  ;;  %v4438_v61 = vadd.f32 %v4437_v17, %v4349_v38  ;;  %v4262_v49 = vpop.f32.mrf.mxu0  ;;  %v4351_v36 = vpop.f32.mrf.mxu1 }
 0x5a6   : > { %v4352_v41 = vadd.f32 %v4351_v36, %v4262_v49  ;;  %v9444_v36 = vld [vmem:[#allocation2 + $0x119] sm:$0xff] }
 0x5a7   : > { %4606 = vst [vmem:[%s9263_s30 + $0x60] sm:$0xff] %v4582_v44  ;;  %v4483_v28 = vadd.f32 %v4438_v61, %v9181_v24 }
 0x5a8   : > { %4918 = vmatmul.f32.gmra.mxu0 %v9412_v10  ;;  %5007 = vmatmul.f32.gmra.mxu1 %v9416_v43 }
 0x5a9   : > { %v4535_v16 = vadd.f32 %v9251_v34, %v4483_v28  ;;  %5096 = vmatmul.f32.gmra.mxu2 %v9422_v42  ;;  %5185 = vmatmul.f32.gmra.mxu3 %v9373_v6 }
 0x5ab   : > { %v4559_v24 = vadd.f32 %v4535_v16, %v4507_v30  ;;  %v5441_v30 = vld [vmem:[#allocation4 + $0x440] sm:$0xff] }
 0x5ac   : > { %v4440_v20 = vpop.f32.mrf.mxu2  ;;  %v9426_v45 = vpop.f32.mrf.mxu3  ;;  %v5409_v16 = vld [vmem:[#allocation4 + $0x340] sm:$0xff]  ;;  %5634 = vmatpush.msra.mxu3 %v5441_v30 }
 0x5ad   : > { %v4583_v52 = vmax.f32 %v4559_v24, 0.0  ;;  %v4441_v23 = vadd.f32 %v4440_v20, %v4352_v41  ;;  %v4265_v3 = vpop.f32.mrf.mxu0  ;;  %v4354_v12 = vpop.f32.mrf.mxu1  ;;  %v9454_v41 = vld [vmem:[#allocation2 + $0x100] sm:$0xff]  ;;  %5456 = vmatpush.msra.mxu1 %v5409_v16 }
 0x5ae   : > { %v4355_v0 = vadd.f32 %v4354_v12, %v4265_v3 }
 0x5af   : > { %4607 = vst [vmem:[%s9263_s30 + $0x68] sm:$0xff] %v4583_v52  ;;  %v4484_v7 = vadd.f32 %v4441_v23, %v9187_v60 }
 0x5b0   : > { %4921 = vmatmul.f32.gmra.mxu0 %v9428_v51  ;;  %5010 = vmatmul.f32.gmra.mxu1 %v9432_v33 }
 0x5b1   : > { %v4536_v40 = vadd.f32 %v9251_v34, %v4484_v7  ;;  %5099 = vmatmul.f32.gmra.mxu2 %v9438_v14  ;;  %5188 = vmatmul.f32.gmra.mxu3 %v9386_v55 }
 0x5b3   : > { %v4560_v60 = vadd.f32 %v4536_v40, %v4508_v31  ;;  %v9464_v40 = vld [vmem:[#allocation2 + $0x122] sm:$0xff] }
 0x5b4   : > { %v4443_v2 = vpop.f32.mrf.mxu2  ;;  %v9442_v38 = vpop.f32.mrf.mxu3 }
 0x5b5   : > { %v4584_v17 = vmax.f32 %v4560_v60, 0.0  ;;  %v4444_v44 = vadd.f32 %v4443_v2, %v4355_v0  ;;  %v4268_v61 = vpop.f32.mrf.mxu0  ;;  %v4357_v49 = vpop.f32.mrf.mxu1  ;;  %v4730_v60 = vld [vmem:[#allocation4 + $0x140] sm:$0xff]  ;;  %v5424_v0 = vld [vmem:[#allocation4 + $0x3b8] sm:$0xff] }
 0x5b6   : > { %v4358_v20 = vadd.f32 %v4357_v49, %v4268_v61  ;;  %v4510_v2 = vld [vmem:[%s6795_s6 + $0x99] sm:$0xff]  ;;  %v9470_v61 = vld [vmem:[#allocation2 + $0x108] sm:$0xff]  ;;  %5247 = vmatpush.msra.mxu0 %v4730_v60  ;;  %5546 = vmatpush.msra.mxu2 %v5424_v0 }
 0x5b7   : > { %4608 = vst [vmem:[%s9263_s30 + $0x70] sm:$0xff] %v4584_v17  ;;  %v4485_v28 = vadd.f32 %v4444_v44, %v9193_v19  ;;  %v5440_v17 = vld [vmem:[#allocation4 + $0x438] sm:$0xff] }
 0x5b8   : > { %4924 = vmatmul.f32.gmra.mxu0 %v9444_v36  ;;  %5013 = vmatmul.f32.gmra.mxu1 %v9448_v63 }
 0x5b9   : > { %v4537_v24 = vadd.f32 %v9251_v34, %v4485_v28  ;;  %5102 = vmatmul.f32.gmra.mxu2 %v9454_v41  ;;  %5191 = vmatmul.f32.gmra.mxu3 %v9399_v54 }
 0x5ba   : > { %5635 = vmatpush.msra.mxu3 %v5440_v17 }
 0x5bb   : > { %v4561_v19 = vadd.f32 %v4537_v24, %v4509_v27 }
 0x5bc   : > { %v4446_v52 = vpop.f32.mrf.mxu2  ;;  %v9458_v23 = vpop.f32.mrf.mxu3 }
 0x5bd   : > { %10217 = vst [vmem:[#allocation28_spill] sm:$0xff] %v9458_v23  ;;  %v4585_v3 = vmax.f32 %v4561_v19, 0.0  ;;  %v4447_v12 = vadd.f32 %v4446_v52, %v4358_v20  ;;  %v4271_v7 = vpop.f32.mrf.mxu0  ;;  %v4360_v50 = vpop.f32.mrf.mxu1  ;;  %v9476_v19 = vld [vmem:[#allocation2 + $0x129] sm:$0xff]  ;;  %v4513_v23 = vld [vmem:[%s6795_s6 + $0xb1] sm:$0xff] }
 0x5be   : > { %v4361_v49 = vadd.f32 %v4360_v50, %v4271_v7  ;;  %10219 = vst [vmem:[#allocation16_spill] sm:$0xff] %v9476_v19  ;;  %v9480_v52 = vld [vmem:[#allocation2 + $0x12a] sm:$0xff] }
 0x5bf   : > { %4609 = vst [vmem:[%s9263_s30 + $0x78] sm:$0xff] %v4585_v3  ;;  %v4486_v31 = vadd.f32 %v4447_v12, %v9199_v39  ;;  %v5408_v3 = vld [vmem:[#allocation4 + $0x338] sm:$0xff] }
 0x5c0   : > { %4927 = vmatmul.f32.gmra.mxu0 %v9460_v4  ;;  %5016 = vmatmul.f32.gmra.mxu1 %v9464_v40  ;;  %10220 = vst [vmem:[#allocation32_spill] sm:$0xff] %v9480_v52  ;;  %v4729_v12 = vld [vmem:[#allocation4 + $0x138] sm:$0xff] }
 0x5c1   : > { %v4538_v44 = vadd.f32 %v9251_v34, %v4486_v31  ;;  %5105 = vmatmul.f32.gmra.mxu2 %v9470_v61  ;;  %5194 = vmatmul.f32.gmra.mxu3 %v9412_v10  ;;  %v4511_v31 = vld [vmem:[%s6795_s6 + $0xa1] sm:$0xff]  ;;  %v9486_v50 = vld [vmem:[#allocation2 + $0x110] sm:$0xff] }
 0x5c2   : > { %5457 = vmatpush.msra.mxu1 %v5408_v3  ;;  %5248 = vmatpush.msra.mxu0 %v4729_v12  ;;  %v5439_v3 = vld [vmem:[#allocation4 + $0x430] sm:$0xff]  ;;  %v9502_v12 = vld [vmem:[#allocation2 + $0x118] sm:$0xff] }
 0x5c3   : > { %v4562_v39 = vadd.f32 %v4538_v44, %v4510_v2  ;;  %5636 = vmatpush.msra.mxu3 %v5439_v3  ;;  %v5422_v3 = vld [vmem:[#allocation4 + $0x3a8] sm:$0xff] }
 0x5c4   : > { %v4449_v28 = vpop.f32.mrf.mxu2  ;;  %v9474_v21 = vpop.f32.mrf.mxu3 }
 0x5c5   : > { %10218 = vst [vmem:[#allocation36_spill] sm:$0xff] %v9474_v21  ;;  %v4586_v30 = vmax.f32 %v4562_v39, 0.0  ;;  %v4450_v27 = vadd.f32 %v4449_v28, %v4361_v49  ;;  %v4274_v16 = vpop.f32.mrf.mxu0  ;;  %v4363_v24 = vpop.f32.mrf.mxu1  ;;  %v9492_v28 = vld [vmem:[#allocation2 + $0x131] sm:$0xff]  ;;  %v4512_v21 = vld [vmem:[%s6795_s6 + $0xa9] sm:$0xff] }
 0x5c6   : > { %v4364_v60 = vadd.f32 %v4363_v24, %v4274_v16  ;;  %v5407_v16 = vld [vmem:[#allocation4 + $0x330] sm:$0xff] }
 0x5c7   : > { %4610 = vst [vmem:[%s9263_s30 + $0x80] sm:$0xff] %v4586_v30  ;;  %v4487_v20 = vadd.f32 %v4450_v27, %v9205_v11  ;;  %v9496_v27 = vld [vmem:[#allocation2 + $0x132] sm:$0xff]  ;;  %5458 = vmatpush.msra.mxu1 %v5407_v16 }
 0x5c8   : > { %4930 = vmatmul.f32.gmra.mxu0 %v9476_v19  ;;  %5019 = vmatmul.f32.gmra.mxu1 %v9480_v52  ;;  %10222 = vst [vmem:[#allocation30_spill] sm:$0xff] %v9496_v27  ;;  %v4514_v52 = vld [vmem:[%s6795_s6 + $0xb9] sm:$0xff] }
 0x5c9   : > { %v4539_v7 = vadd.f32 %v9251_v34, %v4487_v20  ;;  %5108 = vmatmul.f32.gmra.mxu2 %v9486_v50  ;;  %5197 = vmatmul.f32.gmra.mxu3 %v9428_v51  ;;  %v5423_v20 = vld [vmem:[#allocation4 + $0x3b0] sm:$0xff] }
 0x5ca   : > { %5547 = vmatpush.msra.mxu2 %v5423_v20  ;;  %v4728_v20 = vld [vmem:[#allocation4 + $0x130] sm:$0xff] }
 0x5cb   : > { %v4563_v11 = vadd.f32 %v4539_v7, %v4511_v31  ;;  %5249 = vmatpush.msra.mxu0 %v4728_v20  ;;  %v5406_v20 = vld [vmem:[#allocation4 + $0x328] sm:$0xff] }
 0x5cc   : > { %v4452_v0 = vpop.f32.mrf.mxu2  ;;  %v9490_v2 = vpop.f32.mrf.mxu3  ;;  %5548 = vmatpush.msra.mxu2 %v5422_v3  ;;  %v4727_v3 = vld [vmem:[#allocation4 + $0x128] sm:$0xff]  ;;  %5459 = vmatpush.msra.mxu1 %v5406_v20  ;;  %v9544_v20 = vld [vmem:[#allocation2 + $0x14a] sm:$0xff] }
 0x5cd   : > { %10221 = vst [vmem:[#allocation31_spill] sm:$0xff] %v9490_v2  ;;  %v4587_v17 = vmax.f32 %v4563_v11, 0.0  ;;  %v4453_v44 = vadd.f32 %v4452_v0, %v4364_v60  ;;  %v4277_v39 = vpop.f32.mrf.mxu0  ;;  %v4366_v49 = vpop.f32.mrf.mxu1  ;;  %5250 = vmatpush.msra.mxu0 %v4727_v3  ;;  %v4515_v3 = vld [vmem:[%s6795_s6 + $0xc1] sm:$0xff] }
 0x5ce   : > { %v4367_v31 = vadd.f32 %v4366_v49, %v4277_v39  ;;  %v9518_v49 = vld [vmem:[#allocation2 + $0x120] sm:$0xff]  ;;  %10229 = vst [vmem:[#allocation27_spill] sm:$0xff] %v9544_v20 }
 0x5cf   : > { %4611 = vst [vmem:[%s9263_s30 + $0x88] sm:$0xff] %v4587_v17  ;;  %v4488_v30 = vadd.f32 %v4453_v44, %v9211_v25 }
 0x5d0   : > { %4933 = vmatmul.f32.gmra.mxu0 %v9492_v28  ;;  %5022 = vmatmul.f32.gmra.mxu1 %v9496_v27  ;;  %v9512_v27 = vld [vmem:[#allocation2 + $0x13a] sm:$0xff] }
 0x5d1   : > { %v4540_v24 = vadd.f32 %v9251_v34, %v4488_v30  ;;  %5111 = vmatmul.f32.gmra.mxu2 %v9502_v12  ;;  %5200 = vmatmul.f32.gmra.mxu3 %v9444_v36  ;;  %v9508_v30 = vld [vmem:[#allocation2 + $0x139] sm:$0xff]  ;;  %10225 = vst [vmem:[#allocation35_spill] sm:$0xff] %v9512_v27 }
 0x5d2   : > { %10224 = vst [vmem:[#allocation33_spill] sm:$0xff] %v9508_v30 }
 0x5d3   : > { %v4564_v25 = vadd.f32 %v4540_v24, %v4512_v21  ;;  %v5438_v21 = vld [vmem:[#allocation4 + $0x428] sm:$0xff] }
 0x5d4   : > { %v4455_v7 = vpop.f32.mrf.mxu2  ;;  %v9506_v11 = vpop.f32.mrf.mxu3  ;;  %5637 = vmatpush.msra.mxu3 %v5438_v21  ;;  %v9534_v21 = vld [vmem:[#allocation2 + $0x128] sm:$0xff] }
 0x5d5   : > { %10223 = vst [vmem:[#allocation34_spill] sm:$0xff] %v9506_v11  ;;  %v4588_v60 = vmax.f32 %v4564_v25, 0.0  ;;  %v4456_v0 = vadd.f32 %v4455_v7, %v4367_v31  ;;  %v4280_v17 = vpop.f32.mrf.mxu0  ;;  %v4369_v44 = vpop.f32.mrf.mxu1 }
 0x5d6   : > { %v4370_v16 = vadd.f32 %v4369_v44, %v4280_v17  ;;  %v5437_v17 = vld [vmem:[#allocation4 + $0x420] sm:$0xff] }
 0x5d7   : > { %4612 = vst [vmem:[%s9263_s30 + $0x90] sm:$0xff] %v4588_v60  ;;  %v4489_v2 = vadd.f32 %v4456_v0, %v9217_v9  ;;  %v9524_v0 = vld [vmem:[#allocation2 + $0x141] sm:$0xff]  ;;  %5638 = vmatpush.msra.mxu3 %v5437_v17 }
 0x5d8   : > { %4936 = vmatmul.f32.gmra.mxu0 %v9508_v30  ;;  %5025 = vmatmul.f32.gmra.mxu1 %v9512_v27  ;;  %v9528_v27 = vld [vmem:[#allocation2 + $0x142] sm:$0xff] }
 0x5d9   : > { %v4541_v39 = vadd.f32 %v9251_v34, %v4489_v2  ;;  %5114 = vmatmul.f32.gmra.mxu2 %v9518_v49  ;;  %5203 = vmatmul.f32.gmra.mxu3 %v9460_v4  ;;  %10227 = vst [vmem:[#allocation22_spill] sm:$0xff] %v9528_v27 }
 0x5db   : > { %v4565_v9 = vadd.f32 %v4541_v39, %v4513_v23  ;;  %v5421_v23 = vld [vmem:[#allocation4 + $0x3a0] sm:$0xff] }
 0x5dc   : > { %v4458_v24 = vpop.f32.mrf.mxu2  ;;  %v9522_v25 = vpop.f32.mrf.mxu3  ;;  %5549 = vmatpush.msra.mxu2 %v5421_v23  ;;  %v5436_v23 = vld [vmem:[#allocation4 + $0x418] sm:$0xff] }
 0x5dd   : > { %10226 = vst [vmem:[#allocation12_spill] sm:$0xff] %v9522_v25  ;;  %v4589_v31 = vmax.f32 %v4565_v9, 0.0  ;;  %v4459_v7 = vadd.f32 %v4458_v24, %v4370_v16  ;;  %v4283_v60 = vpop.f32.mrf.mxu0  ;;  %v4372_v2 = vpop.f32.mrf.mxu1  ;;  %5639 = vmatpush.msra.mxu3 %v5436_v23 }
 0x5de   : > { %v4373_v9 = vadd.f32 %v4372_v2, %v4283_v60  ;;  %v9550_v2 = vld [vmem:[#allocation2 + $0x130] sm:$0xff] }
 0x5df   : > { %4613 = vst [vmem:[%s9263_s30 + $0x98] sm:$0xff] %v4589_v31  ;;  %v4490_v11 = vadd.f32 %v4459_v7, %v9223_v56  ;;  %v5405_v56 = vld [vmem:[#allocation4 + $0x320] sm:$0xff] }
 0x5e0   : > { %4939 = vmatmul.f32.gmra.mxu0 %v9524_v0  ;;  %5028 = vmatmul.f32.gmra.mxu1 %v9528_v27 }
 0x5e1   : > { %v4542_v44 = vadd.f32 %v9251_v34, %v4490_v11  ;;  %5117 = vmatmul.f32.gmra.mxu2 %v9534_v21  ;;  %5206 = vmatmul.f32.gmra.mxu3 %v9476_v19  ;;  %v9542_v19 = vld [vmem:[#allocation2 + $0x149] sm:$0xff] }
 0x5e2   : > { %5460 = vmatpush.msra.mxu1 %v5405_v56 }
 0x5e3   : > { %v4566_v39 = vadd.f32 %v4542_v44, %v4514_v52  ;;  %v4726_v52 = vld [vmem:[#allocation4 + $0x120] sm:$0xff] }
 0x5e4   : > { %v4461_v16 = vpop.f32.mrf.mxu2  ;;  %v9538_v24 = vpop.f32.mrf.mxu3  ;;  %5251 = vmatpush.msra.mxu0 %v4726_v52 }
 0x5e5   : > { %10228 = vst [vmem:[#allocation14_spill] sm:$0xff] %v9538_v24  ;;  %v4590_v11 = vmax.f32 %v4566_v39, 0.0  ;;  %v4462_v31 = vadd.f32 %v4461_v16, %v4373_v9  ;;  %v4286_v7 = vpop.f32.mrf.mxu0  ;;  %v4375_v25 = vpop.f32.mrf.mxu1  ;;  %v9560_v24 = vld [vmem:[#allocation2 + $0x152] sm:$0xff] }
 0x5e6   : > { %v4376_v44 = vadd.f32 %v4375_v25, %v4286_v7  ;;  %10231 = vst [vmem:[#allocation10_spill] sm:$0xff] %v9560_v24  ;;  %v5404_v25 = vld [vmem:[#allocation4 + $0x318] sm:$0xff]  ;;  %v6384_v7 = vld [vmem:[%s9946_s4] ss:$0 sm:$0xff] }
 0x5e7   : > { %4614 = vst [vmem:[%s9263_s30 + $0xa0] sm:$0xff] %v4590_v11  ;;  %v4491_v27 = vadd.f32 %v4462_v31, %v9229_v18  ;;  %v5420_v18 = vld [vmem:[#allocation4 + $0x398] sm:$0xff]  ;;  %5461 = vmatpush.msra.mxu1 %v5404_v25  ;;  %v5419_v25 = vld [vmem:[#allocation4 + $0x390] sm:$0xff] }
 0x5e8   : > { %4942 = vmatmul.f32.gmra.mxu0 %v9542_v19  ;;  %5031 = vmatmul.f32.gmra.mxu1 %v9544_v20  ;;  %v9558_v31 = vld [vmem:[#allocation2 + $0x151] sm:$0xff]  ;;  %v4516_v20 = vld [vmem:[%s6795_s6 + $0xc9] sm:$0xff] }
 0x5e9   : > { %v4543_v60 = vadd.f32 %v9251_v34, %v4491_v27  ;;  %5120 = vmatmul.f32.gmra.mxu2 %v9550_v2  ;;  %5209 = vmatmul.f32.gmra.mxu3 %v9492_v28 }
 0x5ea   : > { %5550 = vmatpush.msra.mxu2 %v5420_v18 }
 0x5eb   : > { %v4567_v17 = vadd.f32 %v4543_v60, %v4515_v3  ;;  %v9568_v3 = vld [vmem:[#allocation2 + $0x138] sm:$0xff] }
 0x5ec   : > { %v4464_v56 = vpop.f32.mrf.mxu2  ;;  %v9554_v39 = vpop.f32.mrf.mxu3  ;;  %5551 = vmatpush.msra.mxu2 %v5419_v25  ;;  %v4724_v25 = vld [vmem:[#allocation4 + $0x110] sm:$0xff] }
 0x5ed   : > { %10230 = vst [vmem:[#allocation19_spill] sm:$0xff] %v9554_v39  ;;  %v4591_v9 = vmax.f32 %v4567_v17, 0.0  ;;  %v4465_v34 = vadd.f32 %v4464_v56, %v4376_v44  ;;  %v4289_v27 = vpop.f32.mrf.mxu0  ;;  %v4378_v16 = vpop.f32.mrf.mxu1 }
 0x5ee   : > { %v4379_v18 = vadd.f32 %v4378_v16, %v4289_v27  ;;  %v9584_v16 = vld [vmem:[#allocation2 + $0x140] sm:$0xff] }
 0x5ef   : > { %4615 = vst [vmem:[%s9263_s30 + $0xa8] sm:$0xff] %v4591_v9  ;;  %v4492_v11 = vadd.f32 %v4465_v34, %v9235_v47  ;;  %v4725_v47 = vld [vmem:[#allocation4 + $0x118] sm:$0xff] }
 0x5f0   : > { %4945 = vmatmul.f32.gmra.mxu0 %v9558_v31  ;;  %5034 = vmatmul.f32.gmra.mxu1 %v9560_v24  ;;  %v9577_v24 = vld [vmem:[#allocation2 + $0x159] sm:$0xff] }
 0x5f1   : > { %v4544_v52 = vadd.f32 %v6384_v7, %v4492_v11  ;;  %5123 = vmatmul.f32.gmra.mxu2 %v9568_v3  ;;  %5212 = vmatmul.f32.gmra.mxu3 %v9508_v30  ;;  %v9579_v30 = vld [vmem:[#allocation2 + $0x15a] sm:$0xff] }
 0x5f2   : > { %5252 = vmatpush.msra.mxu0 %v4725_v47  ;;  %10233 = vst [vmem:[#allocation17_spill] sm:$0xff] %v9579_v30  ;;  %v4517_v47 = vld [vmem:[%s6795_s6 + $0xd1] sm:$0xff] }
 0x5f3   : > { %v4568_v60 = vadd.f32 %v4544_v52, %v4516_v20  ;;  %v5435_v20 = vld [vmem:[#allocation4 + $0x410] sm:$0xff] }
 0x5f4   : > { %v4467_v23 = vpop.f32.mrf.mxu2  ;;  %v9572_v17 = vpop.f32.mrf.mxu3  ;;  %5640 = vmatpush.msra.mxu3 %v5435_v20  ;;  %5253 = vmatpush.msra.mxu0 %v4724_v25 }
 0x5f5   : > { %10232 = vst [vmem:[#allocation20_spill] sm:$0xff] %v9572_v17  ;;  %v4592_v44 = vmax.f32 %v4568_v60, 0.0  ;;  %v4468_v56 = vadd.f32 %v4467_v23, %v4379_v18  ;;  %v4901_v9 = vpop.f32.mrf.mxu0  ;;  %v4990_v34 = vpop.f32.mrf.mxu1  ;;  %v9592_v17 = vld [vmem:[#allocation2 + $0x161] sm:$0xff] }
 0x5f6   : > { %v4902_v39 = vadd.f32 %v4901_v9, %v9245_v58 }
 0x5f7   : > { %4616 = vst [vmem:[%s9263_s30 + $0xb0] sm:$0xff] %v4592_v44  ;;  %v4493_v11 = vadd.f32 %v4468_v56, %v9240_v62  ;;  %v5403_v62 = vld [vmem:[#allocation4 + $0x310] sm:$0xff] }
 0x5f8   : > { %4948 = vmatmul.f32.gmra.mxu0 %v9577_v24  ;;  %5037 = vmatmul.f32.gmra.mxu1 %v9579_v30  ;;  %v4991_v52 = vadd.f32 %v4990_v34, %v4902_v39  ;;  %v9594_v30 = vld [vmem:[#allocation2 + $0x162] sm:$0xff] }
 0x5f9   : > { %v4545_v27 = vadd.f32 %v6384_v7, %v4493_v11  ;;  %5126 = vmatmul.f32.gmra.mxu2 %v9584_v16  ;;  %5215 = vmatmul.f32.gmra.mxu3 %v9524_v0  ;;  %10235 = vst [vmem:[#allocation37_spill] sm:$0xff] %v9594_v30  ;;  %v9598_v39 = vld [vmem:[#allocation2 + $0x148] sm:$0xff]  ;;  %v5418_v34 = vld [vmem:[#allocation4 + $0x388] sm:$0xff] }
 0x5fa   : > { %5462 = vmatpush.msra.mxu1 %v5403_v62  ;;  %5552 = vmatpush.msra.mxu2 %v5418_v34 }
 0x5fb   : > { %v4569_v58 = vadd.f32 %v4545_v27, %v4517_v47  ;;  %v5434_v47 = vld [vmem:[#allocation4 + $0x408] sm:$0xff] }
 0x5fc   : > { %v5079_v60 = vpop.f32.mrf.mxu2  ;;  %v5168_v18 = vpop.f32.mrf.mxu3  ;;  %5641 = vmatpush.msra.mxu3 %v5434_v47 }
 0x5fd   : > { %v4593_v23 = vmax.f32 %v4569_v58, 0.0  ;;  %v5080_v44 = vadd.f32 %v5079_v60, %v4991_v52  ;;  %v4904_v56 = vpop.f32.mrf.mxu0  ;;  %v4993_v9 = vpop.f32.mrf.mxu1 }
 0x5fe   : > { %v4905_v11 = vadd.f32 %v4904_v56, %v9261_v22  ;;  %v5402_v56 = vld [vmem:[#allocation4 + $0x308] sm:$0xff] }
 0x5ff   : > { %4617 = vst [vmem:[%s9263_s30 + $0xb8] sm:$0xff] %v4593_v23  ;;  %v9589_v7 = vadd.f32 %v5168_v18, %v5080_v44  ;;  %v9605_v23 = vld [vmem:[#allocation2 + $0x169] sm:$0xff]  ;;  %5463 = vmatpush.msra.mxu1 %v5402_v56  ;;  %v5433_v56 = vld [vmem:[#allocation4 + $0x400] sm:$0xff] }
 0x600   : > { %4951 = vmatmul.f32.gmra.mxu0 %v9592_v17  ;;  %5040 = vmatmul.f32.gmra.mxu1 %v9594_v30  ;;  %v4994_v22 = vadd.f32 %v4993_v9, %v4905_v11  ;;  %v9607_v44 = vld [vmem:[#allocation2 + $0x16a] sm:$0xff]  ;;  %v4723_v11 = vld [vmem:[#allocation4 + $0x108] sm:$0xff]  ;;  %v4722_v30 = vld [vmem:[#allocation4 + $0x100] sm:$0xff] }
 0x601   : > { %10234 = vst [vmem:[#allocation24_spill] sm:$0xff] %v9589_v7  ;;  %5129 = vmatmul.f32.gmra.mxu2 %v9598_v39  ;;  %5218 = vmatmul.f32.gmra.mxu3 %v9542_v19  ;;  %v9611_v9 = vld [vmem:[#allocation2 + $0x150] sm:$0xff]  ;;  %v5417_v7 = vld [vmem:[#allocation4 + $0x380] sm:$0xff] }
 0x602   : > { %10237 = vst [vmem:[#allocation11_spill] sm:$0xff] %v9607_v44  ;;  %5254 = vmatpush.msra.mxu0 %v4723_v11  ;;  %5553 = vmatpush.msra.mxu2 %v5417_v7  ;;  %v9637_v7 = vld [vmem:[#allocation2 + $0x160] sm:$0xff] }
 0x603   : > { %5642 = vmatpush.msra.mxu3 %v5433_v56 }
 0x604   : > { %v5082_v20 = vpop.f32.mrf.mxu2  ;;  %v5171_v27 = vpop.f32.mrf.mxu3  ;;  %5255 = vmatpush.msra.mxu0 %v4722_v30 }
 0x605   : > { %v5083_v62 = vadd.f32 %v5082_v20, %v4994_v22  ;;  %v4907_v58 = vpop.f32.mrf.mxu0  ;;  %v4996_v52 = vpop.f32.mrf.mxu1 }
 0x606   : > { %v4908_v18 = vadd.f32 %v4907_v58, %v9276_v46  ;;  %v9618_v58 = vld [vmem:[#allocation2 + $0x171] sm:$0xff] }
 0x607   : > { %v9602_v60 = vadd.f32 %v5171_v27, %v5083_v62 }
 0x608   : > { %4954 = vmatmul.f32.gmra.mxu0 %v9605_v23  ;;  %5043 = vmatmul.f32.gmra.mxu1 %v9607_v44  ;;  %v4997_v25 = vadd.f32 %v4996_v52, %v4908_v18  ;;  %v9624_v52 = vld [vmem:[#allocation2 + $0x158] sm:$0xff] }
 0x609   : > { %10236 = vst [vmem:[#allocation18_spill] sm:$0xff] %v9602_v60  ;;  %5132 = vmatmul.f32.gmra.mxu2 %v9611_v9  ;;  %5221 = vmatmul.f32.gmra.mxu3 %v9558_v31  ;;  %v9620_v60 = vld [vmem:[#allocation2 + $0x172] sm:$0xff]  ;;  %v9633_v44 = vld [vmem:[#allocation2 + $0x17a] sm:$0xff] }
 0x60a   : > { %10239 = vst [vmem:[#allocation15_spill] sm:$0xff] %v9620_v60  ;;  %v5401_v18 = vld [vmem:[#allocation4 + $0x300] sm:$0xff] }
 0x60b   : > { %5464 = vmatpush.msra.mxu1 %v5401_v18 }
 0x60c   : > { %v5085_v46 = vpop.f32.mrf.mxu2  ;;  %v5174_v34 = vpop.f32.mrf.mxu3 }
 0x60d   : > { %v5086_v47 = vadd.f32 %v5085_v46, %v4997_v25  ;;  %v4910_v22 = vpop.f32.mrf.mxu0  ;;  %v4999_v20 = vpop.f32.mrf.mxu1 }
 0x60e   : > { %v4911_v62 = vadd.f32 %v4910_v22, %v9289_v5 }
 0x60f   : > { %v9615_v27 = vadd.f32 %v5174_v34, %v5086_v47 }
 0x610   : > { %4957 = vmatmul.f32.gmra.mxu0 %v9618_v58  ;;  %5046 = vmatmul.f32.gmra.mxu1 %v9620_v60  ;;  %v5000_v5 = vadd.f32 %v4999_v20, %v4911_v62  ;;  %v9631_v60 = vld [vmem:[#allocation2 + $0x179] sm:$0xff] }
 0x611   : > { %10238 = vst [vmem:[#allocation25_spill] sm:$0xff] %v9615_v27  ;;  %5135 = vmatmul.f32.gmra.mxu2 %v9624_v52  ;;  %5224 = vmatmul.f32.gmra.mxu3 %v9577_v24 }
 0x614   : > { %v5088_v11 = vpop.f32.mrf.mxu2  ;;  %v5177_v25 = vpop.f32.mrf.mxu3 }
 0x615   : > { %v5089_v46 = vadd.f32 %v5088_v11, %v5000_v5  ;;  %v4913_v34 = vpop.f32.mrf.mxu0  ;;  %v5002_v47 = vpop.f32.mrf.mxu1 }
 0x616   : > { %v4914_v27 = vadd.f32 %v4913_v34, %v9302_v8  ;;  %v9646_v34 = vld [vmem:[#allocation2 + $0x182] sm:$0xff] }
 0x617   : > { %v9628_v22 = vadd.f32 %v5177_v25, %v5089_v46  ;;  %v9644_v46 = vld [vmem:[#allocation2 + $0x181] sm:$0xff]  ;;  %10243 = vst [vmem:[#allocation39_spill] sm:$0xff] %v9646_v34 }
 0x618   : > { %4960 = vmatmul.f32.gmra.mxu0 %v9631_v60  ;;  %5049 = vmatmul.f32.gmra.mxu1 %v9633_v44  ;;  %v5003_v20 = vadd.f32 %v5002_v47, %v4914_v27  ;;  %10242 = vst [vmem:[#allocation13_spill] sm:$0xff] %v9644_v46 }
 0x619   : > { %10240 = vst [vmem:[#allocation23_spill] sm:$0xff] %v9628_v22  ;;  %5138 = vmatmul.f32.gmra.mxu2 %v9637_v7  ;;  %5227 = vmatmul.f32.gmra.mxu3 %v9592_v17  ;;  %v9650_v22 = vld [vmem:[#allocation2 + $0x168] sm:$0xff] }
 0x61c   : > { %v5091_v62 = vpop.f32.mrf.mxu2  ;;  %v5180_v56 = vpop.f32.mrf.mxu3 }
 0x61d   : > { %v5092_v8 = vadd.f32 %v5091_v62, %v5003_v20  ;;  %v4916_v18 = vpop.f32.mrf.mxu0  ;;  %v5005_v5 = vpop.f32.mrf.mxu1 }
 0x61e   : > { %v4917_v25 = vadd.f32 %v4916_v18, %v9315_v29  ;;  %v9657_v18 = vld [vmem:[#allocation2 + $0x189] sm:$0xff] }
 0x61f   : > { %v9641_v11 = vadd.f32 %v5180_v56, %v5092_v8  ;;  %10245 = vst [vmem:[#allocation29_spill] sm:$0xff] %v9657_v18 }
 0x620   : > { %4963 = vmatmul.f32.gmra.mxu0 %v9644_v46  ;;  %5052 = vmatmul.f32.gmra.mxu1 %v9646_v34  ;;  %v5006_v30 = vadd.f32 %v5005_v5, %v4917_v25  ;;  %v9663_v34 = vld [vmem:[#allocation2 + $0x170] sm:$0xff] }
 0x621   : > { %10241 = vst [vmem:[#allocation26_spill] sm:$0xff] %v9641_v11  ;;  %5141 = vmatmul.f32.gmra.mxu2 %v9650_v22  ;;  %5230 = vmatmul.f32.gmra.mxu3 %v9605_v23  ;;  %v9659_v11 = vld [vmem:[#allocation2 + $0x18a] sm:$0xff] }
 0x622   : > { %10246 = vst [vmem:[#allocation38_spill] sm:$0xff] %v9659_v11 }
 0x624   : > { %v5094_v27 = vpop.f32.mrf.mxu2  ;;  %v5183_v47 = vpop.f32.mrf.mxu3 }
 0x625   : > { %v5095_v20 = vadd.f32 %v5094_v27, %v5006_v30  ;;  %v4919_v62 = vpop.f32.mrf.mxu0  ;;  %v5008_v29 = vpop.f32.mrf.mxu1 }
 0x626   : > { %v4920_v8 = vadd.f32 %v4919_v62, %v9328_v35 }
 0x627   : > { %v9654_v56 = vadd.f32 %v5183_v47, %v5095_v20 }
 0x628   : > { %4966 = vmatmul.f32.gmra.mxu0 %v9657_v18  ;;  %5055 = vmatmul.f32.gmra.mxu1 %v9659_v11  ;;  %v5009_v5 = vadd.f32 %v5008_v29, %v4920_v8  ;;  %v9672_v18 = vld [vmem:[#allocation2 + $0x192] sm:$0xff] }
 0x629   : > { %10244 = vst [vmem:[#allocation21_spill] sm:$0xff] %v9654_v56  ;;  %5144 = vmatmul.f32.gmra.mxu2 %v9663_v34  ;;  %5233 = vmatmul.f32.gmra.mxu3 %v9618_v58  ;;  %v9670_v56 = vld [vmem:[#allocation2 + $0x191] sm:$0xff] }
 0x62a   : > { %10248 = vst [vmem:[#allocation41_spill] sm:$0xff] %v9670_v56  ;;  %v9676_v11 = vld [vmem:[#allocation2 + $0x178] sm:$0xff] }
 0x62b   : > { %10249 = vst [vmem:[#allocation42_spill] sm:$0xff] %v9672_v18 }
 0x62c   : > { %v5097_v25 = vpop.f32.mrf.mxu2  ;;  %v5186_v30 = vpop.f32.mrf.mxu3 }
 0x62d   : > { %v5098_v27 = vadd.f32 %v5097_v25, %v5009_v5  ;;  %v4922_v47 = vpop.f32.mrf.mxu0  ;;  %v5011_v35 = vpop.f32.mrf.mxu1 }
 0x62e   : > { %v4923_v62 = vadd.f32 %v4922_v47, %v9341_v13 }
 0x62f   : > { %v9667_v20 = vadd.f32 %v5186_v30, %v5098_v27 }
 0x630   : > { %4969 = vmatmul.f32.gmra.mxu0 %v9670_v56  ;;  %5058 = vmatmul.f32.gmra.mxu1 %v9672_v18  ;;  %v5012_v29 = vadd.f32 %v5011_v35, %v4923_v62 }
 0x631   : > { %10247 = vst [vmem:[#allocation40_spill] sm:$0xff] %v9667_v20  ;;  %5147 = vmatmul.f32.gmra.mxu2 %v9676_v11  ;;  %5236 = vmatmul.f32.gmra.mxu3 %v9631_v60  ;;  %v6394_v20 = vld [vmem:[#allocation2 + $0xc2] sm:$0xff] }
 0x634   : > { %v5100_v8 = vpop.f32.mrf.mxu2  ;;  %v5189_v5 = vpop.f32.mrf.mxu3 }
 0x635   : > { %v5101_v25 = vadd.f32 %v5100_v8, %v5012_v29  ;;  %v4925_v30 = vpop.f32.mrf.mxu0  ;;  %v5014_v13 = vpop.f32.mrf.mxu1 }
 0x636   : > { %v4926_v47 = vadd.f32 %v4925_v30, %v9351_v48 }
 0x637   : > { %v9680_v27 = vadd.f32 %v5189_v5, %v5101_v25  ;;  %v6395_v25 = vld [vmem:[#allocation2 + $0xca] sm:$0xff] }
 0x638   : > { %5256 = vmatmul.f32.vlgmr.msra.gmra.mxu0 %v6394_v20  ;;  %5465 = vmatmul.f32.vlgmr.msra.gmra.mxu1 %v9422_v42  ;;  %v5015_v18 = vadd.f32 %v5014_v13, %v4926_v47  ;;  %v6396_v13 = vld [vmem:[#allocation2 + $0xd2] sm:$0xff] }
 0x639   : > { %5554 = vmatmul.f32.vlgmr.msra.gmra.mxu2 %v9373_v6  ;;  %5643 = vmatmul.f32.vlgmr.msra.gmra.mxu3 %v9377_v32 }
 0x63c   : > { %v5103_v56 = vpop.f32.mrf.mxu2  ;;  %v5192_v35 = vpop.f32.mrf.mxu3 }
 0x63d   : > { %v5104_v62 = vadd.f32 %v5103_v56, %v5015_v18  ;;  %v4928_v46 = vpop.f32.mrf.mxu0  ;;  %v5017_v29 = vpop.f32.mrf.mxu1 }
 0x63e   : > { %v4929_v5 = vadd.f32 %v4928_v46, %v9361_v26 }
 0x63f   : > { %v9686_v8 = vadd.f32 %v5192_v35, %v5104_v62 }
 0x640   : > { %5259 = vmatmul.f32.gmra.mxu0 %v6395_v25  ;;  %5468 = vmatmul.f32.gmra.mxu1 %v9438_v14  ;;  %v5018_v48 = vadd.f32 %v5017_v29, %v4929_v5  ;;  %v6397_v5 = vld [vmem:[#allocation2 + $0xda] sm:$0xff] }
 0x641   : > { %5557 = vmatmul.f32.gmra.mxu2 %v9386_v55  ;;  %5646 = vmatmul.f32.gmra.mxu3 %v9390_v53 }
 0x644   : > { %v5106_v6 = vpop.f32.mrf.mxu2  ;;  %v5195_v32 = vpop.f32.mrf.mxu3 }
 0x645   : > { %v5107_v42 = vadd.f32 %v5106_v6, %v5018_v48  ;;  %v4931_v20 = vpop.f32.mrf.mxu0  ;;  %v5020_v56 = vpop.f32.mrf.mxu1 }
 0x646   : > { %v4932_v30 = vadd.f32 %v4931_v20, %v9371_v57  ;;  %v6398_v20 = vld [vmem:[#allocation2 + $0xe2] sm:$0xff] }
 0x647   : > { %v9692_v18 = vadd.f32 %v5195_v32, %v5107_v42 }
 0x648   : > { %5262 = vmatmul.f32.gmra.mxu0 %v6396_v13  ;;  %5471 = vmatmul.f32.gmra.mxu1 %v9454_v41  ;;  %v5021_v26 = vadd.f32 %v5020_v56, %v4932_v30 }
 0x649   : > { %5560 = vmatmul.f32.gmra.mxu2 %v9399_v54  ;;  %5649 = vmatmul.f32.gmra.mxu3 %v9403_v37 }
 0x64c   : > { %v5109_v55 = vpop.f32.mrf.mxu2  ;;  %v5198_v14 = vpop.f32.mrf.mxu3 }
 0x64d   : > { %v5110_v46 = vadd.f32 %v5109_v55, %v5021_v26  ;;  %v4934_v47 = vpop.f32.mrf.mxu0  ;;  %v5023_v35 = vpop.f32.mrf.mxu1 }
 0x64e   : > { %v4935_v29 = vadd.f32 %v4934_v47, %v9384_v15 }
 0x64f   : > { %v9698_v62 = vadd.f32 %v5198_v14, %v5110_v46  ;;  %v6399_v14 = vld [vmem:[#allocation2 + $0xea] sm:$0xff] }
 0x650   : > { %5265 = vmatmul.f32.gmra.mxu0 %v6397_v5  ;;  %5474 = vmatmul.f32.gmra.mxu1 %v9470_v61  ;;  %v5024_v57 = vadd.f32 %v5023_v35, %v4935_v29 }
 0x651   : > { %5563 = vmatmul.f32.gmra.mxu2 %v9412_v10  ;;  %5652 = vmatmul.f32.gmra.mxu3 %v9416_v43 }
 0x654   : > { %v5112_v54 = vpop.f32.mrf.mxu2  ;;  %v5201_v41 = vpop.f32.mrf.mxu3 }
 0x655   : > { %v5113_v25 = vadd.f32 %v5112_v54, %v5024_v57  ;;  %v4937_v48 = vpop.f32.mrf.mxu0  ;;  %v5026_v6 = vpop.f32.mrf.mxu1  ;;  %v6400_v57 = vld [vmem:[#allocation2 + $0xf2] sm:$0xff] }
 0x656   : > { %v4938_v42 = vadd.f32 %v4937_v48, %v9397_v1 }
 0x657   : > { %v9704_v32 = vadd.f32 %v5201_v41, %v5113_v25 }
 0x658   : > { %5268 = vmatmul.f32.gmra.mxu0 %v6398_v20  ;;  %5477 = vmatmul.f32.gmra.mxu1 %v9486_v50  ;;  %v5027_v15 = vadd.f32 %v5026_v6, %v4938_v42 }
 0x659   : > { %5566 = vmatmul.f32.gmra.mxu2 %v9428_v51  ;;  %5655 = vmatmul.f32.gmra.mxu3 %v9432_v33 }
 0x65c   : > { %v5115_v10 = vpop.f32.mrf.mxu2  ;;  %v5204_v61 = vpop.f32.mrf.mxu3 }
 0x65d   : > { %v5116_v56 = vadd.f32 %v5115_v10, %v5027_v15  ;;  %v4940_v30 = vpop.f32.mrf.mxu0  ;;  %v5029_v13 = vpop.f32.mrf.mxu1 }
 0x65e   : > { %v4941_v55 = vadd.f32 %v4940_v30, %v9410_v59  ;;  %v10252_v30 = vld [vmem:[#allocation28_spill] sm:$0xff] }
 0x65f   : > { %v9710_v26 = vadd.f32 %v5204_v61, %v5116_v56 }
 0x660   : > { %5271 = vmatmul.f32.gmra.mxu0 %v6399_v14  ;;  %5480 = vmatmul.f32.gmra.mxu1 %v9502_v12  ;;  %v5030_v1 = vadd.f32 %v5029_v13, %v4941_v55 }
 0x661   : > { %5569 = vmatmul.f32.gmra.mxu2 %v9444_v36  ;;  %5658 = vmatmul.f32.gmra.mxu3 %v9448_v63 }
 0x664   : > { %v5118_v51 = vpop.f32.mrf.mxu2  ;;  %v5207_v50 = vpop.f32.mrf.mxu3 }
 0x665   : > { %v5119_v46 = vadd.f32 %v5118_v51, %v5030_v1  ;;  %v4943_v47 = vpop.f32.mrf.mxu0  ;;  %v5032_v35 = vpop.f32.mrf.mxu1 }
 0x666   : > { %v4944_v5 = vadd.f32 %v4943_v47, %v9426_v45  ;;  %v10250_v45 = vld [vmem:[#allocation16_spill] sm:$0xff] }
 0x667   : > { %v9716_v29 = vadd.f32 %v5207_v50, %v5119_v46  ;;  %v10254_v46 = vld [vmem:[#allocation36_spill] sm:$0xff] }
 0x668   : > { %5274 = vmatmul.f32.gmra.mxu0 %v6400_v57  ;;  %5483 = vmatmul.f32.gmra.mxu1 %v9518_v49  ;;  %v5033_v59 = vadd.f32 %v5032_v35, %v4944_v5  ;;  %v10251_v49 = vld [vmem:[#allocation32_spill] sm:$0xff] }
 0x669   : > { %5572 = vmatmul.f32.gmra.mxu2 %v9460_v4  ;;  %5661 = vmatmul.f32.gmra.mxu3 %v9464_v40 }
 0x66c   : > { %v5121_v36 = vpop.f32.mrf.mxu2  ;;  %v5210_v12 = vpop.f32.mrf.mxu3 }
 0x66d   : > { %v5122_v54 = vadd.f32 %v5121_v36, %v5033_v59  ;;  %v4946_v41 = vpop.f32.mrf.mxu0  ;;  %v5035_v25 = vpop.f32.mrf.mxu1 }
 0x66e   : > { %v4947_v6 = vadd.f32 %v4946_v41, %v9442_v38 }
 0x66f   : > { %v9722_v48 = vadd.f32 %v5210_v12, %v5122_v54  ;;  %v10257_v54 = vld [vmem:[#allocation31_spill] sm:$0xff] }
 0x670   : > { %5277 = vmatmul.f32.gmra.mxu0 %v9390_v53  ;;  %5486 = vmatmul.f32.gmra.mxu1 %v9534_v21  ;;  %v5036_v4 = vadd.f32 %v5035_v25, %v4947_v6  ;;  %v10253_v53 = vld [vmem:[#allocation30_spill] sm:$0xff] }
 0x671   : > { %5575 = vmatmul.f32.gmra.mxu2 %v10250_v45  ;;  %5664 = vmatmul.f32.gmra.mxu3 %v10251_v49 }
 0x674   : > { %v5124_v42 = vpop.f32.mrf.mxu2  ;;  %v5213_v20 = vpop.f32.mrf.mxu3 }
 0x675   : > { %v5125_v15 = vadd.f32 %v5124_v42, %v5036_v4  ;;  %v4949_v10 = vpop.f32.mrf.mxu0  ;;  %v5038_v61 = vpop.f32.mrf.mxu1 }
 0x676   : > { %v4950_v13 = vadd.f32 %v4949_v10, %v10252_v30 }
 0x677   : > { %v9729_v56 = vadd.f32 %v5213_v20, %v5125_v15  ;;  %v10259_v15 = vld [vmem:[#allocation34_spill] sm:$0xff] }
 0x678   : > { %5280 = vmatmul.f32.gmra.mxu0 %v9403_v37  ;;  %5489 = vmatmul.f32.gmra.mxu1 %v9550_v2  ;;  %v5039_v38 = vadd.f32 %v5038_v61, %v4950_v13  ;;  %v10255_v37 = vld [vmem:[#allocation33_spill] sm:$0xff]  ;;  %v10256_v2 = vld [vmem:[#allocation35_spill] sm:$0xff] }
 0x679   : > { %5578 = vmatmul.f32.gmra.mxu2 %v9492_v28  ;;  %5667 = vmatmul.f32.gmra.mxu3 %v10253_v53 }
 0x67c   : > { %v5127_v21 = vpop.f32.mrf.mxu2  ;;  %v5216_v55 = vpop.f32.mrf.mxu3 }
 0x67d   : > { %v5128_v14 = vadd.f32 %v5127_v21, %v5039_v38  ;;  %v4952_v1 = vpop.f32.mrf.mxu0  ;;  %v5041_v51 = vpop.f32.mrf.mxu1 }
 0x67e   : > { %v4953_v47 = vadd.f32 %v4952_v1, %v10254_v46 }
 0x67f   : > { %v9736_v50 = vadd.f32 %v5216_v55, %v5128_v14  ;;  %v10261_v55 = vld [vmem:[#allocation12_spill] sm:$0xff] }
 0x680   : > { %5283 = vmatmul.f32.gmra.mxu0 %v9416_v43  ;;  %5492 = vmatmul.f32.gmra.mxu1 %v9568_v3  ;;  %v5042_v28 = vadd.f32 %v5041_v51, %v4953_v47  ;;  %v10258_v43 = vld [vmem:[#allocation22_spill] sm:$0xff] }
 0x681   : > { %5581 = vmatmul.f32.gmra.mxu2 %v10255_v37  ;;  %5670 = vmatmul.f32.gmra.mxu3 %v10256_v2 }
 0x684   : > { %v5130_v35 = vpop.f32.mrf.mxu2  ;;  %v5219_v5 = vpop.f32.mrf.mxu3 }
 0x685   : > { %v5131_v57 = vadd.f32 %v5130_v35, %v5042_v28  ;;  %v4955_v59 = vpop.f32.mrf.mxu0  ;;  %v5044_v36 = vpop.f32.mrf.mxu1  ;;  %v10263_v28 = vld [vmem:[#allocation14_spill] sm:$0xff] }
 0x686   : > { %v4956_v41 = vadd.f32 %v4955_v59, %v10257_v54 }
 0x687   : > { %v9743_v12 = vadd.f32 %v5219_v5, %v5131_v57 }
 0x688   : > { %5286 = vmatmul.f32.gmra.mxu0 %v9432_v33  ;;  %5495 = vmatmul.f32.gmra.mxu1 %v9584_v16  ;;  %v5045_v3 = vadd.f32 %v5044_v36, %v4956_v41  ;;  %v10260_v33 = vld [vmem:[#allocation27_spill] sm:$0xff] }
 0x689   : > { %5584 = vmatmul.f32.gmra.mxu2 %v9524_v0  ;;  %5673 = vmatmul.f32.gmra.mxu3 %v10258_v43  ;;  %v10265_v41 = vld [vmem:[#allocation19_spill] sm:$0xff] }
 0x68c   : > { %v5133_v25 = vpop.f32.mrf.mxu2  ;;  %v5222_v6 = vpop.f32.mrf.mxu3 }
 0x68d   : > { %v5134_v45 = vadd.f32 %v5133_v25, %v5045_v3  ;;  %v4958_v4 = vpop.f32.mrf.mxu0  ;;  %v5047_v42 = vpop.f32.mrf.mxu1 }
 0x68e   : > { %v4959_v10 = vadd.f32 %v4958_v4, %v10259_v15  ;;  %v10267_v15 = vld [vmem:[#allocation20_spill] sm:$0xff] }
 0x68f   : > { %v9750_v20 = vadd.f32 %v5222_v6, %v5134_v45 }
 0x690   : > { %5289 = vmatmul.f32.gmra.mxu0 %v9448_v63  ;;  %5498 = vmatmul.f32.gmra.mxu1 %v9598_v39  ;;  %v5048_v0 = vadd.f32 %v5047_v42, %v4959_v10  ;;  %v10262_v63 = vld [vmem:[#allocation10_spill] sm:$0xff] }
 0x691   : > { %5587 = vmatmul.f32.gmra.mxu2 %v9542_v19  ;;  %5676 = vmatmul.f32.gmra.mxu3 %v10260_v33 }
 0x694   : > { %v5136_v16 = vpop.f32.mrf.mxu2  ;;  %v5225_v61 = vpop.f32.mrf.mxu3 }
 0x695   : > { %v5137_v30 = vadd.f32 %v5136_v16, %v5048_v0  ;;  %v4961_v13 = vpop.f32.mrf.mxu0  ;;  %v5050_v38 = vpop.f32.mrf.mxu1 }
 0x696   : > { %v4962_v14 = vadd.f32 %v4961_v13, %v10261_v55 }
 0x697   : > { %v9757_v21 = vadd.f32 %v5225_v61, %v5137_v30 }
 0x698   : > { %5292 = vmatmul.f32.gmra.mxu0 %v9464_v40  ;;  %5501 = vmatmul.f32.gmra.mxu1 %v9611_v9  ;;  %v5051_v19 = vadd.f32 %v5050_v38, %v4962_v14  ;;  %v10264_v40 = vld [vmem:[#allocation17_spill] sm:$0xff] }
 0x699   : > { %5590 = vmatmul.f32.gmra.mxu2 %v9558_v31  ;;  %5679 = vmatmul.f32.gmra.mxu3 %v10262_v63 }
 0x69c   : > { %v5139_v39 = vpop.f32.mrf.mxu2  ;;  %v5228_v1 = vpop.f32.mrf.mxu3 }
 0x69d   : > { %v5140_v51 = vadd.f32 %v5139_v39, %v5051_v19  ;;  %v4964_v46 = vpop.f32.mrf.mxu0  ;;  %v5053_v47 = vpop.f32.mrf.mxu1  ;;  %v10270_v19 = vld [vmem:[#allocation24_spill] sm:$0xff] }
 0x69e   : > { %v4965_v35 = vadd.f32 %v4964_v46, %v10263_v28 }
 0x69f   : > { %v9764_v37 = vadd.f32 %v5228_v1, %v5140_v51  ;;  %v9795_v51 = vld [vmem:[%s9946_s4] ss:$0 sm:$0xff] }
 0x6a0   : > { %5295 = vmatmul.f32.gmra.mxu0 %v10251_v49  ;;  %5504 = vmatmul.f32.gmra.mxu1 %v9624_v52  ;;  %v5054_v31 = vadd.f32 %v5053_v47, %v4965_v35  ;;  %v10266_v52 = vld [vmem:[#allocation37_spill] sm:$0xff] }
 0x6a1   : > { %5593 = vmatmul.f32.gmra.mxu2 %v9577_v24  ;;  %5682 = vmatmul.f32.gmra.mxu3 %v10264_v40 }
 0x6a4   : > { %v5142_v9 = vpop.f32.mrf.mxu2  ;;  %v5231_v5 = vpop.f32.mrf.mxu3 }
 0x6a5   : > { %v5143_v57 = vadd.f32 %v5142_v9, %v5054_v31  ;;  %v4967_v59 = vpop.f32.mrf.mxu0  ;;  %v5056_v36 = vpop.f32.mrf.mxu1 }
 0x6a6   : > { %v4968_v3 = vadd.f32 %v4967_v59, %v10265_v41  ;;  %v10273_v41 = vld [vmem:[#allocation39_spill] sm:$0xff] }
 0x6a7   : > { %v9771_v54 = vadd.f32 %v5231_v5, %v5143_v57 }
 0x6a8   : > { %5298 = vmatmul.f32.gmra.mxu0 %v10253_v53  ;;  %5507 = vmatmul.f32.gmra.mxu1 %v9637_v7  ;;  %v5057_v24 = vadd.f32 %v5056_v36, %v4968_v3  ;;  %v10268_v7 = vld [vmem:[#allocation11_spill] sm:$0xff]  ;;  %v10272_v36 = vld [vmem:[#allocation13_spill] sm:$0xff] }
 0x6a9   : > { %5596 = vmatmul.f32.gmra.mxu2 %v9592_v17  ;;  %5685 = vmatmul.f32.gmra.mxu3 %v10266_v52  ;;  %v5741_v3 = vld [vmem:[%s6795_s6 + $0xe1] sm:$0xff] }
 0x6ac   : > { %v5145_v49 = vpop.f32.mrf.mxu2  ;;  %v5234_v25 = vpop.f32.mrf.mxu3 }
 0x6ad   : > { %v5146_v6 = vadd.f32 %v5145_v49, %v5057_v24  ;;  %v4970_v45 = vpop.f32.mrf.mxu0  ;;  %v5059_v4 = vpop.f32.mrf.mxu1 }
 0x6ae   : > { %v4971_v10 = vadd.f32 %v4970_v45, %v10267_v15 }
 0x6af   : > { %v9778_v42 = vadd.f32 %v5234_v25, %v5146_v6 }
 0x6b0   : > { %5301 = vmatmul.f32.gmra.mxu0 %v10256_v2  ;;  %5510 = vmatmul.f32.gmra.mxu1 %v9650_v22  ;;  %v5060_v17 = vadd.f32 %v5059_v4, %v4971_v10  ;;  %v10269_v22 = vld [vmem:[#allocation15_spill] sm:$0xff]  ;;  %v10274_v10 = vld [vmem:[#allocation25_spill] sm:$0xff] }
 0x6b1   : > { %5599 = vmatmul.f32.gmra.mxu2 %v9605_v23  ;;  %5688 = vmatmul.f32.gmra.mxu3 %v10268_v7 }
 0x6b4   : > { %v5148_v53 = vpop.f32.mrf.mxu2  ;;  %v5237_v0 = vpop.f32.mrf.mxu3 }
 0x6b5   : > { %v5149_v16 = vadd.f32 %v5148_v53, %v5060_v17  ;;  %v5257_v61 = vpop.f32.mrf.mxu0  ;;  %v5466_v30 = vpop.f32.mrf.mxu1 }
 0x6b6   : > { %v5258_v39 = vadd.f32 %v5257_v61, %v10270_v19  ;;  %v10275_v61 = vld [vmem:[#allocation29_spill] sm:$0xff] }
 0x6b7   : > { %v9785_v13 = vadd.f32 %v5237_v0, %v5149_v16  ;;  %v6402_v0 = vld [vmem:[#allocation2 + $0x188] sm:$0xff] }
 0x6b8   : > { %5304 = vmatmul.f32.gmra.mxu0 %v10258_v43  ;;  %5513 = vmatmul.f32.gmra.mxu1 %v9663_v34  ;;  %v5740_v34 = vld [vmem:[%s6795_s6 + $0xd9] sm:$0xff] }
 0x6b9   : > { %5602 = vmatmul.f32.gmra.mxu2 %v9618_v58  ;;  %5691 = vmatmul.f32.gmra.mxu3 %v10269_v22 }
 0x6bc   : > { %v5555_v23 = vpop.f32.mrf.mxu2  ;;  %v5644_v2 = vpop.f32.mrf.mxu3 }
 0x6bd   : > { %v5556_v38 = vadd.f32 %v5555_v23, %v5466_v30  ;;  %v5260_v55 = vpop.f32.mrf.mxu0  ;;  %v5469_v14 = vpop.f32.mrf.mxu1  ;;  %v10276_v30 = vld [vmem:[#allocation38_spill] sm:$0xff]  ;;  %v5742_v23 = vld [vmem:[%s6795_s6 + $0xe9] sm:$0xff] }
 0x6bf   : > { %v5645_v1 = vadd.f32 %v5644_v2, %v5556_v38 }
 0x6c0   : > { %5307 = vmatmul.f32.gmra.mxu0 %v10260_v33  ;;  %5516 = vmatmul.f32.gmra.mxu1 %v9676_v11  ;;  %v10271_v33 = vld [vmem:[#allocation18_spill] sm:$0xff] }
 0x6c1   : > { %v5716_v58 = vadd.f32 %v5645_v1, %v5258_v39  ;;  %5605 = vmatmul.f32.gmra.mxu2 %v9631_v60  ;;  %5694 = vmatmul.f32.gmra.mxu3 %v9633_v44  ;;  %v5261_v57 = vadd.f32 %v5260_v55, %v10271_v33  ;;  %v6401_v60 = vld [vmem:[#allocation2 + $0x180] sm:$0xff] }
 0x6c3   : > { %v5768_v43 = vadd.f32 %v9795_v51, %v5716_v58  ;;  %v10277_v58 = vld [vmem:[#allocation23_spill] sm:$0xff] }
 0x6c4   : > { %v5558_v46 = vpop.f32.mrf.mxu2  ;;  %v5647_v47 = vpop.f32.mrf.mxu3 }
 0x6c5   : > { %v5792_v28 = vadd.f32 %v5768_v43, %v5740_v34  ;;  %v5559_v35 = vadd.f32 %v5558_v46, %v5469_v14  ;;  %v5263_v31 = vpop.f32.mrf.mxu0  ;;  %v5472_v9 = vpop.f32.mrf.mxu1  ;;  %v6403_v46 = vld [vmem:[#allocation2 + $0x190] sm:$0xff] }
 0x6c6   : > { %v5264_v17 = vadd.f32 %v5263_v31, %v10274_v10  ;;  %v5743_v31 = vld [vmem:[%s6795_s6 + $0xf1] sm:$0xff] }
 0x6c7   : > { %v5816_v5 = vmax.f32 %v5792_v28, 0.0  ;;  %v5648_v11 = vadd.f32 %v5647_v47, %v5559_v35  ;;  %v10278_v28 = vld [vmem:[#allocation41_spill] sm:$0xff]  ;;  %v10279_v35 = vld [vmem:[#allocation42_spill] sm:$0xff] }
 0x6c8   : > { %5310 = vmatmul.f32.gmra.mxu0 %v10262_v63  ;;  %5519 = vmatmul.f32.gmra.mxu1 %v6401_v60 }
 0x6c9   : > { %5840 = vst [vmem:[%s9263_s30 + $0xc0] sm:$0xff] %v5816_v5  ;;  %v5717_v59 = vadd.f32 %v5648_v11, %v5261_v57  ;;  %5608 = vmatmul.f32.gmra.mxu2 %v10272_v36  ;;  %5697 = vmatmul.f32.gmra.mxu3 %v10273_v41  ;;  %v3313_v36 = vld [vmem:[#allocation2 + $0x19a] sm:$0xff] }
 0x6cb   : > { %v5769_v24 = vadd.f32 %v9795_v51, %v5717_v59 }
 0x6cc   : > { %v5561_v49 = vpop.f32.mrf.mxu2  ;;  %v5650_v25 = vpop.f32.mrf.mxu3 }
 0x6cd   : > { %v5793_v6 = vadd.f32 %v5769_v24, %v5741_v3  ;;  %v5562_v45 = vadd.f32 %v5561_v49, %v5472_v9  ;;  %v5266_v4 = vpop.f32.mrf.mxu0  ;;  %v5475_v15 = vpop.f32.mrf.mxu1  ;;  %v10280_v3 = vld [vmem:[#allocation26_spill] sm:$0xff] }
 0x6ce   : > { %v5267_v34 = vadd.f32 %v5266_v4, %v10277_v58 }
 0x6cf   : > { %v5817_v63 = vmax.f32 %v5793_v6, 0.0  ;;  %v5651_v53 = vadd.f32 %v5650_v25, %v5562_v45  ;;  %v3097_v25 = vld [vmem:[#allocation2 + $0x198] sm:$0xff] }
 0x6d0   : > { %5313 = vmatmul.f32.gmra.mxu0 %v10264_v40  ;;  %5522 = vmatmul.f32.gmra.mxu1 %v6402_v0  ;;  %v5744_v45 = vld [vmem:[%s6795_s6 + $0xf9] sm:$0xff] }
 0x6d1   : > { %5841 = vst [vmem:[%s9263_s30 + $0xc8] sm:$0xff] %v5817_v63  ;;  %v5718_v16 = vadd.f32 %v5651_v53, %v5264_v17  ;;  %5611 = vmatmul.f32.gmra.mxu2 %v10275_v61  ;;  %5700 = vmatmul.f32.gmra.mxu3 %v10276_v30  ;;  %v3314_v61 = vld [vmem:[#allocation2 + $0x1a2] sm:$0xff] }
 0x6d3   : > { %v5770_v2 = vadd.f32 %v9795_v51, %v5718_v16  ;;  %v3206_v16 = vld [vmem:[#allocation2 + $0x1a1] sm:$0xff] }
 0x6d4   : > { %v5564_v38 = vpop.f32.mrf.mxu2  ;;  %v5653_v55 = vpop.f32.mrf.mxu3 }
 0x6d5   : > { %v5794_v14 = vadd.f32 %v5770_v2, %v5742_v23  ;;  %v5565_v19 = vadd.f32 %v5564_v38, %v5475_v15  ;;  %v5269_v39 = vpop.f32.mrf.mxu0  ;;  %v5478_v1 = vpop.f32.mrf.mxu1  ;;  %v6404_v38 = vld [vmem:[#allocation2] sm:$0xff] }
 0x6d6   : > { %v5270_v24 = vadd.f32 %v5269_v39, %v10280_v3 }
 0x6d7   : > { %v5818_v40 = vmax.f32 %v5794_v14, 0.0  ;;  %v5654_v43 = vadd.f32 %v5653_v55, %v5565_v19  ;;  %v5745_v14 = vld [vmem:[%s6795_s6 + $0x101] sm:$0xff] }
 0x6d8   : > { %5316 = vmatmul.f32.gmra.mxu0 %v10266_v52  ;;  %5525 = vmatmul.f32.gmra.mxu1 %v6403_v46  ;;  %v3205_v52 = vld [vmem:[#allocation2 + $0x199] sm:$0xff]  ;;  %v3207_v46 = vld [vmem:[#allocation2 + $0x1a9] sm:$0xff] }
 0x6d9   : > { %5842 = vst [vmem:[%s9263_s30 + $0xd0] sm:$0xff] %v5818_v40  ;;  %v5719_v47 = vadd.f32 %v5654_v43, %v5267_v34  ;;  %5614 = vmatmul.f32.gmra.mxu2 %v10278_v28  ;;  %5703 = vmatmul.f32.gmra.mxu3 %v10279_v35  ;;  %v10282_v28 = vld [vmem:[#allocation40_spill] sm:$0xff] }
 0x6db   : > { %v5771_v9 = vadd.f32 %v9795_v51, %v5719_v47  ;;  %v3315_v47 = vld [vmem:[#allocation2 + $0x1aa] sm:$0xff] }
 0x6dc   : > { %v5567_v5 = vpop.f32.mrf.mxu2  ;;  %v5656_v33 = vpop.f32.mrf.mxu3 }
 0x6dd   : > { %v5795_v57 = vadd.f32 %v5771_v9, %v5743_v31  ;;  %v5568_v11 = vadd.f32 %v5567_v5, %v5478_v1  ;;  %v5272_v60 = vpop.f32.mrf.mxu0  ;;  %v5481_v59 = vpop.f32.mrf.mxu1  ;;  %v5746_v5 = vld [vmem:[%s6795_s6 + $0x109] sm:$0xff] }
 0x6df   : > { %v5819_v41 = vmax.f32 %v5795_v57, 0.0  ;;  %v5657_v49 = vadd.f32 %v5656_v33, %v5568_v11 }
 0x6e0   : > { %5319 = vmatmul.f32.gmra.mxu0 %v10268_v7  ;;  %5528 = vmatmul.f32.gmra.mxu1 %v3097_v25  ;;  %v10281_v7 = vld [vmem:[#allocation21_spill] sm:$0xff] }
 0x6e1   : > { %5843 = vst [vmem:[%s9263_s30 + $0xd8] sm:$0xff] %v5819_v41  ;;  %v5720_v6 = vadd.f32 %v5657_v49, %v5270_v24  ;;  %5617 = vmatmul.f32.gmra.mxu2 %v3205_v52  ;;  %5706 = vmatmul.f32.gmra.mxu3 %v3313_v36  ;;  %v5273_v23 = vadd.f32 %v5272_v60, %v10281_v7  ;;  %v5747_v49 = vld [vmem:[%s6795_s6 + $0x111] sm:$0xff] }
 0x6e3   : > { %v5772_v4 = vadd.f32 %v9795_v51, %v5720_v6 }
 0x6e4   : > { %v5570_v15 = vpop.f32.mrf.mxu2  ;;  %v5659_v63 = vpop.f32.mrf.mxu3 }
 0x6e5   : > { %v5796_v10 = vadd.f32 %v5772_v4, %v5744_v45  ;;  %v5571_v17 = vadd.f32 %v5570_v15, %v5481_v59  ;;  %v5275_v53 = vpop.f32.mrf.mxu0  ;;  %v5484_v0 = vpop.f32.mrf.mxu1 }
 0x6e6   : > { %v5276_v35 = vadd.f32 %v5275_v53, %v10282_v28 }
 0x6e7   : > { %v5820_v30 = vmax.f32 %v5796_v10, 0.0  ;;  %v5660_v2 = vadd.f32 %v5659_v63, %v5571_v17 }
 0x6e8   : > { %5322 = vmatmul.f32.gmra.mxu0 %v10269_v22  ;;  %5531 = vmatmul.f32.gmra.mxu1 %v6404_v38 }
 0x6e9   : > { %5844 = vst [vmem:[%s9263_s30 + $0xe0] sm:$0xff] %v5820_v30  ;;  %v5721_v55 = vadd.f32 %v5660_v2, %v5273_v23  ;;  %5620 = vmatmul.f32.gmra.mxu2 %v3206_v16  ;;  %5709 = vmatmul.f32.gmra.mxu3 %v3314_v61  ;;  %v5748_v16 = vld [vmem:[%s6795_s6 + $0x119] sm:$0xff] }
 0x6eb   : > { %v5773_v19 = vadd.f32 %v9795_v51, %v5721_v55 }
 0x6ec   : > { %v5573_v39 = vpop.f32.mrf.mxu2  ;;  %v5662_v1 = vpop.f32.mrf.mxu3 }
 0x6ed   : > { %v5797_v40 = vadd.f32 %v5773_v19, %v5745_v14  ;;  %v5574_v58 = vadd.f32 %v5573_v39, %v5484_v0  ;;  %v5278_v34 = vpop.f32.mrf.mxu0  ;;  %v5487_v43 = vpop.f32.mrf.mxu1 }
 0x6ef   : > { %v5821_v22 = vmax.f32 %v5797_v40, 0.0  ;;  %v5663_v31 = vadd.f32 %v5662_v1, %v5574_v58  ;;  %v5749_v1 = vld [vmem:[%s6795_s6 + $0x121] sm:$0xff] }
 0x6f0   : > { %5325 = vmatmul.f32.gmra.mxu0 %v9633_v44  ;;  %5534 = vmatmul.f32.gmra.mxu1 %v6404_v38  ;;  %v5279_v44 = vadd.f32 %v5278_v34, %v9680_v27 }
 0x6f1   : > { %5845 = vst [vmem:[%s9263_s30 + $0xe8] sm:$0xff] %v5821_v22  ;;  %v5722_v9 = vadd.f32 %v5663_v31, %v5276_v35  ;;  %5623 = vmatmul.f32.gmra.mxu2 %v3207_v46  ;;  %5712 = vmatmul.f32.gmra.mxu3 %v3315_v47 }
 0x6f3   : > { %v5774_v33 = vadd.f32 %v9795_v51, %v5722_v9  ;;  %v5750_v9 = vld [vmem:[%s6795_s6 + $0x129] sm:$0xff] }
 0x6f4   : > { %v5576_v57 = vpop.f32.mrf.mxu2  ;;  %v5665_v11 = vpop.f32.mrf.mxu3 }
 0x6f5   : > { %v5798_v60 = vadd.f32 %v5774_v33, %v5746_v5  ;;  %v5577_v59 = vadd.f32 %v5576_v57, %v5487_v43  ;;  %v5281_v52 = vpop.f32.mrf.mxu0  ;;  %v5490_v36 = vpop.f32.mrf.mxu1 }
 0x6f6   : > { %v5282_v53 = vadd.f32 %v5281_v52, %v9686_v8 }
 0x6f7   : > { %v5822_v41 = vmax.f32 %v5798_v60, 0.0  ;;  %v5666_v3 = vadd.f32 %v5665_v11, %v5577_v59 }
 0x6f9   : > { %5846 = vst [vmem:[%s9263_s30 + $0xf0] sm:$0xff] %v5822_v41  ;;  %v5723_v24 = vadd.f32 %v5666_v3, %v5279_v44  ;;  %v5751_v3 = vld [vmem:[%s6795_s6 + $0x131] sm:$0xff] }
 0x6fb   : > { %v5775_v25 = vadd.f32 %v9795_v51, %v5723_v24 }
 0x6fc   : > { %v5579_v6 = vpop.f32.mrf.mxu2  ;;  %v5668_v45 = vpop.f32.mrf.mxu3 }
 0x6fd   : > { %v5799_v4 = vadd.f32 %v5775_v25, %v5747_v49  ;;  %v5580_v15 = vadd.f32 %v5579_v6, %v5490_v36  ;;  %v5284_v63 = vpop.f32.mrf.mxu0  ;;  %v5493_v10 = vpop.f32.mrf.mxu1 }
 0x6fe   : > { %v5285_v19 = vadd.f32 %v5284_v63, %v9692_v18 }
 0x6ff   : > { %v5823_v17 = vmax.f32 %v5799_v4, 0.0  ;;  %v5669_v0 = vadd.f32 %v5668_v45, %v5580_v15 }
 0x701   : > { %5847 = vst [vmem:[%s9263_s30 + $0xf8] sm:$0xff] %v5823_v17  ;;  %v5724_v27 = vadd.f32 %v5669_v0, %v5282_v53  ;;  %v5752_v53 = vld [vmem:[%s6795_s6 + $0x139] sm:$0xff] }
 0x703   : > { %v5776_v61 = vadd.f32 %v9795_v51, %v5724_v27 }
 0x704   : > { %v5582_v30 = vpop.f32.mrf.mxu2  ;;  %v5671_v7 = vpop.f32.mrf.mxu3 }
 0x705   : > { %v5800_v23 = vadd.f32 %v5776_v61, %v5748_v16  ;;  %v5583_v2 = vadd.f32 %v5582_v30, %v5493_v10  ;;  %v5287_v38 = vpop.f32.mrf.mxu0  ;;  %v5496_v55 = vpop.f32.mrf.mxu1 }
 0x706   : > { %v5288_v35 = vadd.f32 %v5287_v38, %v9698_v62 }
 0x707   : > { %v5824_v14 = vmax.f32 %v5800_v23, 0.0  ;;  %v5672_v39 = vadd.f32 %v5671_v7, %v5583_v2 }
 0x709   : > { %5848 = vst [vmem:[%s9263_s30 + $0x100] sm:$0xff] %v5824_v14  ;;  %v5725_v8 = vadd.f32 %v5672_v39, %v5285_v19  ;;  %v5753_v14 = vld [vmem:[%s6795_s6 + $0x141] sm:$0xff] }
 0x70b   : > { %v5777_v40 = vadd.f32 %v9795_v51, %v5725_v8 }
 0x70c   : > { %v5585_v58 = vpop.f32.mrf.mxu2  ;;  %v5674_v34 = vpop.f32.mrf.mxu3 }
 0x70d   : > { %v5801_v43 = vadd.f32 %v5777_v40, %v5749_v1  ;;  %v5586_v46 = vadd.f32 %v5585_v58, %v5496_v55  ;;  %v5290_v47 = vpop.f32.mrf.mxu0  ;;  %v5499_v22 = vpop.f32.mrf.mxu1 }
 0x70e   : > { %v5291_v41 = vadd.f32 %v5290_v47, %v9704_v32 }
 0x70f   : > { %v5825_v28 = vmax.f32 %v5801_v43, 0.0  ;;  %v5675_v31 = vadd.f32 %v5674_v34, %v5586_v46 }
 0x711   : > { %5849 = vst [vmem:[%s9263_s30 + $0x108] sm:$0xff] %v5825_v28  ;;  %v5726_v18 = vadd.f32 %v5675_v31, %v5288_v35 }
 0x713   : > { %v5778_v5 = vadd.f32 %v9795_v51, %v5726_v18 }
 0x714   : > { %v5588_v33 = vpop.f32.mrf.mxu2  ;;  %v5677_v57 = vpop.f32.mrf.mxu3 }
 0x715   : > { %v5802_v11 = vadd.f32 %v5778_v5, %v5750_v9  ;;  %v5589_v60 = vadd.f32 %v5588_v33, %v5499_v22  ;;  %v5293_v59 = vpop.f32.mrf.mxu0  ;;  %v5502_v52 = vpop.f32.mrf.mxu1  ;;  %v5754_v22 = vld [vmem:[%s6795_s6 + $0x149] sm:$0xff] }
 0x716   : > { %v5294_v10 = vadd.f32 %v5293_v59, %v9710_v26  ;;  %v5755_v59 = vld [vmem:[%s6795_s6 + $0x151] sm:$0xff] }
 0x717   : > { %v5826_v36 = vmax.f32 %v5802_v11, 0.0  ;;  %v5678_v44 = vadd.f32 %v5677_v57, %v5589_v60 }
 0x719   : > { %5850 = vst [vmem:[%s9263_s30 + $0x110] sm:$0xff] %v5826_v36  ;;  %v5727_v62 = vadd.f32 %v5678_v44, %v5291_v41 }
 0x71b   : > { %v5779_v24 = vadd.f32 %v9795_v51, %v5727_v62 }
 0x71c   : > { %v5591_v49 = vpop.f32.mrf.mxu2  ;;  %v5680_v25 = vpop.f32.mrf.mxu3 }
 0x71d   : > { %v5803_v6 = vadd.f32 %v5779_v24, %v5751_v3  ;;  %v5592_v45 = vadd.f32 %v5591_v49, %v5502_v52  ;;  %v5296_v4 = vpop.f32.mrf.mxu0  ;;  %v5505_v15 = vpop.f32.mrf.mxu1 }
 0x71e   : > { %v5297_v38 = vadd.f32 %v5296_v4, %v9716_v29 }
 0x71f   : > { %v5827_v63 = vmax.f32 %v5803_v6, 0.0  ;;  %v5681_v17 = vadd.f32 %v5680_v25, %v5592_v45  ;;  %v5756_v45 = vld [vmem:[%s6795_s6 + $0x159] sm:$0xff] }
 0x721   : > { %5851 = vst [vmem:[%s9263_s30 + $0x118] sm:$0xff] %v5827_v63  ;;  %v5728_v32 = vadd.f32 %v5681_v17, %v5294_v10 }
 0x723   : > { %v5780_v0 = vadd.f32 %v9795_v51, %v5728_v32 }
 0x724   : > { %v5594_v27 = vpop.f32.mrf.mxu2  ;;  %v5683_v16 = vpop.f32.mrf.mxu3 }
 0x725   : > { %v5804_v61 = vadd.f32 %v5780_v0, %v5752_v53  ;;  %v5595_v30 = vadd.f32 %v5594_v27, %v5505_v15  ;;  %v5299_v7 = vpop.f32.mrf.mxu0  ;;  %v5508_v23 = vpop.f32.mrf.mxu1 }
 0x726   : > { %v5300_v46 = vadd.f32 %v5299_v7, %v9722_v48 }
 0x727   : > { %v5828_v2 = vmax.f32 %v5804_v61, 0.0  ;;  %v5684_v55 = vadd.f32 %v5683_v16, %v5595_v30  ;;  %v5757_v61 = vld [vmem:[%s6795_s6 + $0x161] sm:$0xff] }
 0x729   : > { %5852 = vst [vmem:[%s9263_s30 + $0x120] sm:$0xff] %v5828_v2  ;;  %v5729_v26 = vadd.f32 %v5684_v55, %v5297_v38 }
 0x72b   : > { %v5781_v19 = vadd.f32 %v9795_v51, %v5729_v26 }
 0x72c   : > { %v5597_v39 = vpop.f32.mrf.mxu2  ;;  %v5686_v8 = vpop.f32.mrf.mxu3 }
 0x72d   : > { %v5805_v1 = vadd.f32 %v5781_v19, %v5753_v14  ;;  %v5598_v40 = vadd.f32 %v5597_v39, %v5508_v23  ;;  %v5302_v58 = vpop.f32.mrf.mxu0  ;;  %v5511_v34 = vpop.f32.mrf.mxu1 }
 0x72e   : > { %v5303_v11 = vadd.f32 %v5302_v58, %v9729_v56 }
 0x72f   : > { %v5829_v43 = vmax.f32 %v5805_v1, 0.0  ;;  %v5687_v47 = vadd.f32 %v5686_v8, %v5598_v40  ;;  %v5758_v8 = vld [vmem:[%s6795_s6 + $0x169] sm:$0xff] }
 0x731   : > { %5853 = vst [vmem:[%s9263_s30 + $0x128] sm:$0xff] %v5829_v43  ;;  %v5730_v29 = vadd.f32 %v5687_v47, %v5300_v46 }
 0x733   : > { %v5782_v28 = vadd.f32 %v9795_v51, %v5730_v29 }
 0x734   : > { %v5600_v35 = vpop.f32.mrf.mxu2  ;;  %v5689_v31 = vpop.f32.mrf.mxu3 }
 0x735   : > { %v5806_v18 = vadd.f32 %v5782_v28, %v5754_v22  ;;  %v5601_v9 = vadd.f32 %v5600_v35, %v5511_v34  ;;  %v5305_v5 = vpop.f32.mrf.mxu0  ;;  %v5514_v33 = vpop.f32.mrf.mxu1  ;;  %v5759_v35 = vld [vmem:[%s6795_s6 + $0x171] sm:$0xff] }
 0x736   : > { %v5306_v25 = vadd.f32 %v5305_v5, %v9736_v50 }
 0x737   : > { %v5830_v57 = vmax.f32 %v5806_v18, 0.0  ;;  %v5690_v60 = vadd.f32 %v5689_v31, %v5601_v9 }
 0x739   : > { %5854 = vst [vmem:[%s9263_s30 + $0x130] sm:$0xff] %v5830_v57  ;;  %v5731_v48 = vadd.f32 %v5690_v60, %v5303_v11 }
 0x73b   : > { %v5783_v52 = vadd.f32 %v9795_v51, %v5731_v48 }
 0x73c   : > { %v5603_v36 = vpop.f32.mrf.mxu2  ;;  %v5692_v41 = vpop.f32.mrf.mxu3 }
 0x73d   : > { %v5807_v44 = vadd.f32 %v5783_v52, %v5755_v59  ;;  %v5604_v62 = vadd.f32 %v5603_v36, %v5514_v33  ;;  %v5308_v3 = vpop.f32.mrf.mxu0  ;;  %v5517_v24 = vpop.f32.mrf.mxu1  ;;  %v5760_v52 = vld [vmem:[%s6795_s6 + $0x179] sm:$0xff] }
 0x73e   : > { %v5309_v27 = vadd.f32 %v5308_v3, %v9743_v12 }
 0x73f   : > { %v5831_v49 = vmax.f32 %v5807_v44, 0.0  ;;  %v5693_v6 = vadd.f32 %v5692_v41, %v5604_v62 }
 0x741   : > { %5855 = vst [vmem:[%s9263_s30 + $0x138] sm:$0xff] %v5831_v49  ;;  %v5732_v56 = vadd.f32 %v5693_v6, %v5306_v25 }
 0x743   : > { %v5784_v4 = vadd.f32 %v9795_v51, %v5732_v56 }
 0x744   : > { %v5606_v15 = vpop.f32.mrf.mxu2  ;;  %v5695_v63 = vpop.f32.mrf.mxu3 }
 0x745   : > { %v5808_v10 = vadd.f32 %v5784_v4, %v5756_v45  ;;  %v5607_v17 = vadd.f32 %v5606_v15, %v5517_v24  ;;  %v5311_v32 = vpop.f32.mrf.mxu0  ;;  %v5520_v53 = vpop.f32.mrf.mxu1  ;;  %v5761_v45 = vld [vmem:[%s6795_s6 + $0x181] sm:$0xff] }
 0x746   : > { %v5312_v19 = vadd.f32 %v5311_v32, %v9750_v20 }
 0x747   : > { %v5832_v0 = vmax.f32 %v5808_v10, 0.0  ;;  %v5696_v16 = vadd.f32 %v5695_v63, %v5607_v17 }
 0x749   : > { %5856 = vst [vmem:[%s9263_s30 + $0x140] sm:$0xff] %v5832_v0  ;;  %v5733_v50 = vadd.f32 %v5696_v16, %v5309_v27  ;;  %v5762_v27 = vld [vmem:[%s6795_s6 + $0x189] sm:$0xff] }
 0x74b   : > { %v5785_v30 = vadd.f32 %v9795_v51, %v5733_v50 }
 0x74c   : > { %v5609_v7 = vpop.f32.mrf.mxu2  ;;  %v5698_v23 = vpop.f32.mrf.mxu3 }
 0x74d   : > { %v5809_v2 = vadd.f32 %v5785_v30, %v5757_v61  ;;  %v5610_v38 = vadd.f32 %v5609_v7, %v5520_v53  ;;  %v5314_v55 = vpop.f32.mrf.mxu0  ;;  %v5523_v26 = vpop.f32.mrf.mxu1 }
 0x74e   : > { %v5315_v22 = vadd.f32 %v5314_v55, %v9757_v21 }
 0x74f   : > { %v5833_v14 = vmax.f32 %v5809_v2, 0.0  ;;  %v5699_v39 = vadd.f32 %v5698_v23, %v5610_v38 }
 0x751   : > { %5857 = vst [vmem:[%s9263_s30 + $0x148] sm:$0xff] %v5833_v14  ;;  %v5734_v12 = vadd.f32 %v5699_v39, %v5312_v19  ;;  %v5763_v14 = vld [vmem:[%s6795_s6 + $0x191] sm:$0xff] }
 0x753   : > { %v5786_v1 = vadd.f32 %v9795_v51, %v5734_v12 }
 0x754   : > { %v5612_v40 = vpop.f32.mrf.mxu2  ;;  %v5701_v58 = vpop.f32.mrf.mxu3 }
 0x755   : > { %v5810_v34 = vadd.f32 %v5786_v1, %v5758_v8  ;;  %v5613_v43 = vadd.f32 %v5612_v40, %v5523_v26  ;;  %v5317_v46 = vpop.f32.mrf.mxu0  ;;  %v5526_v47 = vpop.f32.mrf.mxu1 }
 0x756   : > { %v5318_v11 = vadd.f32 %v5317_v46, %v9764_v37 }
 0x757   : > { %v5834_v29 = vmax.f32 %v5810_v34, 0.0  ;;  %v5702_v28 = vadd.f32 %v5701_v58, %v5613_v43 }
 0x759   : > { %5858 = vst [vmem:[%s9263_s30 + $0x150] sm:$0xff] %v5834_v29  ;;  %v5735_v20 = vadd.f32 %v5702_v28, %v5315_v22 }
 0x75b   : > { %v5787_v31 = vadd.f32 %v9795_v51, %v5735_v20 }
 0x75c   : > { %v5615_v18 = vpop.f32.mrf.mxu2  ;;  %v5704_v9 = vpop.f32.mrf.mxu3 }
 0x75d   : > { %v5811_v5 = vadd.f32 %v5787_v31, %v5759_v35  ;;  %v5616_v33 = vadd.f32 %v5615_v18, %v5526_v47  ;;  %v5320_v48 = vpop.f32.mrf.mxu0  ;;  %v5529_v59 = vpop.f32.mrf.mxu1 }
 0x75e   : > { %v5321_v49 = vadd.f32 %v5320_v48, %v9771_v54 }
 0x75f   : > { %v5835_v57 = vmax.f32 %v5811_v5, 0.0  ;;  %v5705_v60 = vadd.f32 %v5704_v9, %v5616_v33 }
 0x761   : > { %5859 = vst [vmem:[%s9263_s30 + $0x158] sm:$0xff] %v5835_v57  ;;  %v5736_v21 = vadd.f32 %v5705_v60, %v5318_v11 }
 0x763   : > { %v5788_v36 = vadd.f32 %v9795_v51, %v5736_v21 }
 0x764   : > { %v5618_v41 = vpop.f32.mrf.mxu2  ;;  %v5707_v44 = vpop.f32.mrf.mxu3 }
 0x765   : > { %v5812_v62 = vadd.f32 %v5788_v36, %v5760_v52  ;;  %v5619_v3 = vadd.f32 %v5618_v41, %v5529_v59  ;;  %v5532_v37 = vpop.f32.mrf.mxu1  ;;  %v5323_v6 = vpop.f32.mrf.mxu0 }
 0x766   : > { %v5324_v32 = vadd.f32 %v5323_v6, %v9778_v42 }
 0x767   : > { %v5836_v24 = vmax.f32 %v5812_v62, 0.0  ;;  %v5708_v25 = vadd.f32 %v5707_v44, %v5619_v3 }
 0x769   : > { %5860 = vst [vmem:[%s9263_s30 + $0x160] sm:$0xff] %v5836_v24  ;;  %v5737_v56 = vadd.f32 %v5708_v25, %v5321_v49 }
 0x76b   : > { %v5789_v4 = vadd.f32 %v9795_v51, %v5737_v56 }
 0x76c   : > { %v5621_v15 = vpop.f32.mrf.mxu2  ;;  %v5710_v63 = vpop.f32.mrf.mxu3 }
 0x76d   : > { %v5813_v10 = vadd.f32 %v5789_v4, %v5761_v45  ;;  %v5622_v17 = vadd.f32 %v5621_v15, %v5532_v37  ;;  %v5535_v16 = vpop.f32.mrf.mxu1  ;;  %v5326_v50 = vpop.f32.mrf.mxu0 }
 0x76e   : > { %v5327_v42 = vadd.f32 %v5326_v50, %v9785_v13 }
 0x76f   : > { %v5837_v53 = vmax.f32 %v5813_v10, 0.0  ;;  %v5711_v0 = vadd.f32 %v5710_v63, %v5622_v17 }
 0x771   : > { %5861 = vst [vmem:[%s9263_s30 + $0x168] sm:$0xff] %v5837_v53  ;;  %v5738_v54 = vadd.f32 %v5711_v0, %v5324_v32 }
 0x773   : > { %v5790_v61 = vadd.f32 %v9795_v51, %v5738_v54 }
 0x774   : > { %v5624_v30 = vpop.f32.mrf.mxu2  ;;  %v5713_v7 = vpop.f32.mrf.mxu3 }
 0x775   : > { %v5814_v23 = vadd.f32 %v5790_v61, %v5762_v27  ;;  %v5625_v2 = vadd.f32 %v5624_v30, %v5535_v16 }
 0x777   : > { %v5838_v38 = vmax.f32 %v5814_v23, 0.0  ;;  %v5714_v55 = vadd.f32 %v5713_v7, %v5625_v2 }
 0x779   : > { %5862 = vst [vmem:[%s9263_s30 + $0x170] sm:$0xff] %v5838_v38  ;;  %v5739_v26 = vadd.f32 %v5714_v55, %v5327_v42 }
 0x77b   : > { %v5791_v19 = vadd.f32 %v9795_v51, %v5739_v26 }
 0x77d   : > { %v5815_v39 = vadd.f32 %v5791_v19, %v5763_v14 }
 0x77f   : > { %v5839_v12 = vmax.f32 %v5815_v39, 0.0 }
 0x781   : > { %5863 = vst [vmem:[%s9263_s30 + $0x178] sm:$0xff] %v5839_v12 }
 0x782   : > { %6462 = shalt.err (!%p6459_p8)
}
 0x783   : > { %s6509_s15 = smov 128   ;;  %s6510_s30 = smov 8  }
 0x784   : > { %6163 = dma.vmem_to_hbm [thread:$0]  (%p6579_p5), %s5878_s13, 6144, %s5880_s22, %s5865_s14, %s6509_s15, %s6509_s15, %s6510_s30  }
 0x785 PF: > { %p6175_p9 = scmp.ge.s32.totalorder %s6501_s21, 2  ;;  %s5894_s10 = sand.u32 1, %s6489_s18  }
 0x786   : > { %s5895_s16 = scalar_lea.sflag [#allocation6], %s5894_s10 }
 0x787   : > { %p6170_p10 = pnand %p6175_p9, %p6583_p6 }
 0x789   : > { %p6171_p11 = pneg %p6170_p10 }
 0x78b   : > { %6484 = dma.done.wait (%p6171_p11), %s5895_s16, 6144  }
 0x78c   : > { %6486 = vsyncadd (%p6171_p11), %s5895_s16, 4294961152  ;;  %p16_p12 = scmp.ge.s32.totalorder %s6566_s24, 4   ;;  %s10283_s18 = smov %s6493_s19 }
 0x78d   : > { %s10284_s19 = smov %s6497_s20  ;;  %s10285_s20 = smov %s6577_s27 }
 0x78e   : > { %s10286_s21 = smov %s6566_s24  ;;  %18 = sbr.rel (!%p16_p12) target bundleno = 4 (0x4), region = 84 }
 0x793   :  { %5901 = vsyncpa [#allocation5], 1 }
 0x794   :  { %5903 = vsyncpa [#allocation5 + $0x1], 1 }
 0x795   :  { %5904 = vsyncpa [#allocation6], 1 }
 0x796   :  { %5906 = vsyncpa [#allocation6 + $0x1], 1 }

</bundles_post_ra>
